<compile_context>
chip_gen: v6e
topology: v6e:2x2x1
jax: 0.10.0
libtpu: 0.0.40
codegen_flags: <defaults>
</compile_context>

<pallas_src>
import jax
import jax.numpy as jnp
from jax.experimental import pallas as pl
from jax.experimental.pallas import tpu as pltpu

EMB = 64                     # embedding_dim
NUM_CATE = 72 + 1            # num_cate + 1
NUM_CATE_PAD = 128           # table rows padded to a lane-friendly 128
VAE = 256
N_LEAF = 10                  # number of vae-encoded positions
N_CAT = 11                   # number of category ids
EMB_FEAT = N_CAT * EMB       # 704
VAE_FEAT = N_LEAF * EMB      # 640
FC1_IN = EMB_FEAT + VAE_FEAT # 1344
DIM1 = 1024
DIM2 = 256


# ------------------------------------------------------------------ kernel

def _fused_kernel(cat_ref, leaf_ref, table_ref, w_vae_ref, b_vae_ref,
                  w1e_ref, w1v_ref, b1_ref, w2_ref, b2_ref,
                  w_out_ref, b_out_ref,
                  o_ref,
                  emb_sc, vae_sc, h2_acc):
    """Grid = (batch_tiles, fc1_col_tiles); axis 1 is the reduction axis.

    cat_ref  : (Bt, 11)       int32  category ids
    leaf_ref : (Bt, 2560)     bf16   vae inputs, batch-major (resident)
    table_ref: (128, 64)      bf16   zero-padded embedding table (resident)
    w1e_ref  : (704, n1)      bf16   fc1 rows for the embedding features (tiled)
    w1v_ref  : (640, n1)      bf16   fc1 rows for the vae features (tiled)
    w2_ref   : (n1, 256)      bf16   fc2 rows matching this fc1 tile
    emb_sc   : (Bt, 704)      bf16   gathered embeddings (step 0)
    vae_sc   : (Bt, 640)      bf16   vae encoder outputs (step 0)
    h2_acc   : (Bt, 256)      f32    fc2 pre-relu accumulator
    """
    n = pl.program_id(1)

    @pl.when(n == 0)
    def _init():
        h2_acc[...] = jnp.zeros_like(h2_acc)
        emb_sc[...] = jnp.zeros_like(emb_sc)   # zero pad lanes (704 not /128)

        bt = cat_ref.shape[0]
        # ---- embedding gather: exact one-hot matmuls against the resident table
        iota = jax.lax.broadcasted_iota(jnp.int32, (bt, NUM_CATE_PAD), 1)
        for c in range(N_CAT):
            onehot = (iota == cat_ref[:, c:c + 1]).astype(jnp.bfloat16)
            emb_c = jnp.dot(onehot, table_ref[...],
                            preferred_element_type=jnp.float32)
            emb_sc[:, c * EMB:(c + 1) * EMB] = emb_c.astype(jnp.bfloat16)

        # ---- vae encoder: lane-aligned 256-wide slices of batch-major leaf
        for p in range(N_LEAF):
            v = jnp.dot(leaf_ref[:, p * VAE:(p + 1) * VAE], w_vae_ref[...],
                        preferred_element_type=jnp.float32) + b_vae_ref[...]
            vae_sc[:, p * EMB:(p + 1) * EMB] = v.astype(jnp.bfloat16)

    # ---- fc1 tile: h1 = emb @ W1_emb + vae @ W1_vae + b1 ; relu
    h1 = jnp.dot(emb_sc[...], w1e_ref[...], preferred_element_type=jnp.float32)
    h1 = h1 + jnp.dot(vae_sc[...], w1v_ref[...],
                      preferred_element_type=jnp.float32)
    h1 = jnp.maximum(h1 + b1_ref[...], 0.0)

    # ---- fc2 partial: accumulate relu(h1_tile) @ W2_rows_for_this_tile
    h2_acc[...] += jnp.dot(h1.astype(jnp.bfloat16), w2_ref[...],
                           preferred_element_type=jnp.float32)

    # ---- finalize: relu, linear_out as VPU mul + lane reduce
    @pl.when(n == pl.num_programs(1) - 1)
    def _finish():
        h2 = jnp.maximum(h2_acc[...] + b2_ref[...], 0.0)
        o_ref[...] = (jnp.sum(h2 * w_out_ref[...], axis=-1, keepdims=True)
                      + b_out_ref[...])


# ------------------------------------------------------------- pallas_call

def _pick_nt(b_pad):
    """fc1 output-column tiles: few steps on v6e/v7x (step overhead beats the
    HBM roofline of the ~3.3MB weight stream), keep 4 on bandwidth-poor v5e."""
    kind = ""
    try:
        kind = jax.devices()[0].device_kind.lower()
    except Exception:
        pass
    if ("v5 lite" in kind) or ("v5e" in kind) or ("v5lite" in kind):
        # TODO(synk): on v5e also consider pipeline_mode=pl.Buffered(3) on the
        # w1/w2 streams to fully hide the per-tile fetch behind the 128x128 MXU.
        return 4
    if b_pad <= 64:
        return 1
    if b_pad <= 512:
        return 2
    return 4


def _choose_tiling(B):
    b_pad = -(-B // 16) * 16          # bf16 packs 16 rows / vreg
    if b_pad <= 512:
        b_tile = b_pad                # single batch tile
    else:
        b_tile = 256                  # parallel batch axis (v7x megacore)
        b_pad = -(-b_pad // b_tile) * b_tile
    return b_pad, b_tile, _pick_nt(b_pad)


def _fused_call(cat_ids, leaf, params, *, nt, b_tile):
    b_pad = cat_ids.shape[0]
    bt_grid = b_pad // b_tile
    n1 = DIM1 // nt

    flops = 2 * b_pad * (N_CAT * NUM_CATE_PAD * EMB + N_LEAF * VAE * EMB
                         + FC1_IN * DIM1 + DIM1 * DIM2 + DIM2)
    bytes_accessed = (
        cat_ids.size * 4 + leaf.size * 2 + b_pad * 4
        + (NUM_CATE_PAD * EMB + VAE * EMB + FC1_IN * DIM1 + DIM1 * DIM2) * 2 * bt_grid
        + (EMB + DIM1 + DIM2 + DIM2 + 1) * 4)

    grid_spec = pltpu.PrefetchScalarGridSpec(
        num_scalar_prefetch=0,
        grid=(bt_grid, nt),
        in_specs=[
            pl.BlockSpec((b_tile, N_CAT), lambda b, n: (b, 0)),           # cat ids
            pl.BlockSpec((b_tile, N_LEAF * VAE), lambda b, n: (b, 0)),    # leaf
            pl.BlockSpec((NUM_CATE_PAD, EMB), lambda b, n: (0, 0)),       # emb table
            pl.BlockSpec((VAE, EMB), lambda b, n: (0, 0)),                # w_vae
            pl.BlockSpec((1, EMB), lambda b, n: (0, 0)),                  # b_vae
            pl.BlockSpec((EMB_FEAT, n1), lambda b, n: (0, n)),            # w1 (emb rows)
            pl.BlockSpec((VAE_FEAT, n1), lambda b, n: (0, n)),            # w1 (vae rows)
            pl.BlockSpec((1, n1), lambda b, n: (0, n)),                   # b1 tile
            pl.BlockSpec((n1, DIM2), lambda b, n: (n, 0)),                # w2 tile
            pl.BlockSpec((1, DIM2), lambda b, n: (0, 0)),                 # b2
            pl.BlockSpec((1, DIM2), lambda b, n: (0, 0)),                 # w_out row
            pl.BlockSpec((1, 1), lambda b, n: (0, 0)),                    # b_out
        ],
        out_specs=pl.BlockSpec((b_tile, 1), lambda b, n: (b, 0)),
        scratch_shapes=[
            pltpu.VMEM((b_tile, EMB_FEAT), jnp.bfloat16),   # gathered embeddings
            pltpu.VMEM((b_tile, VAE_FEAT), jnp.bfloat16),   # vae encoder outputs
            pltpu.VMEM((b_tile, DIM2), jnp.float32),        # fc2 accumulator
        ],
    )

    # TODO(synk): at very large batch on v7x (64MiB VMEM), budget VMEM by
    # shrinking b_tile / using pl.Buffered(1) on the constant-index blocks.
    return pl.pallas_call(
        _fused_kernel,
        out_shape=jax.ShapeDtypeStruct((b_pad, 1), jnp.float32),
        grid_spec=grid_spec,
        compiler_params=pltpu.CompilerParams(
            dimension_semantics=("parallel", "arbitrary")),
        cost_estimate=pl.CostEstimate(
            flops=flops, transcendentals=0, bytes_accessed=bytes_accessed),
    )(cat_ids, leaf,
      params["emb_table"], params["w_vae"], params["b_vae"],
      params["w1_emb"], params["w1_vae"], params["b_fc1"],
      params["w_fc2"], params["b_fc2"],
      params["w_out"], params["b_out"])


# ------------------------------------------------------------- full forward

def init_params(key):
    ks = jax.random.split(key, 9)
    s = 0.02
    emb_table = jax.random.normal(ks[0], (NUM_CATE, EMB), jnp.float32) * s
    emb_table = jnp.pad(emb_table, ((0, NUM_CATE_PAD - NUM_CATE), (0, 0)))
    w_vae = jax.random.normal(ks[1], (VAE, EMB), jnp.float32) * s      # vaeencoder.weight.T
    b_vae = jax.random.normal(ks[2], (1, EMB), jnp.float32) * s
    w_fc1 = jax.random.normal(ks[3], (FC1_IN, DIM1), jnp.float32) * s  # fc1.weight.T
    b_fc1 = jax.random.normal(ks[4], (1, DIM1), jnp.float32) * s
    w_fc2 = jax.random.normal(ks[5], (DIM1, DIM2), jnp.float32) * s    # fc2.weight.T
    b_fc2 = jax.random.normal(ks[6], (1, DIM2), jnp.float32) * s
    w_out = jax.random.normal(ks[7], (1, DIM2), jnp.float32) * s       # linear_out.weight row
    b_out = jax.random.normal(ks[8], (1, 1), jnp.float32) * s
    return {
        "emb_table": emb_table.astype(jnp.bfloat16),        # (128, 64), zero-padded
        "w_vae": w_vae.astype(jnp.bfloat16),
        "b_vae": b_vae,
        "w1_emb": w_fc1[:EMB_FEAT].astype(jnp.bfloat16),    # (704, 1024)
        "w1_vae": w_fc1[EMB_FEAT:].astype(jnp.bfloat16),    # (640, 1024)
        "b_fc1": b_fc1,
        "w_fc2": w_fc2.astype(jnp.bfloat16),
        "b_fc2": b_fc2,
        "w_out": w_out,                                     # (1, 256) f32 row
        "b_out": b_out,
    }


@jax.jit
def user_preference_estimator_forward(params, x):
    B = x.shape[0]
    b_pad, b_tile, nt = _choose_tiling(B)

    # Minimal XLA-side glue: split, dtype, pad.  (Gather + "concat" + vae
    # encoder all live inside the kernel; no leaf transpose.)
    cat_ids = x[:, :N_CAT].astype(jnp.int32)                 # (B, 11)
    leaf = x[:, N_CAT:].astype(jnp.bfloat16)                 # (B, 2560) batch-major

    if b_pad != B:
        pad = b_pad - B
        cat_ids = jnp.pad(cat_ids, ((0, pad), (0, 0)))
        leaf = jnp.pad(leaf, ((0, pad), (0, 0)))

    y = _fused_call(cat_ids, leaf, params, nt=nt, b_tile=b_tile)   # (b_pad, 1)
    return y[:B]


# ----------------------------------------------------------- pure-JAX check

def _reference_forward(params, x):
    B = x.shape[0]
    cat = x[:, :N_CAT].astype(jnp.int32)
    table = params["emb_table"].astype(jnp.float32)
    emb = table[cat].reshape(B, EMB_FEAT)
    leaf = x[:, N_CAT:].astype(jnp.bfloat16).astype(jnp.float32).reshape(B, N_LEAF, VAE)
    vae = leaf @ params["w_vae"].astype(jnp.float32) + params["b_vae"]
    vae = vae.reshape(B, VAE_FEAT)
    h = jnp.concatenate([emb, vae], axis=1)
    w1 = jnp.concatenate([params["w1_emb"], params["w1_vae"]],
                         axis=0).astype(jnp.float32)
    h1 = jnp.maximum(h @ w1 + params["b_fc1"], 0.0)
    h2 = jnp.maximum(h1 @ params["w_fc2"].astype(jnp.float32) + params["b_fc2"], 0.0)
    return h2 @ params["w_out"].T + params["b_out"]


if __name__ == "__main__":
    key = jax.random.PRNGKey(0)
    k_param, k_cat, k_leaf = jax.random.split(key, 3)

    params = init_params(k_param)

    B = 4
    # first 11 columns: integer-valued category ids stored as floats (as in torch)
    cat_part = jax.random.randint(k_cat, (B, N_CAT), 0, NUM_CATE).astype(jnp.float32)
    leaf_part = jax.random.normal(k_leaf, (B, N_LEAF * VAE), jnp.float32)
    x = jnp.concatenate([cat_part, leaf_part], axis=1)                 # (B, 2571)

    y = user_preference_estimator_forward(params, x)
    jax.block_until_ready(y)
    assert y.shape == (B, 1) and y.dtype == jnp.float32

    y_ref = _reference_forward(params, x)
    assert jnp.allclose(y, y_ref, atol=1e-2, rtol=5e-2), (y, y_ref)
    print("KERNEL_OK")
</pallas_src>

<mosaic_0001>
module attributes {stable_mosaic.version = 11 : i64} {
  func.func @_fused_kernel(%arg0: i32, %arg1: i32, %arg2: memref<16x11xi32, #tpu.memory_space<vmem>>, %arg3: memref<16x2560xbf16, #tpu.memory_space<vmem>>, %arg4: memref<128x64xbf16, #tpu.memory_space<vmem>>, %arg5: memref<256x64xbf16, #tpu.memory_space<vmem>>, %arg6: memref<1x64xf32, #tpu.memory_space<vmem>>, %arg7: memref<704x1024xbf16, #tpu.memory_space<vmem>>, %arg8: memref<640x1024xbf16, #tpu.memory_space<vmem>>, %arg9: memref<1x1024xf32, #tpu.memory_space<vmem>>, %arg10: memref<1024x256xbf16, #tpu.memory_space<vmem>>, %arg11: memref<1x256xf32, #tpu.memory_space<vmem>>, %arg12: memref<1x256xf32, #tpu.memory_space<vmem>>, %arg13: memref<1x1xf32, #tpu.memory_space<vmem>>, %arg14: memref<16x1xf32, #tpu.memory_space<vmem>>, %arg15: memref<16x704xbf16, #tpu.memory_space<vmem>>, %arg16: memref<16x640xbf16, #tpu.memory_space<vmem>>, %arg17: memref<16x256xf32, #tpu.memory_space<vmem>>) attributes {dimension_semantics = [#tpu.dimension_semantics<parallel>, #tpu.dimension_semantics<arbitrary>], iteration_bounds = array<i64: 1, 1>, scalar_prefetch = 0 : i64, scratch_operands = 3 : i64, tpu.core_type = #tpu.core_type<tc>, window_params = [{transform_indices = @transform_0, window_bounds = array<i64: 16, 11>}, {transform_indices = @transform_1, window_bounds = array<i64: 16, 2560>}, {pipeline_mode = #tpu.pipeline_mode<synchronous>, transform_indices = @transform_2, window_bounds = array<i64: 128, 64>}, {pipeline_mode = #tpu.pipeline_mode<synchronous>, transform_indices = @transform_3, window_bounds = array<i64: 256, 64>}, {pipeline_mode = #tpu.pipeline_mode<synchronous>, transform_indices = @transform_4, window_bounds = array<i64: 1, 64>}, {transform_indices = @transform_5, window_bounds = array<i64: 704, 1024>}, {transform_indices = @transform_6, window_bounds = array<i64: 640, 1024>}, {transform_indices = @transform_7, window_bounds = array<i64: 1, 1024>}, {transform_indices = @transform_8, window_bounds = array<i64: 1024, 256>}, {pipeline_mode = #tpu.pipeline_mode<synchronous>, transform_indices = @transform_9, window_bounds = array<i64: 1, 256>}, {pipeline_mode = #tpu.pipeline_mode<synchronous>, transform_indices = @transform_10, window_bounds = array<i64: 1, 256>}, {pipeline_mode = #tpu.pipeline_mode<synchronous>, transform_indices = @transform_11, window_bounds = array<i64: 1, 1>}, {transform_indices = @transform_12, window_bounds = array<i64: 16, 1>}]} {
    %c0_i32 = arith.constant 0 : i32
    %0 = arith.cmpi eq, %arg1, %c0_i32 : i32
    %1 = arith.extui %0 : i1 to i32
    %c0_i32_0 = arith.constant 0 : i32
    %2 = arith.cmpi ne, %1, %c0_i32_0 : i32
    scf.if %2 {
      %cst_21 = arith.constant 0.000000e+00 : f32
      %24 = vector.broadcast %cst_21 : f32 to vector<16x256xf32>
      %c0_22 = arith.constant 0 : index
      %c0_23 = arith.constant 0 : index
      %25 = vector.load %arg17[%c0_22, %c0_23] : memref<16x256xf32, #tpu.memory_space<vmem>>, vector<16x256xf32>
      tpu.vector_store %arg17[%c0_22, %c0_23], %24 {strides = array<i32>} : memref<16x256xf32, #tpu.memory_space<vmem>>, vector<16x256xf32>,
      %cst_24 = arith.constant 0.000000e+00 : bf16
      %26 = vector.broadcast %cst_24 : bf16 to vector<16x704xbf16>
      %c0_25 = arith.constant 0 : index
      %c0_26 = arith.constant 0 : index
      %27 = vector.load %arg15[%c0_25, %c0_26] : memref<16x704xbf16, #tpu.memory_space<vmem>>, vector<16x704xbf16>
      tpu.vector_store %arg15[%c0_25, %c0_26], %26 {strides = array<i32>} : memref<16x704xbf16, #tpu.memory_space<vmem>>, vector<16x704xbf16>,
      %28 = tpu.iota {dimensions = array<i32: 1>} : vector<16x128xi32>
      %c0_27 = arith.constant 0 : index
      %c0_28 = arith.constant 0 : index
      %29 = vector.load %arg2[%c0_27, %c0_28] : memref<16x11xi32, #tpu.memory_space<vmem>>, vector<16x1xi32>
      %30 = vector.broadcast %29 : vector<16x1xi32> to vector<16x128xi32>
      %31 = arith.cmpi eq, %28, %30 : vector<16x128xi32>
      %32 = arith.extui %31 : vector<16x128xi1> to vector<16x128xi32>
      %33 = arith.sitofp %32 : vector<16x128xi32> to vector<16x128xf32>
      %34 = arith.truncf %33 : vector<16x128xf32> to vector<16x128xbf16>
      %c0_29 = arith.constant 0 : index
      %c0_30 = arith.constant 0 : index
      %35 = vector.load %arg4[%c0_29, %c0_30] : memref<128x64xbf16, #tpu.memory_space<vmem>>, vector<128x64xbf16>
      %cst_31 = arith.constant dense<0.000000e+00> : vector<16x64xf32>
      %36 = tpu.matmul %34, %35, %cst_31 {dimension_numbers = #tpu.dot_dimension_numbers<[1], [0], [0], [1], [0, 0, 1, 1], [], []>} : vector<16x128xbf16>, vector<128x64xbf16>, vector<16x64xf32> -> vector<16x64xf32>
      %37 = arith.truncf %36 : vector<16x64xf32> to vector<16x64xbf16>
      %c0_32 = arith.constant 0 : index
      %c0_33 = arith.constant 0 : index
      %38 = vector.load %arg15[%c0_32, %c0_33] : memref<16x704xbf16, #tpu.memory_space<vmem>>, vector<16x64xbf16>
      tpu.vector_store %arg15[%c0_32, %c0_33], %37 {strides = array<i32>} : memref<16x704xbf16, #tpu.memory_space<vmem>>, vector<16x64xbf16>,
      %c0_34 = arith.constant 0 : index
      %c1 = arith.constant 1 : index
      %39 = vector.load %arg2[%c0_34, %c1] : memref<16x11xi32, #tpu.memory_space<vmem>>, vector<16x1xi32>
      %40 = vector.broadcast %39 : vector<16x1xi32> to vector<16x128xi32>
      %41 = arith.cmpi eq, %28, %40 : vector<16x128xi32>
      %42 = arith.extui %41 : vector<16x128xi1> to vector<16x128xi32>
      %43 = arith.sitofp %42 : vector<16x128xi32> to vector<16x128xf32>
      %44 = arith.truncf %43 : vector<16x128xf32> to vector<16x128xbf16>
      %c0_35 = arith.constant 0 : index
      %c0_36 = arith.constant 0 : index
      %45 = vector.load %arg4[%c0_35, %c0_36] : memref<128x64xbf16, #tpu.memory_space<vmem>>, vector<128x64xbf16>
      %cst_37 = arith.constant dense<0.000000e+00> : vector<16x64xf32>
      %46 = tpu.matmul %44, %45, %cst_37 {dimension_numbers = #tpu.dot_dimension_numbers<[1], [0], [0], [1], [0, 0, 1, 1], [], []>} : vector<16x128xbf16>, vector<128x64xbf16>, vector<16x64xf32> -> vector<16x64xf32>
      %47 = arith.truncf %46 : vector<16x64xf32> to vector<16x64xbf16>
      %c0_38 = arith.constant 0 : index
      %c64 = arith.constant 64 : index
      %48 = vector.load %arg15[%c0_38, %c64] : memref<16x704xbf16, #tpu.memory_space<vmem>>, vector<16x64xbf16>
      tpu.vector_store %arg15[%c0_38, %c64], %47 {strides = array<i32>} : memref<16x704xbf16, #tpu.memory_space<vmem>>, vector<16x64xbf16>,
      %c0_39 = arith.constant 0 : index
      %c2 = arith.constant 2 : index
      %49 = vector.load %arg2[%c0_39, %c2] : memref<16x11xi32, #tpu.memory_space<vmem>>, vector<16x1xi32>
      %50 = vector.broadcast %49 : vector<16x1xi32> to vector<16x128xi32>
      %51 = arith.cmpi eq, %28, %50 : vector<16x128xi32>
      %52 = arith.extui %51 : vector<16x128xi1> to vector<16x128xi32>
      %53 = arith.sitofp %52 : vector<16x128xi32> to vector<16x128xf32>
      %54 = arith.truncf %53 : vector<16x128xf32> to vector<16x128xbf16>
      %c0_40 = arith.constant 0 : index
      %c0_41 = arith.constant 0 : index
      %55 = vector.load %arg4[%c0_40, %c0_41] : memref<128x64xbf16, #tpu.memory_space<vmem>>, vector<128x64xbf16>
      %cst_42 = arith.constant dense<0.000000e+00> : vector<16x64xf32>
      %56 = tpu.matmul %54, %55, %cst_42 {dimension_numbers = #tpu.dot_dimension_numbers<[1], [0], [0], [1], [0, 0, 1, 1], [], []>} : vector<16x128xbf16>, vector<128x64xbf16>, vector<16x64xf32> -> vector<16x64xf32>
      %57 = arith.truncf %56 : vector<16x64xf32> to vector<16x64xbf16>
      %c0_43 = arith.constant 0 : index
      %c128 = arith.constant 128 : index
      %58 = vector.load %arg15[%c0_43, %c128] : memref<16x704xbf16, #tpu.memory_space<vmem>>, vector<16x64xbf16>
      tpu.vector_store %arg15[%c0_43, %c128], %57 {strides = array<i32>} : memref<16x704xbf16, #tpu.memory_space<vmem>>, vector<16x64xbf16>,
      %c0_44 = arith.constant 0 : index
      %c3 = arith.constant 3 : index
      %59 = vector.load %arg2[%c0_44, %c3] : memref<16x11xi32, #tpu.memory_space<vmem>>, vector<16x1xi32>
      %60 = vector.broadcast %59 : vector<16x1xi32> to vector<16x128xi32>
      %61 = arith.cmpi eq, %28, %60 : vector<16x128xi32>
      %62 = arith.extui %61 : vector<16x128xi1> to vector<16x128xi32>
      %63 = arith.sitofp %62 : vector<16x128xi32> to vector<16x128xf32>
      %64 = arith.truncf %63 : vector<16x128xf32> to vector<16x128xbf16>
      %c0_45 = arith.constant 0 : index
      %c0_46 = arith.constant 0 : index
      %65 = vector.load %arg4[%c0_45, %c0_46] : memref<128x64xbf16, #tpu.memory_space<vmem>>, vector<128x64xbf16>
      %cst_47 = arith.constant dense<0.000000e+00> : vector<16x64xf32>
      %66 = tpu.matmul %64, %65, %cst_47 {dimension_numbers = #tpu.dot_dimension_numbers<[1], [0], [0], [1], [0, 0, 1, 1], [], []>} : vector<16x128xbf16>, vector<128x64xbf16>, vector<16x64xf32> -> vector<16x64xf32>
      %67 = arith.truncf %66 : vector<16x64xf32> to vector<16x64xbf16>
      %c0_48 = arith.constant 0 : index
      %c192 = arith.constant 192 : index
      %68 = vector.load %arg15[%c0_48, %c192] : memref<16x704xbf16, #tpu.memory_space<vmem>>, vector<16x64xbf16>
      tpu.vector_store %arg15[%c0_48, %c192], %67 {strides = array<i32>} : memref<16x704xbf16, #tpu.memory_space<vmem>>, vector<16x64xbf16>,
      %c0_49 = arith.constant 0 : index
      %c4 = arith.constant 4 : index
      %69 = vector.load %arg2[%c0_49, %c4] : memref<16x11xi32, #tpu.memory_space<vmem>>, vector<16x1xi32>
      %70 = vector.broadcast %69 : vector<16x1xi32> to vector<16x128xi32>
      %71 = arith.cmpi eq, %28, %70 : vector<16x128xi32>
      %72 = arith.extui %71 : vector<16x128xi1> to vector<16x128xi32>
      %73 = arith.sitofp %72 : vector<16x128xi32> to vector<16x128xf32>
      %74 = arith.truncf %73 : vector<16x128xf32> to vector<16x128xbf16>
      %c0_50 = arith.constant 0 : index
      %c0_51 = arith.constant 0 : index
      %75 = vector.load %arg4[%c0_50, %c0_51] : memref<128x64xbf16, #tpu.memory_space<vmem>>, vector<128x64xbf16>
      %cst_52 = arith.constant dense<0.000000e+00> : vector<16x64xf32>
      %76 = tpu.matmul %74, %75, %cst_52 {dimension_numbers = #tpu.dot_dimension_numbers<[1], [0], [0], [1], [0, 0, 1, 1], [], []>} : vector<16x128xbf16>, vector<128x64xbf16>, vector<16x64xf32> -> vector<16x64xf32>
      %77 = arith.truncf %76 : vector<16x64xf32> to vector<16x64xbf16>
      %c0_53 = arith.constant 0 : index
      %c256 = arith.constant 256 : index
      %78 = vector.load %arg15[%c0_53, %c256] : memref<16x704xbf16, #tpu.memory_space<vmem>>, vector<16x64xbf16>
      tpu.vector_store %arg15[%c0_53, %c256], %77 {strides = array<i32>} : memref<16x704xbf16, #tpu.memory_space<vmem>>, vector<16x64xbf16>,
      %c0_54 = arith.constant 0 : index
      %c5 = arith.constant 5 : index
      %79 = vector.load %arg2[%c0_54, %c5] : memref<16x11xi32, #tpu.memory_space<vmem>>, vector<16x1xi32>
      %80 = vector.broadcast %79 : vector<16x1xi32> to vector<16x128xi32>
      %81 = arith.cmpi eq, %28, %80 : vector<16x128xi32>
      %82 = arith.extui %81 : vector<16x128xi1> to vector<16x128xi32>
      %83 = arith.sitofp %82 : vector<16x128xi32> to vector<16x128xf32>
      %84 = arith.truncf %83 : vector<16x128xf32> to vector<16x128xbf16>
      %c0_55 = arith.constant 0 : index
      %c0_56 = arith.constant 0 : index
      %85 = vector.load %arg4[%c0_55, %c0_56] : memref<128x64xbf16, #tpu.memory_space<vmem>>, vector<128x64xbf16>
      %cst_57 = arith.constant dense<0.000000e+00> : vector<16x64xf32>
      %86 = tpu.matmul %84, %85, %cst_57 {dimension_numbers = #tpu.dot_dimension_numbers<[1], [0], [0], [1], [0, 0, 1, 1], [], []>} : vector<16x128xbf16>, vector<128x64xbf16>, vector<16x64xf32> -> vector<16x64xf32>
      %87 = arith.truncf %86 : vector<16x64xf32> to vector<16x64xbf16>
      %c0_58 = arith.constant 0 : index
      %c320 = arith.constant 320 : index
      %88 = vector.load %arg15[%c0_58, %c320] : memref<16x704xbf16, #tpu.memory_space<vmem>>, vector<16x64xbf16>
      tpu.vector_store %arg15[%c0_58, %c320], %87 {strides = array<i32>} : memref<16x704xbf16, #tpu.memory_space<vmem>>, vector<16x64xbf16>,
      %c0_59 = arith.constant 0 : index
      %c6 = arith.constant 6 : index
      %89 = vector.load %arg2[%c0_59, %c6] : memref<16x11xi32, #tpu.memory_space<vmem>>, vector<16x1xi32>
      %90 = vector.broadcast %89 : vector<16x1xi32> to vector<16x128xi32>
      %91 = arith.cmpi eq, %28, %90 : vector<16x128xi32>
      %92 = arith.extui %91 : vector<16x128xi1> to vector<16x128xi32>
      %93 = arith.sitofp %92 : vector<16x128xi32> to vector<16x128xf32>
      %94 = arith.truncf %93 : vector<16x128xf32> to vector<16x128xbf16>
      %c0_60 = arith.constant 0 : index
      %c0_61 = arith.constant 0 : index
      %95 = vector.load %arg4[%c0_60, %c0_61] : memref<128x64xbf16, #tpu.memory_space<vmem>>, vector<128x64xbf16>
      %cst_62 = arith.constant dense<0.000000e+00> : vector<16x64xf32>
      %96 = tpu.matmul %94, %95, %cst_62 {dimension_numbers = #tpu.dot_dimension_numbers<[1], [0], [0], [1], [0, 0, 1, 1], [], []>} : vector<16x128xbf16>, vector<128x64xbf16>, vector<16x64xf32> -> vector<16x64xf32>
      %97 = arith.truncf %96 : vector<16x64xf32> to vector<16x64xbf16>
      %c0_63 = arith.constant 0 : index
      %c384 = arith.constant 384 : index
      %98 = vector.load %arg15[%c0_63, %c384] : memref<16x704xbf16, #tpu.memory_space<vmem>>, vector<16x64xbf16>
      tpu.vector_store %arg15[%c0_63, %c384], %97 {strides = array<i32>} : memref<16x704xbf16, #tpu.memory_space<vmem>>, vector<16x64xbf16>,
      %c0_64 = arith.constant 0 : index
      %c7 = arith.constant 7 : index
      %99 = vector.load %arg2[%c0_64, %c7] : memref<16x11xi32, #tpu.memory_space<vmem>>, vector<16x1xi32>
      %100 = vector.broadcast %99 : vector<16x1xi32> to vector<16x128xi32>
      %101 = arith.cmpi eq, %28, %100 : vector<16x128xi32>
      %102 = arith.extui %101 : vector<16x128xi1> to vector<16x128xi32>
      %103 = arith.sitofp %102 : vector<16x128xi32> to vector<16x128xf32>
      %104 = arith.truncf %103 : vector<16x128xf32> to vector<16x128xbf16>
      %c0_65 = arith.constant 0 : index
      %c0_66 = arith.constant 0 : index
      %105 = vector.load %arg4[%c0_65, %c0_66] : memref<128x64xbf16, #tpu.memory_space<vmem>>, vector<128x64xbf16>
      %cst_67 = arith.constant dense<0.000000e+00> : vector<16x64xf32>
      %106 = tpu.matmul %104, %105, %cst_67 {dimension_numbers = #tpu.dot_dimension_numbers<[1], [0], [0], [1], [0, 0, 1, 1], [], []>} : vector<16x128xbf16>, vector<128x64xbf16>, vector<16x64xf32> -> vector<16x64xf32>
      %107 = arith.truncf %106 : vector<16x64xf32> to vector<16x64xbf16>
      %c0_68 = arith.constant 0 : index
      %c448 = arith.constant 448 : index
      %108 = vector.load %arg15[%c0_68, %c448] : memref<16x704xbf16, #tpu.memory_space<vmem>>, vector<16x64xbf16>
      tpu.vector_store %arg15[%c0_68, %c448], %107 {strides = array<i32>} : memref<16x704xbf16, #tpu.memory_space<vmem>>, vector<16x64xbf16>,
      %c0_69 = arith.constant 0 : index
      %c8 = arith.constant 8 : index
      %109 = vector.load %arg2[%c0_69, %c8] : memref<16x11xi32, #tpu.memory_space<vmem>>, vector<16x1xi32>
      %110 = vector.broadcast %109 : vector<16x1xi32> to vector<16x128xi32>
      %111 = arith.cmpi eq, %28, %110 : vector<16x128xi32>
      %112 = arith.extui %111 : vector<16x128xi1> to vector<16x128xi32>
      %113 = arith.sitofp %112 : vector<16x128xi32> to vector<16x128xf32>
      %114 = arith.truncf %113 : vector<16x128xf32> to vector<16x128xbf16>
      %c0_70 = arith.constant 0 : index
      %c0_71 = arith.constant 0 : index
      %115 = vector.load %arg4[%c0_70, %c0_71] : memref<128x64xbf16, #tpu.memory_space<vmem>>, vector<128x64xbf16>
      %cst_72 = arith.constant dense<0.000000e+00> : vector<16x64xf32>
      %116 = tpu.matmul %114, %115, %cst_72 {dimension_numbers = #tpu.dot_dimension_numbers<[1], [0], [0], [1], [0, 0, 1, 1], [], []>} : vector<16x128xbf16>, vector<128x64xbf16>, vector<16x64xf32> -> vector<16x64xf32>
      %117 = arith.truncf %116 : vector<16x64xf32> to vector<16x64xbf16>
      %c0_73 = arith.constant 0 : index
      %c512 = arith.constant 512 : index
      %118 = vector.load %arg15[%c0_73, %c512] : memref<16x704xbf16, #tpu.memory_space<vmem>>, vector<16x64xbf16>
      tpu.vector_store %arg15[%c0_73, %c512], %117 {strides = array<i32>} : memref<16x704xbf16, #tpu.memory_space<vmem>>, vector<16x64xbf16>,
      %c0_74 = arith.constant 0 : index
      %c9 = arith.constant 9 : index
      %119 = vector.load %arg2[%c0_74, %c9] : memref<16x11xi32, #tpu.memory_space<vmem>>, vector<16x1xi32>
      %120 = vector.broadcast %119 : vector<16x1xi32> to vector<16x128xi32>
      %121 = arith.cmpi eq, %28, %120 : vector<16x128xi32>
      %122 = arith.extui %121 : vector<16x128xi1> to vector<16x128xi32>
      %123 = arith.sitofp %122 : vector<16x128xi32> to vector<16x128xf32>
      %124 = arith.truncf %123 : vector<16x128xf32> to vector<16x128xbf16>
      %c0_75 = arith.constant 0 : index
      %c0_76 = arith.constant 0 : index
      %125 = vector.load %arg4[%c0_75, %c0_76] : memref<128x64xbf16, #tpu.memory_space<vmem>>, vector<128x64xbf16>
      %cst_77 = arith.constant dense<0.000000e+00> : vector<16x64xf32>
      %126 = tpu.matmul %124, %125, %cst_77 {dimension_numbers = #tpu.dot_dimension_numbers<[1], [0], [0], [1], [0, 0, 1, 1], [], []>} : vector<16x128xbf16>, vector<128x64xbf16>, vector<16x64xf32> -> vector<16x64xf32>
      %127 = arith.truncf %126 : vector<16x64xf32> to vector<16x64xbf16>
      %c0_78 = arith.constant 0 : index
      %c576 = arith.constant 576 : index
      %128 = vector.load %arg15[%c0_78, %c576] : memref<16x704xbf16, #tpu.memory_space<vmem>>, vector<16x64xbf16>
      tpu.vector_store %arg15[%c0_78, %c576], %127 {strides = array<i32>} : memref<16x704xbf16, #tpu.memory_space<vmem>>, vector<16x64xbf16>,
      %c0_79 = arith.constant 0 : index
      %c10 = arith.constant 10 : index
      %129 = vector.load %arg2[%c0_79, %c10] : memref<16x11xi32, #tpu.memory_space<vmem>>, vector<16x1xi32>
      %130 = vector.broadcast %129 : vector<16x1xi32> to vector<16x128xi32>
      %131 = arith.cmpi eq, %28, %130 : vector<16x128xi32>
      %132 = arith.extui %131 : vector<16x128xi1> to vector<16x128xi32>
      %133 = arith.sitofp %132 : vector<16x128xi32> to vector<16x128xf32>
      %134 = arith.truncf %133 : vector<16x128xf32> to vector<16x128xbf16>
      %c0_80 = arith.constant 0 : index
      %c0_81 = arith.constant 0 : index
      %135 = vector.load %arg4[%c0_80, %c0_81] : memref<128x64xbf16, #tpu.memory_space<vmem>>, vector<128x64xbf16>
      %cst_82 = arith.constant dense<0.000000e+00> : vector<16x64xf32>
      %136 = tpu.matmul %134, %135, %cst_82 {dimension_numbers = #tpu.dot_dimension_numbers<[1], [0], [0], [1], [0, 0, 1, 1], [], []>} : vector<16x128xbf16>, vector<128x64xbf16>, vector<16x64xf32> -> vector<16x64xf32>
      %137 = arith.truncf %136 : vector<16x64xf32> to vector<16x64xbf16>
      %c0_83 = arith.constant 0 : index
      %c640 = arith.constant 640 : index
      %138 = vector.load %arg15[%c0_83, %c640] : memref<16x704xbf16, #tpu.memory_space<vmem>>, vector<16x64xbf16>
      tpu.vector_store %arg15[%c0_83, %c640], %137 {strides = array<i32>} : memref<16x704xbf16, #tpu.memory_space<vmem>>, vector<16x64xbf16>,
      %c0_84 = arith.constant 0 : index
      %c0_85 = arith.constant 0 : index
      %139 = vector.load %arg3[%c0_84, %c0_85] : memref<16x2560xbf16, #tpu.memory_space<vmem>>, vector<16x256xbf16>
      %c0_86 = arith.constant 0 : index
      %c0_87 = arith.constant 0 : index
      %140 = vector.load %arg5[%c0_86, %c0_87] : memref<256x64xbf16, #tpu.memory_space<vmem>>, vector<256x64xbf16>
      %cst_88 = arith.constant dense<0.000000e+00> : vector<16x64xf32>
      %141 = tpu.matmul %139, %140, %cst_88 {dimension_numbers = #tpu.dot_dimension_numbers<[1], [0], [0], [1], [0, 0, 1, 1], [], []>} : vector<16x256xbf16>, vector<256x64xbf16>, vector<16x64xf32> -> vector<16x64xf32>
      %c0_89 = arith.constant 0 : index
      %c0_90 = arith.constant 0 : index
      %142 = vector.load %arg6[%c0_89, %c0_90] : memref<1x64xf32, #tpu.memory_space<vmem>>, vector<1x64xf32>
      %143 = vector.broadcast %142 : vector<1x64xf32> to vector<16x64xf32>
      %144 = arith.addf %141, %143 : vector<16x64xf32>
      %145 = arith.truncf %144 : vector<16x64xf32> to vector<16x64xbf16>
      %c0_91 = arith.constant 0 : index
      %c0_92 = arith.constant 0 : index
      %146 = vector.load %arg16[%c0_91, %c0_92] : memref<16x640xbf16, #tpu.memory_space<vmem>>, vector<16x64xbf16>
      tpu.vector_store %arg16[%c0_91, %c0_92], %145 {strides = array<i32>} : memref<16x640xbf16, #tpu.memory_space<vmem>>, vector<16x64xbf16>,
      %c0_93 = arith.constant 0 : index
      %c256_94 = arith.constant 256 : index
      %147 = vector.load %arg3[%c0_93, %c256_94] : memref<16x2560xbf16, #tpu.memory_space<vmem>>, vector<16x256xbf16>
      %c0_95 = arith.constant 0 : index
      %c0_96 = arith.constant 0 : index
      %148 = vector.load %arg5[%c0_95, %c0_96] : memref<256x64xbf16, #tpu.memory_space<vmem>>, vector<256x64xbf16>
      %cst_97 = arith.constant dense<0.000000e+00> : vector<16x64xf32>
      %149 = tpu.matmul %147, %148, %cst_97 {dimension_numbers = #tpu.dot_dimension_numbers<[1], [0], [0], [1], [0, 0, 1, 1], [], []>} : vector<16x256xbf16>, vector<256x64xbf16>, vector<16x64xf32> -> vector<16x64xf32>
      %c0_98 = arith.constant 0 : index
      %c0_99 = arith.constant 0 : index
      %150 = vector.load %arg6[%c0_98, %c0_99] : memref<1x64xf32, #tpu.memory_space<vmem>>, vector<1x64xf32>
      %151 = vector.broadcast %150 : vector<1x64xf32> to vector<16x64xf32>
      %152 = arith.addf %149, %151 : vector<16x64xf32>
      %153 = arith.truncf %152 : vector<16x64xf32> to vector<16x64xbf16>
      %c0_100 = arith.constant 0 : index
      %c64_101 = arith.constant 64 : index
      %154 = vector.load %arg16[%c0_100, %c64_101] : memref<16x640xbf16, #tpu.memory_space<vmem>>, vector<16x64xbf16>
      tpu.vector_store %arg16[%c0_100, %c64_101], %153 {strides = array<i32>} : memref<16x640xbf16, #tpu.memory_space<vmem>>, vector<16x64xbf16>,
      %c0_102 = arith.constant 0 : index
      %c512_103 = arith.constant 512 : index
      %155 = vector.load %arg3[%c0_102, %c512_103] : memref<16x2560xbf16, #tpu.memory_space<vmem>>, vector<16x256xbf16>
      %c0_104 = arith.constant 0 : index
      %c0_105 = arith.constant 0 : index
      %156 = vector.load %arg5[%c0_104, %c0_105] : memref<256x64xbf16, #tpu.memory_space<vmem>>, vector<256x64xbf16>
      %cst_106 = arith.constant dense<0.000000e+00> : vector<16x64xf32>
      %157 = tpu.matmul %155, %156, %cst_106 {dimension_numbers = #tpu.dot_dimension_numbers<[1], [0], [0], [1], [0, 0, 1, 1], [], []>} : vector<16x256xbf16>, vector<256x64xbf16>, vector<16x64xf32> -> vector<16x64xf32>
      %c0_107 = arith.constant 0 : index
      %c0_108 = arith.constant 0 : index
      %158 = vector.load %arg6[%c0_107, %c0_108] : memref<1x64xf32, #tpu.memory_space<vmem>>, vector<1x64xf32>
      %159 = vector.broadcast %158 : vector<1x64xf32> to vector<16x64xf32>
      %160 = arith.addf %157, %159 : vector<16x64xf32>
      %161 = arith.truncf %160 : vector<16x64xf32> to vector<16x64xbf16>
      %c0_109 = arith.constant 0 : index
      %c128_110 = arith.constant 128 : index
      %162 = vector.load %arg16[%c0_109, %c128_110] : memref<16x640xbf16, #tpu.memory_space<vmem>>, vector<16x64xbf16>
      tpu.vector_store %arg16[%c0_109, %c128_110], %161 {strides = array<i32>} : memref<16x640xbf16, #tpu.memory_space<vmem>>, vector<16x64xbf16>,
      %c0_111 = arith.constant 0 : index
      %c768 = arith.constant 768 : index
      %163 = vector.load %arg3[%c0_111, %c768] : memref<16x2560xbf16, #tpu.memory_space<vmem>>, vector<16x256xbf16>
      %c0_112 = arith.constant 0 : index
      %c0_113 = arith.constant 0 : index
      %164 = vector.load %arg5[%c0_112, %c0_113] : memref<256x64xbf16, #tpu.memory_space<vmem>>, vector<256x64xbf16>
      %cst_114 = arith.constant dense<0.000000e+00> : vector<16x64xf32>
      %165 = tpu.matmul %163, %164, %cst_114 {dimension_numbers = #tpu.dot_dimension_numbers<[1], [0], [0], [1], [0, 0, 1, 1], [], []>} : vector<16x256xbf16>, vector<256x64xbf16>, vector<16x64xf32> -> vector<16x64xf32>
      %c0_115 = arith.constant 0 : index
      %c0_116 = arith.constant 0 : index
      %166 = vector.load %arg6[%c0_115, %c0_116] : memref<1x64xf32, #tpu.memory_space<vmem>>, vector<1x64xf32>
      %167 = vector.broadcast %166 : vector<1x64xf32> to vector<16x64xf32>
      %168 = arith.addf %165, %167 : vector<16x64xf32>
      %169 = arith.truncf %168 : vector<16x64xf32> to vector<16x64xbf16>
      %c0_117 = arith.constant 0 : index
      %c192_118 = arith.constant 192 : index
      %170 = vector.load %arg16[%c0_117, %c192_118] : memref<16x640xbf16, #tpu.memory_space<vmem>>, vector<16x64xbf16>
      tpu.vector_store %arg16[%c0_117, %c192_118], %169 {strides = array<i32>} : memref<16x640xbf16, #tpu.memory_space<vmem>>, vector<16x64xbf16>,
      %c0_119 = arith.constant 0 : index
      %c1024 = arith.constant 1024 : index
      %171 = vector.load %arg3[%c0_119, %c1024] : memref<16x2560xbf16, #tpu.memory_space<vmem>>, vector<16x256xbf16>
      %c0_120 = arith.constant 0 : index
      %c0_121 = arith.constant 0 : index
      %172 = vector.load %arg5[%c0_120, %c0_121] : memref<256x64xbf16, #tpu.memory_space<vmem>>, vector<256x64xbf16>
      %cst_122 = arith.constant dense<0.000000e+00> : vector<16x64xf32>
      %173 = tpu.matmul %171, %172, %cst_122 {dimension_numbers = #tpu.dot_dimension_numbers<[1], [0], [0], [1], [0, 0, 1, 1], [], []>} : vector<16x256xbf16>, vector<256x64xbf16>, vector<16x64xf32> -> vector<16x64xf32>
      %c0_123 = arith.constant 0 : index
      %c0_124 = arith.constant 0 : index
      %174 = vector.load %arg6[%c0_123, %c0_124] : memref<1x64xf32, #tpu.memory_space<vmem>>, vector<1x64xf32>
      %175 = vector.broadcast %174 : vector<1x64xf32> to vector<16x64xf32>
      %176 = arith.addf %173, %175 : vector<16x64xf32>
      %177 = arith.truncf %176 : vector<16x64xf32> to vector<16x64xbf16>
      %c0_125 = arith.constant 0 : index
      %c256_126 = arith.constant 256 : index
      %178 = vector.load %arg16[%c0_125, %c256_126] : memref<16x640xbf16, #tpu.memory_space<vmem>>, vector<16x64xbf16>
      tpu.vector_store %arg16[%c0_125, %c256_126], %177 {strides = array<i32>} : memref<16x640xbf16, #tpu.memory_space<vmem>>, vector<16x64xbf16>,
      %c0_127 = arith.constant 0 : index
      %c1280 = arith.constant 1280 : index
      %179 = vector.load %arg3[%c0_127, %c1280] : memref<16x2560xbf16, #tpu.memory_space<vmem>>, vector<16x256xbf16>
      %c0_128 = arith.constant 0 : index
      %c0_129 = arith.constant 0 : index
      %180 = vector.load %arg5[%c0_128, %c0_129] : memref<256x64xbf16, #tpu.memory_space<vmem>>, vector<256x64xbf16>
      %cst_130 = arith.constant dense<0.000000e+00> : vector<16x64xf32>
      %181 = tpu.matmul %179, %180, %cst_130 {dimension_numbers = #tpu.dot_dimension_numbers<[1], [0], [0], [1], [0, 0, 1, 1], [], []>} : vector<16x256xbf16>, vector<256x64xbf16>, vector<16x64xf32> -> vector<16x64xf32>
      %c0_131 = arith.constant 0 : index
      %c0_132 = arith.constant 0 : index
      %182 = vector.load %arg6[%c0_131, %c0_132] : memref<1x64xf32, #tpu.memory_space<vmem>>, vector<1x64xf32>
      %183 = vector.broadcast %182 : vector<1x64xf32> to vector<16x64xf32>
      %184 = arith.addf %181, %183 : vector<16x64xf32>
      %185 = arith.truncf %184 : vector<16x64xf32> to vector<16x64xbf16>
      %c0_133 = arith.constant 0 : index
      %c320_134 = arith.constant 320 : index
      %186 = vector.load %arg16[%c0_133, %c320_134] : memref<16x640xbf16, #tpu.memory_space<vmem>>, vector<16x64xbf16>
      tpu.vector_store %arg16[%c0_133, %c320_134], %185 {strides = array<i32>} : memref<16x640xbf16, #tpu.memory_space<vmem>>, vector<16x64xbf16>,
      %c0_135 = arith.constant 0 : index
      %c1536 = arith.constant 1536 : index
      %187 = vector.load %arg3[%c0_135, %c1536] : memref<16x2560xbf16, #tpu.memory_space<vmem>>, vector<16x256xbf16>
      %c0_136 = arith.constant 0 : index
      %c0_137 = arith.constant 0 : index
      %188 = vector.load %arg5[%c0_136, %c0_137] : memref<256x64xbf16, #tpu.memory_space<vmem>>, vector<256x64xbf16>
      %cst_138 = arith.constant dense<0.000000e+00> : vector<16x64xf32>
      %189 = tpu.matmul %187, %188, %cst_138 {dimension_numbers = #tpu.dot_dimension_numbers<[1], [0], [0], [1], [0, 0, 1, 1], [], []>} : vector<16x256xbf16>, vector<256x64xbf16>, vector<16x64xf32> -> vector<16x64xf32>
      %c0_139 = arith.constant 0 : index
      %c0_140 = arith.constant 0 : index
      %190 = vector.load %arg6[%c0_139, %c0_140] : memref<1x64xf32, #tpu.memory_space<vmem>>, vector<1x64xf32>
      %191 = vector.broadcast %190 : vector<1x64xf32> to vector<16x64xf32>
      %192 = arith.addf %189, %191 : vector<16x64xf32>
      %193 = arith.truncf %192 : vector<16x64xf32> to vector<16x64xbf16>
      %c0_141 = arith.constant 0 : index
      %c384_142 = arith.constant 384 : index
      %194 = vector.load %arg16[%c0_141, %c384_142] : memref<16x640xbf16, #tpu.memory_space<vmem>>, vector<16x64xbf16>
      tpu.vector_store %arg16[%c0_141, %c384_142], %193 {strides = array<i32>} : memref<16x640xbf16, #tpu.memory_space<vmem>>, vector<16x64xbf16>,
      %c0_143 = arith.constant 0 : index
      %c1792 = arith.constant 1792 : index
      %195 = vector.load %arg3[%c0_143, %c1792] : memref<16x2560xbf16, #tpu.memory_space<vmem>>, vector<16x256xbf16>
      %c0_144 = arith.constant 0 : index
      %c0_145 = arith.constant 0 : index
      %196 = vector.load %arg5[%c0_144, %c0_145] : memref<256x64xbf16, #tpu.memory_space<vmem>>, vector<256x64xbf16>
      %cst_146 = arith.constant dense<0.000000e+00> : vector<16x64xf32>
      %197 = tpu.matmul %195, %196, %cst_146 {dimension_numbers = #tpu.dot_dimension_numbers<[1], [0], [0], [1], [0, 0, 1, 1], [], []>} : vector<16x256xbf16>, vector<256x64xbf16>, vector<16x64xf32> -> vector<16x64xf32>
      %c0_147 = arith.constant 0 : index
      %c0_148 = arith.constant 0 : index
      %198 = vector.load %arg6[%c0_147, %c0_148] : memref<1x64xf32, #tpu.memory_space<vmem>>, vector<1x64xf32>
      %199 = vector.broadcast %198 : vector<1x64xf32> to vector<16x64xf32>
      %200 = arith.addf %197, %199 : vector<16x64xf32>
      %201 = arith.truncf %200 : vector<16x64xf32> to vector<16x64xbf16>
      %c0_149 = arith.constant 0 : index
      %c448_150 = arith.constant 448 : index
      %202 = vector.load %arg16[%c0_149, %c448_150] : memref<16x640xbf16, #tpu.memory_space<vmem>>, vector<16x64xbf16>
      tpu.vector_store %arg16[%c0_149, %c448_150], %201 {strides = array<i32>} : memref<16x640xbf16, #tpu.memory_space<vmem>>, vector<16x64xbf16>,
      %c0_151 = arith.constant 0 : index
      %c2048 = arith.constant 2048 : index
      %203 = vector.load %arg3[%c0_151, %c2048] : memref<16x2560xbf16, #tpu.memory_space<vmem>>, vector<16x256xbf16>
      %c0_152 = arith.constant 0 : index
      %c0_153 = arith.constant 0 : index
      %204 = vector.load %arg5[%c0_152, %c0_153] : memref<256x64xbf16, #tpu.memory_space<vmem>>, vector<256x64xbf16>
      %cst_154 = arith.constant dense<0.000000e+00> : vector<16x64xf32>
      %205 = tpu.matmul %203, %204, %cst_154 {dimension_numbers = #tpu.dot_dimension_numbers<[1], [0], [0], [1], [0, 0, 1, 1], [], []>} : vector<16x256xbf16>, vector<256x64xbf16>, vector<16x64xf32> -> vector<16x64xf32>
      %c0_155 = arith.constant 0 : index
      %c0_156 = arith.constant 0 : index
      %206 = vector.load %arg6[%c0_155, %c0_156] : memref<1x64xf32, #tpu.memory_space<vmem>>, vector<1x64xf32>
      %207 = vector.broadcast %206 : vector<1x64xf32> to vector<16x64xf32>
      %208 = arith.addf %205, %207 : vector<16x64xf32>
      %209 = arith.truncf %208 : vector<16x64xf32> to vector<16x64xbf16>
      %c0_157 = arith.constant 0 : index
      %c512_158 = arith.constant 512 : index
      %210 = vector.load %arg16[%c0_157, %c512_158] : memref<16x640xbf16, #tpu.memory_space<vmem>>, vector<16x64xbf16>
      tpu.vector_store %arg16[%c0_157, %c512_158], %209 {strides = array<i32>} : memref<16x640xbf16, #tpu.memory_space<vmem>>, vector<16x64xbf16>,
      %c0_159 = arith.constant 0 : index
      %c2304 = arith.constant 2304 : index
      %211 = vector.load %arg3[%c0_159, %c2304] : memref<16x2560xbf16, #tpu.memory_space<vmem>>, vector<16x256xbf16>
      %c0_160 = arith.constant 0 : index
      %c0_161 = arith.constant 0 : index
      %212 = vector.load %arg5[%c0_160, %c0_161] : memref<256x64xbf16, #tpu.memory_space<vmem>>, vector<256x64xbf16>
      %cst_162 = arith.constant dense<0.000000e+00> : vector<16x64xf32>
      %213 = tpu.matmul %211, %212, %cst_162 {dimension_numbers = #tpu.dot_dimension_numbers<[1], [0], [0], [1], [0, 0, 1, 1], [], []>} : vector<16x256xbf16>, vector<256x64xbf16>, vector<16x64xf32> -> vector<16x64xf32>
      %c0_163 = arith.constant 0 : index
      %c0_164 = arith.constant 0 : index
      %214 = vector.load %arg6[%c0_163, %c0_164] : memref<1x64xf32, #tpu.memory_space<vmem>>, vector<1x64xf32>
      %215 = vector.broadcast %214 : vector<1x64xf32> to vector<16x64xf32>
      %216 = arith.addf %213, %215 : vector<16x64xf32>
      %217 = arith.truncf %216 : vector<16x64xf32> to vector<16x64xbf16>
      %c0_165 = arith.constant 0 : index
      %c576_166 = arith.constant 576 : index
      %218 = vector.load %arg16[%c0_165, %c576_166] : memref<16x640xbf16, #tpu.memory_space<vmem>>, vector<16x64xbf16>
      tpu.vector_store %arg16[%c0_165, %c576_166], %217 {strides = array<i32>} : memref<16x640xbf16, #tpu.memory_space<vmem>>, vector<16x64xbf16>,
    } else {
    }
    %c0 = arith.constant 0 : index
    %c0_1 = arith.constant 0 : index
    %3 = vector.load %arg15[%c0, %c0_1] : memref<16x704xbf16, #tpu.memory_space<vmem>>, vector<16x704xbf16>
    %c0_2 = arith.constant 0 : index
    %c0_3 = arith.constant 0 : index
    %4 = vector.load %arg7[%c0_2, %c0_3] : memref<704x1024xbf16, #tpu.memory_space<vmem>>, vector<704x1024xbf16>
    %cst = arith.constant dense<0.000000e+00> : vector<16x1024xf32>
    %5 = tpu.matmul %3, %4, %cst {dimension_numbers = #tpu.dot_dimension_numbers<[1], [0], [0], [1], [0, 0, 1, 1], [], []>} : vector<16x704xbf16>, vector<704x1024xbf16>, vector<16x1024xf32> -> vector<16x1024xf32>
    %c0_4 = arith.constant 0 : index
    %c0_5 = arith.constant 0 : index
    %6 = vector.load %arg16[%c0_4, %c0_5] : memref<16x640xbf16, #tpu.memory_space<vmem>>, vector<16x640xbf16>
    %c0_6 = arith.constant 0 : index
    %c0_7 = arith.constant 0 : index
    %7 = vector.load %arg8[%c0_6, %c0_7] : memref<640x1024xbf16, #tpu.memory_space<vmem>>, vector<640x1024xbf16>
    %cst_8 = arith.constant dense<0.000000e+00> : vector<16x1024xf32>
    %8 = tpu.matmul %6, %7, %cst_8 {dimension_numbers = #tpu.dot_dimension_numbers<[1], [0], [0], [1], [0, 0, 1, 1], [], []>} : vector<16x640xbf16>, vector<640x1024xbf16>, vector<16x1024xf32> -> vector<16x1024xf32>
    %9 = arith.addf %5, %8 : vector<16x1024xf32>
    %c0_9 = arith.constant 0 : index
    %c0_10 = arith.constant 0 : index
    %10 = vector.load %arg9[%c0_9, %c0_10] : memref<1x1024xf32, #tpu.memory_space<vmem>>, vector<1x1024xf32>
    %11 = vector.broadcast %10 : vector<1x1024xf32> to vector<16x1024xf32>
    %12 = arith.addf %9, %11 : vector<16x1024xf32>
    %cst_11 = arith.constant 0.000000e+00 : f32
    %13 = vector.broadcast %cst_11 : f32 to vector<16x1024xf32>
    %14 = arith.maximumf %12, %13 : vector<16x1024xf32>
    %c0_12 = arith.constant 0 : index
    %c0_13 = arith.constant 0 : index
    %15 = vector.load %arg17[%c0_12, %c0_13] : memref<16x256xf32, #tpu.memory_space<vmem>>, vector<16x256xf32>
    %16 = arith.truncf %14 : vector<16x1024xf32> to vector<16x1024xbf16>
    %c0_14 = arith.constant 0 : index
    %c0_15 = arith.constant 0 : index
    %17 = vector.load %arg10[%c0_14, %c0_15] : memref<1024x256xbf16, #tpu.memory_space<vmem>>, vector<1024x256xbf16>
    %cst_16 = arith.constant dense<0.000000e+00> : vector<16x256xf32>
    %18 = tpu.matmul %16, %17, %cst_16 {dimension_numbers = #tpu.dot_dimension_numbers<[1], [0], [0], [1], [0, 0, 1, 1], [], []>} : vector<16x1024xbf16>, vector<1024x256xbf16>, vector<16x256xf32> -> vector<16x256xf32>
    %19 = arith.addf %15, %18 : vector<16x256xf32>
    %c0_17 = arith.constant 0 : index
    %c0_18 = arith.constant 0 : index
    %20 = vector.load %arg17[%c0_17, %c0_18] : memref<16x256xf32, #tpu.memory_space<vmem>>, vector<16x256xf32>
    tpu.vector_store %arg17[%c0_17, %c0_18], %19 {strides = array<i32>} : memref<16x256xf32, #tpu.memory_space<vmem>>, vector<16x256xf32>,
    %c0_i32_19 = arith.constant 0 : i32
    %21 = arith.cmpi eq, %arg1, %c0_i32_19 : i32
    %22 = arith.extui %21 : i1 to i32
    %c0_i32_20 = arith.constant 0 : i32
    %23 = arith.cmpi ne, %22, %c0_i32_20 : i32
    scf.if %23 {
      %c0_21 = arith.constant 0 : index
      %c0_22 = arith.constant 0 : index
      %24 = vector.load %arg17[%c0_21, %c0_22] : memref<16x256xf32, #tpu.memory_space<vmem>>, vector<16x256xf32>
      %c0_23 = arith.constant 0 : index
      %c0_24 = arith.constant 0 : index
      %25 = vector.load %arg11[%c0_23, %c0_24] : memref<1x256xf32, #tpu.memory_space<vmem>>, vector<1x256xf32>
      %26 = vector.broadcast %25 : vector<1x256xf32> to vector<16x256xf32>
      %27 = arith.addf %24, %26 : vector<16x256xf32>
      %cst_25 = arith.constant 0.000000e+00 : f32
      %28 = vector.broadcast %cst_25 : f32 to vector<16x256xf32>
      %29 = arith.maximumf %27, %28 : vector<16x256xf32>
      %c0_26 = arith.constant 0 : index
      %c0_27 = arith.constant 0 : index
      %30 = vector.load %arg12[%c0_26, %c0_27] : memref<1x256xf32, #tpu.memory_space<vmem>>, vector<1x256xf32>
      %31 = vector.broadcast %30 : vector<1x256xf32> to vector<16x256xf32>
      %32 = arith.mulf %29, %31 : vector<16x256xf32>
      %cst_28 = arith.constant dense<0.000000e+00> : vector<16xf32>
      %33 = vector.multi_reduction <add>, %32, %cst_28 [1] : vector<16x256xf32> to vector<16xf32>
      %34 = vector.shape_cast %33 : vector<16xf32> to vector<16x1xf32>
      %c0_29 = arith.constant 0 : index
      %c0_30 = arith.constant 0 : index
      %35 = vector.load %arg13[%c0_29, %c0_30] : memref<1x1xf32, #tpu.memory_space<vmem>>, vector<1x1xf32>
      %36 = vector.broadcast %35 : vector<1x1xf32> to vector<16x1xf32>
      %37 = arith.addf %34, %36 : vector<16x1xf32>
      %c0_31 = arith.constant 0 : index
      %c0_32 = arith.constant 0 : index
      %38 = vector.load %arg14[%c0_31, %c0_32] : memref<16x1xf32, #tpu.memory_space<vmem>>, vector<16x1xf32>
      tpu.vector_store %arg14[%c0_31, %c0_32], %37 {strides = array<i32>} : memref<16x1xf32, #tpu.memory_space<vmem>>, vector<16x1xf32>,
    } else {
    }
    return
  }
  func.func @transform_0(%arg0: i32, %arg1: i32) -> (i32, i32) {
    %c0_i32 = arith.constant 0 : i32
    %c0_i32_0 = arith.constant 0 : i32
    return %arg0, %c0_i32 : i32, i32
  }
  func.func @transform_1(%arg0: i32, %arg1: i32) -> (i32, i32) {
    %c0_i32 = arith.constant 0 : i32
    %c0_i32_0 = arith.constant 0 : i32
    return %arg0, %c0_i32 : i32, i32
  }
  func.func @transform_2(%arg0: i32, %arg1: i32) -> (i32, i32) {
    %c0_i32 = arith.constant 0 : i32
    %c0_i32_0 = arith.constant 0 : i32
    %c0_i32_1 = arith.constant 0 : i32
    return %c0_i32, %c0_i32_0 : i32, i32
  }
  func.func @transform_3(%arg0: i32, %arg1: i32) -> (i32, i32) {
    %c0_i32 = arith.constant 0 : i32
    %c0_i32_0 = arith.constant 0 : i32
    %c0_i32_1 = arith.constant 0 : i32
    return %c0_i32, %c0_i32_0 : i32, i32
  }
  func.func @transform_4(%arg0: i32, %arg1: i32) -> (i32, i32) {
    %c0_i32 = arith.constant 0 : i32
    %c0_i32_0 = arith.constant 0 : i32
    %c0_i32_1 = arith.constant 0 : i32
    return %c0_i32, %c0_i32_0 : i32, i32
  }
  func.func @transform_5(%arg0: i32, %arg1: i32) -> (i32, i32) {
    %c0_i32 = arith.constant 0 : i32
    %c0_i32_0 = arith.constant 0 : i32
    return %c0_i32, %arg1 : i32, i32
  }
  func.func @transform_6(%arg0: i32, %arg1: i32) -> (i32, i32) {
    %c0_i32 = arith.constant 0 : i32
    %c0_i32_0 = arith.constant 0 : i32
    return %c0_i32, %arg1 : i32, i32
  }
  func.func @transform_7(%arg0: i32, %arg1: i32) -> (i32, i32) {
    %c0_i32 = arith.constant 0 : i32
    %c0_i32_0 = arith.constant 0 : i32
    return %c0_i32, %arg1 : i32, i32
  }
  func.func @transform_8(%arg0: i32, %arg1: i32) -> (i32, i32) {
    %c0_i32 = arith.constant 0 : i32
    %c0_i32_0 = arith.constant 0 : i32
    return %arg1, %c0_i32 : i32, i32
  }
  func.func @transform_9(%arg0: i32, %arg1: i32) -> (i32, i32) {
    %c0_i32 = arith.constant 0 : i32
    %c0_i32_0 = arith.constant 0 : i32
    %c0_i32_1 = arith.constant 0 : i32
    return %c0_i32, %c0_i32_0 : i32, i32
  }
  func.func @transform_10(%arg0: i32, %arg1: i32) -> (i32, i32) {
    %c0_i32 = arith.constant 0 : i32
    %c0_i32_0 = arith.constant 0 : i32
    %c0_i32_1 = arith.constant 0 : i32
    return %c0_i32, %c0_i32_0 : i32, i32
  }
  func.func @transform_11(%arg0: i32, %arg1: i32) -> (i32, i32) {
    %c0_i32 = arith.constant 0 : i32
    %c0_i32_0 = arith.constant 0 : i32
    %c0_i32_1 = arith.constant 0 : i32
    return %c0_i32, %c0_i32_0 : i32, i32
  }
  func.func @transform_12(%arg0: i32, %arg1: i32) -> (i32, i32) {
    %c0_i32 = arith.constant 0 : i32
    %c0_i32_0 = arith.constant 0 : i32
    return %arg0, %c0_i32 : i32, i32
  }
}

</mosaic_0001>

<bundles_post_ra>
// kernel: user_preference_estimator_forward.1
= control target key start
LH: loop header
LB: loop body
LE: loop exit
PB: predicated region body
PF: predicated region fallthrough
CT: control target
= control target key end

     0   :  { %s13813_s0 = inlined_call_operand.vmem [shape: s32[16,11], index: 0, kind: input, shape index: {}]   ;;  %s13814_s1 = inlined_call_operand.vmem [shape: bf16[16,2560], index: 1, kind: input, shape index: {}]   ;;  %s13815_s2 = inlined_call_operand.vmem [shape: bf16[128,64], index: 2, kind: input, shape index: {}]   ;;  %s13816_s3 = inlined_call_operand.vmem [shape: bf16[256,64], index: 3, kind: input, shape index: {}]   ;;  %s13817_s4 = inlined_call_operand.hbm [shape: f32[1,64], index: 4, kind: input, shape index: {}]   ;;  %s13818_s5 = inlined_call_operand.hbm [shape: bf16[704,1024], index: 5, kind: input, shape index: {}]   ;;  %s13819_s6 = inlined_call_operand.hbm [shape: bf16[640,1024], index: 6, kind: input, shape index: {}]   ;;  %s13820_s7 = inlined_call_operand.hbm [shape: f32[1,1024], index: 7, kind: input, shape index: {}]   ;;  %s13821_s8 = inlined_call_operand.hbm [shape: bf16[1024,256], index: 8, kind: input, shape index: {}]   ;;  %s13822_s9 = inlined_call_operand.hbm [shape: f32[1,256], index: 9, kind: input, shape index: {}]   ;;  %s13823_s10 = inlined_call_operand.hbm [shape: f32[1,256], index: 10, kind: input, shape index: {}]   ;;  %s13824_s11 = inlined_call_operand.<no memory space> [shape: f32[1,1], index: 11, kind: input, shape index: {}]   ;;  %s13825_s12 = inlined_call_operand.vmem [shape: f32[16,1], index: 12, kind: output, shape index: {}]  }
   0x1   :  { %v17_v0 = vstv %s13824_s11 }
   0x2   :  { %18 = vst [vmem:[#allocation5] sm:$0x1] %v17_v0 }
   0x3   :  { %19 = vsyncpa [#allocation7], 0 }
   0x4   :  { %20 = vsyncpa [#allocation9], 0 }
   0x5   :  { %21 = vsyncpa [#allocation12], 0 }
   0x6   :  { %22 = vsyncpa [#allocation15], 0  ;;  %s12292_s23 = smov [#allocation8]  }
   0x7   :  { %s46_s24 = sshll.u32 %s12292_s23, 4  ;;  %s47_s24 = int_to_ptr.vmem [resolvable:$true] %s46_s24 }
   0x8   :  { %s12152_s25 = scalar_lea.vmem %s47_s24, 45056  ;;  %p12157_p1 = scmp.lt.s32.totalorder %s47_s24, %s47_s24 }
   0x9   :  { %p12153_p0 = scmp.ne.s32.totalorder %s47_s24, %s12152_s25  ;;  %p12158_p2 = scmp.lt.s32.totalorder %s12152_s25, %s12152_s25 }
   0xb   :  { %p12159_p3 = por %p12158_p2, %p12157_p1 }
   0xd   :  { %p12160_p4 = pnand %p12159_p3, %p12153_p0 }
   0xf   :  { %12163 = shalt.err (!%p12160_p4)
}
  0x10   :  { %s12293_s26 = smov 512   ;;  %s12294_s27 = smov 32  }
  0x11   :  { %52 = dma.hbm_to_vmem [thread:$0]  %s13818_s5, 45056, %s47_s24, [#allocation9], %s12293_s26, %s12293_s26, %s12294_s27  }
  0x12   :  { %s12295_s29 = smov [#allocation11]   ;;  %s12296_s13 = smov [#allocation14]  }
  0x13   :  { %s71_s30 = sshll.u32 %s12295_s29, 4  ;;  %s93_s14 = sshll.u32 %s12296_s13, 4  ;;  %s72_s30 = int_to_ptr.vmem [resolvable:$true] %s71_s30  ;;  %s94_s14 = int_to_ptr.vmem [resolvable:$true] %s93_s14 }
  0x14   :  { %s12172_s15 = scalar_lea.vmem %s72_s30, 128  ;;  %p12177_p6 = scmp.lt.s32.totalorder %s72_s30, %s72_s30 }
  0x15   :  { %p12173_p5 = scmp.ne.s32.totalorder %s72_s30, %s12172_s15  ;;  %p12178_p7 = scmp.lt.s32.totalorder %s12172_s15, %s12172_s15 }
  0x17   :  { %p12179_p8 = por %p12178_p7, %p12177_p6 }
  0x19   :  { %p12180_p9 = pnand %p12179_p8, %p12173_p5 }
  0x1b   :  { %12183 = shalt.err (!%p12180_p9)
}
  0x1c   :  { %74 = dma.hbm_to_vmem [thread:$0]  %s13820_s7, 128, %s72_s30, [#allocation12]  }
  0x1d   :  { %s12192_s18 = scalar_lea.vmem %s94_s14, 32  ;;  %p12197_p11 = scmp.lt.s32.totalorder %s94_s14, %s94_s14 }
  0x1e   :  { %p12193_p10 = scmp.ne.s32.totalorder %s94_s14, %s12192_s18  ;;  %p12198_p12 = scmp.lt.s32.totalorder %s12192_s18, %s12192_s18 }
  0x20   :  { %p12199_p13 = por %p12198_p12, %p12197_p11 }
  0x22   :  { %p12200_p0 = pnand %p12199_p13, %p12193_p10 }
  0x24   :  { %12203 = shalt.err (!%p12200_p0)
}
  0x25   :  { %96 = dma.hbm_to_vmem [thread:$0]  %s13822_s9, 32, %s94_s14, [#allocation15]  }
  0x26   :  { %s12297_s20 = smov [#allocation6]   ;;  %s12298_s22 = smov [#allocation10]  }
  0x27   :  { %s37_s21 = sshll.u32 %s12297_s20, 4  ;;  %s58_s23 = sshll.u32 %s12298_s22, 4  ;;  %s38_s21 = int_to_ptr.vmem [resolvable:$true] %s37_s21  ;;  %s59_s23 = int_to_ptr.vmem [resolvable:$true] %s58_s23 }
  0x28   :  { %s12212_s24 = scalar_lea.vmem %s38_s21, 16  ;;  %s12216_s7 = scalar_lea.vmem %s38_s21, 32 }
  0x29   :  { %p12213_p1 = scmp.ne.s32.totalorder %s38_s21, %s12212_s24  ;;  %p12217_p2 = scmp.lt.s32.totalorder %s38_s21, %s38_s21 }
  0x2a   :  { %p12218_p3 = scmp.lt.s32.totalorder %s12216_s7, %s12212_s24 }
  0x2c   :  { %p12219_p4 = por %p12218_p3, %p12217_p2 }
  0x2e   :  { %p12220_p5 = pnand %p12219_p4, %p12213_p1 }
  0x30   :  { %12223 = shalt.err (!%p12220_p5)
}
  0x31   :  { %40 = dma.hbm_to_vmem [thread:$0]  %s13817_s4, 16, %s38_s21, [#allocation7]  }
  0x32   :  { %s12232_s28 = scalar_lea.vmem %s59_s23, 40960  ;;  %p12237_p7 = scmp.lt.s32.totalorder %s59_s23, %s59_s23 }
  0x33   :  { %p12233_p6 = scmp.ne.s32.totalorder %s59_s23, %s12232_s28  ;;  %p12238_p8 = scmp.lt.s32.totalorder %s12232_s28, %s12232_s28 }
  0x35   :  { %p12239_p9 = por %p12238_p8, %p12237_p7 }
  0x37   :  { %p12240_p10 = pnand %p12239_p9, %p12233_p6 }
  0x39   :  { %12243 = shalt.err (!%p12240_p10)
}
  0x3a   :  { %64 = dma.hbm_to_vmem [thread:$0]  %s13819_s6, 40960, %s59_s23, [#allocation9], %s12293_s26, %s12293_s26, %s12294_s27  }
  0x3b   :  { %s12299_s30 = smov [#allocation13]  }
  0x3c   :  { %s80_s13 = sshll.u32 %s12299_s30, 4  ;;  %s81_s13 = int_to_ptr.vmem [resolvable:$true] %s80_s13 }
  0x3d   :  { %s12252_s14 = scalar_lea.vmem %s81_s13, 16384  ;;  %p12257_p12 = scmp.lt.s32.totalorder %s81_s13, %s81_s13 }
  0x3e   :  { %p12253_p11 = scmp.ne.s32.totalorder %s81_s13, %s12252_s14  ;;  %p12258_p13 = scmp.lt.s32.totalorder %s12252_s14, %s12252_s14 }
  0x40   :  { %p12259_p0 = por %p12258_p13, %p12257_p12 }
  0x42   :  { %p12260_p1 = pnand %p12259_p0, %p12253_p11 }
  0x44   :  { %12263 = shalt.err (!%p12260_p1)
}
  0x45   :  { %s12300_s4 = smov 128   ;;  %s12301_s15 = smov 8  }
  0x46   :  { %86 = dma.hbm_to_vmem [thread:$0]  %s13821_s8, 16384, %s81_s13, [#allocation12], %s12300_s4, %s12300_s4, %s12301_s15  }
  0x47   :  { %s12302_s18 = smov [#allocation16]  }
  0x48   :  { %s103_s5 = sshll.u32 %s12302_s18, 4  ;;  %s104_s5 = int_to_ptr.vmem [resolvable:$true] %s103_s5 }
  0x49   :  { %s12272_s6 = scalar_lea.vmem %s104_s5, 32  ;;  %p12277_p3 = scmp.lt.s32.totalorder %s104_s5, %s104_s5 }
  0x4a   :  { %p12273_p2 = scmp.ne.s32.totalorder %s104_s5, %s12272_s6  ;;  %p12278_p4 = scmp.lt.s32.totalorder %s12272_s6, %s12272_s6 }
  0x4c   :  { %p12279_p5 = por %p12278_p4, %p12277_p3 }
  0x4e   :  { %p12280_p6 = pnand %p12279_p5, %p12273_p2 }
  0x50   :  { %12283 = shalt.err (!%p12280_p6)
}
  0x51   :  { %106 = dma.hbm_to_vmem [thread:$0]  %s13823_s10, 32, %s104_s5, [#allocation15]  }
  0x52   :  { %12284 = dma.done.wait [#allocation7], 16  }
  0x53   :  { %12285 = vsyncadd [#allocation7], 4294967280 }
  0x54   :  { %12286 = dma.done.wait [#allocation9], 86016  }
  0x55   :  { %12287 = vsyncadd [#allocation9], 4294881280 }
  0x56   :  { %12288 = dma.done.wait [#allocation12], 16512  }
  0x57   :  { %12289 = vsyncadd [#allocation12], 4294950784 }
  0x58   :  { %12290 = dma.done.wait [#allocation15], 64  }
  0x59   :  { %12291 = vsyncadd [#allocation15], 4294967232  ;;  %v12303_v1 = vmov 0   ;;  %v12304_v2 = vmov 2   ;;  %v12305_v3 = vmov 0.0   ;;  %v12418_v4 = vld [vmem:[%s13813_s0] sm:$0xff]  ;;  %v148_v30 = vlaneseq }
  0x5a   :  { %11627 = vset.pattern.permute.xlu0 %v12303_v1  ;;  %139 = vst [vmem:[#allocation2] sm:$0xff] %v12303_v1  ;;  %140 = vst [vmem:[#allocation2 + $0x8] sm:$0xff] %v12303_v1  ;;  %11628 = vset.pattern.permute.xlu1 %v12304_v2  ;;  %v11645_v5 = vld [vmem:[%s13815_s2 + $0x38] sm:$0xff]   ;;  %v12428_v6 = vld [vmem:[%s13813_s0 + $0x8] sm:$0xff]  ;;  %vm12306_vm0 = vmmov 0   ;;  %v12307_v9 = vmov 4  }
  0x5b   :  { %145 = vst [vmem:[#allocation2 + $0x18] sm:$0xff] %v12303_v1  ;;  %146 = vst [vmem:[#allocation2 + $0x20] sm:$0xff] %v12303_v1  ;;  %11381 = vmatprep.subr.bf16.mxu0 %v12305_v3  ;;  %11401 = vmatprep.subr.bf16.mxu1 %v12305_v3  ;;  %v11646_v7 = vld [vmem:[%s13815_s2 + $0x30] sm:$0xff]   ;;  %v11647_v8 = vld [vmem:[%s13815_s2 + $0x28] sm:$0xff]   ;;  %v12308_v11 = vmov 1   ;;  %v12309_v14 = vmov 6  }
  0x5c   :  { %153 = vperm.xlu0 %11627, %v12418_v4   ;;  %419 = vperm.xlu1 %11628, %v12418_v4   ;;  %v11648_v10 = vld [vmem:[%s13815_s2 + $0x20] sm:$0xff]   ;;  %v11649_v12 = vld [vmem:[%s13815_s2 + $0x18] sm:$0xff]   ;;  %v11650_v13 = vld [vmem:[%s13815_s2 + $0x10] sm:$0xff]   ;;  %v12310_v15 = vmov 3   ;;  %v12311_v17 = vmov 8   ;;  %v12312_v19 = vmov 10  }
  0x5d   :  { %11397 = vmatprep.mubr.msk.bf16.mxu0 %vm12306_vm0, %v12305_v3  ;;  %11417 = vmatprep.mubr.msk.bf16.mxu1 %vm12306_vm0, %v12305_v3  ;;  %v11651_v16 = vld [vmem:[%s13815_s2 + $0x8] sm:$0xff]   ;;  %v11652_v18 = vld [vmem:[%s13815_s2] sm:$0xff]   ;;  %v12313_v20 = vmov 5   ;;  %v11666_v21 = vld [vmem:[%s13815_s2 + $0x38] sm:$0xff]   ;;  %v12314_v29 = vmov 7   ;;  %v12514_v31 = vand.u32 127, %v148_v30 }
  0x5e   :  { %11382 = vmatpush3.bf16.msra.mxu0 %v11645_v5  ;;  %11402 = vmatpush3.bf16.msra.mxu1 %v11666_v21  ;;  %v11668_v22 = vld [vmem:[%s13815_s2 + $0x30] sm:$0xff]   ;;  %v11670_v23 = vld [vmem:[%s13815_s2 + $0x28] sm:$0xff]   ;;  %v11672_v24 = vld [vmem:[%s13815_s2 + $0x20] sm:$0xff]   ;;  %v12315_v37 = vmov 1.0|1.0   ;;  %v12316_v43 = vmov 9  }
  0x5f   :  { %11383 = vmatprep.subr.bf16.mxu0 %v12305_v3  ;;  %11403 = vmatprep.subr.bf16.mxu1 %v12305_v3  ;;  %v11674_v25 = vld [vmem:[%s13815_s2 + $0x18] sm:$0xff]   ;;  %v11676_v26 = vld [vmem:[%s13815_s2 + $0x10] sm:$0xff]   ;;  %v11678_v27 = vld [vmem:[%s13815_s2 + $0x8] sm:$0xff]  }
  0x60   :  { %156 = vperm.xlu0 %11627, %v12428_v6   ;;  %422 = vperm.xlu1 %11628, %v12428_v6   ;;  %v11680_v28 = vld [vmem:[%s13815_s2] sm:$0xff]   ;;  %v11653_v35 = vld [vmem:[%s13815_s2 + $0x38] sm:$0xff]   ;;  %v11654_v38 = vld [vmem:[%s13815_s2 + $0x30] sm:$0xff]  }
  0x61   :  { %v11655_v41 = vld [vmem:[%s13815_s2 + $0x28] sm:$0xff]   ;;  %v11682_v42 = vld [vmem:[%s13815_s2 + $0x38] sm:$0xff]   ;;  %v11656_v46 = vld [vmem:[%s13815_s2 + $0x20] sm:$0xff]  }
  0x62   :  { %11384 = vmatpush3.bf16.msra.mxu0 %v11646_v7  ;;  %11404 = vmatpush3.bf16.msra.mxu1 %v11668_v22  ;;  %v11684_v47 = vld [vmem:[%s13815_s2 + $0x30] sm:$0xff]   ;;  %v11657_v48 = vld [vmem:[%s13815_s2 + $0x18] sm:$0xff]   ;;  %v11686_v49 = vld [vmem:[%s13815_s2 + $0x28] sm:$0xff]  }
  0x63   :  { %11385 = vmatprep.subr.bf16.mxu0 %v12305_v3  ;;  %11405 = vmatprep.subr.bf16.mxu1 %v12305_v3  ;;  %v11658_v50 = vld [vmem:[%s13815_s2 + $0x10] sm:$0xff]   ;;  %v11688_v51 = vld [vmem:[%s13815_s2 + $0x20] sm:$0xff]   ;;  %v11659_v52 = vld [vmem:[%s13815_s2 + $0x8] sm:$0xff]  }
  0x64   :  { %11630 = vset.pattern.permute.xlu1 %v12307_v9  ;;  %11629 = vset.pattern.permute.xlu0 %v12307_v9  ;;  %v11660_v54 = vld [vmem:[%s13815_s2] sm:$0xff]   ;;  %v11690_v55 = vld [vmem:[%s13815_s2 + $0x18] sm:$0xff]   ;;  %v11692_v56 = vld [vmem:[%s13815_s2 + $0x10] sm:$0xff]  }
  0x65   :  { %686 = vperm.xlu1 %11630, %v12428_v6   ;;  %683 = vperm.xlu0 %11629, %v12418_v4   ;;  %v11661_v57 = vld [vmem:[%s13815_s2 + $0x38] sm:$0xff]   ;;  %v11694_v59 = vld [vmem:[%s13815_s2 + $0x8] sm:$0xff]   ;;  %v11662_v62 = vld [vmem:[%s13815_s2 + $0x30] sm:$0xff]  }
  0x66   :  { %11386 = vmatpush3.bf16.msra.mxu0 %v11647_v8  ;;  %11406 = vmatpush3.bf16.msra.mxu1 %v11670_v23  ;;  %v11696_v63 = vld [vmem:[%s13815_s2] sm:$0xff]   ;;  %v11663_v0 = vld [vmem:[%s13815_s2 + $0x28] sm:$0xff]   ;;  %v11698_v1 = vld [vmem:[%s13815_s2 + $0x38] sm:$0xff]  }
  0x67   :  { %11387 = vmatprep.subr.bf16.mxu0 %v12305_v3  ;;  %11407 = vmatprep.subr.bf16.mxu1 %v12305_v3  ;;  %v11664_v2 = vld [vmem:[%s13815_s2 + $0x20] sm:$0xff]   ;;  %v11665_v5 = vld [vmem:[%s13815_s2 + $0x18] sm:$0xff]   ;;  %v11667_v7 = vld [vmem:[%s13815_s2 + $0x10] sm:$0xff]  }
  0x68   :  { %v11704_v8 = vld [vmem:[%s13815_s2 + $0x20] sm:$0xff]   ;;  %v11669_v9 = vld [vmem:[%s13815_s2 + $0x8] sm:$0xff]   ;;  %v11742_v21 = vld [vmem:[%s13815_s2 + $0x38] sm:$0xff]  }
  0x69   :  { %11631 = vset.pattern.permute.xlu1 %v12308_v11  ;;  %11632 = vset.pattern.permute.xlu0 %v12308_v11  ;;  %v11706_v11 = vld [vmem:[%s13815_s2 + $0x18] sm:$0xff]   ;;  %v11679_v22 = vld [vmem:[%s13815_s2 + $0x20] sm:$0xff]   ;;  %v11745_v23 = vld [vmem:[%s13815_s2 + $0x30] sm:$0xff]  }
  0x6a   :  { %284 = vperm.xlu1 %11631, %v12418_v4   ;;  %287 = vperm.xlu0 %11632, %v12428_v6  }
  0x6b   :  { %11388 = vmatpush3.bf16.msra.mxu0 %v11648_v10  ;;  %11408 = vmatpush3.bf16.msra.mxu1 %v11672_v24  ;;  %v11681_v24 = vld [vmem:[%s13815_s2 + $0x18] sm:$0xff]  }
  0x6c   :  { %11389 = vmatprep.subr.bf16.mxu0 %v12305_v3  ;;  %11409 = vmatprep.subr.bf16.mxu1 %v12305_v3 }
  0x6e   :  { %11633 = vset.pattern.permute.xlu1 %v12309_v14  ;;  %11634 = vset.pattern.permute.xlu0 %v12310_v15 }
  0x6f   :  { %947 = vperm.xlu1 %11633, %v12418_v4   ;;  %11390 = vmatpush3.bf16.msra.mxu0 %v11649_v12  ;;  %v11671_v12 = vld [vmem:[%s13815_s2] sm:$0xff]  }
  0x70   :  { %11391 = vmatprep.subr.bf16.mxu0 %v12305_v3  ;;  %549 = vperm.xlu0 %11634, %v12418_v4  }
  0x71   :  { %11410 = vmatpush3.bf16.msra.mxu1 %v11674_v25  ;;  %v11748_v25 = vld [vmem:[%s13815_s2 + $0x28] sm:$0xff]  }
  0x72   :  { %11411 = vmatprep.subr.bf16.mxu1 %v12305_v3 }
  0x73   :  { %950 = vperm.xlu1 %11633, %v12428_v6   ;;  %11392 = vmatpush3.bf16.msra.mxu0 %v11650_v13  ;;  %v11708_v13 = vld [vmem:[%s13815_s2 + $0x10] sm:$0xff]  }
  0x74   :  { %11393 = vmatprep.subr.bf16.mxu0 %v12305_v3  ;;  %11637 = vset.pattern.permute.xlu0 %v12311_v17 }
  0x75   :  { %1214 = vperm.xlu0 %11637, %v12428_v6   ;;  %11412 = vmatpush3.bf16.msra.mxu1 %v11676_v26  ;;  %v11683_v26 = vld [vmem:[%s13815_s2 + $0x10] sm:$0xff]  }
  0x76   :  { %11413 = vmatprep.subr.bf16.mxu1 %v12305_v3 }
  0x77   :  { %11635 = vset.pattern.permute.xlu1 %v12310_v15  ;;  %11394 = vmatpush3.bf16.msra.mxu0 %v11651_v16  ;;  %v11673_v15 = vld [vmem:[%s13815_s2 + $0x38] sm:$0xff]   ;;  %v11675_v16 = vld [vmem:[%s13815_s2 + $0x30] sm:$0xff]  }
  0x78   :  { %552 = vperm.xlu1 %11635, %v12428_v6   ;;  %11395 = vmatprep.subr.bf16.mxu0 %v12305_v3 }
  0x79   :  { %11639 = vset.pattern.permute.xlu0 %v12312_v19  ;;  %11414 = vmatpush3.bf16.msra.mxu1 %v11678_v27  ;;  %v11751_v27 = vld [vmem:[%s13815_s2 + $0x20] sm:$0xff]  }
  0x7a   :  { %1475 = vperm.xlu0 %11639, %v12418_v4   ;;  %11415 = vmatprep.subr.bf16.mxu1 %v12305_v3 }
  0x7b   :  { %11396 = vmatpush3.bf16.msra.mxu0 %v11652_v18 }
  0x7c   :  { %11421 = vmatprep.subr.bf16.mxu0 %v12305_v3  ;;  %11636 = vset.pattern.permute.xlu1 %v12311_v17  ;;  %v11710_v17 = vld [vmem:[%s13815_s2 + $0x8] sm:$0xff]  }
  0x7d   :  { %1211 = vperm.xlu1 %11636, %v12418_v4   ;;  %11416 = vmatpush3.bf16.msra.mxu1 %v11680_v28  ;;  %v11685_v28 = vld [vmem:[%s13815_s2 + $0x8] sm:$0xff]  }
  0x7e   :  { %11441 = vmatprep.subr.bf16.mxu1 %v12305_v3  ;;  %11642 = vset.pattern.permute.xlu0 %v12314_v29 }
  0x7f   :  { %1080 = vperm.xlu0 %11642, %v12428_v6  }
  0x81   :  { %11638 = vset.pattern.permute.xlu1 %v12313_v20  ;;  %v11712_v20 = vld [vmem:[%s13815_s2] sm:$0xff]  }
  0x82   :  { %813 = vperm.xlu1 %11638, %v12418_v4  }
  0x83   :  { %11644 = vset.pattern.permute.xlu0 %v12312_v19 }
  0x86   :  { %816 = vperm.xlu1 %11638, %v12428_v6  }
  0x8a   :  { %11640 = vset.pattern.permute.xlu1 %v12312_v19  ;;  %v11677_v19 = vld [vmem:[%s13815_s2 + $0x28] sm:$0xff]  }
  0x8b   :  { %1478 = vperm.xlu1 %11640, %v12428_v6  }
  0x8f   :  { %11641 = vset.pattern.permute.xlu1 %v12314_v29  ;;  %v11754_v29 = vld [vmem:[%s13815_s2 + $0x18] sm:$0xff]  }
  0x90   :  { %1077 = vperm.xlu1 %11641, %v12418_v4  }
  0x94   :  { %11643 = vset.pattern.permute.xlu1 %v12316_v43 }
  0x95   :  { %1341 = vperm.xlu1 %11643, %v12418_v4   ;;  %v11700_v4 = vld [vmem:[%s13815_s2 + $0x30] sm:$0xff]  }
  0x99   :  { %1344 = vperm.xlu1 %11643, %v12428_v6   ;;  %v11702_v6 = vld [vmem:[%s13815_s2 + $0x28] sm:$0xff]  }
  0xd7   :  { %v154_v32 = vpop.permute.xlu0 %153  ;;  %v12516_v33 = vpop.permute.xlu1 %419 }
  0xd8   :  { %vm158_vm1 = vcmp.eq.s32.totalorder %v12514_v31, %v154_v32  ;;  %vm424_vm7 = vcmp.eq.s32.totalorder %v12514_v31, %v12516_v33  ;;  %v11687_v32 = vld [vmem:[%s13815_s2] sm:$0xff]   ;;  %v11757_v33 = vld [vmem:[%s13815_s2 + $0x10] sm:$0xff]  }
  0xdb   :  { %v157_v34 = vpop.permute.xlu0 %156  ;;  %v423_v36 = vpop.permute.xlu1 %422 }
  0xdc   :  { %vm159_vm2 = vcmp.eq.s32.totalorder %v12514_v31, %v157_v34  ;;  %vm425_vm8 = vcmp.eq.s32.totalorder %v12514_v31, %v423_v36  ;;  %v11689_v34 = vld [vmem:[%s13815_s2 + $0x38] sm:$0xff]   ;;  %v11691_v36 = vld [vmem:[%s13815_s2 + $0x30] sm:$0xff]  }
  0xdd   :  { %vm9850_vm3 = vmpackc.low %vm159_vm2, %vm158_vm1 }
  0xde   :  { %11398 = vmatmul.mubr.msk.bf16.vlgmr.msra.gmra.mxu0 %vm9850_vm3, %v12315_v37  ;;  %vm9878_vm9 = vmpackc.low %vm425_vm8, %vm424_vm7 }
  0xdf   :  { %11422 = vmatpush3.bf16.msra.mxu0 %v11653_v35  ;;  %11437 = vmatprep.mubr.msk.bf16.mxu0 %vm12306_vm0, %v12305_v3 }
  0xe0   :  { %11423 = vmatprep.subr.bf16.mxu0 %v12305_v3  ;;  %v12530_v39 = vpop.permute.xlu1 %686  ;;  %v12532_v40 = vpop.permute.xlu0 %683 }
  0xe1   :  { %vm689_vm13 = vcmp.eq.s32.totalorder %v12514_v31, %v12530_v39  ;;  %vm688_vm14 = vcmp.eq.s32.totalorder %v12514_v31, %v12532_v40 }
  0xe2   :  { %vm9906_vm15 = vmpackc.low %vm689_vm13, %vm688_vm14 }
  0xe3   :  { %11424 = vmatpush3.bf16.msra.mxu0 %v11654_v38  ;;  %v11763_v38 = vld [vmem:[%s13815_s2 + $0x8] sm:$0xff]  }
  0xe4   :  { %11425 = vmatprep.subr.bf16.mxu0 %v12305_v3 }
  0xe5   :  { %v285_v44 = vpop.permute.xlu1 %284  ;;  %v288_v45 = vpop.permute.xlu0 %287 }
  0xe6   :  { %vm289_vm4 = vcmp.eq.s32.totalorder %v12514_v31, %v285_v44  ;;  %vm290_vm5 = vcmp.eq.s32.totalorder %v12514_v31, %v288_v45  ;;  %v11769_v45 = vld [vmem:[%s13815_s2 + $0x38] sm:$0xff]  }
  0xe7   :  { %11426 = vmatpush3.bf16.msra.mxu0 %v11655_v41  ;;  %vm9864_vm6 = vmpackc.low %vm290_vm5, %vm289_vm4  ;;  %v11693_v41 = vld [vmem:[%s13815_s2 + $0x28] sm:$0xff]  }
  0xe8   :  { %11427 = vmatprep.subr.bf16.mxu0 %v12305_v3  ;;  %11418 = vmatmul.mubr.msk.bf16.vlgmr.msra.gmra.mxu1 %vm9864_vm6, %v12315_v37 }
  0xe9   :  { %11442 = vmatpush3.bf16.msra.mxu1 %v11682_v42  ;;  %11457 = vmatprep.mubr.msk.bf16.mxu1 %vm12306_vm0, %v12305_v3  ;;  %v11766_v42 = vld [vmem:[%s13815_s2] sm:$0xff]  }
  0xea   :  { %11443 = vmatprep.subr.bf16.mxu1 %v12305_v3  ;;  %v12576_v53 = vpop.permute.xlu1 %947 }
  0xeb   :  { %11428 = vmatpush3.bf16.msra.mxu0 %v11656_v46  ;;  %v550_v61 = vpop.permute.xlu0 %549  ;;  %vm952_vm4 = vcmp.eq.s32.totalorder %v12514_v31, %v12576_v53  ;;  %v11695_v46 = vld [vmem:[%s13815_s2 + $0x20] sm:$0xff]   ;;  %v11781_v53 = vld [vmem:[%s13815_s2 + $0x18] sm:$0xff]  }
  0xec   :  { %11429 = vmatprep.subr.bf16.mxu0 %v12305_v3  ;;  %vm554_vm11 = vcmp.eq.s32.totalorder %v12514_v31, %v550_v61  ;;  %v11793_v61 = vld [vmem:[%s13815_s2] sm:$0xff]  }
  0xed   :  { %11444 = vmatpush3.bf16.msra.mxu1 %v11684_v47  ;;  %v11772_v47 = vld [vmem:[%s13815_s2 + $0x30] sm:$0xff]  }
  0xee   :  { %11445 = vmatprep.subr.bf16.mxu1 %v12305_v3  ;;  %v12595_v58 = vpop.permute.xlu1 %950 }
  0xef   :  { %11430 = vmatpush3.bf16.msra.mxu0 %v11657_v48  ;;  %vm953_vm5 = vcmp.eq.s32.totalorder %v12514_v31, %v12595_v58  ;;  %v11697_v48 = vld [vmem:[%s13815_s2 + $0x18] sm:$0xff]   ;;  %v11790_v58 = vld [vmem:[%s13815_s2 + $0x8] sm:$0xff]  }
  0xf0   :  { %11431 = vmatprep.subr.bf16.mxu0 %v12305_v3  ;;  %v1215_v35 = vpop.permute.xlu0 %1214  ;;  %vm9934_vm6 = vmpackc.low %vm953_vm5, %vm952_vm4  ;;  %vm141_vm4 = vcmask 1043456   ;;  %vm142_vm5 = vcmask 523268  }
  0xf1   :  { %11446 = vmatpush3.bf16.msra.mxu1 %v11686_v49  ;;  %v11775_v49 = vld [vmem:[%s13815_s2 + $0x28] sm:$0xff]  }
  0xf2   :  { %11447 = vmatprep.subr.bf16.mxu1 %v12305_v3 }
  0xf3   :  { %11432 = vmatpush3.bf16.msra.mxu0 %v11658_v50  ;;  %v553_v60 = vpop.permute.xlu1 %552  ;;  %v11699_v50 = vld [vmem:[%s13815_s2 + $0x10] sm:$0xff]  }
  0xf4   :  { %11433 = vmatprep.subr.bf16.mxu0 %v12305_v3  ;;  %vm555_vm10 = vcmp.eq.s32.totalorder %v12514_v31, %v553_v60  ;;  %v11709_v60 = vld [vmem:[%s13815_s2 + $0x28] sm:$0xff]  }
  0xf5   :  { %11448 = vmatpush3.bf16.msra.mxu1 %v11688_v51  ;;  %vm9892_vm12 = vmpackc.low %vm555_vm10, %vm554_vm11  ;;  %v12766_v40 = vpop.permute.xlu0 %1475  ;;  %v11778_v51 = vld [vmem:[%s13815_s2 + $0x20] sm:$0xff]   ;;  %vm1217_vm11 = vcmp.eq.s32.totalorder %v12514_v31, %v1215_v35  ;;  %v11838_v35 = vld [vmem:[%s13816_s3 + $0x70] sm:$0xff]  }
  0xf6   :  { %11449 = vmatprep.subr.bf16.mxu1 %v12305_v3 }
  0xf7   :  { %11434 = vmatpush3.bf16.msra.mxu0 %v11659_v52  ;;  %v11701_v52 = vld [vmem:[%s13815_s2 + $0x8] sm:$0xff]  }
  0xf8   :  { %11435 = vmatprep.subr.bf16.mxu0 %v12305_v3  ;;  %v12655_v10 = vpop.permute.xlu1 %1211 }
  0xf9   :  { %11450 = vmatpush3.bf16.msra.mxu1 %v11690_v55  ;;  %vm1216_vm10 = vcmp.eq.s32.totalorder %v12514_v31, %v12655_v10  ;;  %v11784_v55 = vld [vmem:[%s13815_s2 + $0x10] sm:$0xff]   ;;  %v11808_v10 = vld [vmem:[%s13816_s3 + $0x60] sm:$0xff]  }
  0xfa   :  { %11451 = vmatprep.subr.bf16.mxu1 %v12305_v3  ;;  %v1081_v44 = vpop.permute.xlu0 %1080 }
  0xfb   :  { %11436 = vmatpush3.bf16.msra.mxu0 %v11660_v54  ;;  %vm1083_vm8 = vcmp.eq.s32.totalorder %v12514_v31, %v1081_v44  ;;  %v11703_v54 = vld [vmem:[%s13815_s2] sm:$0xff]  }
  0xfc   :  { %11461 = vmatprep.subr.bf16.mxu0 %v12305_v3  ;;  %v11846_v44 = vld [vmem:[%s13816_s3 + $0x60] sm:$0xff]  }
  0xfd   :  { %11452 = vmatpush3.bf16.msra.mxu1 %v11692_v56  ;;  %v814_v14 = vpop.permute.xlu1 %813  ;;  %v11705_v56 = vld [vmem:[%s13815_s2 + $0x38] sm:$0xff]  }
  0xfe   :  { %11438 = vmatmul.mubr.msk.bf16.vlgmr.msra.gmra.mxu0 %vm9878_vm9, %v12315_v37  ;;  %11453 = vmatprep.subr.bf16.mxu1 %v12305_v3  ;;  %vm818_vm1 = vcmp.eq.s32.totalorder %v12514_v31, %v814_v14  ;;  %v11717_v14 = vld [vmem:[%s13816_s3 + $0x78] sm:$0xff]  }
  0xff   :  { %11462 = vmatpush3.bf16.msra.mxu0 %v11661_v57  ;;  %11477 = vmatprep.mubr.msk.bf16.mxu0 %vm12306_vm0, %v12305_v3  ;;  %v11707_v57 = vld [vmem:[%s13815_s2 + $0x30] sm:$0xff]  }
 0x100   :  { %11463 = vmatprep.subr.bf16.mxu0 %v12305_v3 }
 0x101   :  { %11454 = vmatpush3.bf16.msra.mxu1 %v11694_v59  ;;  %v817_v18 = vpop.permute.xlu1 %816 }
 0x102   :  { %11455 = vmatprep.subr.bf16.mxu1 %v12305_v3  ;;  %vm819_vm2 = vcmp.eq.s32.totalorder %v12514_v31, %v817_v18  ;;  %v11821_v18 = vld [vmem:[%s13816_s3 + $0x10] sm:$0xff]  }
 0x103   :  { %11464 = vmatpush3.bf16.msra.mxu0 %v11662_v62  ;;  %vm9920_vm3 = vmpackc.low %vm819_vm2, %vm818_vm1  ;;  %vm1480_vm1 = vcmp.eq.s32.totalorder %v12514_v31, %v12766_v40  ;;  %v11842_v40 = vld [vmem:[%s13816_s3 + $0x68] sm:$0xff]  }
 0x104   :  { %11465 = vmatprep.subr.bf16.mxu0 %v12305_v3 }
 0x105   :  { %11456 = vmatpush3.bf16.msra.mxu1 %v11696_v63  ;;  %v11711_v63 = vld [vmem:[%s13815_s2 + $0x20] sm:$0xff]  }
 0x106   :  { %11481 = vmatprep.subr.bf16.mxu1 %v12305_v3  ;;  %v12764_v39 = vpop.permute.xlu1 %1478 }
 0x107   :  { %11466 = vmatpush3.bf16.msra.mxu0 %v11663_v0  ;;  %v11796_v0 = vld [vmem:[%s13816_s3 + $0x78] sm:$0xff]  }
 0x108   :  { %11467 = vmatprep.subr.bf16.mxu0 %v12305_v3  ;;  %11458 = vmatmul.mubr.msk.bf16.vlgmr.msra.gmra.mxu1 %vm9892_vm12, %v12315_v37  ;;  %vm9962_vm12 = vmpackc.low %vm1217_vm11, %vm1216_vm10 }
 0x109   :  { %11482 = vmatpush3.bf16.msra.mxu1 %v11698_v1  ;;  %11497 = vmatprep.mubr.msk.bf16.mxu1 %vm12306_vm0, %v12305_v3  ;;  %v11798_v1 = vld [vmem:[%s13816_s3 + $0x38] sm:$0xff]  }
 0x10a   :  { %11483 = vmatprep.subr.bf16.mxu1 %v12305_v3 }
 0x10b   :  { %11468 = vmatpush3.bf16.msra.mxu0 %v11664_v2  ;;  %v1078_v43 = vpop.permute.xlu1 %1077  ;;  %v11713_v2 = vld [vmem:[%s13815_s2 + $0x18] sm:$0xff]  }
 0x10c   :  { %11469 = vmatprep.subr.bf16.mxu0 %v12305_v3  ;;  %vm1082_vm7 = vcmp.eq.s32.totalorder %v12514_v31, %v1078_v43  ;;  %v11730_v43 = vld [vmem:[%s13816_s3 + $0x8] sm:$0xff]  }
 0x10d   :  { %11484 = vmatpush3.bf16.msra.mxu1 %v11700_v4  ;;  %vm9948_vm9 = vmpackc.low %vm1083_vm8, %vm1082_vm7  ;;  %v11800_v4 = vld [vmem:[%s13816_s3 + $0x70] sm:$0xff]   ;;  %vm413_vm7 = vcmask 1043968   ;;  %vm8217_vm8 = vcmask 523264  }
 0x10e   :  { %11485 = vmatprep.subr.bf16.mxu1 %v12305_v3 }
 0x10f   :  { %11470 = vmatpush3.bf16.msra.mxu0 %v11665_v5  ;;  %v11802_v5 = vld [vmem:[%s13816_s3 + $0x30] sm:$0xff]  }
 0x110   :  { %11471 = vmatprep.subr.bf16.mxu0 %v12305_v3  ;;  %v1342_v59 = vpop.permute.xlu1 %1341 }
 0x111   :  { %11486 = vmatpush3.bf16.msra.mxu1 %v11702_v6  ;;  %vm1346_vm13 = vcmp.eq.s32.totalorder %v12514_v31, %v1342_v59  ;;  %v11714_v6 = vld [vmem:[%s13815_s2 + $0x10] sm:$0xff]  }
 0x112   :  { %11487 = vmatprep.subr.bf16.mxu1 %v12305_v3  ;;  %v11739_v59 = vld [vmem:[%s13816_s3 + $0x30] sm:$0xff]  }
 0x113   :  { %11472 = vmatpush3.bf16.msra.mxu0 %v11667_v7  ;;  %v11804_v7 = vld [vmem:[%s13816_s3 + $0x68] sm:$0xff]  }
 0x114   :  { %11473 = vmatprep.subr.bf16.mxu0 %v12305_v3  ;;  %v1345_v62 = vpop.permute.xlu1 %1344 }
 0x115   :  { %11488 = vmatpush3.bf16.msra.mxu1 %v11704_v8  ;;  %v11806_v8 = vld [vmem:[%s13816_s3 + $0x28] sm:$0xff]  }
 0x116   :  { %11489 = vmatprep.subr.bf16.mxu1 %v12305_v3 }
 0x117   :  { %11474 = vmatpush3.bf16.msra.mxu0 %v11669_v9  ;;  %v11715_v9 = vld [vmem:[%s13815_s2 + $0x8] sm:$0xff]  }
 0x118   :  { %11475 = vmatprep.subr.bf16.mxu0 %v12305_v3 }
 0x119   :  { %11490 = vmatpush3.bf16.msra.mxu1 %v11706_v11  ;;  %v11810_v11 = vld [vmem:[%s13816_s3 + $0x20] sm:$0xff]  }
 0x11a   :  { %11491 = vmatprep.subr.bf16.mxu1 %v12305_v3 }
 0x11b   :  { %11476 = vmatpush3.bf16.msra.mxu0 %v11671_v12  ;;  %v11716_v12 = vld [vmem:[%s13815_s2] sm:$0xff]  }
 0x11c   :  { %11501 = vmatprep.subr.bf16.mxu0 %v12305_v3 }
 0x11d   :  { %11492 = vmatpush3.bf16.msra.mxu1 %v11708_v13  ;;  %v11812_v13 = vld [vmem:[%s13816_s3 + $0x58] sm:$0xff]  }
 0x11e   :  { %11478 = vmatmul.mubr.msk.bf16.vlgmr.msra.gmra.mxu0 %vm9906_vm15, %v12315_v37  ;;  %11493 = vmatprep.subr.bf16.mxu1 %v12305_v3  ;;  %vm1481_vm15 = vcmp.eq.s32.totalorder %v12514_v31, %v12764_v39  ;;  %v11728_v39 = vld [vmem:[%s13816_s3 + $0x10] sm:$0xff]  }
 0x11f   :  { %11502 = vmatpush3.bf16.msra.mxu0 %v11673_v15  ;;  %11517 = vmatprep.mubr.msk.bf16.mxu0 %vm12306_vm0, %v12305_v3  ;;  %v11814_v15 = vld [vmem:[%s13816_s3 + $0x18] sm:$0xff]   ;;  %vm9990_vm2 = vmpackc.low %vm1481_vm15, %vm1480_vm1 }
 0x120   :  { %11503 = vmatprep.subr.bf16.mxu0 %v12305_v3 }
 0x121   :  { %11494 = vmatpush3.bf16.msra.mxu1 %v11710_v17  ;;  %v11819_v17 = vld [vmem:[%s13816_s3 + $0x50] sm:$0xff]  }
 0x122   :  { %11495 = vmatprep.subr.bf16.mxu1 %v12305_v3 }
 0x123   :  { %11504 = vmatpush3.bf16.msra.mxu0 %v11675_v16  ;;  %v11719_v16 = vld [vmem:[%s13816_s3 + $0x70] sm:$0xff]  }
 0x124   :  { %11505 = vmatprep.subr.bf16.mxu0 %v12305_v3 }
 0x125   :  { %11496 = vmatpush3.bf16.msra.mxu1 %v11712_v20  ;;  %v11721_v20 = vld [vmem:[%s13816_s3 + $0x68] sm:$0xff]  }
 0x126   :  { %11521 = vmatprep.subr.bf16.mxu1 %v12305_v3 }
 0x127   :  { %11506 = vmatpush3.bf16.msra.mxu0 %v11677_v19  ;;  %v11720_v19 = vld [vmem:[%s13816_s3 + $0x30] sm:$0xff]  }
 0x128   :  { %11507 = vmatprep.subr.bf16.mxu0 %v12305_v3  ;;  %11498 = vmatmul.mubr.msk.bf16.vlgmr.msra.gmra.mxu1 %vm9920_vm3, %v12315_v37  ;;  %vm278_vm3 = vcmask 519168  }
 0x129   :  { %11522 = vmatpush3.bf16.msra.mxu1 %v11742_v21  ;;  %11537 = vmatprep.mubr.msk.bf16.mxu1 %vm12306_vm0, %v12305_v3  ;;  %v11823_v21 = vld [vmem:[%s13816_s3 + $0x48] sm:$0xff]  }
 0x12a   :  { %11523 = vmatprep.subr.bf16.mxu1 %v12305_v3 }
 0x12b   :  { %11508 = vmatpush3.bf16.msra.mxu0 %v11679_v22  ;;  %v11722_v22 = vld [vmem:[%s13816_s3 + $0x28] sm:$0xff]  }
 0x12c   :  { %11509 = vmatprep.subr.bf16.mxu0 %v12305_v3 }
 0x12d   :  { %11524 = vmatpush3.bf16.msra.mxu1 %v11745_v23  ;;  %v11723_v23 = vld [vmem:[%s13816_s3 + $0x60] sm:$0xff]  }
 0x12e   :  { %11525 = vmatprep.subr.bf16.mxu1 %v12305_v3 }
 0x12f   :  { %11510 = vmatpush3.bf16.msra.mxu0 %v11681_v24  ;;  %v11827_v24 = vld [vmem:[%s13816_s3 + $0x40] sm:$0xff]  }
 0x130   :  { %11511 = vmatprep.subr.bf16.mxu0 %v12305_v3 }
 0x131   :  { %11526 = vmatpush3.bf16.msra.mxu1 %v11748_v25  ;;  %v11829_v25 = vld [vmem:[%s13816_s3] sm:$0xff]  }
 0x132   :  { %11527 = vmatprep.subr.bf16.mxu1 %v12305_v3 }
 0x133   :  { %11512 = vmatpush3.bf16.msra.mxu0 %v11683_v26  ;;  %v11724_v26 = vld [vmem:[%s13816_s3 + $0x20] sm:$0xff]  }
 0x134   :  { %11513 = vmatprep.subr.bf16.mxu0 %v12305_v3 }
 0x135   :  { %11528 = vmatpush3.bf16.msra.mxu1 %v11751_v27  ;;  %v11831_v27 = vld [vmem:[%s13814_s1] ss:$80 sps:$4 sm:$0xff]  }
 0x136   :  { %11529 = vmatprep.subr.bf16.mxu1 %v12305_v3 }
 0x137   :  { %11514 = vmatpush3.bf16.msra.mxu0 %v11685_v28  ;;  %v11833_v28 = vld [vmem:[%s13814_s1 + $0x4] ss:$80 sps:$4 sm:$0xff]  }
 0x138   :  { %11515 = vmatprep.subr.bf16.mxu0 %v12305_v3 }
 0x139   :  { %11530 = vmatpush3.bf16.msra.mxu1 %v11754_v29  ;;  %v11834_v29 = vld [vmem:[%s13816_s3 + $0x78] sm:$0xff]  }
 0x13a   :  { %11531 = vmatprep.subr.bf16.mxu1 %v12305_v3 }
 0x13b   :  { %11516 = vmatpush3.bf16.msra.mxu0 %v11687_v32  ;;  %v11725_v32 = vld [vmem:[%s13816_s3 + $0x58] sm:$0xff]  }
 0x13c   :  { %11541 = vmatprep.subr.bf16.mxu0 %v12305_v3 }
 0x13d   :  { %11532 = vmatpush3.bf16.msra.mxu1 %v11757_v33  ;;  %v11836_v33 = vld [vmem:[%s13816_s3 + $0x38] sm:$0xff]  }
 0x13e   :  { %11518 = vmatmul.mubr.msk.bf16.vlgmr.msra.gmra.mxu0 %vm9934_vm6, %v12315_v37  ;;  %11533 = vmatprep.subr.bf16.mxu1 %v12305_v3  ;;  %vm143_vm6 = vmor %vm142_vm5, %vm141_vm4 }
 0x13f   :  { %11542 = vmatpush3.bf16.msra.mxu0 %v11689_v34  ;;  %11557 = vmatprep.mubr.msk.bf16.mxu0 %vm12306_vm0, %v12305_v3  ;;  %v11726_v34 = vld [vmem:[%s13816_s3 + $0x18] sm:$0xff]  }
 0x140   :  { %11543 = vmatprep.subr.bf16.mxu0 %v12305_v3 }
 0x141   :  { %11534 = vmatpush3.bf16.msra.mxu1 %v11763_v38  ;;  %v11840_v38 = vld [vmem:[%s13816_s3 + $0x30] sm:$0xff]  }
 0x142   :  { %11535 = vmatprep.subr.bf16.mxu1 %v12305_v3 }
 0x143   :  { %11544 = vmatpush3.bf16.msra.mxu0 %v11691_v36  ;;  %v11727_v36 = vld [vmem:[%s13816_s3 + $0x50] sm:$0xff]  }
 0x144   :  { %11545 = vmatprep.subr.bf16.mxu0 %v12305_v3 }
 0x145   :  { %11536 = vmatpush3.bf16.msra.mxu1 %v11766_v42  ;;  %v11844_v42 = vld [vmem:[%s13816_s3 + $0x28] sm:$0xff]  }
 0x146   :  { %11561 = vmatprep.subr.bf16.mxu1 %v12305_v3 }
 0x147   :  { %11546 = vmatpush3.bf16.msra.mxu0 %v11693_v41  ;;  %v11729_v41 = vld [vmem:[%s13816_s3 + $0x48] sm:$0xff]  }
 0x148   :  { %11547 = vmatprep.subr.bf16.mxu0 %v12305_v3  ;;  %11538 = vmatmul.mubr.msk.bf16.vlgmr.msra.gmra.mxu1 %vm9948_vm9, %v12315_v37  ;;  %vm9829_vm9 = vcmask 7168  }
 0x149   :  { %11562 = vmatpush3.bf16.msra.mxu1 %v11769_v45  ;;  %11577 = vmatprep.mubr.msk.bf16.mxu1 %vm12306_vm0, %v12305_v3  ;;  %v11731_v45 = vld [vmem:[%s13816_s3 + $0x40] sm:$0xff]  }
 0x14a   :  { %11563 = vmatprep.subr.bf16.mxu1 %v12305_v3 }
 0x14b   :  { %11548 = vmatpush3.bf16.msra.mxu0 %v11695_v46  ;;  %v11848_v46 = vld [vmem:[%s13816_s3 + $0x20] sm:$0xff]  }
 0x14c   :  { %11549 = vmatprep.subr.bf16.mxu0 %v12305_v3 }
 0x14d   :  { %11564 = vmatpush3.bf16.msra.mxu1 %v11772_v47  ;;  %v11732_v47 = vld [vmem:[%s13816_s3] sm:$0xff]  }
 0x14e   :  { %11565 = vmatprep.subr.bf16.mxu1 %v12305_v3 }
 0x14f   :  { %11550 = vmatpush3.bf16.msra.mxu0 %v11697_v48  ;;  %v11850_v48 = vld [vmem:[%s13816_s3 + $0x58] sm:$0xff]  }
 0x150   :  { %11551 = vmatprep.subr.bf16.mxu0 %v12305_v3 }
 0x151   :  { %11566 = vmatpush3.bf16.msra.mxu1 %v11775_v49  ;;  %v11736_v49 = vld [vmem:[%s13816_s3 + $0x78] sm:$0xff]  }
 0x152   :  { %11567 = vmatprep.subr.bf16.mxu1 %v12305_v3 }
 0x153   :  { %11552 = vmatpush3.bf16.msra.mxu0 %v11699_v50  ;;  %v11852_v50 = vld [vmem:[%s13816_s3 + $0x18] sm:$0xff]  }
 0x154   :  { %11553 = vmatprep.subr.bf16.mxu0 %v12305_v3 }
 0x155   :  { %11568 = vmatpush3.bf16.msra.mxu1 %v11778_v51  ;;  %v11733_v51 = vld [vmem:[%s13814_s1 + $0x8] ss:$80 sps:$4 sm:$0xff]  }
 0x156   :  { %11569 = vmatprep.subr.bf16.mxu1 %v12305_v3 }
 0x157   :  { %11554 = vmatpush3.bf16.msra.mxu0 %v11701_v52  ;;  %v11737_v52 = vld [vmem:[%s13816_s3 + $0x38] sm:$0xff]  }
 0x158   :  { %11555 = vmatprep.subr.bf16.mxu0 %v12305_v3 }
 0x159   :  { %11570 = vmatpush3.bf16.msra.mxu1 %v11781_v53  ;;  %v11760_v53 = vld [vmem:[%s13814_s1 + $0x1c] ss:$80 sps:$4 sm:$0xff]  }
 0x15a   :  { %11571 = vmatprep.subr.bf16.mxu1 %v12305_v3 }
 0x15b   :  { %11556 = vmatpush3.bf16.msra.mxu0 %v11703_v54  ;;  %v11738_v54 = vld [vmem:[%s13816_s3 + $0x70] sm:$0xff]  }
 0x15c   :  { %11581 = vmatprep.subr.bf16.mxu0 %v12305_v3 }
 0x15d   :  { %11572 = vmatpush3.bf16.msra.mxu1 %v11784_v55  ;;  %v11857_v55 = vld [vmem:[%s13816_s3 + $0x50] sm:$0xff]  }
 0x15e   :  { %11558 = vmatmul.mubr.msk.bf16.vlgmr.msra.gmra.mxu0 %vm9962_vm12, %v12315_v37  ;;  %11573 = vmatprep.subr.bf16.mxu1 %v12305_v3 }
 0x15f   :  { %11582 = vmatpush3.bf16.msra.mxu0 %v11705_v56  ;;  %11597 = vmatprep.mubr.msk.bf16.mxu0 %vm12306_vm0, %v12305_v3  ;;  %vm1347_vm0 = vcmp.eq.s32.totalorder %v12514_v31, %v1345_v62  ;;  %v11735_v31 = vld [vmem:[%s13814_s1 + $0xc] ss:$80 sps:$4 sm:$0xff]   ;;  %v11858_v56 = vld [vmem:[%s13816_s3 + $0x10] sm:$0xff]  }
 0x160   :  { %11583 = vmatprep.subr.bf16.mxu0 %v12305_v3  ;;  %vm9976_vm14 = vmpackc.low %vm1347_vm0, %vm1346_vm13  ;;  %v11859_v62 = vld [vmem:[%s13816_s3 + $0x48] sm:$0xff]  }
 0x161   :  { %11574 = vmatpush3.bf16.msra.mxu1 %v11790_v58 }
 0x162   :  { %11575 = vmatprep.subr.bf16.mxu1 %v12305_v3 }
 0x163   :  { %11584 = vmatpush3.bf16.msra.mxu0 %v11707_v57 }
 0x164   :  { %11585 = vmatprep.subr.bf16.mxu0 %v12305_v3 }
 0x165   :  { %11576 = vmatpush3.bf16.msra.mxu1 %v11793_v61  ;;  %v11740_v61 = vld [vmem:[%s13816_s3 + $0x68] sm:$0xff]  }
 0x166   :  { %11161 = vmatprep.subr.bf16.mxu1 %v11796_v0  ;;  %v13047_v0 = vld [vmem:[#allocation2] sm:$0xff] }
 0x167   :  { %11586 = vmatpush3.bf16.msra.mxu0 %v11709_v60  ;;  %144 = vst.msk [vmem:[#allocation2 + $0x10] sm:$0xff] %vm143_vm6, %v13047_v0  ;;  %147 = vst.msk [vmem:[#allocation2 + $0x28] sm:$0xff] %vm143_vm6, %v13047_v0 }
 0x168   :  { %11587 = vmatprep.subr.bf16.mxu0 %v12305_v3  ;;  %11578 = vmatmul.mubr.msk.bf16.vlgmr.msra.gmra.mxu1 %vm9976_vm14, %v12315_v37 }
 0x169   :  { %11162 = vmatpush3.bf16.msra.mxu1 %v11798_v1  ;;  %1781 = vmatprep.mubr.bf16.mxu1 %v11833_v28  ;;  %v11874_v28 = vld [vmem:[%s13816_s3 + $0x58] sm:$0xff]  }
 0x16a   :  { %11163 = vmatprep.subr.bf16.mxu1 %v11800_v4  ;;  %v11741_v4 = vld [vmem:[%s13816_s3 + $0x28] sm:$0xff]  }
 0x16b   :  { %11588 = vmatpush3.bf16.msra.mxu0 %v11711_v63  ;;  %v11860_v63 = vld [vmem:[%s13816_s3 + $0x8] sm:$0xff]  }
 0x16c   :  { %11589 = vmatprep.subr.bf16.mxu0 %v12305_v3 }
 0x16d   :  { %11164 = vmatpush3.bf16.msra.mxu1 %v11802_v5 }
 0x16e   :  { %11165 = vmatprep.subr.bf16.mxu1 %v11804_v7  ;;  %v11861_v7 = vld [vmem:[%s13816_s3 + $0x40] sm:$0xff]  }
 0x16f   :  { %11590 = vmatpush3.bf16.msra.mxu0 %v11713_v2 }
 0x170   :  { %11591 = vmatprep.subr.bf16.mxu0 %v12305_v3 }
 0x171   :  { %11166 = vmatpush3.bf16.msra.mxu1 %v11806_v8  ;;  %v11862_v8 = vld [vmem:[%s13816_s3] sm:$0xff]  }
 0x172   :  { %11167 = vmatprep.subr.bf16.mxu1 %v11808_v10  ;;  %v11866_v10 = vld [vmem:[%s13816_s3 + $0x78] sm:$0xff]  }
 0x173   :  { %11592 = vmatpush3.bf16.msra.mxu0 %v11714_v6  ;;  %v11743_v6 = vld [vmem:[%s13816_s3 + $0x60] sm:$0xff]  }
 0x174   :  { %11593 = vmatprep.subr.bf16.mxu0 %v12305_v3 }
 0x175   :  { %11168 = vmatpush3.bf16.msra.mxu1 %v11810_v11  ;;  %v11744_v11 = vld [vmem:[%s13816_s3 + $0x20] sm:$0xff]  }
 0x176   :  { %11169 = vmatprep.subr.bf16.mxu1 %v11812_v13  ;;  %v11746_v13 = vld [vmem:[%s13816_s3 + $0x58] sm:$0xff]  }
 0x177   :  { %11594 = vmatpush3.bf16.msra.mxu0 %v11715_v9  ;;  %v11865_v9 = vld [vmem:[%s13814_s1 + $0x14] ss:$80 sps:$4 sm:$0xff]  }
 0x178   :  { %11595 = vmatprep.subr.bf16.mxu0 %v12305_v3  ;;  %v11718_v3 = vld [vmem:[%s13816_s3 + $0x38] sm:$0xff]  }
 0x179   :  { %11170 = vmatpush3.bf16.msra.mxu1 %v11814_v15  ;;  %v11867_v15 = vld [vmem:[%s13816_s3 + $0x38] sm:$0xff]  }
 0x17a   :  { %11171 = vmatprep.subr.bf16.mxu1 %v11819_v17  ;;  %v11749_v17 = vld [vmem:[%s13816_s3 + $0x50] sm:$0xff]  }
 0x17b   :  { %11596 = vmatpush3.bf16.msra.mxu0 %v11716_v12  ;;  %v11863_v12 = vld [vmem:[%s13814_s1 + $0x10] ss:$80 sps:$4 sm:$0xff]  }
 0x17c   :  { %11183 = vmatprep.subr.bf16.mxu0 %v11717_v14 }
 0x17d   :  { %11172 = vmatpush3.bf16.msra.mxu1 %v11821_v18 }
 0x17e   :  { %11598 = vmatmul.mubr.msk.bf16.vlgmr.msra.gmra.mxu0 %vm9990_vm2, %v12315_v37  ;;  %v11825_v37 = vld [vmem:[%s13816_s3 + $0x8] sm:$0xff]   ;;  %11173 = vmatprep.subr.bf16.mxu1 %v11823_v21 }
 0x17f   :  { %11184 = vmatpush3.bf16.msra.mxu0 %v11718_v3  ;;  %1979 = vmatprep.mubr.bf16.mxu0 %v11735_v31  ;;  %v11868_v3 = vld [vmem:[%s13816_s3 + $0x70] sm:$0xff]  }
 0x180   :  { %11185 = vmatprep.subr.bf16.mxu0 %v11719_v16  ;;  %v11747_v16 = vld [vmem:[%s13816_s3 + $0x18] sm:$0xff]  }
 0x181   :  { %11174 = vmatpush3.bf16.msra.mxu1 %v11825_v37  ;;  %v11750_v37 = vld [vmem:[%s13816_s3 + $0x10] sm:$0xff]  }
 0x182   :  { %11175 = vmatprep.subr.bf16.mxu1 %v11827_v24  ;;  %v11872_v24 = vld [vmem:[%s13816_s3 + $0x60] sm:$0xff]  }
 0x183   :  { %11186 = vmatpush3.bf16.msra.mxu0 %v11720_v19  ;;  %v11869_v19 = vld [vmem:[%s13816_s3 + $0x30] sm:$0xff]  }
 0x184   :  { %11187 = vmatprep.subr.bf16.mxu0 %v11721_v20  ;;  %v11870_v20 = vld [vmem:[%s13816_s3 + $0x68] sm:$0xff]  }
 0x185   :  { %11176 = vmatpush3.bf16.msra.mxu1 %v11829_v25  ;;  %v11753_v25 = vld [vmem:[%s13816_s3 + $0x8] sm:$0xff]  }
 0x186   :  { %11205 = vmatprep.subr.bf16.mxu1 %v11834_v29  ;;  %v11756_v29 = vld [vmem:[%s13816_s3] sm:$0xff]  }
 0x187   :  { %11188 = vmatpush3.bf16.msra.mxu0 %v11722_v22  ;;  %v11752_v22 = vld [vmem:[%s13816_s3 + $0x48] sm:$0xff]  }
 0x188   :  { %11189 = vmatprep.subr.bf16.mxu0 %v11723_v23  ;;  %1782 = vmatmul.mubr.bf16.vlgmr.msra.gmra.mxu1 %v11831_v27  ;;  %v11871_v23 = vld [vmem:[%s13816_s3 + $0x28] sm:$0xff]   ;;  %v11873_v27 = vld [vmem:[%s13816_s3 + $0x20] sm:$0xff]  }
 0x189   :  { %11206 = vmatpush3.bf16.msra.mxu1 %v11836_v33  ;;  %2181 = vmatprep.mubr.bf16.mxu1 %v11865_v9  ;;  %v11875_v33 = vld [vmem:[%s13816_s3 + $0x18] sm:$0xff]   ;;  %v11779_v9 = vld [vmem:[%s13816_s3 + $0x48] sm:$0xff]  }
 0x18a   :  { %11207 = vmatprep.subr.bf16.mxu1 %v11838_v35  ;;  %v11762_v35 = vld [vmem:[%s13816_s3 + $0x38] sm:$0xff]  }
 0x18b   :  { %11190 = vmatpush3.bf16.msra.mxu0 %v11724_v26  ;;  %v11755_v26 = vld [vmem:[%s13816_s3 + $0x40] sm:$0xff]  }
 0x18c   :  { %11191 = vmatprep.subr.bf16.mxu0 %v11725_v32  ;;  %v11761_v32 = vld [vmem:[%s13816_s3 + $0x78] sm:$0xff]  }
 0x18d   :  { %11208 = vmatpush3.bf16.msra.mxu1 %v11840_v38  ;;  %v11764_v38 = vld [vmem:[%s13816_s3 + $0x70] sm:$0xff]  }
 0x18e   :  { %11209 = vmatprep.subr.bf16.mxu1 %v11842_v40  ;;  %v11877_v40 = vld [vmem:[%s13816_s3 + $0x10] sm:$0xff]  }
 0x18f   :  { %11192 = vmatpush3.bf16.msra.mxu0 %v11726_v34  ;;  %v11758_v34 = vld [vmem:[%s13814_s1 + $0x18] ss:$80 sps:$4 sm:$0xff]  }
 0x190   :  { %11193 = vmatprep.subr.bf16.mxu0 %v11727_v36  ;;  %v11787_v36 = vld [vmem:[%s13814_s1 + $0x2c] ss:$80 sps:$4 sm:$0xff]  }
 0x191   :  { %11210 = vmatpush3.bf16.msra.mxu1 %v11844_v42 }
 0x192   :  { %11211 = vmatprep.subr.bf16.mxu1 %v11846_v44 }
 0x193   :  { %11194 = vmatpush3.bf16.msra.mxu0 %v11728_v39  ;;  %v11876_v39 = vld [vmem:[%s13816_s3 + $0x50] sm:$0xff]  }
 0x194   :  { %11195 = vmatprep.subr.bf16.mxu0 %v11729_v41 }
 0x195   :  { %11212 = vmatpush3.bf16.msra.mxu1 %v11848_v46  ;;  %v11878_v46 = vld [vmem:[%s13816_s3 + $0x48] sm:$0xff]  }
 0x196   :  { %11213 = vmatprep.subr.bf16.mxu1 %v11850_v48 }
 0x197   :  { %11196 = vmatpush3.bf16.msra.mxu0 %v11730_v43  ;;  %v11765_v43 = vld [vmem:[%s13816_s3 + $0x30] sm:$0xff]  }
 0x198   :  { %11197 = vmatprep.subr.bf16.mxu0 %v11731_v45  ;;  %v11767_v45 = vld [vmem:[%s13816_s3 + $0x68] sm:$0xff]  }
 0x199   :  { %11214 = vmatpush3.bf16.msra.mxu1 %v11852_v50  ;;  %v11768_v50 = vld [vmem:[%s13816_s3 + $0x28] sm:$0xff]  }
 0x19a   :  { %11215 = vmatprep.subr.bf16.mxu1 %v11857_v55  ;;  %v11884_v55 = vld [vmem:[%s13814_s1 + $0x24] ss:$80 sps:$4 sm:$0xff]  }
 0x19b   :  { %11198 = vmatpush3.bf16.msra.mxu0 %v11732_v47  ;;  %v11879_v47 = vld [vmem:[%s13816_s3 + $0x8] sm:$0xff]  }
 0x19c   :  { %11227 = vmatprep.subr.bf16.mxu0 %v11736_v49 }
 0x19d   :  { %11216 = vmatpush3.bf16.msra.mxu1 %v11858_v56  ;;  %v11885_v56 = vld [vmem:[%s13816_s3 + $0x78] sm:$0xff]  }
 0x19e   :  { %1980 = vmatmul.mubr.bf16.vlgmr.msra.gmra.mxu0 %v11733_v51  ;;  %v263_v57 = vpop.f32.mrf.mxu0  ;;  %11217 = vmatprep.subr.bf16.mxu1 %v11859_v62  ;;  %v11887_v62 = vld [vmem:[%s13816_s3 + $0x70] sm:$0xff]  }
 0x19f   :  { %v11020_v58 = vpack.c.bf16 %v263_v57, %v263_v57  ;;  %11228 = vmatpush3.bf16.msra.mxu0 %v11737_v52  ;;  %2379 = vmatprep.mubr.bf16.mxu0 %v11760_v53  ;;  %v11770_v52 = vld [vmem:[%s13816_s3 + $0x60] sm:$0xff]  }
 0x1a0   :  { %v11399_v60 = vpop.f32.mrf.mxu0  ;;  %11229 = vmatprep.subr.bf16.mxu0 %v11738_v54  ;;  %v11880_v53 = vld [vmem:[%s13816_s3 + $0x40] sm:$0xff]  }
 0x1a1   :  { %279 = vst.msk [vmem:[#allocation2] sm:$0xf] %vm278_vm3, %v11020_v58  ;;  %11218 = vmatpush3.bf16.msra.mxu1 %v11860_v63  ;;  %v11881_v54 = vld [vmem:[%s13816_s3] sm:$0xff]  }
 0x1a2   :  { %v266_v1 = vpop.f32.mrf.mxu0  ;;  %11219 = vmatprep.subr.bf16.mxu1 %v11861_v7  ;;  %v11771_v57 = vld [vmem:[%s13816_s3 + $0x20] sm:$0xff]  }
 0x1a3   :  { %v11021_v2 = vpack.c.bf16 %v266_v1, %v266_v1  ;;  %11230 = vmatpush3.bf16.msra.mxu0 %v11739_v59  ;;  %v11882_v58 = vld [vmem:[%s13814_s1 + $0x20] ss:$80 sps:$4 sm:$0xff]   ;;  %v11773_v59 = vld [vmem:[%s13816_s3 + $0x58] sm:$0xff]  }
 0x1a4   :  { %v11400_v5 = vpop.f32.mrf.mxu0  ;;  %11231 = vmatprep.subr.bf16.mxu0 %v11740_v61  ;;  %v11886_v61 = vld [vmem:[%s13816_s3 + $0x38] sm:$0xff]  }
 0x1a5   :  { %280 = vst.msk [vmem:[#allocation2 + $0x18] sm:$0xf] %vm278_vm3, %v11021_v2  ;;  %11220 = vmatpush3.bf16.msra.mxu1 %v11862_v8  ;;  %v11774_v1 = vld [vmem:[%s13816_s3 + $0x18] sm:$0xff]   ;;  %v11776_v2 = vld [vmem:[%s13816_s3 + $0x50] sm:$0xff]  }
 0x1a6   :  { %11249 = vmatprep.subr.bf16.mxu1 %v11866_v10  ;;  %v11888_v5 = vld [vmem:[%s13816_s3 + $0x30] sm:$0xff]   ;;  %v11890_v10 = vld [vmem:[%s13816_s3 + $0x28] sm:$0xff]  }
 0x1a7   :  { %11232 = vmatpush3.bf16.msra.mxu0 %v11741_v4  ;;  %v11777_v8 = vld [vmem:[%s13816_s3 + $0x10] sm:$0xff]  }
 0x1a8   :  { %11233 = vmatprep.subr.bf16.mxu0 %v11743_v6  ;;  %v13080_v14 = vpop.f32.mrf.mxu1  ;;  %2182 = vmatmul.mubr.bf16.vlgmr.msra.gmra.mxu1 %v11863_v12  ;;  %v11889_v6 = vld [vmem:[%s13816_s3 + $0x68] sm:$0xff]  }
 0x1a9   :  { %11250 = vmatpush3.bf16.msra.mxu1 %v11867_v15  ;;  %2581 = vmatprep.mubr.bf16.mxu1 %v11884_v55  ;;  %v11780_v12 = vld [vmem:[%s13816_s3 + $0x8] sm:$0xff]   ;;  %v11892_v15 = vld [vmem:[%s13816_s3 + $0x20] sm:$0xff]  }
 0x1aa   :  { %v11419_v31 = vpop.f32.mrf.mxu1  ;;  %11251 = vmatprep.subr.bf16.mxu1 %v11868_v3  ;;  %v11893_v3 = vld [vmem:[%s13816_s3 + $0x58] sm:$0xff]  }
 0x1ab   :  { %11234 = vmatpush3.bf16.msra.mxu0 %v11744_v11  ;;  %v11891_v11 = vld [vmem:[%s13816_s3 + $0x60] sm:$0xff]  }
 0x1ac   :  { %11235 = vmatprep.subr.bf16.mxu0 %v11746_v13  ;;  %v13094_v18 = vpop.f32.mrf.mxu1  ;;  %v11782_v13 = vld [vmem:[%s13816_s3 + $0x40] sm:$0xff]  }
 0x1ad   :  { %11252 = vmatpush3.bf16.msra.mxu1 %v11869_v19  ;;  %v11783_v31 = vld [vmem:[%s13816_s3] sm:$0xff]   ;;  %v11785_v19 = vld [vmem:[%s13814_s1 + $0x28] ss:$80 sps:$4 sm:$0xff]  }
 0x1ae   :  { %v11420_v21 = vpop.f32.mrf.mxu1  ;;  %11253 = vmatprep.subr.bf16.mxu1 %v11870_v20  ;;  %v11789_v20 = vld [vmem:[%s13816_s3 + $0x38] sm:$0xff]  }
 0x1af   :  { %11236 = vmatpush3.bf16.msra.mxu0 %v11747_v16  ;;  %v11788_v16 = vld [vmem:[%s13816_s3 + $0x78] sm:$0xff]  }
 0x1b0   :  { %11237 = vmatprep.subr.bf16.mxu0 %v11749_v17  ;;  %v11894_v17 = vld [vmem:[%s13816_s3 + $0x18] sm:$0xff]  }
 0x1b1   :  { %11254 = vmatpush3.bf16.msra.mxu1 %v11871_v23  ;;  %v11818_v21 = vld [vmem:[%s13814_s1 + $0x3c] ss:$80 sps:$4 sm:$0xff]   ;;  %v11896_v23 = vld [vmem:[%s13816_s3 + $0x10] sm:$0xff]  }
 0x1b2   :  { %11255 = vmatprep.subr.bf16.mxu1 %v11872_v24 }
 0x1b3   :  { %11238 = vmatpush3.bf16.msra.mxu0 %v11750_v37  ;;  %v11791_v37 = vld [vmem:[%s13816_s3 + $0x70] sm:$0xff]  }
 0x1b4   :  { %11239 = vmatprep.subr.bf16.mxu0 %v11752_v22  ;;  %v11895_v22 = vld [vmem:[%s13816_s3 + $0x50] sm:$0xff]  }
 0x1b5   :  { %11256 = vmatpush3.bf16.msra.mxu1 %v11873_v27 }
 0x1b6   :  { %11257 = vmatprep.subr.bf16.mxu1 %v11874_v28  ;;  %v11794_v28 = vld [vmem:[%s13816_s3 + $0x68] sm:$0xff]  }
 0x1b7   :  { %11240 = vmatpush3.bf16.msra.mxu0 %v11753_v25 }
 0x1b8   :  { %11241 = vmatprep.subr.bf16.mxu0 %v11755_v26  ;;  %v11792_v26 = vld [vmem:[%s13816_s3 + $0x30] sm:$0xff]  }
 0x1b9   :  { %11258 = vmatpush3.bf16.msra.mxu1 %v11875_v33 }
 0x1ba   :  { %11259 = vmatprep.subr.bf16.mxu1 %v11876_v39  ;;  %v11899_v39 = vld [vmem:[%s13816_s3 + $0x40] sm:$0xff]  }
 0x1bb   :  { %11242 = vmatpush3.bf16.msra.mxu0 %v11756_v29  ;;  %v11897_v29 = vld [vmem:[%s13816_s3 + $0x48] sm:$0xff]  }
 0x1bc   :  { %11271 = vmatprep.subr.bf16.mxu0 %v11761_v32  ;;  %v11898_v32 = vld [vmem:[%s13816_s3 + $0x8] sm:$0xff]  }
 0x1bd   :  { %11260 = vmatpush3.bf16.msra.mxu1 %v11877_v40  ;;  %v11900_v40 = vld [vmem:[%s13816_s3] sm:$0xff]  }
 0x1be   :  { %v529_v41 = vpop.f32.mrf.mxu0  ;;  %2380 = vmatmul.mubr.bf16.vlgmr.msra.gmra.mxu0 %v11758_v34  ;;  %11261 = vmatprep.subr.bf16.mxu1 %v11878_v46  ;;  %v11901_v46 = vld [vmem:[%s13814_s1 + $0x30] ss:$80 sps:$4 sm:$0xff]  }
 0x1bf   :  { %v11024_v42 = vpack.c.bf16 %v529_v41, %v529_v41  ;;  %11272 = vmatpush3.bf16.msra.mxu0 %v11762_v35  ;;  %2779 = vmatprep.mubr.bf16.mxu0 %v11787_v36  ;;  %v11795_v35 = vld [vmem:[%s13816_s3 + $0x28] sm:$0xff]   ;;  %v11799_v41 = vld [vmem:[%s13816_s3 + $0x20] sm:$0xff]  }
 0x1c0   :  { %v11439_v44 = vpop.f32.mrf.mxu0  ;;  %11273 = vmatprep.subr.bf16.mxu0 %v11764_v38  ;;  %v11797_v38 = vld [vmem:[%s13816_s3 + $0x60] sm:$0xff]  }
 0x1c1   :  { %544 = vst.msk [vmem:[#allocation2 + $0x4] sm:$0xf] %vm278_vm3, %v11024_v42  ;;  %11262 = vmatpush3.bf16.msra.mxu1 %v11879_v47  ;;  %v11801_v42 = vld [vmem:[%s13816_s3 + $0x58] sm:$0xff]   ;;  %v11903_v44 = vld [vmem:[%s13814_s1 + $0x34] ss:$80 sps:$4 sm:$0xff]  }
 0x1c2   :  { %v532_v48 = vpop.f32.mrf.mxu0  ;;  %11263 = vmatprep.subr.bf16.mxu1 %v11880_v53  ;;  %v11905_v47 = vld [vmem:[%s13816_s3 + $0x38] sm:$0xff]   ;;  %v11907_v53 = vld [vmem:[%s13816_s3 + $0x30] sm:$0xff]  }
 0x1c3   :  { %v11025_v49 = vpack.c.bf16 %v532_v48, %v532_v48  ;;  %11274 = vmatpush3.bf16.msra.mxu0 %v11765_v43 }
 0x1c4   :  { %v11440_v51 = vpop.f32.mrf.mxu0  ;;  %11275 = vmatprep.subr.bf16.mxu0 %v11767_v45  ;;  %v11904_v45 = vld [vmem:[%s13816_s3 + $0x78] sm:$0xff]  }
 0x1c5   :  { %545 = vst.msk [vmem:[#allocation2 + $0x1c] sm:$0xf] %vm278_vm3, %v11025_v49  ;;  %11264 = vmatpush3.bf16.msra.mxu1 %v11881_v54  ;;  %v11803_v49 = vld [vmem:[%s13816_s3 + $0x18] sm:$0xff]   ;;  %v11805_v51 = vld [vmem:[%s13816_s3 + $0x50] sm:$0xff]   ;;  %v11908_v54 = vld [vmem:[%s13816_s3 + $0x68] sm:$0xff]  }
 0x1c6   :  { %11293 = vmatprep.subr.bf16.mxu1 %v11885_v56  ;;  %v11807_v56 = vld [vmem:[%s13816_s3 + $0x10] sm:$0xff]  }
 0x1c7   :  { %11276 = vmatpush3.bf16.msra.mxu0 %v11768_v50  ;;  %v11906_v50 = vld [vmem:[%s13816_s3 + $0x70] sm:$0xff]  }
 0x1c8   :  { %11277 = vmatprep.subr.bf16.mxu0 %v11770_v52  ;;  %v13194_v60 = vpop.f32.mrf.mxu1  ;;  %2582 = vmatmul.mubr.bf16.vlgmr.msra.gmra.mxu1 %v11882_v58  ;;  %v11909_v58 = vld [vmem:[%s13816_s3 + $0x28] sm:$0xff]  }
 0x1c9   :  { %11294 = vmatpush3.bf16.msra.mxu1 %v11886_v61  ;;  %2981 = vmatprep.mubr.bf16.mxu1 %v11903_v44  ;;  %v11811_v61 = vld [vmem:[%s13816_s3 + $0x8] sm:$0xff]   ;;  %v11853_v44 = vld [vmem:[%s13816_s3] sm:$0xff]  }
 0x1ca   :  { %v11459_v63 = vpop.f32.mrf.mxu1  ;;  %11295 = vmatprep.subr.bf16.mxu1 %v11887_v62  ;;  %v11813_v62 = vld [vmem:[%s13816_s3 + $0x40] sm:$0xff]  }
 0x1cb   :  { %11278 = vmatpush3.bf16.msra.mxu0 %v11771_v57  ;;  %v11809_v57 = vld [vmem:[%s13816_s3 + $0x48] sm:$0xff]   ;;  %v11911_v63 = vld [vmem:[%s13816_s3 + $0x20] sm:$0xff]  }
 0x1cc   :  { %11279 = vmatprep.subr.bf16.mxu0 %v11773_v59  ;;  %v13208_v4 = vpop.f32.mrf.mxu1  ;;  %v11910_v59 = vld [vmem:[%s13816_s3 + $0x60] sm:$0xff]  }
 0x1cd   :  { %11296 = vmatpush3.bf16.msra.mxu1 %v11888_v5  ;;  %v11820_v5 = vld [vmem:[%s13816_s3 + $0x78] sm:$0xff]  }
 0x1ce   :  { %v11460_v7 = vpop.f32.mrf.mxu1  ;;  %11297 = vmatprep.subr.bf16.mxu1 %v11889_v6  ;;  %v11913_v6 = vld [vmem:[%s13816_s3 + $0x18] sm:$0xff]  }
 0x1cf   :  { %11280 = vmatpush3.bf16.msra.mxu0 %v11774_v1  ;;  %v11912_v1 = vld [vmem:[%s13816_s3 + $0x58] sm:$0xff]  }
 0x1d0   :  { %11281 = vmatprep.subr.bf16.mxu0 %v11776_v2  ;;  %v11815_v2 = vld [vmem:[%s13816_s3] sm:$0xff]   ;;  %v11816_v7 = vld [vmem:[%s13814_s1 + $0x38] ss:$80 sps:$4 sm:$0xff]  }
 0x1d1   :  { %11298 = vmatpush3.bf16.msra.mxu1 %v11890_v10  ;;  %v11824_v10 = vld [vmem:[%s13816_s3 + $0x70] sm:$0xff]  }
 0x1d2   :  { %11299 = vmatprep.subr.bf16.mxu1 %v11891_v11  ;;  %v11914_v11 = vld [vmem:[%s13816_s3 + $0x50] sm:$0xff]  }
 0x1d3   :  { %11282 = vmatpush3.bf16.msra.mxu0 %v11777_v8  ;;  %v11822_v8 = vld [vmem:[%s13816_s3 + $0x38] sm:$0xff]  }
 0x1d4   :  { %11283 = vmatprep.subr.bf16.mxu0 %v11779_v9  ;;  %v11856_v9 = vld [vmem:[%s13814_s1 + $0x4c] ss:$80 sps:$4 sm:$0xff]  }
 0x1d5   :  { %11300 = vmatpush3.bf16.msra.mxu1 %v11892_v15 }
 0x1d6   :  { %11301 = vmatprep.subr.bf16.mxu1 %v11893_v3  ;;  %v11826_v3 = vld [vmem:[%s13816_s3 + $0x30] sm:$0xff]  }
 0x1d7   :  { %11284 = vmatpush3.bf16.msra.mxu0 %v11780_v12  ;;  %v11915_v12 = vld [vmem:[%s13816_s3 + $0x10] sm:$0xff]  }
 0x1d8   :  { %11285 = vmatprep.subr.bf16.mxu0 %v11782_v13 }
 0x1d9   :  { %11302 = vmatpush3.bf16.msra.mxu1 %v11894_v17  ;;  %v11916_v17 = vld [vmem:[%s13816_s3 + $0x48] sm:$0xff]  }
 0x1da   :  { %11303 = vmatprep.subr.bf16.mxu1 %v11895_v22 }
 0x1db   :  { %11286 = vmatpush3.bf16.msra.mxu0 %v11783_v31 }
 0x1dc   :  { %11315 = vmatprep.subr.bf16.mxu0 %v11788_v16  ;;  %v11828_v16 = vld [vmem:[%s13816_s3 + $0x68] sm:$0xff]  }
 0x1dd   :  { %11304 = vmatpush3.bf16.msra.mxu1 %v11896_v23  ;;  %v11835_v23 = vld [vmem:[%s13816_s3 + $0x60] sm:$0xff]  }
 0x1de   :  { %v793_v24 = vpop.f32.mrf.mxu0  ;;  %2780 = vmatmul.mubr.bf16.vlgmr.msra.gmra.mxu0 %v11785_v19  ;;  %11305 = vmatprep.subr.bf16.mxu1 %v11897_v29  ;;  %v11917_v19 = vld [vmem:[%s13816_s3 + $0x8] sm:$0xff]   ;;  %v11920_v29 = vld [vmem:[%s13814_s1 + $0x40] ss:$80 sps:$4 sm:$0xff]  }
 0x1df   :  { %v11028_v25 = vpack.c.bf16 %v793_v24, %v793_v24  ;;  %11316 = vmatpush3.bf16.msra.mxu0 %v11789_v20  ;;  %3179 = vmatprep.mubr.bf16.mxu0 %v11818_v21  ;;  %v11918_v24 = vld [vmem:[%s13816_s3 + $0x40] sm:$0xff]  }
 0x1e0   :  { %v11479_v27 = vpop.f32.mrf.mxu0  ;;  %11317 = vmatprep.subr.bf16.mxu0 %v11791_v37  ;;  %v11830_v37 = vld [vmem:[%s13816_s3 + $0x28] sm:$0xff]  }
 0x1e1   :  { %808 = vst.msk [vmem:[#allocation2 + $0x8] sm:$0xf] %vm278_vm3, %v11028_v25  ;;  %11306 = vmatpush3.bf16.msra.mxu1 %v11898_v32  ;;  %v11919_v25 = vld [vmem:[%s13816_s3] sm:$0xff]   ;;  %v11841_v32 = vld [vmem:[%s13816_s3 + $0x18] sm:$0xff]  }
 0x1e2   :  { %v796_v33 = vpop.f32.mrf.mxu0  ;;  %11307 = vmatprep.subr.bf16.mxu1 %v11899_v39  ;;  %v11922_v27 = vld [vmem:[%s13814_s1 + $0x44] ss:$80 sps:$4 sm:$0xff]   ;;  %v11847_v39 = vld [vmem:[%s13816_s3 + $0x48] sm:$0xff]  }
 0x1e3   :  { %v11029_v34 = vpack.c.bf16 %v796_v33, %v796_v33  ;;  %11318 = vmatpush3.bf16.msra.mxu0 %v11792_v26  ;;  %v11837_v26 = vld [vmem:[%s13816_s3 + $0x20] sm:$0xff]  }
 0x1e4   :  { %v11480_v36 = vpop.f32.mrf.mxu0  ;;  %11319 = vmatprep.subr.bf16.mxu0 %v11794_v28  ;;  %v11839_v28 = vld [vmem:[%s13816_s3 + $0x58] sm:$0xff]  }
 0x1e5   :  { %809 = vst.msk [vmem:[#allocation2 + $0x20] sm:$0xf] %vm278_vm3, %v11029_v34  ;;  %11308 = vmatpush3.bf16.msra.mxu1 %v11900_v40  ;;  %v11843_v34 = vld [vmem:[%s13816_s3 + $0x50] sm:$0xff]  }
 0x1e6   :  { %11337 = vmatprep.subr.bf16.mxu1 %v11904_v45  ;;  %v11845_v36 = vld [vmem:[%s13816_s3 + $0x10] sm:$0xff]   ;;  %v11854_v45 = vld [vmem:[%s13814_s1 + $0x48] ss:$80 sps:$4 sm:$0xff]   ;;  %s12317_s1 = smov 64  }
 0x1e7   :  { %11320 = vmatpush3.bf16.msra.mxu0 %v11795_v35 }
 0x1e8   :  { %11321 = vmatprep.subr.bf16.mxu0 %v11797_v38  ;;  %v13299_v43 = vpop.f32.mrf.mxu1  ;;  %2982 = vmatmul.mubr.bf16.vlgmr.msra.gmra.mxu1 %v11901_v46 }
 0x1e9   :  { %11338 = vmatpush3.bf16.msra.mxu1 %v11905_v47  ;;  %3381 = vmatprep.mubr.bf16.mxu1 %v11922_v27 }
 0x1ea   :  { %v11499_v48 = vpop.f32.mrf.mxu1  ;;  %11339 = vmatprep.subr.bf16.mxu1 %v11906_v50 }
 0x1eb   :  { %11322 = vmatpush3.bf16.msra.mxu0 %v11799_v41  ;;  %v11849_v41 = vld [vmem:[%s13816_s3 + $0x8] sm:$0xff]  }
 0x1ec   :  { %11323 = vmatprep.subr.bf16.mxu0 %v11801_v42  ;;  %v13322_v52 = vpop.f32.mrf.mxu1  ;;  %v11851_v42 = vld [vmem:[%s13816_s3 + $0x40] sm:$0xff]  }
 0x1ed   :  { %11340 = vmatpush3.bf16.msra.mxu1 %v11907_v53 }
 0x1ee   :  { %v11500_v55 = vpop.f32.mrf.mxu1  ;;  %11341 = vmatprep.subr.bf16.mxu1 %v11908_v54 }
 0x1ef   :  { %11324 = vmatpush3.bf16.msra.mxu0 %v11803_v49 }
 0x1f0   :  { %11325 = vmatprep.subr.bf16.mxu0 %v11805_v51 }
 0x1f1   :  { %11342 = vmatpush3.bf16.msra.mxu1 %v11909_v58 }
 0x1f2   :  { %11343 = vmatprep.subr.bf16.mxu1 %v11910_v59 }
 0x1f3   :  { %11326 = vmatpush3.bf16.msra.mxu0 %v11807_v56 }
 0x1f4   :  { %11327 = vmatprep.subr.bf16.mxu0 %v11809_v57 }
 0x1f5   :  { %11344 = vmatpush3.bf16.msra.mxu1 %v11911_v63 }
 0x1f6   :  { %11345 = vmatprep.subr.bf16.mxu1 %v11912_v1  ;;  %v4022_v1 = vld [vmem:[#allocation10 + $0x1c0] sm:$0xff] }
 0x1f7   :  { %11328 = vmatpush3.bf16.msra.mxu0 %v11811_v61 }
 0x1f8   :  { %11329 = vmatprep.subr.bf16.mxu0 %v11813_v62 }
 0x1f9   :  { %11346 = vmatpush3.bf16.msra.mxu1 %v11913_v6 }
 0x1fa   :  { %11347 = vmatprep.subr.bf16.mxu1 %v11914_v11 }
 0x1fb   :  { %11330 = vmatpush3.bf16.msra.mxu0 %v11815_v2  ;;  %v4026_v2 = vld [vmem:[#allocation10 + $0x1e0] sm:$0xff] }
 0x1fc   :  { %11359 = vmatprep.subr.bf16.mxu0 %v11820_v5  ;;  %v10266_v5 = vcombine.high %v4022_v1, %v4026_v2  ;;  %v10265_v6 = vcombine.low %v4022_v1, %v4026_v2  ;;  %v4090_v1 = vld [vmem:[#allocation10 + $0x3e0] sm:$0xff] }
 0x1fd   :  { %11348 = vmatpush3.bf16.msra.mxu1 %v11915_v12  ;;  %v4006_v12 = vld [vmem:[#allocation10 + $0x140] sm:$0xff] }
 0x1fe   :  { %v1057_v13 = vpop.f32.mrf.mxu0  ;;  %3180 = vmatmul.mubr.bf16.vlgmr.msra.gmra.mxu0 %v11816_v7  ;;  %11349 = vmatprep.subr.bf16.mxu1 %v11916_v17  ;;  %v4014_v7 = vld [vmem:[#allocation10 + $0x180] sm:$0xff] }
 0x1ff   :  { %v11032_v15 = vpack.c.bf16 %v1057_v13, %v1057_v13  ;;  %11360 = vmatpush3.bf16.msra.mxu0 %v11822_v8  ;;  %3579 = vmatprep.mubr.bf16.mxu0 %v11856_v9  ;;  %v4018_v8 = vld [vmem:[#allocation10 + $0x1a0] sm:$0xff] }
 0x200   :  { %v11519_v31 = vpop.f32.mrf.mxu0  ;;  %11361 = vmatprep.subr.bf16.mxu0 %v11824_v10  ;;  %v10258_v9 = vcombine.high %v4014_v7, %v4018_v8  ;;  %v10257_v11 = vcombine.low %v4014_v7, %v4018_v8  ;;  %v4010_v13 = vld [vmem:[#allocation10 + $0x160] sm:$0xff] }
 0x201   :  { %1072 = vst.msk [vmem:[#allocation2 + $0xc] sm:$0xf] %vm278_vm3, %v11032_v15  ;;  %11350 = vmatpush3.bf16.msra.mxu1 %v11917_v19  ;;  %v3998_v15 = vld [vmem:[#allocation10 + $0x100] sm:$0xff]  ;;  %v10249_v17 = vcombine.low %v4006_v12, %v4010_v13 }
 0x202   :  { %v1060_v20 = vpop.f32.mrf.mxu0  ;;  %11351 = vmatprep.subr.bf16.mxu1 %v11918_v24  ;;  %v4002_v31 = vld [vmem:[#allocation10 + $0x120] sm:$0xff] }
 0x203   :  { %v11033_v21 = vpack.c.bf16 %v1060_v20, %v1060_v20  ;;  %11362 = vmatpush3.bf16.msra.mxu0 %v11826_v3  ;;  %v10250_v3 = vcombine.high %v4006_v12, %v4010_v13  ;;  %v10242_v20 = vcombine.high %v3998_v15, %v4002_v31  ;;  %v4078_v8 = vld [vmem:[#allocation10 + $0x380] sm:$0xff] }
 0x204   :  { %v11520_v22 = vpop.f32.mrf.mxu0  ;;  %11363 = vmatprep.subr.bf16.mxu0 %v11828_v16 }
 0x205   :  { %1073 = vst.msk [vmem:[#allocation2 + $0x24] sm:$0xf] %vm278_vm3, %v11033_v21  ;;  %11352 = vmatpush3.bf16.msra.mxu1 %v11919_v25  ;;  %v13455_v21 = vld [vmem:[#allocation6] ss:$0 sm:$0xff]  ;;  %v3990_v22 = vld [vmem:[#allocation10 + $0xc0] sm:$0xff] }
 0x206   :  { %5912 = vmatprep.subr.bf16.mxu1 %v10266_v5 }
 0x207   :  { %11364 = vmatpush3.bf16.msra.mxu0 %v11830_v37 }
 0x208   :  { %11365 = vmatprep.subr.bf16.mxu0 %v11835_v23  ;;  %3382 = vmatmul.mubr.bf16.vlgmr.msra.gmra.mxu1 %v11920_v29  ;;  %v13422_v33 = vpop.f32.mrf.mxu1  ;;  %v3994_v23 = vld [vmem:[#allocation10 + $0xe0] sm:$0xff] }
 0x209   :  { %5913 = vmatpush1.bf16.msra.mxu1 %v10265_v6  ;;  %v10234_v29 = vcombine.high %v3990_v22, %v3994_v23 }
 0x20a   :  { %v11539_v35 = vpop.f32.mrf.mxu1  ;;  %5914 = vmatprep.subr.bf16.mxu1 %v10258_v9  ;;  %v4082_v9 = vld [vmem:[#allocation10 + $0x3a0] sm:$0xff] }
 0x20b   :  { %11366 = vmatpush3.bf16.msra.mxu0 %v11837_v26  ;;  %v10241_v26 = vcombine.low %v3998_v15, %v4002_v31  ;;  %v10321_v12 = vcombine.low %v4078_v8, %v4082_v9  ;;  %v4070_v15 = vld [vmem:[#allocation10 + $0x340] sm:$0xff] }
 0x20c   :  { %11367 = vmatprep.subr.bf16.mxu0 %v11839_v28  ;;  %v13430_v38 = vpop.f32.mrf.mxu1 }
 0x20d   :  { %5915 = vmatpush1.bf16.msra.mxu1 %v10257_v11 }
 0x20e   :  { %v11540_v40 = vpop.f32.mrf.mxu1  ;;  %5916 = vmatprep.subr.bf16.mxu1 %v10250_v3  ;;  %v4074_v3 = vld [vmem:[#allocation10 + $0x360] sm:$0xff] }
 0x20f   :  { %11368 = vmatpush3.bf16.msra.mxu0 %v11841_v32 }
 0x210   :  { %11369 = vmatprep.subr.bf16.mxu0 %v11843_v34  ;;  %v10233_v34 = vcombine.low %v3990_v22, %v3994_v23  ;;  %v4062_v22 = vld [vmem:[#allocation10 + $0x300] sm:$0xff] }
 0x211   :  { %5917 = vmatpush1.bf16.msra.mxu1 %v10249_v17  ;;  %v4066_v23 = vld [vmem:[#allocation10 + $0x320] sm:$0xff] }
 0x212   :  { %5918 = vmatprep.subr.bf16.mxu1 %v10242_v20 }
 0x213   :  { %11370 = vmatpush3.bf16.msra.mxu0 %v11845_v36  ;;  %v3982_v36 = vld [vmem:[#allocation10 + $0x80] sm:$0xff] }
 0x214   :  { %11371 = vmatprep.subr.bf16.mxu0 %v11847_v39  ;;  %v3986_v39 = vld [vmem:[#allocation10 + $0xa0] sm:$0xff] }
 0x215   :  { %5919 = vmatpush1.bf16.msra.mxu1 %v10241_v26  ;;  %v10226_v40 = vcombine.high %v3982_v36, %v3986_v39  ;;  %v10306_v26 = vcombine.high %v4062_v22, %v4066_v23 }
 0x216   :  { %5920 = vmatprep.subr.bf16.mxu1 %v10234_v29  ;;  %v4054_v29 = vld [vmem:[#allocation10 + $0x2c0] sm:$0xff] }
 0x217   :  { %11372 = vmatpush3.bf16.msra.mxu0 %v11849_v41  ;;  %v10225_v41 = vcombine.low %v3982_v36, %v3986_v39  ;;  %v4046_v39 = vld [vmem:[#allocation10 + $0x280] sm:$0xff] }
 0x218   :  { %11373 = vmatprep.subr.bf16.mxu0 %v11851_v42  ;;  %v3974_v42 = vld [vmem:[#allocation10 + $0x40] sm:$0xff] }
 0x219   :  { %5921 = vmatpush1.bf16.msra.mxu1 %v10233_v34 }
 0x21a   :  { %5922 = vmatprep.subr.bf16.mxu1 %v10226_v40  ;;  %v4050_v40 = vld [vmem:[#allocation10 + $0x2a0] sm:$0xff] }
 0x21b   :  { %11374 = vmatpush3.bf16.msra.mxu0 %v11853_v44  ;;  %v3978_v44 = vld [vmem:[#allocation10 + $0x60] sm:$0xff] }
 0x21d   :  { %5923 = vmatpush1.bf16.msra.mxu1 %v10225_v41  ;;  %v10290_v41 = vcombine.high %v4046_v39, %v4050_v40 }
 0x21e   :  { %v1321_v46 = vpop.f32.mrf.mxu0  ;;  %3580 = vmatmul.mubr.bf16.vlgmr.msra.gmra.mxu0 %v11854_v45 }
 0x21f   :  { %v11036_v47 = vpack.c.bf16 %v1321_v46, %v1321_v46  ;;  %v10218_v46 = vcombine.high %v3974_v42, %v3978_v44 }
 0x220   :  { %v11559_v48 = vpop.f32.mrf.mxu0 }
 0x221   :  { %1336 = vst.msk [vmem:[#allocation2 + $0x10] sm:$0xf] %vm278_vm3, %v11036_v47  ;;  %v10217_v47 = vcombine.low %v3974_v42, %v3978_v44  ;;  %5924 = vmatprep.subr.bf16.mxu1 %v10218_v46  ;;  %v10289_v42 = vcombine.low %v4046_v39, %v4050_v40  ;;  %v4038_v44 = vld [vmem:[#allocation10 + $0x240] sm:$0xff] }
 0x222   :  { %v1324_v49 = vpop.f32.mrf.mxu0  ;;  %v4110_v40 = vld [vmem:[#allocation10 + $0x480] sm:$0xff] }
 0x223   :  { %v11037_v50 = vpack.c.bf16 %v1324_v49, %v1324_v49  ;;  %5925 = vmatpush1.bf16.msra.mxu1 %v10217_v47 }
 0x224   :  { %v11560_v51 = vpop.f32.mrf.mxu0 }
 0x225   :  { %1337 = vst.msk [vmem:[#allocation2 + $0x28] sm:$0xf] %vm278_vm3, %v11037_v50  ;;  %v3966_v50 = vld [vmem:[#allocation10] sm:$0xff] }
 0x226   :  { %v3970_v51 = vld [vmem:[#allocation10 + $0x20] sm:$0xff] }
 0x228   :  { %v13449_v53 = vpop.f32.mrf.mxu1 }
 0x22a   :  { %v11579_v54 = vpop.f32.mrf.mxu1 }
 0x22c   :  { %v13451_v55 = vpop.f32.mrf.mxu1 }
 0x22e   :  { %v11580_v56 = vpop.f32.mrf.mxu1 }
 0x22f   :  { %v10210_v56 = vcombine.high %v3966_v50, %v3970_v51 }
 0x231   :  { %5926 = vmatprep.subr.bf16.mxu1 %v10210_v56 }
 0x23e   :  { %v1585_v57 = vpop.f32.mrf.mxu0 }
 0x23f   :  { %v11040_v58 = vpack.c.bf16 %v1585_v57, %v1585_v57 }
 0x240   :  { %v11599_v59 = vpop.f32.mrf.mxu0 }
 0x241   :  { %1600 = vst.msk [vmem:[#allocation2 + $0x14] sm:$0xf] %vm278_vm3, %v11040_v58  ;;  %v10209_v58 = vcombine.low %v3966_v50, %v3970_v51  ;;  %v4034_v50 = vld [vmem:[#allocation10 + $0x220] sm:$0xff] }
 0x242   :  { %v1588_v61 = vpop.f32.mrf.mxu0 }
 0x243   :  { %v11041_v62 = vpack.c.bf16 %v1588_v61, %v1588_v61  ;;  %5927 = vmatpush1.bf16.msra.mxu1 %v10209_v58 }
 0x244   :  { %v11600_v63 = vpop.f32.mrf.mxu0 }
 0x245   :  { %1601 = vst.msk [vmem:[#allocation2 + $0x2c] sm:$0xf] %vm278_vm3, %v11041_v62  ;;  %v4086_v63 = vld [vmem:[#allocation10 + $0x3c0] sm:$0xff] }
 0x246   :  { %v10330_v2 = vcombine.high %v4086_v63, %v4090_v1  ;;  %v10329_v6 = vcombine.low %v4086_v63, %v4090_v1  ;;  %v4154_v63 = vld [vmem:[#allocation10 + $0x5e0] sm:$0xff] }
 0x248   :  { %v11177_v10 = vpop.f32.mrf.mxu1  ;;  %5928 = vmatprep.subr.bf16.mxu1 %v10330_v2 }
 0x249   :  { %5929 = vmatpush2.bf16.msra.mxu1 %v10329_v6 }
 0x24a   :  { %v11178_v16 = vpop.f32.mrf.mxu1 }
 0x24b   :  { %v11179_v19 = vadd.f32 %v11178_v16, %v11177_v10  ;;  %v10322_v10 = vcombine.high %v4078_v8, %v4082_v9  ;;  %v10314_v16 = vcombine.high %v4070_v15, %v4074_v3  ;;  %v4142_v8 = vld [vmem:[#allocation10 + $0x580] sm:$0xff] }
 0x24c   :  { %v11180_v37 = vpop.f32.mrf.mxu1  ;;  %v4146_v9 = vld [vmem:[#allocation10 + $0x5a0] sm:$0xff] }
 0x24d   :  { %v1784_v24 = vadd.f32 %v11179_v19, %v13455_v21  ;;  %5930 = vmatprep.subr.bf16.mxu1 %v10322_v10  ;;  %v10313_v19 = vcombine.low %v4070_v15, %v4074_v3  ;;  %v4134_v10 = vld [vmem:[#allocation10 + $0x540] sm:$0xff] }
 0x24e   :  { %v11181_v25 = vpop.f32.mrf.mxu1  ;;  %5931 = vmatpush2.bf16.msra.mxu1 %v10321_v12  ;;  %v10385_v12 = vcombine.low %v4142_v8, %v4146_v9  ;;  %v4138_v15 = vld [vmem:[#allocation10 + $0x560] sm:$0xff] }
 0x24f   :  { %v11042_v27 = vpack.c.bf16 %v1784_v24, %v1784_v24  ;;  %v11182_v28 = vadd.f32 %v11181_v25, %v11180_v37  ;;  %5932 = vmatprep.subr.bf16.mxu1 %v10314_v16  ;;  %v10378_v3 = vcombine.high %v4134_v10, %v4138_v15  ;;  %v4130_v16 = vld [vmem:[#allocation10 + $0x520] sm:$0xff] }
 0x251   :  { %1798 = vst.msk [vmem:[#allocation3] sm:$0xf] %vm278_vm3, %v11042_v27  ;;  %v1787_v32 = vadd.f32 %v11182_v28, %v13455_v21  ;;  %v10305_v27 = vcombine.low %v4062_v22, %v4066_v23  ;;  %v4118_v23 = vld [vmem:[#allocation10 + $0x4c0] sm:$0xff] }
 0x252   :  { %5933 = vmatpush2.bf16.msra.mxu1 %v10313_v19  ;;  %v10377_v19 = vcombine.low %v4134_v10, %v4138_v15 }
 0x253   :  { %v11043_v35 = vpack.c.bf16 %v1787_v32, %v1787_v32  ;;  %5934 = vmatprep.subr.bf16.mxu1 %v10306_v26  ;;  %v4058_v32 = vld [vmem:[#allocation10 + $0x2e0] sm:$0xff] }
 0x254   :  { %v10297_v36 = vcombine.low %v4054_v29, %v4058_v32 }
 0x255   :  { %1799 = vst.msk [vmem:[#allocation3 + $0x14] sm:$0xf] %vm278_vm3, %v11043_v35  ;;  %v10298_v35 = vcombine.high %v4054_v29, %v4058_v32 }
 0x256   :  { %5935 = vmatpush2.bf16.msra.mxu1 %v10305_v27 }
 0x257   :  { %5936 = vmatprep.subr.bf16.mxu1 %v10298_v35 }
 0x25a   :  { %5937 = vmatpush2.bf16.msra.mxu1 %v10297_v36 }
 0x25b   :  { %5938 = vmatprep.subr.bf16.mxu1 %v10290_v41  ;;  %v4114_v41 = vld [vmem:[#allocation10 + $0x4a0] sm:$0xff] }
 0x25e   :  { %v11199_v45 = vpop.f32.mrf.mxu0  ;;  %5939 = vmatpush2.bf16.msra.mxu1 %v10289_v42  ;;  %v10354_v42 = vcombine.high %v4110_v40, %v4114_v41 }
 0x260   :  { %v11200_v48 = vpop.f32.mrf.mxu0 }
 0x261   :  { %v11201_v49 = vadd.f32 %v11200_v48, %v11199_v45  ;;  %v4042_v45 = vld [vmem:[#allocation10 + $0x260] sm:$0xff] }
 0x262   :  { %v11202_v54 = vpop.f32.mrf.mxu0  ;;  %v10282_v47 = vcombine.high %v4038_v44, %v4042_v45  ;;  %v10281_v48 = vcombine.low %v4038_v44, %v4042_v45  ;;  %v10353_v44 = vcombine.low %v4110_v40, %v4114_v41  ;;  %v4102_v45 = vld [vmem:[#allocation10 + $0x440] sm:$0xff] }
 0x263   :  { %v1982_v57 = vadd.f32 %v11201_v49, %v13455_v21  ;;  %v4030_v49 = vld [vmem:[#allocation10 + $0x200] sm:$0xff] }
 0x264   :  { %v11203_v59 = vpop.f32.mrf.mxu0  ;;  %5940 = vmatprep.subr.bf16.mxu1 %v10282_v47  ;;  %v4174_v41 = vld [vmem:[#allocation10 + $0x680] sm:$0xff] }
 0x265   :  { %v11044_v61 = vpack.c.bf16 %v1982_v57, %v1982_v57  ;;  %v11204_v62 = vadd.f32 %v11203_v59, %v11202_v54  ;;  %v10274_v54 = vcombine.high %v4030_v49, %v4034_v50  ;;  %5941 = vmatpush2.bf16.msra.mxu1 %v10281_v48  ;;  %v10273_v57 = vcombine.low %v4030_v49, %v4034_v50  ;;  %v4094_v50 = vld [vmem:[#allocation10 + $0x400] sm:$0xff] }
 0x267   :  { %v1985_v5 = vadd.f32 %v11204_v62, %v13455_v21  ;;  %1994 = vrot.lane.b32.xlu0 %v11044_v61, %s12317_s1  ;;  %5942 = vmatprep.subr.bf16.mxu1 %v10274_v54  ;;  %v4150_v62 = vld [vmem:[#allocation10 + $0x5c0] sm:$0xff] }
 0x268   :  { %v11221_v11 = vpop.f32.mrf.mxu1  ;;  %v10393_v6 = vcombine.low %v4150_v62, %v4154_v63  ;;  %v4214_v54 = vld [vmem:[#allocation10 + $0x7c0] sm:$0xff] }
 0x269   :  { %v11045_v7 = vpack.c.bf16 %v1985_v5, %v1985_v5  ;;  %5943 = vmatpush2.bf16.msra.mxu1 %v10273_v57  ;;  %v10394_v5 = vcombine.high %v4150_v62, %v4154_v63  ;;  %v4218_v57 = vld [vmem:[#allocation10 + $0x7e0] sm:$0xff] }
 0x26a   :  { %v11222_v13 = vpop.f32.mrf.mxu1  ;;  %v10458_v62 = vcombine.high %v4214_v54, %v4218_v57 }
 0x26b   :  { %1996 = vrot.lane.b32.xlu1 %v11045_v7, %s12317_s1  ;;  %v11223_v31 = vadd.f32 %v11222_v13, %v11221_v11  ;;  %5955 = vmatprep.subr.bf16.mxu0 %v10394_v5  ;;  %v10386_v13 = vcombine.high %v4142_v8, %v4146_v9 }
 0x26c   :  { %v11224_v17 = vpop.f32.mrf.mxu1  ;;  %5956 = vmatpush1.bf16.msra.mxu0 %v10393_v6 }
 0x26d   :  { %v2184_v20 = vadd.f32 %v11223_v31, %v13455_v21  ;;  %v4126_v31 = vld [vmem:[#allocation10 + $0x500] sm:$0xff]  ;;  %5957 = vmatprep.subr.bf16.mxu0 %v10386_v13 }
 0x26e   :  { %v11225_v37 = vpop.f32.mrf.mxu1  ;;  %v10369_v27 = vcombine.low %v4126_v31, %v4130_v16 }
 0x26f   :  { %v11046_v24 = vpack.c.bf16 %v2184_v20, %v2184_v20  ;;  %v11226_v25 = vadd.f32 %v11225_v37, %v11224_v17  ;;  %v10370_v37 = vcombine.high %v4126_v31, %v4130_v16  ;;  %v4190_v16 = vld [vmem:[#allocation10 + $0x700] sm:$0xff] }
 0x270   :  { %5958 = vmatpush1.bf16.msra.mxu0 %v10385_v12  ;;  %v4202_v12 = vld [vmem:[#allocation10 + $0x760] sm:$0xff] }
 0x271   :  { %2198 = vst.msk [vmem:[#allocation3 + $0x4] sm:$0xf] %vm278_vm3, %v11046_v24  ;;  %v2187_v28 = vadd.f32 %v11226_v25, %v13455_v21  ;;  %5959 = vmatprep.subr.bf16.mxu0 %v10378_v3  ;;  %v4122_v24 = vld [vmem:[#allocation10 + $0x4e0] sm:$0xff] }
 0x272   :  { %v10362_v29 = vcombine.high %v4118_v23, %v4122_v24  ;;  %v10361_v36 = vcombine.low %v4118_v23, %v4122_v24  ;;  %v4182_v24 = vld [vmem:[#allocation10 + $0x6c0] sm:$0xff] }
 0x273   :  { %v11047_v34 = vpack.c.bf16 %v2187_v28, %v2187_v28 }
 0x274   :  { %5960 = vmatpush1.bf16.msra.mxu0 %v10377_v19 }
 0x275   :  { %2199 = vst.msk [vmem:[#allocation3 + $0x18] sm:$0xf] %vm278_vm3, %v11047_v34  ;;  %5961 = vmatprep.subr.bf16.mxu0 %v10370_v37 }
 0x278   :  { %5962 = vmatpush1.bf16.msra.mxu0 %v10369_v27 }
 0x279   :  { %5963 = vmatprep.subr.bf16.mxu0 %v10362_v29 }
 0x27c   :  { %5964 = vmatpush1.bf16.msra.mxu0 %v10361_v36 }
 0x27d   :  { %5965 = vmatprep.subr.bf16.mxu0 %v10354_v42  ;;  %v4178_v42 = vld [vmem:[#allocation10 + $0x6a0] sm:$0xff] }
 0x27e   :  { %v11243_v46 = vpop.f32.mrf.mxu0 }
 0x280   :  { %v11244_v51 = vpop.f32.mrf.mxu0  ;;  %5966 = vmatpush1.bf16.msra.mxu0 %v10353_v44  ;;  %v10418_v44 = vcombine.high %v4174_v41, %v4178_v42 }
 0x281   :  { %v11245_v56 = vadd.f32 %v11244_v51, %v11243_v46  ;;  %v4106_v46 = vld [vmem:[#allocation10 + $0x460] sm:$0xff] }
 0x282   :  { %v11246_v58 = vpop.f32.mrf.mxu0  ;;  %v10346_v47 = vcombine.high %v4102_v45, %v4106_v46  ;;  %v10345_v49 = vcombine.low %v4102_v45, %v4106_v46  ;;  %v4098_v51 = vld [vmem:[#allocation10 + $0x420] sm:$0xff]  ;;  %v10417_v45 = vcombine.low %v4174_v41, %v4178_v42 }
 0x283   :  { %v2382_v59 = vadd.f32 %v11245_v56, %v13455_v21  ;;  %v10338_v56 = vcombine.high %v4094_v50, %v4098_v51  ;;  %v4166_v46 = vld [vmem:[#allocation10 + $0x640] sm:$0xff] }
 0x284   :  { %v11247_v61 = vpop.f32.mrf.mxu0  ;;  %5967 = vmatprep.subr.bf16.mxu0 %v10346_v47  ;;  %v4170_v47 = vld [vmem:[#allocation10 + $0x660] sm:$0xff] }
 0x285   :  { %v11048_v1 = vpack.c.bf16 %v2382_v59, %v2382_v59  ;;  %v11248_v2 = vadd.f32 %v11247_v61, %v11246_v58  ;;  %5968 = vmatpush1.bf16.msra.mxu0 %v10345_v49  ;;  %v10337_v59 = vcombine.low %v4094_v50, %v4098_v51  ;;  %v10409_v50 = vcombine.low %v4166_v46, %v4170_v47  ;;  %v4158_v51 = vld [vmem:[#allocation10 + $0x600] sm:$0xff] }
 0x286   :  { %5969 = vmatprep.subr.bf16.mxu0 %v10338_v56  ;;  %v13485_v56 = vld [vmem:[#allocation10 + $0x9c0] sm:$0xff] }
 0x287   :  { %v2385_v7 = vadd.f32 %v11248_v2, %v13455_v21  ;;  %2394 = vrot.lane.b32.xlu0 %v11048_v1, %s12317_s1  ;;  %v4206_v1 = vld [vmem:[#allocation10 + $0x780] sm:$0xff] }
 0x288   :  { %v11265_v17 = vpop.f32.mrf.mxu1  ;;  %v4210_v2 = vld [vmem:[#allocation10 + $0x7a0] sm:$0xff] }
 0x289   :  { %v11049_v11 = vpack.c.bf16 %v2385_v7, %v2385_v7  ;;  %5970 = vmatpush1.bf16.msra.mxu0 %v10337_v59  ;;  %v10457_v7 = vcombine.low %v4214_v54, %v4218_v57  ;;  %v10450_v10 = vcombine.high %v4206_v1, %v4210_v2  ;;  %v10449_v15 = vcombine.low %v4206_v1, %v4210_v2  ;;  %v4162_v54 = vld [vmem:[#allocation10 + $0x620] sm:$0xff] }
 0x28a   :  { %v11266_v20 = vpop.f32.mrf.mxu1  ;;  %5971 = vmatprep.subr.bf16.mxu0 %v10458_v62  ;;  %v10402_v57 = vcombine.high %v4158_v51, %v4162_v54 }
 0x28b   :  { %2396 = vrot.lane.b32.xlu1 %v11049_v11, %s12317_s1  ;;  %v11267_v22 = vadd.f32 %v11266_v20, %v11265_v17  ;;  %v4198_v11 = vld [vmem:[#allocation10 + $0x740] sm:$0xff] }
 0x28c   :  { %v11268_v25 = vpop.f32.mrf.mxu1  ;;  %v10442_v31 = vcombine.high %v4198_v11, %v4202_v12  ;;  %v4194_v17 = vld [vmem:[#allocation10 + $0x720] sm:$0xff]  ;;  %v10441_v20 = vcombine.low %v4198_v11, %v4202_v12 }
 0x28d   :  { %v2584_v26 = vadd.f32 %v11267_v22, %v13455_v21  ;;  %5972 = vmatpush2.bf16.msra.mxu0 %v10457_v7  ;;  %v10434_v22 = vcombine.high %v4190_v16, %v4194_v17  ;;  %v13494_v7 = vld [vmem:[#allocation10 + $0x1c8] sm:$0xff] }
 0x28e   :  { %v11269_v28 = vpop.f32.mrf.mxu1  ;;  %5973 = vmatprep.subr.bf16.mxu0 %v10450_v10 }
 0x28f   :  { %v11050_v32 = vpack.c.bf16 %v2584_v26, %v2584_v26  ;;  %v11270_v34 = vadd.f32 %v11269_v28, %v11268_v25  ;;  %v4186_v25 = vld [vmem:[#allocation10 + $0x6e0] sm:$0xff]  ;;  %v10433_v28 = vcombine.low %v4190_v16, %v4194_v17 }
 0x291   :  { %2598 = vst.msk [vmem:[#allocation3 + $0x8] sm:$0xf] %vm278_vm3, %v11050_v32  ;;  %v2587_v35 = vadd.f32 %v11270_v34, %v13455_v21  ;;  %5974 = vmatpush2.bf16.msra.mxu0 %v10449_v15  ;;  %v10426_v32 = vcombine.high %v4182_v24, %v4186_v25 }
 0x292   :  { %5975 = vmatprep.subr.bf16.mxu0 %v10442_v31 }
 0x293   :  { %v11051_v39 = vpack.c.bf16 %v2587_v35, %v2587_v35 }
 0x295   :  { %2599 = vst.msk [vmem:[#allocation3 + $0x1c] sm:$0xf] %vm278_vm3, %v11051_v39  ;;  %5976 = vmatpush2.bf16.msra.mxu0 %v10441_v20  ;;  %v10425_v39 = vcombine.low %v4182_v24, %v4186_v25 }
 0x296   :  { %5977 = vmatprep.subr.bf16.mxu0 %v10434_v22 }
 0x299   :  { %5978 = vmatpush2.bf16.msra.mxu0 %v10433_v28 }
 0x29a   :  { %5979 = vmatprep.subr.bf16.mxu0 %v10426_v32 }
 0x29d   :  { %5980 = vmatpush2.bf16.msra.mxu0 %v10425_v39  ;;  %v13514_v39 = vld [vmem:[#allocation10 + $0x5e8] sm:$0xff] }
 0x29e   :  { %v11287_v48 = vpop.f32.mrf.mxu0  ;;  %5981 = vmatprep.subr.bf16.mxu0 %v10418_v44 }
 0x2a0   :  { %v11288_v58 = vpop.f32.mrf.mxu0 }
 0x2a1   :  { %v11289_v61 = vadd.f32 %v11288_v58, %v11287_v48  ;;  %5982 = vmatpush2.bf16.msra.mxu0 %v10417_v45  ;;  %v10410_v48 = vcombine.high %v4166_v46, %v4170_v47  ;;  %v13487_v58 = vld [vmem:[#allocation10 + $0x9e0] sm:$0xff]  ;;  %v11022_v45 = vpack.c.bf16 %v13080_v14, %v13080_v14  ;;  %v11023_v47 = vpack.c.bf16 %v13094_v18, %v13094_v18 }
 0x2a2   :  { %v11290_v63 = vpop.f32.mrf.mxu0  ;;  %v10521_v62 = vcombine.low %v13485_v56, %v13487_v58  ;;  %v11030_v14 = vpack.c.bf16 %v13299_v43, %v13299_v43  ;;  %v11031_v18 = vpack.c.bf16 %v13322_v52, %v13322_v52  ;;  %v11038_v43 = vpack.c.bf16 %v13449_v53, %v13449_v53 }
 0x2a3   :  { %v2782_v5 = vadd.f32 %v11289_v61, %v13455_v21  ;;  %5983 = vmatprep.subr.bf16.mxu0 %v10410_v48  ;;  %v10401_v61 = vcombine.low %v4158_v51, %v4162_v54  ;;  %v11026_v48 = vpack.c.bf16 %v13194_v60, %v13194_v60  ;;  %v11034_v60 = vpack.c.bf16 %v13422_v33, %v13422_v33 }
 0x2a4   :  { %v11291_v6 = vpop.f32.mrf.mxu0  ;;  %v11039_v52 = vpack.c.bf16 %v13451_v55, %v13451_v55 }
 0x2a5   :  { %v11052_v8 = vpack.c.bf16 %v2782_v5, %v2782_v5  ;;  %v11292_v9 = vadd.f32 %v11291_v6, %v11290_v63  ;;  %5984 = vmatpush2.bf16.msra.mxu0 %v10409_v50  ;;  %v10522_v63 = vcombine.high %v13485_v56, %v13487_v58  ;;  %v4270_v50 = vld [vmem:[#allocation10 + $0x980] sm:$0xff] }
 0x2a6   :  { %5985 = vmatprep.subr.bf16.mxu0 %v10402_v57  ;;  %v4262_v57 = vld [vmem:[#allocation10 + $0x940] sm:$0xff] }
 0x2a7   :  { %v2785_v13 = vadd.f32 %v11292_v9, %v13455_v21  ;;  %2794 = vrot.lane.b32.xlu0 %v11052_v8, %s12317_s1  ;;  %5998 = vmatprep.subr.bf16.mxu1 %v10522_v63  ;;  %v13496_v8 = vld [vmem:[#allocation10 + $0x1e8] sm:$0xff]  ;;  %v4254_v63 = vld [vmem:[#allocation10 + $0x900] sm:$0xff] }
 0x2a8   :  { %v11309_v19 = vpop.f32.mrf.mxu1  ;;  %v10268_v11 = vcombine.high %v13494_v7, %v13496_v8  ;;  %v10267_v12 = vcombine.low %v13494_v7, %v13496_v8  ;;  %v4242_v56 = vld [vmem:[#allocation10 + $0x8a0] sm:$0xff]  ;;  %v3987_v7 = vld [vmem:[#allocation10 + $0xa8] sm:$0xff] }
 0x2a9   :  { %v11053_v3 = vpack.c.bf16 %v2785_v13, %v2785_v13  ;;  %5986 = vmatpush2.bf16.msra.mxu0 %v10401_v61 }
 0x2aa   :  { %v11310_v37 = vpop.f32.mrf.mxu1  ;;  %6041 = vmatprep.subr.bf16.mxu0 %v10268_v11 }
 0x2ab   :  { %2796 = vrot.lane.b32.xlu1 %v11053_v3, %s12317_s1  ;;  %v11311_v23 = vadd.f32 %v11310_v37, %v11309_v19 }
 0x2ac   :  { %v11312_v26 = vpop.f32.mrf.mxu1 }
 0x2ad   :  { %v2984_v27 = vadd.f32 %v11311_v23, %v13455_v21 }
 0x2ae   :  { %v11313_v29 = vpop.f32.mrf.mxu1 }
 0x2af   :  { %v11054_v34 = vpack.c.bf16 %v2984_v27, %v2984_v27  ;;  %v11314_v35 = vadd.f32 %v11313_v29, %v11312_v26 }
 0x2b1   :  { %2998 = vst.msk [vmem:[#allocation3 + $0xc] sm:$0xf] %vm278_vm3, %v11054_v34  ;;  %v2987_v36 = vadd.f32 %v11314_v35, %v13455_v21 }
 0x2b3   :  { %v11055_v40 = vpack.c.bf16 %v2987_v36, %v2987_v36  ;;  %v13512_v36 = vld [vmem:[#allocation10 + $0x5c8] sm:$0xff] }
 0x2b4   :  { %v10395_v42 = vcombine.low %v13512_v36, %v13514_v39 }
 0x2b5   :  { %2999 = vst.msk [vmem:[#allocation3 + $0x20] sm:$0xf] %vm278_vm3, %v11055_v40 }
 0x2be   :  { %v11331_v49 = vpop.f32.mrf.mxu0 }
 0x2c0   :  { %v11332_v59 = vpop.f32.mrf.mxu0 }
 0x2c1   :  { %v11333_v1 = vadd.f32 %v11332_v59, %v11331_v49  ;;  %v4266_v59 = vld [vmem:[#allocation10 + $0x960] sm:$0xff] }
 0x2c2   :  { %v11334_v2 = vpop.f32.mrf.mxu0  ;;  %v10506_v61 = vcombine.high %v4262_v57, %v4266_v59 }
 0x2c3   :  { %v3182_v5 = vadd.f32 %v11333_v1, %v13455_v21  ;;  %v4258_v1 = vld [vmem:[#allocation10 + $0x920] sm:$0xff] }
 0x2c4   :  { %v11335_v6 = vpop.f32.mrf.mxu0 }
 0x2c5   :  { %v11056_v9 = vpack.c.bf16 %v3182_v5, %v3182_v5  ;;  %v11336_v10 = vadd.f32 %v11335_v6, %v11334_v2  ;;  %v10505_v2 = vcombine.low %v4262_v57, %v4266_v59  ;;  %v10498_v5 = vcombine.high %v4254_v63, %v4258_v1  ;;  %v4246_v6 = vld [vmem:[#allocation10 + $0x8c0] sm:$0xff]  ;;  %v3971_v57 = vld [vmem:[#allocation10 + $0x28] sm:$0xff] }
 0x2c7   :  { %v3185_v13 = vadd.f32 %v11336_v10, %v13455_v21  ;;  %3194 = vrot.lane.b32.xlu0 %v11056_v9, %s12317_s1  ;;  %v4250_v9 = vld [vmem:[#allocation10 + $0x8e0] sm:$0xff]  ;;  %v10497_v10 = vcombine.low %v4254_v63, %v4258_v1  ;;  %v4087_v1 = vld [vmem:[#allocation10 + $0x3c8] sm:$0xff] }
 0x2c8   :  { %v11353_v3 = vpop.f32.mrf.mxu1  ;;  %v10490_v11 = vcombine.high %v4246_v6, %v4250_v9  ;;  %v10489_v58 = vcombine.low %v4246_v6, %v4250_v9 }
 0x2c9   :  { %v11057_v15 = vpack.c.bf16 %v3185_v13, %v3185_v13  ;;  %v4238_v13 = vld [vmem:[#allocation10 + $0x880] sm:$0xff] }
 0x2ca   :  { %v11354_v31 = vpop.f32.mrf.mxu1 }
 0x2cb   :  { %3196 = vrot.lane.b32.xlu1 %v11057_v15, %s12317_s1  ;;  %v11355_v16 = vadd.f32 %v11354_v31, %v11353_v3  ;;  %v4230_v15 = vld [vmem:[#allocation10 + $0x840] sm:$0xff] }
 0x2cc   :  { %v11356_v17 = vpop.f32.mrf.mxu1  ;;  %v4234_v3 = vld [vmem:[#allocation10 + $0x860] sm:$0xff] }
 0x2cd   :  { %v3384_v19 = vadd.f32 %v11355_v16, %v13455_v21  ;;  %v10481_v16 = vcombine.low %v4238_v13, %v4242_v56 }
 0x2ce   :  { %v11357_v20 = vpop.f32.mrf.mxu1 }
 0x2cf   :  { %v11058_v37 = vpack.c.bf16 %v3384_v19, %v3384_v19  ;;  %v11358_v22 = vadd.f32 %v11357_v20, %v11356_v17  ;;  %v10474_v17 = vcombine.high %v4230_v15, %v4234_v3  ;;  %v4222_v19 = vld [vmem:[#allocation10 + $0x800] sm:$0xff] }
 0x2d0   :  { %v4226_v20 = vld [vmem:[#allocation10 + $0x820] sm:$0xff] }
 0x2d1   :  { %3398 = vst.msk [vmem:[#allocation3 + $0x10] sm:$0xf] %vm278_vm3, %v11058_v37  ;;  %v3387_v23 = vadd.f32 %v11358_v22, %v13455_v21  ;;  %v10473_v22 = vcombine.low %v4230_v15, %v4234_v3 }
 0x2d3   :  { %v11059_v24 = vpack.c.bf16 %v3387_v23, %v3387_v23  ;;  %v10466_v23 = vcombine.high %v4222_v19, %v4226_v20 }
 0x2d5   :  { %3399 = vst.msk [vmem:[#allocation3 + $0x24] sm:$0xf] %vm278_vm3, %v11059_v24  ;;  %v10465_v24 = vcombine.low %v4222_v19, %v4226_v20  ;;  %v4135_v19 = vld [vmem:[#allocation10 + $0x548] sm:$0xff] }
 0x2d6   :  { %v4139_v20 = vld [vmem:[#allocation10 + $0x568] sm:$0xff] }
 0x2d9   :  { %v1995_v25 = vpop.permute.xlu0 %1994 }
 0x2da   :  { %2000 = vst.msk [vmem:[#allocation3] sm:$0xf] %vm413_vm7, %v1995_v25  ;;  %v10396_v25 = vcombine.high %v13512_v36, %v13514_v39  ;;  %v4067_v36 = vld [vmem:[#allocation10 + $0x328] sm:$0xff]  ;;  %v10379_v39 = vcombine.low %v4135_v19, %v4139_v20 }
 0x2dd   :  { %v1997_v26 = vpop.permute.xlu1 %1996 }
 0x2de   :  { %2001 = vst.msk [vmem:[#allocation3 + $0x14] sm:$0xf] %vm413_vm7, %v1997_v26  ;;  %v11375_v27 = vpop.f32.mrf.mxu0 }
 0x2e0   :  { %v11376_v28 = vpop.f32.mrf.mxu0 }
 0x2e1   :  { %v11377_v29 = vadd.f32 %v11376_v28, %v11375_v27  ;;  %v4015_v28 = vld [vmem:[#allocation10 + $0x188] sm:$0xff] }
 0x2e2   :  { %v11378_v32 = vpop.f32.mrf.mxu0 }
 0x2e3   :  { %v3582_v34 = vadd.f32 %v11377_v29, %v13455_v21  ;;  %v4019_v29 = vld [vmem:[#allocation10 + $0x1a8] sm:$0xff] }
 0x2e4   :  { %v11379_v35 = vpop.f32.mrf.mxu0 }
 0x2e5   :  { %v11060_v40 = vpack.c.bf16 %v3582_v34, %v3582_v34  ;;  %v11380_v41 = vadd.f32 %v11379_v35, %v11378_v32  ;;  %v13555_v53 = vld [vmem:[#allocation3] ss:$20 sps:$4 sm:$0xff]   ;;  %v10260_v35 = vcombine.high %v4015_v28, %v4019_v29 }
 0x2e7   :  { %v3585_v44 = vadd.f32 %v11380_v41, %v13455_v21  ;;  %3594 = vrot.lane.b32.xlu0 %v11060_v40, %s12317_s1  ;;  %v11027_v21 = vpack.c.bf16 %v13208_v4, %v13208_v4  ;;  %v11035_v4 = vpack.c.bf16 %v13430_v38, %v13430_v38  ;;  %v4274_v38 = vld [vmem:[#allocation10 + $0x9a0] sm:$0xff]  ;;  %v4007_v40 = vld [vmem:[#allocation10 + $0x148] sm:$0xff] }
 0x2e8   :  { %v10514_v54 = vcombine.high %v4270_v50, %v4274_v38  ;;  %v10513_v55 = vcombine.low %v4270_v50, %v4274_v38  ;;  %v4011_v41 = vld [vmem:[#allocation10 + $0x168] sm:$0xff] }
 0x2e9   :  { %v11061_v46 = vpack.c.bf16 %v3585_v44, %v3585_v44  ;;  %v10259_v44 = vcombine.low %v4015_v28, %v4019_v29  ;;  %v4127_v29 = vld [vmem:[#allocation10 + $0x508] sm:$0xff] }
 0x2eb   :  { %3596 = vrot.lane.b32.xlu1 %v11061_v46, %s12317_s1  ;;  %407 = vrot.lane.b32.xlu0 %v11022_v45, %s12317_s1  ;;  %v10252_v45 = vcombine.high %v4007_v40, %v4011_v41  ;;  %v3999_v46 = vld [vmem:[#allocation10 + $0x108] sm:$0xff] }
 0x2ef   :  { %409 = vrot.lane.b32.xlu1 %v11023_v47, %s12317_s1  ;;  %672 = vrot.lane.b32.xlu0 %v11026_v48, %s12317_s1  ;;  %v4003_v47 = vld [vmem:[#allocation10 + $0x128] sm:$0xff]  ;;  %v10251_v48 = vcombine.low %v4007_v40, %v4011_v41 }
 0x2f0   :  { %v4063_v40 = vld [vmem:[#allocation10 + $0x308] sm:$0xff] }
 0x2f3   :  { %674 = vrot.lane.b32.xlu1 %v11027_v21, %s12317_s1  ;;  %936 = vrot.lane.b32.xlu0 %v11030_v14, %s12317_s1  ;;  %v10244_v21 = vcombine.high %v3999_v46, %v4003_v47  ;;  %v3991_v14 = vld [vmem:[#allocation10 + $0xc8] sm:$0xff] }
 0x2f7   :  { %938 = vrot.lane.b32.xlu1 %v11031_v18, %s12317_s1  ;;  %1200 = vrot.lane.b32.xlu0 %v11034_v60, %s12317_s1  ;;  %v3995_v18 = vld [vmem:[#allocation10 + $0xe8] sm:$0xff]  ;;  %v10243_v60 = vcombine.low %v3999_v46, %v4003_v47  ;;  %v10308_v46 = vcombine.high %v4063_v40, %v4067_v36 }
 0x2f8   :  { %v10235_v8 = vcombine.low %v3991_v14, %v3995_v18  ;;  %v4119_v47 = vld [vmem:[#allocation10 + $0x4c8] sm:$0xff] }
 0x2f9   :  { %v2395_v49 = vpop.permute.xlu0 %2394 }
 0x2fa   :  { %2400 = vst.msk [vmem:[#allocation3 + $0x4] sm:$0xf] %vm413_vm7, %v2395_v49  ;;  %v3975_v49 = vld [vmem:[#allocation10 + $0x48] sm:$0xff] }
 0x2fb   :  { %1202 = vrot.lane.b32.xlu1 %v11035_v4, %s12317_s1  ;;  %1464 = vrot.lane.b32.xlu0 %v11038_v43, %s12317_s1  ;;  %v10236_v4 = vcombine.high %v3991_v14, %v3995_v18  ;;  %v3983_v43 = vld [vmem:[#allocation10 + $0x88] sm:$0xff] }
 0x2fc   :  { %v10227_v50 = vcombine.low %v3983_v43, %v3987_v7  ;;  %v4059_v14 = vld [vmem:[#allocation10 + $0x2e8] sm:$0xff] }
 0x2fd   :  { %v2397_v33 = vpop.permute.xlu1 %2396 }
 0x2fe   :  { %2401 = vst.msk [vmem:[#allocation3 + $0x18] sm:$0xf] %vm413_vm7, %v2397_v33 }
 0x2ff   :  { %1466 = vrot.lane.b32.xlu1 %v11039_v52, %s12317_s1  ;;  %v3979_v52 = vld [vmem:[#allocation10 + $0x68] sm:$0xff] }
 0x300   :  { %v10220_v38 = vcombine.high %v3975_v49, %v3979_v52 }
 0x305   :  { %v13553_v51 = vld [vmem:[#allocation3 + $0x4] ss:$20 sps:$4 sm:$0xff]  }
 0x306   :  { %5944 = vmatprep.mubr.bf16.mxu1 %v13553_v51 }
 0x307   :  { %5945 = vmatmul.mubr.bf16.vlgmr.msra.gmra.mxu1 %v13555_v53 }
 0x308   :  { %5999 = vmatpush1.bf16.msra.mxu1 %v10521_v62  ;;  %6030 = vmatprep.mubr.bf16.mxu1 %v13047_v0  ;;  %v10482_v62 = vcombine.high %v4238_v13, %v4242_v56  ;;  %v4147_v13 = vld [vmem:[#allocation10 + $0x5a8] sm:$0xff] }
 0x309   :  { %6000 = vmatprep.subr.bf16.mxu1 %v10514_v54  ;;  %v3967_v54 = vld [vmem:[#allocation10 + $0x8] sm:$0xff] }
 0x30a   :  { %v10212_v63 = vcombine.high %v3967_v54, %v3971_v57  ;;  %v10211_v9 = vcombine.low %v3967_v54, %v3971_v57  ;;  %v4079_v56 = vld [vmem:[#allocation10 + $0x388] sm:$0xff] }
 0x30b   :  { %v4103_v57 = vld [vmem:[#allocation10 + $0x448] sm:$0xff] }
 0x30c   :  { %6001 = vmatpush1.bf16.msra.mxu1 %v10513_v55 }
 0x30d   :  { %6002 = vmatprep.subr.bf16.mxu1 %v10506_v61  ;;  %v10219_v61 = vcombine.low %v3975_v49, %v3979_v52  ;;  %v4047_v49 = vld [vmem:[#allocation10 + $0x288] sm:$0xff] }
 0x30e   :  { %v4051_v52 = vld [vmem:[#allocation10 + $0x2a8] sm:$0xff] }
 0x30f   :  { %v10292_v54 = vcombine.high %v4047_v49, %v4051_v52 }
 0x310   :  { %6003 = vmatpush1.bf16.msra.mxu1 %v10505_v2  ;;  %v4091_v2 = vld [vmem:[#allocation10 + $0x3e8] sm:$0xff] }
 0x311   :  { %6004 = vmatprep.subr.bf16.mxu1 %v10498_v5 }
 0x314   :  { %6005 = vmatpush1.bf16.msra.mxu1 %v10497_v10  ;;  %v10332_v10 = vcombine.high %v4087_v1, %v4091_v2 }
 0x315   :  { %6006 = vmatprep.subr.bf16.mxu1 %v10490_v11  ;;  %v4143_v11 = vld [vmem:[#allocation10 + $0x588] sm:$0xff] }
 0x318   :  { %6007 = vmatpush1.bf16.msra.mxu1 %v10489_v58  ;;  %v4083_v58 = vld [vmem:[#allocation10 + $0x3a8] sm:$0xff] }
 0x319   :  { %v2795_v31 = vpop.permute.xlu0 %2794  ;;  %6008 = vmatprep.subr.bf16.mxu1 %v10482_v62 }
 0x31a   :  { %2800 = vst.msk [vmem:[#allocation3 + $0x8] sm:$0xf] %vm413_vm7, %v2795_v31  ;;  %v10331_v31 = vcombine.low %v4087_v1, %v4091_v2  ;;  %v10291_v1 = vcombine.low %v4047_v49, %v4051_v52 }
 0x31c   :  { %6009 = vmatpush1.bf16.msra.mxu1 %v10481_v16  ;;  %v10388_v16 = vcombine.high %v4143_v11, %v4147_v13 }
 0x31d   :  { %v2797_v37 = vpop.permute.xlu1 %2796  ;;  %6010 = vmatprep.subr.bf16.mxu1 %v10474_v17  ;;  %v10324_v17 = vcombine.high %v4079_v56, %v4083_v58 }
 0x31e   :  { %2801 = vst.msk [vmem:[#allocation3 + $0x1c] sm:$0xf] %vm413_vm7, %v2797_v37  ;;  %v4071_v37 = vld [vmem:[#allocation10 + $0x348] sm:$0xff] }
 0x320   :  { %6011 = vmatpush1.bf16.msra.mxu1 %v10473_v22  ;;  %v4075_v22 = vld [vmem:[#allocation10 + $0x368] sm:$0xff] }
 0x321   :  { %6012 = vmatprep.subr.bf16.mxu1 %v10466_v23  ;;  %v10387_v23 = vcombine.low %v4143_v11, %v4147_v13  ;;  %v10316_v28 = vcombine.high %v4071_v37, %v4075_v22  ;;  %v4035_v11 = vld [vmem:[#allocation10 + $0x228] sm:$0xff] }
 0x324   :  { %6013 = vmatpush1.bf16.msra.mxu1 %v10465_v24 }
 0x325   :  { %6084 = vmatprep.subr.bf16.mxu1 %v10396_v25  ;;  %v13571_v34 = vld [vmem:[#allocation3 + $0x8] ss:$20 sps:$4 sm:$0xff]  }
 0x339   :  { %v3195_v26 = vpop.permute.xlu0 %3194 }
 0x33a   :  { %3200 = vst.msk [vmem:[#allocation3 + $0xc] sm:$0xf] %vm413_vm7, %v3195_v26  ;;  %v10323_v26 = vcombine.low %v4079_v56, %v4083_v58 }
 0x33d   :  { %v3197_v27 = vpop.permute.xlu1 %3196 }
 0x33e   :  { %3201 = vst.msk [vmem:[#allocation3 + $0x20] sm:$0xf] %vm413_vm7, %v3197_v27  ;;  %v10380_v27 = vcombine.high %v4135_v19, %v4139_v20 }
 0x345   :  { %v13569_v32 = vld [vmem:[#allocation3 + $0xc] ss:$20 sps:$4 sm:$0xff]  }
 0x346   :  { %5987 = vmatprep.mubr.bf16.mxu0 %v13569_v32 }
 0x347   :  { %5988 = vmatmul.mubr.bf16.vlgmr.msra.gmra.mxu0 %v13571_v34 }
 0x348   :  { %6042 = vmatpush1.bf16.msra.mxu0 %v10267_v12  ;;  %6073 = vmatprep.mubr.bf16.mxu0 %v13553_v51  ;;  %v10228_v12 = vcombine.high %v3983_v43, %v3987_v7 }
 0x349   :  { %6043 = vmatprep.subr.bf16.mxu0 %v10260_v35  ;;  %v4131_v35 = vld [vmem:[#allocation10 + $0x528] sm:$0xff] }
 0x34a   :  { %v10371_v18 = vcombine.low %v4127_v29, %v4131_v35 }
 0x34c   :  { %6044 = vmatpush1.bf16.msra.mxu0 %v10259_v44  ;;  %v10315_v44 = vcombine.low %v4071_v37, %v4075_v22 }
 0x34d   :  { %6045 = vmatprep.subr.bf16.mxu0 %v10252_v45  ;;  %v10372_v45 = vcombine.high %v4127_v29, %v4131_v35 }
 0x350   :  { %6046 = vmatpush1.bf16.msra.mxu0 %v10251_v48  ;;  %v4123_v48 = vld [vmem:[#allocation10 + $0x4e8] sm:$0xff] }
 0x351   :  { %6047 = vmatprep.subr.bf16.mxu0 %v10244_v21  ;;  %v4055_v21 = vld [vmem:[#allocation10 + $0x2c8] sm:$0xff]  ;;  %v10364_v43 = vcombine.high %v4119_v47, %v4123_v48 }
 0x352   :  { %v10300_v7 = vcombine.high %v4055_v21, %v4059_v14 }
 0x354   :  { %6048 = vmatpush1.bf16.msra.mxu0 %v10243_v60 }
 0x355   :  { %6049 = vmatprep.subr.bf16.mxu0 %v10236_v4  ;;  %v10307_v4 = vcombine.low %v4063_v40, %v4067_v36  ;;  %v4199_v40 = vld [vmem:[#allocation10 + $0x748] sm:$0xff] }
 0x356   :  { %v4203_v36 = vld [vmem:[#allocation10 + $0x768] sm:$0xff] }
 0x358   :  { %6050 = vmatpush1.bf16.msra.mxu0 %v10235_v8  ;;  %v4111_v8 = vld [vmem:[#allocation10 + $0x488] sm:$0xff] }
 0x359   :  { %v3595_v33 = vpop.permute.xlu0 %3594  ;;  %6051 = vmatprep.subr.bf16.mxu0 %v10228_v12  ;;  %v4115_v12 = vld [vmem:[#allocation10 + $0x4a8] sm:$0xff] }
 0x35a   :  { %3600 = vst.msk [vmem:[#allocation3 + $0x10] sm:$0xf] %vm413_vm7, %v3595_v33  ;;  %v10363_v33 = vcombine.low %v4119_v47, %v4123_v48  ;;  %v4191_v47 = vld [vmem:[#allocation10 + $0x708] sm:$0xff] }
 0x35b   :  { %v4195_v48 = vld [vmem:[#allocation10 + $0x728] sm:$0xff] }
 0x35c   :  { %6052 = vmatpush1.bf16.msra.mxu0 %v10227_v50  ;;  %v10299_v50 = vcombine.low %v4055_v21, %v4059_v14  ;;  %v4255_v21 = vld [vmem:[#allocation10 + $0x908] sm:$0xff]  ;;  %v10435_v49 = vcombine.low %v4191_v47, %v4195_v48 }
 0x35d   :  { %v3597_v59 = vpop.permute.xlu1 %3596  ;;  %v408_v55 = vpop.permute.xlu0 %407  ;;  %6053 = vmatprep.subr.bf16.mxu0 %v10220_v38  ;;  %v10356_v38 = vcombine.high %v4111_v8, %v4115_v12  ;;  %v4259_v14 = vld [vmem:[#allocation10 + $0x928] sm:$0xff] }
 0x35e   :  { %3601 = vst.msk [vmem:[#allocation3 + $0x24] sm:$0xf] %vm413_vm7, %v3597_v59  ;;  %414 = vst.msk [vmem:[#allocation2] sm:$0xf] %vm413_vm7, %v408_v55  ;;  %v4107_v59 = vld [vmem:[#allocation10 + $0x468] sm:$0xff]  ;;  %v10499_v52 = vcombine.low %v4255_v21, %v4259_v14 }
 0x35f   :  { %v4039_v55 = vld [vmem:[#allocation10 + $0x248] sm:$0xff]  ;;  %v10348_v2 = vcombine.high %v4103_v57, %v4107_v59  ;;  %v10347_v13 = vcombine.low %v4103_v57, %v4107_v59 }
 0x360   :  { %6054 = vmatpush1.bf16.msra.mxu0 %v10219_v61  ;;  %v4043_v61 = vld [vmem:[#allocation10 + $0x268] sm:$0xff] }
 0x361   :  { %v410_v5 = vpop.permute.xlu1 %409  ;;  %v673_v6 = vpop.permute.xlu0 %672  ;;  %6055 = vmatprep.subr.bf16.mxu0 %v10212_v63  ;;  %v10355_v63 = vcombine.low %v4111_v8, %v4115_v12  ;;  %v10283_v56 = vcombine.low %v4039_v55, %v4043_v61  ;;  %v4247_v8 = vld [vmem:[#allocation10 + $0x8c8] sm:$0xff] }
 0x362   :  { %415 = vst.msk [vmem:[#allocation2 + $0x18] sm:$0xf] %vm413_vm7, %v410_v5  ;;  %678 = vst.msk [vmem:[#allocation2 + $0x4] sm:$0xf] %vm413_vm7, %v673_v6  ;;  %v10284_v5 = vcombine.high %v4039_v55, %v4043_v61  ;;  %v4095_v6 = vld [vmem:[#allocation10 + $0x408] sm:$0xff] }
 0x363   :  { %v4251_v12 = vld [vmem:[#allocation10 + $0x8e8] sm:$0xff] }
 0x364   :  { %6056 = vmatpush1.bf16.msra.mxu0 %v10211_v9  ;;  %v4099_v9 = vld [vmem:[#allocation10 + $0x428] sm:$0xff]  ;;  %v10491_v61 = vcombine.low %v4247_v8, %v4251_v12 }
 0x365   :  { %v675_v62 = vpop.permute.xlu1 %674  ;;  %v937_v15 = vpop.permute.xlu0 %936  ;;  %v13584_v3 = vld [vmem:[#allocation3 + $0x10] ss:$20 sps:$4 sm:$0xff]   ;;  %6057 = vmatprep.subr.bf16.mxu0 %v10332_v10  ;;  %v10340_v58 = vcombine.high %v4095_v6, %v4099_v9  ;;  %v10339_v19 = vcombine.low %v4095_v6, %v4099_v9 }
 0x366   :  { %679 = vst.msk [vmem:[#allocation2 + $0x1c] sm:$0xf] %vm413_vm7, %v675_v62  ;;  %942 = vst.msk [vmem:[#allocation2 + $0x8] sm:$0xf] %vm413_vm7, %v937_v15  ;;  %6031 = vmatmul.mubr.bf16.vlgmr.msra.gmra.mxu1 %v13584_v3  ;;  %v4031_v10 = vld [vmem:[#allocation10 + $0x208] sm:$0xff] }
 0x367   :  { %6085 = vmatpush1.bf16.msra.mxu1 %v10395_v42  ;;  %6116 = vmatprep.mubr.bf16.mxu1 %v13569_v32  ;;  %v10276_v62 = vcombine.high %v4031_v10, %v4035_v11  ;;  %v4215_v15 = vld [vmem:[#allocation10 + $0x7c8] sm:$0xff]  ;;  %v10275_v20 = vcombine.low %v4031_v10, %v4035_v11 }
 0x368   :  { %6058 = vmatpush2.bf16.msra.mxu0 %v10331_v31  ;;  %6086 = vmatprep.subr.bf16.mxu1 %v10388_v16  ;;  %v4219_v31 = vld [vmem:[#allocation10 + $0x7e8] sm:$0xff] }
 0x369   :  { %v939_v24 = vpop.permute.xlu1 %938  ;;  %v1201_v25 = vpop.permute.xlu0 %1200  ;;  %6059 = vmatprep.subr.bf16.mxu0 %v10324_v17  ;;  %v4279_v16 = vld [vmem:[#allocation10 + $0x9c8] sm:$0xff]  ;;  %v10460_v37 = vcombine.high %v4215_v15, %v4219_v31 }
 0x36a   :  { %943 = vst.msk [vmem:[#allocation2 + $0x20] sm:$0xf] %vm413_vm7, %v939_v24  ;;  %1206 = vst.msk [vmem:[#allocation2 + $0xc] sm:$0xf] %vm413_vm7, %v1201_v25  ;;  %v4283_v17 = vld [vmem:[#allocation10 + $0x9e8] sm:$0xff] }
 0x36b   :  { %6087 = vmatpush1.bf16.msra.mxu1 %v10387_v23  ;;  %v10524_v22 = vcombine.high %v4279_v16, %v4283_v17  ;;  %v4207_v23 = vld [vmem:[#allocation10 + $0x788] sm:$0xff] }
 0x36c   :  { %6060 = vmatpush2.bf16.msra.mxu0 %v10323_v26  ;;  %6088 = vmatprep.subr.bf16.mxu1 %v10380_v27  ;;  %v4211_v24 = vld [vmem:[#allocation10 + $0x7a8] sm:$0xff]  ;;  %v10459_v27 = vcombine.low %v4215_v15, %v4219_v31 }
 0x36d   :  { %v1203_v42 = vpop.permute.xlu1 %1202  ;;  %v1465_v41 = vpop.permute.xlu0 %1464  ;;  %6061 = vmatprep.subr.bf16.mxu0 %v10316_v28  ;;  %v4271_v25 = vld [vmem:[#allocation10 + $0x988] sm:$0xff]  ;;  %v10523_v28 = vcombine.low %v4279_v16, %v4283_v17  ;;  %v10452_v29 = vcombine.high %v4207_v23, %v4211_v24 }
 0x36e   :  { %1207 = vst.msk [vmem:[#allocation2 + $0x24] sm:$0xf] %vm413_vm7, %v1203_v42  ;;  %1470 = vst.msk [vmem:[#allocation2 + $0x10] sm:$0xf] %vm413_vm7, %v1465_v41  ;;  %v4275_v26 = vld [vmem:[#allocation10 + $0x9a8] sm:$0xff]  ;;  %v10451_v41 = vcombine.low %v4207_v23, %v4211_v24  ;;  %v4152_v23 = vld [vmem:[#allocation10 + $0x5d0] sm:$0xff] }
 0x36f   :  { %6089 = vmatpush1.bf16.msra.mxu1 %v10379_v39  ;;  %v10516_v35 = vcombine.high %v4271_v25, %v4275_v26  ;;  %v4263_v39 = vld [vmem:[#allocation10 + $0x948] sm:$0xff]  ;;  %v4156_v24 = vld [vmem:[#allocation10 + $0x5f0] sm:$0xff] }
 0x370   :  { %6062 = vmatpush2.bf16.msra.mxu0 %v10315_v44  ;;  %6090 = vmatprep.subr.bf16.mxu1 %v10372_v45  ;;  %v4267_v42 = vld [vmem:[#allocation10 + $0x968] sm:$0xff]  ;;  %v10515_v44 = vcombine.low %v4271_v25, %v4275_v26  ;;  %v10444_v45 = vcombine.high %v4199_v40, %v4203_v36 }
 0x371   :  { %v1467_v60 = vpop.permute.xlu1 %1466  ;;  %6063 = vmatprep.subr.bf16.mxu0 %v10308_v46  ;;  %v10508_v46 = vcombine.high %v4263_v39, %v4267_v42  ;;  %v4239_v57 = vld [vmem:[#allocation10 + $0x888] sm:$0xff] }
 0x372   :  { %1471 = vst.msk [vmem:[#allocation2 + $0x28] sm:$0xf] %vm413_vm7, %v1467_v60  ;;  %v10507_v60 = vcombine.low %v4263_v39, %v4267_v42  ;;  %v4243_v59 = vld [vmem:[#allocation10 + $0x8a8] sm:$0xff]  ;;  %v4148_v39 = vld [vmem:[#allocation10 + $0x5b0] sm:$0xff]  ;;  %v10397_v42 = vcombine.low %v4152_v23, %v4156_v24 }
 0x373   :  { %6091 = vmatpush1.bf16.msra.mxu1 %v10371_v18  ;;  %v10443_v18 = vcombine.low %v4199_v40, %v4203_v36  ;;  %v4231_v6 = vld [vmem:[#allocation10 + $0x848] sm:$0xff]  ;;  %v10483_v11 = vcombine.low %v4239_v57, %v4243_v59  ;;  %v4144_v36 = vld [vmem:[#allocation10 + $0x590] sm:$0xff] }
 0x374   :  { %6064 = vmatpush2.bf16.msra.mxu0 %v10307_v4  ;;  %6092 = vmatprep.subr.bf16.mxu1 %v10364_v43  ;;  %v10500_v4 = vcombine.high %v4255_v21, %v4259_v14  ;;  %v4183_v43 = vld [vmem:[#allocation10 + $0x6c8] sm:$0xff]  ;;  %v10389_v14 = vcombine.low %v4144_v36, %v4148_v39 }
 0x375   :  { %6065 = vmatprep.subr.bf16.mxu0 %v10300_v7  ;;  %v4187_v7 = vld [vmem:[#allocation10 + $0x6e8] sm:$0xff] }
 0x376   :  { %v10427_v55 = vcombine.low %v4183_v43, %v4187_v7  ;;  %v4235_v9 = vld [vmem:[#allocation10 + $0x868] sm:$0xff] }
 0x377   :  { %6093 = vmatpush1.bf16.msra.mxu1 %v10363_v33  ;;  %v10428_v33 = vcombine.high %v4183_v43, %v4187_v7  ;;  %v4223_v15 = vld [vmem:[#allocation10 + $0x808] sm:$0xff]  ;;  %v10475_v17 = vcombine.low %v4231_v6, %v4235_v9  ;;  %v4128_v43 = vld [vmem:[#allocation10 + $0x510] sm:$0xff] }
 0x378   :  { %6066 = vmatpush2.bf16.msra.mxu0 %v10299_v50  ;;  %6094 = vmatprep.subr.bf16.mxu1 %v10356_v38  ;;  %v10492_v50 = vcombine.high %v4247_v8, %v4251_v12  ;;  %v4175_v38 = vld [vmem:[#allocation10 + $0x688] sm:$0xff]  ;;  %v4132_v7 = vld [vmem:[#allocation10 + $0x530] sm:$0xff] }
 0x379   :  { %6067 = vmatprep.subr.bf16.mxu0 %v10292_v54  ;;  %v4179_v54 = vld [vmem:[#allocation10 + $0x6a8] sm:$0xff] }
 0x37a   :  { %v10419_v10 = vcombine.low %v4175_v38, %v4179_v54  ;;  %v4227_v31 = vld [vmem:[#allocation10 + $0x828] sm:$0xff] }
 0x37b   :  { %6095 = vmatpush1.bf16.msra.mxu1 %v10355_v63  ;;  %v10420_v63 = vcombine.high %v4175_v38, %v4179_v54  ;;  %v10467_v26 = vcombine.low %v4223_v15, %v4227_v31  ;;  %v10373_v38 = vcombine.low %v4128_v43, %v4132_v7 }
 0x37c   :  { %6068 = vmatpush2.bf16.msra.mxu0 %v10291_v1  ;;  %6096 = vmatprep.subr.bf16.mxu1 %v10348_v2  ;;  %v10484_v1 = vcombine.high %v4239_v57, %v4243_v59  ;;  %v4167_v2 = vld [vmem:[#allocation10 + $0x648] sm:$0xff]  ;;  %v3984_v59 = vld [vmem:[#allocation10 + $0x90] sm:$0xff] }
 0x37d   :  { %6069 = vmatprep.subr.bf16.mxu0 %v10284_v5  ;;  %v4171_v5 = vld [vmem:[#allocation10 + $0x668] sm:$0xff] }
 0x37e   :  { %v10411_v16 = vcombine.low %v4167_v2, %v4171_v5 }
 0x37f   :  { %6097 = vmatpush1.bf16.msra.mxu1 %v10347_v13  ;;  %v10412_v13 = vcombine.high %v4167_v2, %v4171_v5 }
 0x380   :  { %6070 = vmatpush2.bf16.msra.mxu0 %v10283_v56  ;;  %6098 = vmatprep.subr.bf16.mxu1 %v10340_v58  ;;  %v10476_v56 = vcombine.high %v4231_v6, %v4235_v9  ;;  %v4159_v58 = vld [vmem:[#allocation10 + $0x608] sm:$0xff]  ;;  %v3976_v9 = vld [vmem:[#allocation10 + $0x50] sm:$0xff] }
 0x381   :  { %6071 = vmatprep.subr.bf16.mxu0 %v10276_v62  ;;  %v4163_v62 = vld [vmem:[#allocation10 + $0x628] sm:$0xff] }
 0x382   :  { %v10403_v25 = vcombine.low %v4159_v58, %v4163_v62 }
 0x383   :  { %6099 = vmatpush1.bf16.msra.mxu1 %v10339_v19  ;;  %v10404_v19 = vcombine.high %v4159_v58, %v4163_v62 }
 0x384   :  { %6072 = vmatpush2.bf16.msra.mxu0 %v10275_v20  ;;  %6100 = vmatprep.subr.bf16.mxu1 %v10460_v37  ;;  %v10468_v20 = vcombine.high %v4223_v15, %v4227_v31  ;;  %v4024_v37 = vld [vmem:[#allocation10 + $0x1d0] sm:$0xff] }
 0x385   :  { %6127 = vmatprep.subr.bf16.mxu0 %v10524_v22  ;;  %v4028_v22 = vld [vmem:[#allocation10 + $0x1f0] sm:$0xff] }
 0x386   :  { %v10269_v40 = vcombine.low %v4024_v37, %v4028_v22  ;;  %v3968_v31 = vld [vmem:[#allocation10 + $0x10] sm:$0xff] }
 0x387   :  { %6074 = vmatmul.mubr.bf16.vlgmr.msra.gmra.mxu0 %v13555_v53  ;;  %6101 = vmatpush2.bf16.msra.mxu1 %v10459_v27  ;;  %v10436_v53 = vcombine.high %v4191_v47, %v4195_v48  ;;  %v10270_v27 = vcombine.high %v4024_v37, %v4028_v22  ;;  %v4136_v47 = vld [vmem:[#allocation10 + $0x550] sm:$0xff] }
 0x388   :  { %6128 = vmatpush1.bf16.msra.mxu0 %v10523_v28  ;;  %6102 = vmatprep.subr.bf16.mxu1 %v10452_v29  ;;  %v10398_v28 = vcombine.high %v4152_v23, %v4156_v24  ;;  %v4016_v29 = vld [vmem:[#allocation10 + $0x190] sm:$0xff] }
 0x389   :  { %6129 = vmatprep.subr.bf16.mxu0 %v10516_v35  ;;  %6159 = vmatprep.mubr.bf16.mxu0 %v13047_v0  ;;  %v4020_v35 = vld [vmem:[#allocation10 + $0x1b0] sm:$0xff] }
 0x38a   :  { %v4140_v48 = vld [vmem:[#allocation10 + $0x570] sm:$0xff]  ;;  %v10261_v21 = vcombine.low %v4016_v29, %v4020_v35 }
 0x38b   :  { %6103 = vmatpush2.bf16.msra.mxu1 %v10451_v41  ;;  %v10262_v41 = vcombine.high %v4016_v29, %v4020_v35  ;;  %v4088_v24 = vld [vmem:[#allocation10 + $0x3d0] sm:$0xff] }
 0x38c   :  { %6130 = vmatpush1.bf16.msra.mxu0 %v10515_v44  ;;  %6104 = vmatprep.subr.bf16.mxu1 %v10444_v45  ;;  %v4008_v44 = vld [vmem:[#allocation10 + $0x150] sm:$0xff] }
 0x38d   :  { %6131 = vmatprep.subr.bf16.mxu0 %v10508_v46  ;;  %v4012_v45 = vld [vmem:[#allocation10 + $0x170] sm:$0xff]  ;;  %v10390_v46 = vcombine.high %v4144_v36, %v4148_v39 }
 0x38e   :  { %v10253_v8 = vcombine.low %v4008_v44, %v4012_v45  ;;  %v4080_v36 = vld [vmem:[#allocation10 + $0x390] sm:$0xff] }
 0x38f   :  { %6105 = vmatpush2.bf16.msra.mxu1 %v10443_v18  ;;  %v10254_v18 = vcombine.high %v4008_v44, %v4012_v45  ;;  %v4084_v39 = vld [vmem:[#allocation10 + $0x3b0] sm:$0xff] }
 0x390   :  { %6132 = vmatpush1.bf16.msra.mxu0 %v10507_v60  ;;  %6106 = vmatprep.subr.bf16.mxu1 %v10436_v53  ;;  %v10382_v60 = vcombine.high %v4136_v47, %v4140_v48  ;;  %v4000_v53 = vld [vmem:[#allocation10 + $0x110] sm:$0xff] }
 0x391   :  { %6133 = vmatprep.subr.bf16.mxu0 %v10500_v4  ;;  %v4004_v4 = vld [vmem:[#allocation10 + $0x130] sm:$0xff] }
 0x392   :  { %v10246_v12 = vcombine.high %v4000_v53, %v4004_v4 }
 0x393   :  { %6107 = vmatpush2.bf16.msra.mxu1 %v10435_v49  ;;  %v3992_v49 = vld [vmem:[#allocation10 + $0xd0] sm:$0xff] }
 0x394   :  { %6134 = vmatpush1.bf16.msra.mxu0 %v10499_v52  ;;  %6108 = vmatprep.subr.bf16.mxu1 %v10428_v33  ;;  %v3996_v52 = vld [vmem:[#allocation10 + $0xf0] sm:$0xff] }
 0x395   :  { %6135 = vmatprep.subr.bf16.mxu0 %v10492_v50  ;;  %v4120_v33 = vld [vmem:[#allocation10 + $0x4d0] sm:$0xff]  ;;  %v10238_v54 = vcombine.high %v3992_v49, %v3996_v52 }
 0x396   :  { %v4124_v50 = vld [vmem:[#allocation10 + $0x4f0] sm:$0xff] }
 0x397   :  { %6109 = vmatpush2.bf16.msra.mxu1 %v10427_v55  ;;  %v10366_v57 = vcombine.high %v4120_v33, %v4124_v50  ;;  %v3988_v55 = vld [vmem:[#allocation10 + $0xb0] sm:$0xff]  ;;  %v10365_v2 = vcombine.low %v4120_v33, %v4124_v50 }
 0x398   :  { %6136 = vmatpush1.bf16.msra.mxu0 %v10491_v61  ;;  %6110 = vmatprep.subr.bf16.mxu1 %v10420_v63  ;;  %v4112_v61 = vld [vmem:[#allocation10 + $0x490] sm:$0xff]  ;;  %v10230_v5 = vcombine.high %v3984_v59, %v3988_v55 }
 0x399   :  { %6137 = vmatprep.subr.bf16.mxu0 %v10484_v1  ;;  %v4116_v63 = vld [vmem:[#allocation10 + $0x4b0] sm:$0xff]  ;;  %v10237_v1 = vcombine.low %v3992_v49, %v3996_v52 }
 0x39a   :  { %v10358_v6 = vcombine.high %v4112_v61, %v4116_v63  ;;  %v10357_v58 = vcombine.low %v4112_v61, %v4116_v63  ;;  %v4056_v50 = vld [vmem:[#allocation10 + $0x2d0] sm:$0xff] }
 0x39b   :  { %6111 = vmatpush2.bf16.msra.mxu1 %v10419_v10  ;;  %v3980_v10 = vld [vmem:[#allocation10 + $0x70] sm:$0xff] }
 0x39c   :  { %6138 = vmatpush1.bf16.msra.mxu0 %v10483_v11  ;;  %6112 = vmatprep.subr.bf16.mxu1 %v10412_v13  ;;  %v4104_v11 = vld [vmem:[#allocation10 + $0x450] sm:$0xff]  ;;  %v10222_v62 = vcombine.high %v3976_v9, %v3980_v10 }
 0x39d   :  { %6139 = vmatprep.subr.bf16.mxu0 %v10476_v56  ;;  %v4108_v13 = vld [vmem:[#allocation10 + $0x470] sm:$0xff]  ;;  %v10229_v56 = vcombine.low %v3984_v59, %v3988_v55 }
 0x39e   :  { %v10350_v15 = vcombine.high %v4104_v11, %v4108_v13  ;;  %v10349_v37 = vcombine.low %v4104_v11, %v4108_v13  ;;  %v4048_v63 = vld [vmem:[#allocation10 + $0x290] sm:$0xff] }
 0x39f   :  { %6113 = vmatpush2.bf16.msra.mxu1 %v10411_v16  ;;  %v3972_v16 = vld [vmem:[#allocation10 + $0x30] sm:$0xff] }
 0x3a0   :  { %6140 = vmatpush1.bf16.msra.mxu0 %v10475_v17  ;;  %6114 = vmatprep.subr.bf16.mxu1 %v10404_v19  ;;  %v4096_v17 = vld [vmem:[#allocation10 + $0x410] sm:$0xff]  ;;  %v10214_v22 = vcombine.high %v3968_v31, %v3972_v16 }
 0x3a1   :  { %6141 = vmatprep.subr.bf16.mxu0 %v10468_v20  ;;  %v4100_v19 = vld [vmem:[#allocation10 + $0x430] sm:$0xff]  ;;  %v10221_v20 = vcombine.low %v3976_v9, %v3980_v10 }
 0x3a2   :  { %v10342_v23 = vcombine.high %v4096_v17, %v4100_v19  ;;  %v10341_v29 = vcombine.low %v4096_v17, %v4100_v19  ;;  %v4040_v13 = vld [vmem:[#allocation10 + $0x250] sm:$0xff] }
 0x3a3   :  { %6115 = vmatpush2.bf16.msra.mxu1 %v10403_v25  ;;  %v4092_v25 = vld [vmem:[#allocation10 + $0x3f0] sm:$0xff] }
 0x3a4   :  { %6142 = vmatpush1.bf16.msra.mxu0 %v10467_v26  ;;  %6170 = vmatprep.subr.bf16.mxu1 %v10270_v27  ;;  %v4216_v26 = vld [vmem:[#allocation10 + $0x7d0] sm:$0xff]  ;;  %v10334_v35 = vcombine.high %v4088_v24, %v4092_v25  ;;  %v10333_v44 = vcombine.low %v4088_v24, %v4092_v25 }
 0x3a5   :  { %6213 = vmatprep.subr.bf16.mxu0 %v10398_v28  ;;  %v4220_v27 = vld [vmem:[#allocation10 + $0x7f0] sm:$0xff]  ;;  %v10213_v28 = vcombine.low %v3968_v31, %v3972_v16 }
 0x3a6   :  { %6117 = vmatmul.mubr.bf16.vlgmr.msra.gmra.mxu1 %v13571_v34  ;;  %v10461_v45 = vcombine.low %v4216_v26, %v4220_v27  ;;  %v4032_v19 = vld [vmem:[#allocation10 + $0x210] sm:$0xff] }
 0x3a7   :  { %6160 = vmatmul.mubr.bf16.vlgmr.msra.gmra.mxu0 %v13584_v3  ;;  %6171 = vmatpush1.bf16.msra.mxu1 %v10269_v40  ;;  %v10381_v3 = vcombine.low %v4136_v47, %v4140_v48  ;;  %v10462_v40 = vcombine.high %v4216_v26, %v4220_v27  ;;  %v4072_v48 = vld [vmem:[#allocation10 + $0x350] sm:$0xff] }
 0x3a8   :  { %6202 = vmatprep.mubr.bf16.mxu1 %v13553_v51  ;;  %6214 = vmatpush1.bf16.msra.mxu0 %v10397_v42  ;;  %v10374_v51 = vcombine.high %v4128_v43, %v4132_v7  ;;  %v4208_v42 = vld [vmem:[#allocation10 + $0x790] sm:$0xff] }
 0x3a9   :  { %6245 = vmatprep.mubr.bf16.mxu0 %v13569_v32  ;;  %6172 = vmatprep.subr.bf16.mxu1 %v10262_v41  ;;  %v10245_v32 = vcombine.low %v4000_v53, %v4004_v4  ;;  %v4212_v41 = vld [vmem:[#allocation10 + $0x7b0] sm:$0xff] }
 0x3aa   :  { %6215 = vmatprep.subr.bf16.mxu0 %v10390_v46  ;;  %v10326_v46 = vcombine.high %v4080_v36, %v4084_v39  ;;  %v10454_v47 = vcombine.high %v4208_v42, %v4212_v41  ;;  %v10453_v53 = vcombine.low %v4208_v42, %v4212_v41  ;;  %v4064_v7 = vld [vmem:[#allocation10 + $0x310] sm:$0xff] }
 0x3ab   :  { %6173 = vmatpush1.bf16.msra.mxu1 %v10261_v21  ;;  %v4076_v21 = vld [vmem:[#allocation10 + $0x370] sm:$0xff] }
 0x3ac   :  { %6216 = vmatpush1.bf16.msra.mxu0 %v10389_v14  ;;  %6174 = vmatprep.subr.bf16.mxu1 %v10254_v18  ;;  %v4200_v14 = vld [vmem:[#allocation10 + $0x750] sm:$0xff]  ;;  %v10318_v4 = vcombine.high %v4072_v48, %v4076_v21 }
 0x3ad   :  { %6217 = vmatprep.subr.bf16.mxu0 %v10382_v60  ;;  %v4204_v18 = vld [vmem:[#allocation10 + $0x770] sm:$0xff]  ;;  %v10325_v60 = vcombine.low %v4080_v36, %v4084_v39 }
 0x3ae   :  { %v10446_v43 = vcombine.high %v4200_v14, %v4204_v18  ;;  %v10445_v49 = vcombine.low %v4200_v14, %v4204_v18  ;;  %v4280_v27 = vld [vmem:[#allocation10 + $0x9d0] sm:$0xff] }
 0x3af   :  { %6175 = vmatpush1.bf16.msra.mxu1 %v10253_v8  ;;  %v4068_v8 = vld [vmem:[#allocation10 + $0x330] sm:$0xff] }
 0x3b0   :  { %6218 = vmatpush1.bf16.msra.mxu0 %v10381_v3  ;;  %6176 = vmatprep.subr.bf16.mxu1 %v10246_v12  ;;  %v4192_v3 = vld [vmem:[#allocation10 + $0x710] sm:$0xff]  ;;  %v10310_v52 = vcombine.high %v4064_v7, %v4068_v8 }
 0x3b1   :  { %6219 = vmatprep.subr.bf16.mxu0 %v10374_v51  ;;  %v4196_v12 = vld [vmem:[#allocation10 + $0x730] sm:$0xff]  ;;  %v10317_v51 = vcombine.low %v4072_v48, %v4076_v21 }
 0x3b2   :  { %v10438_v33 = vcombine.high %v4192_v3, %v4196_v12  ;;  %v10437_v59 = vcombine.low %v4192_v3, %v4196_v12  ;;  %v4272_v41 = vld [vmem:[#allocation10 + $0x990] sm:$0xff] }
 0x3b3   :  { %6177 = vmatpush1.bf16.msra.mxu1 %v10245_v32  ;;  %v4060_v32 = vld [vmem:[#allocation10 + $0x2f0] sm:$0xff] }
 0x3b4   :  { %6220 = vmatpush1.bf16.msra.mxu0 %v10373_v38  ;;  %6178 = vmatprep.subr.bf16.mxu1 %v10238_v54  ;;  %v4184_v38 = vld [vmem:[#allocation10 + $0x6d0] sm:$0xff]  ;;  %v10302_v55 = vcombine.high %v4056_v50, %v4060_v32 }
 0x3b5   :  { %6221 = vmatprep.subr.bf16.mxu0 %v10366_v57  ;;  %v4188_v54 = vld [vmem:[#allocation10 + $0x6f0] sm:$0xff]  ;;  %v10309_v57 = vcombine.low %v4064_v7, %v4068_v8 }
 0x3b6   :  { %v10430_v61 = vcombine.high %v4184_v38, %v4188_v54  ;;  %v10429_v9 = vcombine.low %v4184_v38, %v4188_v54  ;;  %v4264_v18 = vld [vmem:[#allocation10 + $0x950] sm:$0xff] }
 0x3b7   :  { %6179 = vmatpush1.bf16.msra.mxu1 %v10237_v1  ;;  %v4052_v1 = vld [vmem:[#allocation10 + $0x2b0] sm:$0xff] }
 0x3b8   :  { %6222 = vmatpush1.bf16.msra.mxu0 %v10365_v2  ;;  %6180 = vmatprep.subr.bf16.mxu1 %v10230_v5  ;;  %v4176_v2 = vld [vmem:[#allocation10 + $0x690] sm:$0xff]  ;;  %v10294_v10 = vcombine.high %v4048_v63, %v4052_v1 }
 0x3b9   :  { %6223 = vmatprep.subr.bf16.mxu0 %v10358_v6  ;;  %v4180_v5 = vld [vmem:[#allocation10 + $0x6b0] sm:$0xff]  ;;  %v10301_v6 = vcombine.low %v4056_v50, %v4060_v32  ;;  %v4005_v50 = vld [vmem:[#allocation10 + $0x138] sm:$0xff] }
 0x3ba   :  { %v10422_v11 = vcombine.high %v4176_v2, %v4180_v5  ;;  %v10421_v31 = vcombine.low %v4176_v2, %v4180_v5  ;;  %v12133_v8 = vld [vmem:[#allocation3 + $0x4] ss:$20 sps:$4 sm:$0xff]  }
 0x3bb   :  { %6181 = vmatpush1.bf16.msra.mxu1 %v10229_v56  ;;  %v4044_v56 = vld [vmem:[#allocation10 + $0x270] sm:$0xff] }
 0x3bc   :  { %6224 = vmatpush1.bf16.msra.mxu0 %v10357_v58  ;;  %6182 = vmatprep.subr.bf16.mxu1 %v10222_v62  ;;  %v4168_v58 = vld [vmem:[#allocation10 + $0x650] sm:$0xff]  ;;  %v10286_v16 = vcombine.high %v4040_v13, %v4044_v56 }
 0x3bd   :  { %6225 = vmatprep.subr.bf16.mxu0 %v10350_v15  ;;  %v4172_v62 = vld [vmem:[#allocation10 + $0x670] sm:$0xff]  ;;  %v10293_v15 = vcombine.low %v4048_v63, %v4052_v1 }
 0x3be   :  { %v10414_v17 = vcombine.high %v4168_v58, %v4172_v62  ;;  %v10413_v24 = vcombine.low %v4168_v58, %v4172_v62 }
 0x3bf   :  { %6183 = vmatpush1.bf16.msra.mxu1 %v10221_v20  ;;  %v4036_v20 = vld [vmem:[#allocation10 + $0x230] sm:$0xff] }
 0x3c0   :  { %6226 = vmatpush1.bf16.msra.mxu0 %v10349_v37  ;;  %6184 = vmatprep.subr.bf16.mxu1 %v10214_v22  ;;  %v4160_v37 = vld [vmem:[#allocation10 + $0x610] sm:$0xff]  ;;  %v10278_v25 = vcombine.high %v4032_v19, %v4036_v20 }
 0x3c1   :  { %6227 = vmatprep.subr.bf16.mxu0 %v10342_v23  ;;  %v4164_v22 = vld [vmem:[#allocation10 + $0x630] sm:$0xff]  ;;  %v10285_v23 = vcombine.low %v4040_v13, %v4044_v56 }
 0x3c2   :  { %v10406_v26 = vcombine.high %v4160_v37, %v4164_v22  ;;  %v10405_v36 = vcombine.low %v4160_v37, %v4164_v22 }
 0x3c3   :  { %6185 = vmatpush1.bf16.msra.mxu1 %v10213_v28  ;;  %v4284_v28 = vld [vmem:[#allocation10 + $0x9f0] sm:$0xff] }
 0x3c4   :  { %6228 = vmatpush1.bf16.msra.mxu0 %v10341_v29  ;;  %6186 = vmatprep.subr.bf16.mxu1 %v10334_v35  ;;  %v4025_v29 = vld [vmem:[#allocation10 + $0x1d8] sm:$0xff]  ;;  %v10526_v39 = vcombine.high %v4280_v27, %v4284_v28 }
 0x3c5   :  { %6229 = vmatprep.subr.bf16.mxu0 %v10462_v40  ;;  %v4029_v35 = vld [vmem:[#allocation10 + $0x1f8] sm:$0xff]  ;;  %v10277_v40 = vcombine.low %v4032_v19, %v4036_v20 }
 0x3c6   :  { %v10272_v42 = vcombine.high %v4025_v29, %v4029_v35  ;;  %v10271_v48 = vcombine.low %v4025_v29, %v4029_v35 }
 0x3c7   :  { %6187 = vmatpush2.bf16.msra.mxu1 %v10333_v44  ;;  %v4276_v44 = vld [vmem:[#allocation10 + $0x9b0] sm:$0xff] }
 0x3c8   :  { %6230 = vmatpush2.bf16.msra.mxu0 %v10461_v45  ;;  %6188 = vmatprep.subr.bf16.mxu1 %v10326_v46  ;;  %v4017_v45 = vld [vmem:[#allocation10 + $0x198] sm:$0xff]  ;;  %v10518_v21 = vcombine.high %v4272_v41, %v4276_v44  ;;  %v10517_v7 = vcombine.low %v4272_v41, %v4276_v44 }
 0x3c9   :  { %6231 = vmatprep.subr.bf16.mxu0 %v10454_v47  ;;  %v4021_v46 = vld [vmem:[#allocation10 + $0x1b8] sm:$0xff]  ;;  %v10525_v47 = vcombine.low %v4280_v27, %v4284_v28 }
 0x3ca   :  { %v10264_v14 = vcombine.high %v4017_v45, %v4021_v46  ;;  %v10263_v3 = vcombine.low %v4017_v45, %v4021_v46 }
 0x3cb   :  { %6189 = vmatpush2.bf16.msra.mxu1 %v10325_v60  ;;  %v4268_v60 = vld [vmem:[#allocation10 + $0x970] sm:$0xff] }
 0x3cc   :  { %6232 = vmatpush2.bf16.msra.mxu0 %v10453_v53  ;;  %6190 = vmatprep.subr.bf16.mxu1 %v10318_v4  ;;  %v13604_v53 = vld [vmem:[#allocation3] ss:$20 sps:$4 sm:$0xff]   ;;  %v10510_v12 = vcombine.high %v4264_v18, %v4268_v60  ;;  %v10509_v32 = vcombine.low %v4264_v18, %v4268_v60  ;;  %v5946_v18 = vpop.f32.mrf.mxu1 }
 0x3cd   :  { %6233 = vmatprep.subr.bf16.mxu0 %v10446_v43  ;;  %v4009_v4 = vld [vmem:[#allocation10 + $0x158] sm:$0xff] }
 0x3ce   :  { %v4013_v43 = vld [vmem:[#allocation10 + $0x178] sm:$0xff] }
 0x3cf   :  { %6191 = vmatpush2.bf16.msra.mxu1 %v10317_v51  ;;  %v10256_v51 = vcombine.high %v4009_v4, %v4013_v43 }
 0x3d0   :  { %6234 = vmatpush2.bf16.msra.mxu0 %v10445_v49  ;;  %6192 = vmatprep.subr.bf16.mxu1 %v10310_v52  ;;  %v4256_v49 = vld [vmem:[#allocation10 + $0x910] sm:$0xff] }
 0x3d1   :  { %6235 = vmatprep.subr.bf16.mxu0 %v10438_v33  ;;  %v4260_v52 = vld [vmem:[#allocation10 + $0x930] sm:$0xff]  ;;  %v4001_v33 = vld [vmem:[#allocation10 + $0x118] sm:$0xff] }
 0x3d2   :  { %v10502_v38 = vcombine.high %v4256_v49, %v4260_v52  ;;  %v10248_v54 = vcombine.high %v4001_v33, %v4005_v50  ;;  %v10501_v63 = vcombine.low %v4256_v49, %v4260_v52  ;;  %v10247_v1 = vcombine.low %v4001_v33, %v4005_v50  ;;  %v4077_v49 = vld [vmem:[#allocation10 + $0x378] sm:$0xff]  ;;  %v13612_v52 = vpop.f32.mrf.mxu1 }
 0x3d3   :  { %6193 = vmatpush2.bf16.msra.mxu1 %v10309_v57  ;;  %v4248_v57 = vld [vmem:[#allocation10 + $0x8d0] sm:$0xff] }
 0x3d4   :  { %6236 = vmatpush2.bf16.msra.mxu0 %v10437_v59  ;;  %6194 = vmatprep.subr.bf16.mxu1 %v10302_v55  ;;  %v4252_v59 = vld [vmem:[#allocation10 + $0x8f0] sm:$0xff]  ;;  %v3993_v55 = vld [vmem:[#allocation10 + $0xd8] sm:$0xff] }
 0x3d5   :  { %6237 = vmatprep.subr.bf16.mxu0 %v10430_v61  ;;  %v3997_v61 = vld [vmem:[#allocation10 + $0xf8] sm:$0xff]  ;;  %v10494_v2 = vcombine.high %v4248_v57, %v4252_v59  ;;  %v10493_v13 = vcombine.low %v4248_v57, %v4252_v59 }
 0x3d6   :  { %v10240_v5 = vcombine.high %v3993_v55, %v3997_v61  ;;  %v10239_v56 = vcombine.low %v3993_v55, %v3997_v61  ;;  %v12135_v33 = vld [vmem:[#allocation3 + $0xc] ss:$20 sps:$4 sm:$0xff]  }
 0x3d7   :  { %6195 = vmatpush2.bf16.msra.mxu1 %v10301_v6  ;;  %v4240_v6 = vld [vmem:[#allocation10 + $0x890] sm:$0xff]  ;;  %v4129_v55 = vld [vmem:[#allocation10 + $0x518] sm:$0xff] }
 0x3d8   :  { %6238 = vmatpush2.bf16.msra.mxu0 %v10429_v9  ;;  %6196 = vmatprep.subr.bf16.mxu1 %v10294_v10  ;;  %v4244_v9 = vld [vmem:[#allocation10 + $0x8b0] sm:$0xff]  ;;  %v3985_v10 = vld [vmem:[#allocation10 + $0x98] sm:$0xff] }
 0x3d9   :  { %6239 = vmatprep.subr.bf16.mxu0 %v10422_v11  ;;  %v3989_v11 = vld [vmem:[#allocation10 + $0xb8] sm:$0xff]  ;;  %v10486_v58 = vcombine.high %v4240_v6, %v4244_v9  ;;  %v10485_v19 = vcombine.low %v4240_v6, %v4244_v9 }
 0x3da   :  { %v10232_v62 = vcombine.high %v3985_v10, %v3989_v11  ;;  %v10231_v20 = vcombine.low %v3985_v10, %v3989_v11  ;;  %v4133_v61 = vld [vmem:[#allocation10 + $0x538] sm:$0xff] }
 0x3db   :  { %6197 = vmatpush2.bf16.msra.mxu1 %v10293_v15  ;;  %v4232_v15 = vld [vmem:[#allocation10 + $0x850] sm:$0xff]  ;;  %v10376_v11 = vcombine.high %v4129_v55, %v4133_v61 }
 0x3dc   :  { %6240 = vmatpush2.bf16.msra.mxu0 %v10421_v31  ;;  %6198 = vmatprep.subr.bf16.mxu1 %v10286_v16  ;;  %v4236_v31 = vld [vmem:[#allocation10 + $0x870] sm:$0xff]  ;;  %v3977_v16 = vld [vmem:[#allocation10 + $0x58] sm:$0xff] }
 0x3dd   :  { %6241 = vmatprep.subr.bf16.mxu0 %v10414_v17  ;;  %v3981_v17 = vld [vmem:[#allocation10 + $0x78] sm:$0xff]  ;;  %v10478_v37 = vcombine.high %v4232_v15, %v4236_v31  ;;  %v10477_v27 = vcombine.low %v4232_v15, %v4236_v31  ;;  %v10375_v31 = vcombine.low %v4129_v55, %v4133_v61 }
 0x3de   :  { %v10224_v22 = vcombine.high %v3977_v16, %v3981_v17  ;;  %v10223_v28 = vcombine.low %v3977_v16, %v3981_v17  ;;  %v4061_v15 = vld [vmem:[#allocation10 + $0x2f8] sm:$0xff] }
 0x3df   :  { %6199 = vmatpush2.bf16.msra.mxu1 %v10285_v23  ;;  %v4224_v23 = vld [vmem:[#allocation10 + $0x810] sm:$0xff] }
 0x3e0   :  { %6242 = vmatpush2.bf16.msra.mxu0 %v10413_v24  ;;  %6200 = vmatprep.subr.bf16.mxu1 %v10278_v25  ;;  %v4228_v24 = vld [vmem:[#allocation10 + $0x830] sm:$0xff]  ;;  %v3969_v25 = vld [vmem:[#allocation10 + $0x18] sm:$0xff] }
 0x3e1   :  { %6243 = vmatprep.subr.bf16.mxu0 %v10406_v26  ;;  %v3973_v26 = vld [vmem:[#allocation10 + $0x38] sm:$0xff]  ;;  %v10470_v29 = vcombine.high %v4224_v23, %v4228_v24  ;;  %v10469_v41 = vcombine.low %v4224_v23, %v4228_v24 }
 0x3e2   :  { %v10216_v35 = vcombine.high %v3969_v25, %v3973_v26  ;;  %v10215_v44 = vcombine.low %v3969_v25, %v3973_v26  ;;  %v4053_v23 = vld [vmem:[#allocation10 + $0x2b8] sm:$0xff] }
 0x3e3   :  { %6201 = vmatpush2.bf16.msra.mxu1 %v10277_v40  ;;  %v4153_v40 = vld [vmem:[#allocation10 + $0x5d8] sm:$0xff] }
 0x3e4   :  { %6244 = vmatpush2.bf16.msra.mxu0 %v10405_v36  ;;  %6256 = vmatprep.subr.bf16.mxu1 %v10526_v39  ;;  %v4157_v36 = vld [vmem:[#allocation10 + $0x5f8] sm:$0xff] }
 0x3e5   :  { %6299 = vmatprep.subr.bf16.mxu0 %v10272_v42  ;;  %v4089_v39 = vld [vmem:[#allocation10 + $0x3d8] sm:$0xff]  ;;  %v10400_v45 = vcombine.high %v4153_v40, %v4157_v36  ;;  %v10399_v60 = vcombine.low %v4153_v40, %v4157_v36 }
 0x3e6   :  { %6203 = vmatmul.mubr.bf16.vlgmr.msra.gmra.mxu1 %v13604_v53  ;;  %v4093_v42 = vld [vmem:[#allocation10 + $0x3f8] sm:$0xff] }
 0x3e7   :  { %6246 = vmatmul.mubr.bf16.vlgmr.msra.gmra.mxu0 %v13571_v34  ;;  %6257 = vmatpush1.bf16.msra.mxu1 %v10525_v47  ;;  %v10255_v34 = vcombine.low %v4009_v4, %v4013_v43  ;;  %v10336_v46 = vcombine.high %v4089_v39, %v4093_v42  ;;  %v4145_v47 = vld [vmem:[#allocation10 + $0x598] sm:$0xff]  ;;  %v10335_v4 = vcombine.low %v4089_v39, %v4093_v42 }
 0x3e8   :  { %6300 = vmatpush1.bf16.msra.mxu0 %v10271_v48  ;;  %6331 = vmatprep.mubr.bf16.mxu0 %v12133_v8  ;;  %v4149_v48 = vld [vmem:[#allocation10 + $0x5b8] sm:$0xff] }
 0x3e9   :  { %6258 = vmatprep.subr.bf16.mxu1 %v10518_v21  ;;  %6301 = vmatprep.subr.bf16.mxu0 %v10264_v14  ;;  %v4081_v21 = vld [vmem:[#allocation10 + $0x398] sm:$0xff]  ;;  %v10392_v43 = vcombine.high %v4145_v47, %v4149_v48 }
 0x3ea   :  { %6288 = vmatprep.mubr.bf16.mxu1 %v13047_v0  ;;  %v4085_v14 = vld [vmem:[#allocation10 + $0x3b8] sm:$0xff] }
 0x3eb   :  { %6259 = vmatpush1.bf16.msra.mxu1 %v10517_v7  ;;  %v10328_v7 = vcombine.high %v4081_v21, %v4085_v14  ;;  %v4137_v8 = vld [vmem:[#allocation10 + $0x558] sm:$0xff] }
 0x3ec   :  { %6302 = vmatpush1.bf16.msra.mxu0 %v10263_v3  ;;  %6260 = vmatprep.subr.bf16.mxu1 %v10510_v12  ;;  %v4141_v3 = vld [vmem:[#allocation10 + $0x578] sm:$0xff] }
 0x3ed   :  { %6303 = vmatprep.subr.bf16.mxu0 %v10256_v51  ;;  %v13609_v12 = vld [vmem:[#allocation3 + $0x10] ss:$20 sps:$4 sm:$0xff]   ;;  %v10383_v6 = vcombine.low %v4137_v8, %v4141_v3 }
 0x3ee   :  { %v4073_v51 = vld [vmem:[#allocation10 + $0x358] sm:$0xff] }
 0x3ef   :  { %6261 = vmatpush1.bf16.msra.mxu1 %v10509_v32  ;;  %v10391_v32 = vcombine.low %v4145_v47, %v4149_v48  ;;  %v10320_v59 = vcombine.high %v4073_v51, %v4077_v49  ;;  %v10319_v10 = vcombine.low %v4073_v51, %v4077_v49  ;;  %v4045_v40 = vld [vmem:[#allocation10 + $0x278] sm:$0xff] }
 0x3f0   :  { %6304 = vmatpush1.bf16.msra.mxu0 %v10255_v34  ;;  %6262 = vmatprep.subr.bf16.mxu1 %v10502_v38  ;;  %v10327_v38 = vcombine.low %v4081_v21, %v4085_v14  ;;  %v4037_v47 = vld [vmem:[#allocation10 + $0x238] sm:$0xff] }
 0x3f1   :  { %6305 = vmatprep.subr.bf16.mxu0 %v10248_v54  ;;  %v10384_v54 = vcombine.high %v4137_v8, %v4141_v3 }
 0x3f3   :  { %6263 = vmatpush1.bf16.msra.mxu1 %v10501_v63  ;;  %v4065_v63 = vld [vmem:[#allocation10 + $0x318] sm:$0xff] }
 0x3f4   :  { %6306 = vmatpush1.bf16.msra.mxu0 %v10247_v1  ;;  %6264 = vmatprep.subr.bf16.mxu1 %v10494_v2  ;;  %v4069_v1 = vld [vmem:[#allocation10 + $0x338] sm:$0xff]  ;;  %v5950_v2 = vpop.f32.mrf.mxu1 }
 0x3f5   :  { %6307 = vmatprep.subr.bf16.mxu0 %v10240_v5  ;;  %v10311_v16 = vcombine.low %v4065_v63, %v4069_v1 }
 0x3f7   :  { %6265 = vmatpush1.bf16.msra.mxu1 %v10493_v13  ;;  %v10312_v13 = vcombine.high %v4065_v63, %v4069_v1  ;;  %v4201_v1 = vld [vmem:[#allocation10 + $0x758] sm:$0xff] }
 0x3f8   :  { %6308 = vmatpush1.bf16.msra.mxu0 %v10239_v56  ;;  %6266 = vmatprep.subr.bf16.mxu1 %v10486_v58  ;;  %v4121_v56 = vld [vmem:[#allocation10 + $0x4d8] sm:$0xff] }
 0x3f9   :  { %6309 = vmatprep.subr.bf16.mxu0 %v10232_v62  ;;  %v4125_v58 = vld [vmem:[#allocation10 + $0x4f8] sm:$0xff] }
 0x3fa   :  { %v4057_v62 = vld [vmem:[#allocation10 + $0x2d8] sm:$0xff]  ;;  %v10368_v17 = vcombine.high %v4121_v56, %v4125_v58  ;;  %v10367_v24 = vcombine.low %v4121_v56, %v4125_v58 }
 0x3fb   :  { %6267 = vmatpush1.bf16.msra.mxu1 %v10485_v19  ;;  %v10304_v19 = vcombine.high %v4057_v62, %v4061_v15  ;;  %v10303_v25 = vcombine.low %v4057_v62, %v4061_v15 }
 0x3fc   :  { %6310 = vmatpush1.bf16.msra.mxu0 %v10231_v20  ;;  %6268 = vmatprep.subr.bf16.mxu1 %v10478_v37  ;;  %v4113_v20 = vld [vmem:[#allocation10 + $0x498] sm:$0xff] }
 0x3fd   :  { %6311 = vmatprep.subr.bf16.mxu0 %v10224_v22  ;;  %v4117_v37 = vld [vmem:[#allocation10 + $0x4b8] sm:$0xff] }
 0x3fe   :  { %v4049_v22 = vld [vmem:[#allocation10 + $0x298] sm:$0xff]  ;;  %v10360_v26 = vcombine.high %v4113_v20, %v4117_v37  ;;  %v10359_v36 = vcombine.low %v4113_v20, %v4117_v37 }
 0x3ff   :  { %6269 = vmatpush1.bf16.msra.mxu1 %v10477_v27  ;;  %v10296_v27 = vcombine.high %v4049_v22, %v4053_v23  ;;  %v10295_v39 = vcombine.low %v4049_v22, %v4053_v23 }
 0x400   :  { %6312 = vmatpush1.bf16.msra.mxu0 %v10223_v28  ;;  %6270 = vmatprep.subr.bf16.mxu1 %v10470_v29  ;;  %v4105_v28 = vld [vmem:[#allocation10 + $0x458] sm:$0xff] }
 0x401   :  { %6313 = vmatprep.subr.bf16.mxu0 %v10216_v35  ;;  %v4109_v29 = vld [vmem:[#allocation10 + $0x478] sm:$0xff] }
 0x402   :  { %v4041_v35 = vld [vmem:[#allocation10 + $0x258] sm:$0xff]  ;;  %v10352_v42 = vcombine.high %v4105_v28, %v4109_v29  ;;  %v10351_v48 = vcombine.low %v4105_v28, %v4109_v29 }
 0x403   :  { %6271 = vmatpush1.bf16.msra.mxu1 %v10469_v41  ;;  %v10288_v41 = vcombine.high %v4041_v35, %v4045_v40  ;;  %v10287_v21 = vcombine.low %v4041_v35, %v4045_v40  ;;  %v4177_v35 = vld [vmem:[#allocation10 + $0x698] sm:$0xff] }
 0x404   :  { %6314 = vmatpush1.bf16.msra.mxu0 %v10215_v44  ;;  %6342 = vmatprep.subr.bf16.mxu1 %v10400_v45  ;;  %v4097_v44 = vld [vmem:[#allocation10 + $0x418] sm:$0xff] }
 0x405   :  { %6315 = vmatprep.subr.bf16.mxu0 %v10336_v46  ;;  %v4101_v45 = vld [vmem:[#allocation10 + $0x438] sm:$0xff] }
 0x406   :  { %6289 = vmatmul.mubr.bf16.vlgmr.msra.gmra.mxu1 %v13609_v12  ;;  %v4033_v46 = vld [vmem:[#allocation10 + $0x218] sm:$0xff]  ;;  %v10344_v14 = vcombine.high %v4097_v44, %v4101_v45  ;;  %v10343_v8 = vcombine.low %v4097_v44, %v4101_v45 }
 0x407   :  { %6343 = vmatpush1.bf16.msra.mxu1 %v10399_v60  ;;  %6374 = vmatprep.mubr.bf16.mxu1 %v12135_v33  ;;  %v5989_v50 = vpop.f32.mrf.mxu0  ;;  %v4217_v60 = vld [vmem:[#allocation10 + $0x7d8] sm:$0xff]  ;;  %v10279_v3 = vcombine.low %v4033_v46, %v4037_v47 }
 0x408   :  { %v13614_v34 = vadd.f32 %v5989_v50, %v5946_v18  ;;  %6316 = vmatpush2.bf16.msra.mxu0 %v10335_v4  ;;  %6344 = vmatprep.subr.bf16.mxu1 %v10392_v43  ;;  %v10280_v18 = vcombine.high %v4033_v46, %v4037_v47  ;;  %v4221_v4 = vld [vmem:[#allocation10 + $0x7f8] sm:$0xff] }
 0x409   :  { %v13616_v57 = vpop.f32.mrf.mxu0  ;;  %6317 = vmatprep.subr.bf16.mxu0 %v10328_v7  ;;  %v4281_v43 = vld [vmem:[#allocation10 + $0x9d8] sm:$0xff]  ;;  %v10464_v51 = vcombine.high %v4217_v60, %v4221_v4 }
 0x40a   :  { %v4285_v7 = vld [vmem:[#allocation10 + $0x9f8] sm:$0xff] }
 0x40b   :  { %6345 = vmatpush1.bf16.msra.mxu1 %v10391_v32  ;;  %v5993_v5 = vpop.f32.mrf.mxu0  ;;  %v10528_v49 = vcombine.high %v4281_v43, %v4285_v7  ;;  %v4209_v33 = vld [vmem:[#allocation10 + $0x798] sm:$0xff]  ;;  %v10527_v55 = vcombine.low %v4281_v43, %v4285_v7 }
 0x40c   :  { %v13618_v9 = vadd.f32 %v5993_v5, %v5950_v2  ;;  %6318 = vmatpush2.bf16.msra.mxu0 %v10327_v38  ;;  %6346 = vmatprep.subr.bf16.mxu1 %v10384_v54  ;;  %v4213_v50 = vld [vmem:[#allocation10 + $0x7b8] sm:$0xff]  ;;  %v10463_v54 = vcombine.low %v4217_v60, %v4221_v4 }
 0x40d   :  { %6319 = vmatprep.subr.bf16.mxu0 %v10320_v59  ;;  %v4273_v32 = vld [vmem:[#allocation10 + $0x998] sm:$0xff]  ;;  %v13620_v59 = vpop.f32.mrf.mxu1  ;;  %v10456_v61 = vcombine.high %v4209_v33, %v4213_v50 }
 0x40e   :  { %v4277_v38 = vld [vmem:[#allocation10 + $0x9b8] sm:$0xff] }
 0x40f   :  { %6347 = vmatpush1.bf16.msra.mxu1 %v10383_v6  ;;  %v10520_v63 = vcombine.high %v4273_v32, %v4277_v38  ;;  %v4205_v2 = vld [vmem:[#allocation10 + $0x778] sm:$0xff]  ;;  %v10519_v58 = vcombine.low %v4273_v32, %v4277_v38  ;;  %v3664_v32 = vld [vmem:[#allocation8 + $0x1c0] sm:$0xff] }
 0x410   :  { %6320 = vmatpush2.bf16.msra.mxu0 %v10319_v10  ;;  %6348 = vmatprep.subr.bf16.mxu1 %v10376_v11  ;;  %v4265_v6 = vld [vmem:[#allocation10 + $0x958] sm:$0xff]  ;;  %v10448_v62 = vcombine.high %v4201_v1, %v4205_v2  ;;  %v3668_v38 = vld [vmem:[#allocation8 + $0x1e0] sm:$0xff] }
 0x411   :  { %6321 = vmatprep.subr.bf16.mxu0 %v10312_v13  ;;  %v4269_v10 = vld [vmem:[#allocation10 + $0x978] sm:$0xff]  ;;  %v10455_v13 = vcombine.low %v4209_v33, %v4213_v50 }
 0x412   :  { %v10512_v15 = vcombine.high %v4265_v6, %v4269_v10  ;;  %v10511_v37 = vcombine.low %v4265_v6, %v4269_v10  ;;  %v4181_v40 = vld [vmem:[#allocation10 + $0x6b8] sm:$0xff]  ;;  %v3660_v6 = vld [vmem:[#allocation8 + $0x1a0] sm:$0xff]  ;;  %v10591_v10 = vcombine.low %v3664_v32, %v3668_v38 }
 0x413   :  { %6349 = vmatpush1.bf16.msra.mxu1 %v10375_v31  ;;  %v4193_v31 = vld [vmem:[#allocation10 + $0x718] sm:$0xff]  ;;  %v10424_v44 = vcombine.high %v4177_v35, %v4181_v40 }
 0x414   :  { %6322 = vmatpush2.bf16.msra.mxu0 %v10311_v16  ;;  %6350 = vmatprep.subr.bf16.mxu1 %v10368_v17  ;;  %v4197_v16 = vld [vmem:[#allocation10 + $0x738] sm:$0xff] }
 0x415   :  { %6323 = vmatprep.subr.bf16.mxu0 %v10304_v19  ;;  %v4257_v19 = vld [vmem:[#allocation10 + $0x918] sm:$0xff]  ;;  %v10440_v22 = vcombine.high %v4193_v31, %v4197_v16 }
 0x416   :  { %v4169_v46 = vld [vmem:[#allocation10 + $0x658] sm:$0xff] }
 0x417   :  { %6351 = vmatpush1.bf16.msra.mxu1 %v10367_v24  ;;  %v4185_v24 = vld [vmem:[#allocation10 + $0x6d8] sm:$0xff] }
 0x418   :  { %6324 = vmatpush2.bf16.msra.mxu0 %v10303_v25  ;;  %6352 = vmatprep.subr.bf16.mxu1 %v10360_v26  ;;  %v4189_v25 = vld [vmem:[#allocation10 + $0x6f8] sm:$0xff] }
 0x419   :  { %6325 = vmatprep.subr.bf16.mxu0 %v10296_v27  ;;  %v4249_v26 = vld [vmem:[#allocation10 + $0x8d8] sm:$0xff]  ;;  %v10432_v29 = vcombine.high %v4185_v24, %v4189_v25 }
 0x41a   :  { %v4253_v27 = vld [vmem:[#allocation10 + $0x8f8] sm:$0xff] }
 0x41b   :  { %6353 = vmatpush1.bf16.msra.mxu1 %v10359_v36  ;;  %v4241_v36 = vld [vmem:[#allocation10 + $0x898] sm:$0xff] }
 0x41c   :  { %6326 = vmatpush2.bf16.msra.mxu0 %v10295_v39  ;;  %6354 = vmatprep.subr.bf16.mxu1 %v10352_v42  ;;  %v4245_v39 = vld [vmem:[#allocation10 + $0x8b8] sm:$0xff]  ;;  %v10431_v42 = vcombine.low %v4185_v24, %v4189_v25 }
 0x41d   :  { %6327 = vmatprep.subr.bf16.mxu0 %v10288_v41  ;;  %v10495_v41 = vcombine.low %v4249_v26, %v4253_v27  ;;  %v10488_v45 = vcombine.high %v4241_v36, %v4245_v39  ;;  %v4173_v47 = vld [vmem:[#allocation10 + $0x678] sm:$0xff] }
 0x41e   :  { %v10416_v60 = vcombine.high %v4169_v46, %v4173_v47  ;;  %v4161_v43 = vld [vmem:[#allocation10 + $0x618] sm:$0xff] }
 0x41f   :  { %6355 = vmatpush1.bf16.msra.mxu1 %v10351_v48  ;;  %v4233_v48 = vld [vmem:[#allocation10 + $0x858] sm:$0xff] }
 0x420   :  { %6328 = vmatpush2.bf16.msra.mxu0 %v10287_v21  ;;  %6356 = vmatprep.subr.bf16.mxu1 %v10344_v14  ;;  %v4237_v21 = vld [vmem:[#allocation10 + $0x878] sm:$0xff]  ;;  %v10423_v14 = vcombine.low %v4177_v35, %v4181_v40 }
 0x421   :  { %6329 = vmatprep.subr.bf16.mxu0 %v10280_v18  ;;  %v10487_v18 = vcombine.low %v4241_v36, %v4245_v39  ;;  %v10480_v4 = vcombine.high %v4233_v48, %v4237_v21  ;;  %v4165_v7 = vld [vmem:[#allocation10 + $0x638] sm:$0xff]  ;;  %v3632_v36 = vld [vmem:[#allocation8 + $0xc0] sm:$0xff] }
 0x422   :  { %v10408_v33 = vcombine.high %v4161_v43, %v4165_v7  ;;  %v3636_v39 = vld [vmem:[#allocation8 + $0xe0] sm:$0xff] }
 0x423   :  { %6357 = vmatpush1.bf16.msra.mxu1 %v10343_v8  ;;  %v4225_v8 = vld [vmem:[#allocation10 + $0x818] sm:$0xff] }
 0x424   :  { %6330 = vmatpush2.bf16.msra.mxu0 %v10279_v3  ;;  %6358 = vmatprep.subr.bf16.mxu1 %v10464_v51  ;;  %v4229_v3 = vld [vmem:[#allocation10 + $0x838] sm:$0xff]  ;;  %v10415_v51 = vcombine.low %v4169_v46, %v4173_v47  ;;  %v10560_v46 = vcombine.high %v3632_v36, %v3636_v39 }
 0x425   :  { %6385 = vmatprep.subr.bf16.mxu0 %v10528_v49  ;;  %v10479_v49 = vcombine.low %v4233_v48, %v4237_v21  ;;  %v10472_v50 = vcombine.high %v4225_v8, %v4229_v3  ;;  %v3624_v48 = vld [vmem:[#allocation8 + $0x80] sm:$0xff] }
 0x426   :  { %v6032_v5 = vpop.f32.mrf.mxu1  ;;  %v3628_v21 = vld [vmem:[#allocation8 + $0xa0] sm:$0xff] }
 0x427   :  { %v13623_v11 = vadd.f32 %v6032_v5, %v13614_v34  ;;  %6332 = vmatmul.mubr.bf16.vlgmr.msra.gmra.mxu0 %v13604_v53  ;;  %6359 = vmatpush2.bf16.msra.mxu1 %v10463_v54  ;;  %v4261_v34 = vld [vmem:[#allocation10 + $0x938] sm:$0xff]  ;;  %v10447_v53 = vcombine.low %v4201_v1, %v4205_v2  ;;  %v3792_v54 = vld [vmem:[#allocation8 + $0x5c0] sm:$0xff]  ;;  %v10592_v1 = vcombine.high %v3664_v32, %v3668_v38 }
 0x428   :  { %6386 = vmatpush1.bf16.msra.mxu0 %v10527_v55  ;;  %v13626_v56 = vpop.f32.mrf.mxu1  ;;  %6360 = vmatprep.subr.bf16.mxu1 %v10456_v61  ;;  %v10504_v23 = vcombine.high %v4257_v19, %v4261_v34  ;;  %v10503_v28 = vcombine.low %v4257_v19, %v4261_v34  ;;  %v3796_v55 = vld [vmem:[#allocation8 + $0x5e0] sm:$0xff]  ;;  %v10407_v61 = vcombine.low %v4161_v43, %v4165_v7 }
 0x429   :  { %6387 = vmatprep.subr.bf16.mxu0 %v10520_v63  ;;  %6417 = vmatprep.mubr.bf16.mxu0 %v13047_v0  ;;  %v10439_v0 = vcombine.low %v4193_v31, %v4197_v16  ;;  %v10471_v63 = vcombine.low %v4225_v8, %v4229_v3  ;;  %v10720_v2 = vcombine.high %v3792_v54, %v3796_v55  ;;  %v3656_v5 = vld [vmem:[#allocation8 + $0x180] sm:$0xff] }
 0x42a   :  { %v6036_v17 = vpop.f32.mrf.mxu1  ;;  %v3648_v31 = vld [vmem:[#allocation8 + $0x140] sm:$0xff]  ;;  %v10552_v43 = vcombine.high %v3624_v48, %v3628_v21 }
 0x42b   :  { %v13630_v20 = vadd.f32 %v6036_v17, %v13618_v9  ;;  %6361 = vmatpush2.bf16.msra.mxu1 %v10455_v13  ;;  %v10496_v9 = vcombine.high %v4249_v26, %v4253_v27  ;;  %v3784_v13 = vld [vmem:[#allocation8 + $0x580] sm:$0xff] }
 0x42c   :  { %6388 = vmatpush1.bf16.msra.mxu0 %v10519_v58  ;;  %6362 = vmatprep.subr.bf16.mxu1 %v10448_v62  ;;  %v3788_v58 = vld [vmem:[#allocation8 + $0x5a0] sm:$0xff]  ;;  %v10719_v62 = vcombine.low %v3792_v54, %v3796_v55 }
 0x42d   :  { %6389 = vmatprep.subr.bf16.mxu0 %v10512_v15  ;;  %v10584_v15 = vcombine.high %v3656_v5, %v3660_v6  ;;  %v3652_v16 = vld [vmem:[#allocation8 + $0x160] sm:$0xff]  ;;  %v10712_v34 = vcombine.high %v3784_v13, %v3788_v58  ;;  %v10711_v24 = vcombine.low %v3784_v13, %v3788_v58 }
 0x42e   :  { %v12136_v17 = vld [vmem:[#allocation3 + $0x8] ss:$20 sps:$4 sm:$0xff]   ;;  %v13632_v19 = vld [vmem:[#allocation2 + $0x4] ss:$24 sps:$4 sm:$0xff]   ;;  %v10576_v25 = vcombine.high %v3648_v31, %v3652_v16 }
 0x42f   :  { %6363 = vmatpush2.bf16.msra.mxu1 %v10447_v53  ;;  %v3776_v53 = vld [vmem:[#allocation8 + $0x540] sm:$0xff] }
 0x430   :  { %6390 = vmatpush1.bf16.msra.mxu0 %v10511_v37  ;;  %6364 = vmatprep.subr.bf16.mxu1 %v10440_v22  ;;  %v3780_v37 = vld [vmem:[#allocation8 + $0x560] sm:$0xff]  ;;  %v13635_v22 = vld [vmem:[#allocation2 + $0xc] ss:$24 sps:$4 sm:$0xff]  }
 0x431   :  { %6391 = vmatprep.subr.bf16.mxu0 %v10504_v23  ;;  %v10583_v23 = vcombine.low %v3656_v5, %v3660_v6  ;;  %v10704_v26 = vcombine.high %v3776_v53, %v3780_v37  ;;  %v3640_v27 = vld [vmem:[#allocation8 + $0x100] sm:$0xff] }
 0x432   :  { %v3616_v8 = vld [vmem:[#allocation8 + $0x40] sm:$0xff] }
 0x433   :  { %6365 = vmatpush2.bf16.msra.mxu1 %v10439_v0  ;;  %v3644_v0 = vld [vmem:[#allocation8 + $0x120] sm:$0xff] }
 0x434   :  { %6392 = vmatpush1.bf16.msra.mxu0 %v10503_v28  ;;  %6366 = vmatprep.subr.bf16.mxu1 %v10432_v29  ;;  %v3768_v28 = vld [vmem:[#allocation8 + $0x500] sm:$0xff]  ;;  %v10568_v35 = vcombine.high %v3640_v27, %v3644_v0 }
 0x435   :  { %6393 = vmatprep.subr.bf16.mxu0 %v10496_v9  ;;  %v3772_v29 = vld [vmem:[#allocation8 + $0x520] sm:$0xff]  ;;  %v10703_v9 = vcombine.low %v3776_v53, %v3780_v37 }
 0x436   :  { %v10696_v40 = vcombine.high %v3768_v28, %v3772_v29  ;;  %v3620_v3 = vld [vmem:[#allocation8 + $0x60] sm:$0xff] }
 0x437   :  { %6367 = vmatpush2.bf16.msra.mxu1 %v10431_v42  ;;  %v3760_v42 = vld [vmem:[#allocation8 + $0x4c0] sm:$0xff]  ;;  %v10544_v38 = vcombine.high %v3616_v8, %v3620_v3  ;;  %v10543_v5 = vcombine.low %v3616_v8, %v3620_v3 }
 0x438   :  { %6394 = vmatpush1.bf16.msra.mxu0 %v10495_v41  ;;  %6368 = vmatprep.subr.bf16.mxu1 %v10424_v44  ;;  %v3764_v41 = vld [vmem:[#allocation8 + $0x4e0] sm:$0xff]  ;;  %v10567_v44 = vcombine.low %v3640_v27, %v3644_v0 }
 0x439   :  { %6395 = vmatprep.subr.bf16.mxu0 %v10488_v45  ;;  %v10695_v45 = vcombine.low %v3768_v28, %v3772_v29  ;;  %v10688_v47 = vcombine.high %v3760_v42, %v3764_v41  ;;  %v3852_v27 = vld [vmem:[#allocation8 + $0x7a0] sm:$0xff]  ;;  %v13641_v28 = vpop.f32.mrf.mxu1 }
 0x43a   :  { %v3832_v3 = vld [vmem:[#allocation8 + $0x700] sm:$0xff] }
 0x43b   :  { %6369 = vmatpush2.bf16.msra.mxu1 %v10423_v14  ;;  %v3752_v14 = vld [vmem:[#allocation8 + $0x480] sm:$0xff] }
 0x43c   :  { %6396 = vmatpush1.bf16.msra.mxu0 %v10487_v18  ;;  %6370 = vmatprep.subr.bf16.mxu1 %v10416_v60  ;;  %v3756_v18 = vld [vmem:[#allocation8 + $0x4a0] sm:$0xff]  ;;  %v10559_v60 = vcombine.low %v3632_v36, %v3636_v39 }
 0x43d   :  { %6397 = vmatprep.subr.bf16.mxu0 %v10480_v4  ;;  %v10687_v4 = vcombine.low %v3760_v42, %v3764_v41  ;;  %v10680_v7 = vcombine.high %v3752_v14, %v3756_v18  ;;  %v10679_v32 = vcombine.low %v3752_v14, %v3756_v18  ;;  %v3716_v36 = vld [vmem:[#allocation8 + $0x360] sm:$0xff] }
 0x43e   :  { %v3840_v42 = vld [vmem:[#allocation8 + $0x740] sm:$0xff] }
 0x43f   :  { %6371 = vmatpush2.bf16.msra.mxu1 %v10415_v51  ;;  %v3744_v51 = vld [vmem:[#allocation8 + $0x440] sm:$0xff] }
 0x440   :  { %6398 = vmatpush1.bf16.msra.mxu0 %v10479_v49  ;;  %6372 = vmatprep.subr.bf16.mxu1 %v10408_v33  ;;  %v3748_v49 = vld [vmem:[#allocation8 + $0x460] sm:$0xff]  ;;  %v13639_v33 = vpop.f32.mrf.mxu0 }
 0x441   :  { %6399 = vmatprep.subr.bf16.mxu0 %v10472_v50  ;;  %v10551_v50 = vcombine.low %v3624_v48, %v3628_v21  ;;  %v10672_v55 = vcombine.high %v3744_v51, %v3748_v49  ;;  %v10671_v6 = vcombine.low %v3744_v51, %v3748_v49  ;;  %v3844_v41 = vld [vmem:[#allocation8 + $0x760] sm:$0xff] }
 0x442   :  { %v3836_v51 = vld [vmem:[#allocation8 + $0x720] sm:$0xff] }
 0x443   :  { %6373 = vmatpush2.bf16.msra.mxu1 %v10407_v61  ;;  %v3608_v61 = vld [vmem:[#allocation8] sm:$0xff] }
 0x444   :  { %6400 = vmatpush1.bf16.msra.mxu0 %v10471_v63  ;;  %8221 = vmatprep.subr.bf16.mxu1 %v10592_v1  ;;  %v3612_v63 = vld [vmem:[#allocation8 + $0x20] sm:$0xff] }
 0x445   :  { %8264 = vmatprep.subr.bf16.mxu0 %v10720_v2  ;;  %v3736_v1 = vld [vmem:[#allocation8 + $0x400] sm:$0xff] }
 0x446   :  { %6375 = vmatmul.mubr.bf16.vlgmr.msra.gmra.mxu1 %v12136_v17  ;;  %v3740_v2 = vld [vmem:[#allocation8 + $0x420] sm:$0xff]  ;;  %v10535_v17 = vcombine.low %v3608_v61, %v3612_v63 }
 0x447   :  { %6418 = vmatmul.mubr.bf16.vlgmr.msra.gmra.mxu0 %v13609_v12  ;;  %8222 = vmatpush1.bf16.msra.mxu1 %v10591_v10  ;;  %v10575_v12 = vcombine.low %v3648_v31, %v3652_v16  ;;  %v6075_v54 = vpop.f32.mrf.mxu0  ;;  %v10536_v10 = vcombine.high %v3608_v61, %v3612_v63  ;;  %v10664_v58 = vcombine.high %v3736_v1, %v3740_v2  ;;  %v3856_v31 = vld [vmem:[#allocation8 + $0x7c0] sm:$0xff] }
 0x448   :  { %8253 = vmatprep.mubr.bf16.mxu1 %v13632_v19  ;;  %8265 = vmatpush1.bf16.msra.mxu0 %v10719_v62  ;;  %v3728_v62 = vld [vmem:[#allocation8 + $0x3c0] sm:$0xff]  ;;  %v10760_v61 = vcombine.high %v3832_v3, %v3836_v51 }
 0x449   :  { %8296 = vmatprep.mubr.bf16.mxu0 %v13635_v22  ;;  %8223 = vmatprep.subr.bf16.mxu1 %v10584_v15  ;;  %v6077_v13 = vpop.f32.mrf.mxu0  ;;  %v3732_v15 = vld [vmem:[#allocation8 + $0x3e0] sm:$0xff] }
 0x44a   :  { %8266 = vmatprep.subr.bf16.mxu0 %v10712_v34  ;;  %v3860_v16 = vld [vmem:[#allocation8 + $0x7e0] sm:$0xff]  ;;  %v10663_v34 = vcombine.low %v3736_v1, %v3740_v2  ;;  %v10656_v53 = vcombine.high %v3728_v62, %v3732_v15  ;;  %v10655_v0 = vcombine.low %v3728_v62, %v3732_v15 }
 0x44b   :  { %8224 = vmatpush1.bf16.msra.mxu1 %v10583_v23  ;;  %v6079_v37 = vpop.f32.mrf.mxu0  ;;  %v10784_v23 = vcombine.high %v3856_v31, %v3860_v16  ;;  %v10783_v29 = vcombine.low %v3856_v31, %v3860_v16  ;;  %v3696_v63 = vld [vmem:[#allocation8 + $0x2c0] sm:$0xff] }
 0x44c   :  { %8267 = vmatpush1.bf16.msra.mxu0 %v10711_v24  ;;  %8225 = vmatprep.subr.bf16.mxu1 %v10576_v25  ;;  %v3720_v24 = vld [vmem:[#allocation8 + $0x380] sm:$0xff] }
 0x44d   :  { %8268 = vmatprep.subr.bf16.mxu0 %v10704_v26  ;;  %v3724_v25 = vld [vmem:[#allocation8 + $0x3a0] sm:$0xff] }
 0x44e   :  { %v3848_v26 = vld [vmem:[#allocation8 + $0x780] sm:$0xff] }
 0x44f   :  { %8226 = vmatpush1.bf16.msra.mxu1 %v10575_v12  ;;  %v10648_v12 = vcombine.high %v3720_v24, %v3724_v25  ;;  %v10775_v48 = vcombine.low %v3848_v26, %v3852_v27  ;;  %v3700_v1 = vld [vmem:[#allocation8 + $0x2e0] sm:$0xff] }
 0x450   :  { %8269 = vmatpush1.bf16.msra.mxu0 %v10703_v9  ;;  %8227 = vmatprep.subr.bf16.mxu1 %v10568_v35  ;;  %v13643_v9 = vpop.f32.mrf.mxu0  ;;  %v10776_v35 = vcombine.high %v3848_v26, %v3852_v27  ;;  %v3824_v2 = vld [vmem:[#allocation8 + $0x6c0] sm:$0xff] }
 0x451   :  { %8270 = vmatprep.subr.bf16.mxu0 %v10696_v40  ;;  %v3712_v40 = vld [vmem:[#allocation8 + $0x340] sm:$0xff] }
 0x452   :  { %v10640_v21 = vcombine.high %v3712_v40, %v3716_v36  ;;  %v3688_v62 = vld [vmem:[#allocation8 + $0x280] sm:$0xff] }
 0x453   :  { %8228 = vmatpush1.bf16.msra.mxu1 %v10567_v44  ;;  %v3692_v15 = vld [vmem:[#allocation8 + $0x2a0] sm:$0xff] }
 0x454   :  { %8271 = vmatpush1.bf16.msra.mxu0 %v10695_v45  ;;  %8229 = vmatprep.subr.bf16.mxu1 %v10560_v46  ;;  %v10647_v46 = vcombine.low %v3720_v24, %v3724_v25  ;;  %v3816_v31 = vld [vmem:[#allocation8 + $0x680] sm:$0xff]  ;;  %v10615_v27 = vcombine.low %v3688_v62, %v3692_v15 }
 0x455   :  { %8272 = vmatprep.subr.bf16.mxu0 %v10688_v47  ;;  %v3820_v16 = vld [vmem:[#allocation8 + $0x6a0] sm:$0xff] }
 0x456   :  { %v3684_v24 = vld [vmem:[#allocation8 + $0x260] sm:$0xff] }
 0x457   :  { %8230 = vmatpush1.bf16.msra.mxu1 %v10559_v60  ;;  %v3808_v25 = vld [vmem:[#allocation8 + $0x640] sm:$0xff] }
 0x458   :  { %8273 = vmatpush1.bf16.msra.mxu0 %v10687_v4  ;;  %8231 = vmatprep.subr.bf16.mxu1 %v10552_v43  ;;  %v10768_v4 = vcombine.high %v3840_v42, %v3844_v41  ;;  %v3704_v43 = vld [vmem:[#allocation8 + $0x300] sm:$0xff] }
 0x459   :  { %8274 = vmatprep.subr.bf16.mxu0 %v10680_v7  ;;  %v3708_v7 = vld [vmem:[#allocation8 + $0x320] sm:$0xff] }
 0x45a   :  { %v3812_v26 = vld [vmem:[#allocation8 + $0x660] sm:$0xff] }
 0x45b   :  { %8232 = vmatpush1.bf16.msra.mxu1 %v10551_v50 }
 0x45c   :  { %8275 = vmatpush1.bf16.msra.mxu0 %v10679_v32  ;;  %8233 = vmatprep.subr.bf16.mxu1 %v10544_v38  ;;  %v10639_v32 = vcombine.low %v3712_v40, %v3716_v36  ;;  %v10767_v38 = vcombine.low %v3840_v42, %v3844_v41  ;;  %v3676_v40 = vld [vmem:[#allocation8 + $0x220] sm:$0xff]  ;;  %v10735_v41 = vcombine.low %v3808_v25, %v3812_v26 }
 0x45d   :  { %8276 = vmatprep.subr.bf16.mxu0 %v10672_v55  ;;  %v3800_v36 = vld [vmem:[#allocation8 + $0x600] sm:$0xff] }
 0x45f   :  { %8234 = vmatpush1.bf16.msra.mxu1 %v10543_v5  ;;  %v3828_v5 = vld [vmem:[#allocation8 + $0x6e0] sm:$0xff] }
 0x460   :  { %8277 = vmatpush1.bf16.msra.mxu0 %v10671_v6  ;;  %8235 = vmatprep.subr.bf16.mxu1 %v10536_v10  ;;  %v10631_v6 = vcombine.low %v3704_v43, %v3708_v7  ;;  %v10759_v10 = vcombine.low %v3832_v3, %v3836_v51  ;;  %v3912_v3 = vld [vmem:[#allocation8 + $0x980] sm:$0xff] }
 0x461   :  { %8278 = vmatprep.subr.bf16.mxu0 %v10664_v58  ;;  %v10752_v58 = vcombine.high %v3824_v2, %v3828_v5  ;;  %v3916_v51 = vld [vmem:[#allocation8 + $0x9a0] sm:$0xff] }
 0x463   :  { %8236 = vmatpush1.bf16.msra.mxu1 %v10535_v17  ;;  %v10623_v17 = vcombine.low %v3696_v63, %v3700_v1 }
 0x464   :  { %8279 = vmatpush1.bf16.msra.mxu0 %v10663_v34  ;;  %8237 = vmatprep.subr.bf16.mxu1 %v10656_v53  ;;  %v10751_v34 = vcombine.low %v3824_v2, %v3828_v5  ;;  %v10616_v53 = vcombine.high %v3688_v62, %v3692_v15  ;;  %v3908_v2 = vld [vmem:[#allocation8 + $0x960] sm:$0xff]  ;;  %v13658_v5 = vld [vmem:[#allocation2 + $0x14] ss:$24 sps:$4 sm:$0xff]  }
 0x465   :  { %8280 = vmatprep.subr.bf16.mxu0 %v10784_v23  ;;  %v3680_v23 = vld [vmem:[#allocation8 + $0x240] sm:$0xff] }
 0x466   :  { %v6118_v39 = vpop.f32.mrf.mxu1  ;;  %v10607_v42 = vcombine.low %v3680_v23, %v3684_v24 }
 0x467   :  { %v6119_v44 = vadd.f32 %v6118_v39, %v6075_v54  ;;  %v6161_v45 = vpop.f32.mrf.mxu0  ;;  %8238 = vmatpush2.bf16.msra.mxu1 %v10655_v0  ;;  %v10632_v54 = vcombine.high %v3704_v43, %v3708_v7  ;;  %v10743_v0 = vcombine.low %v3816_v31, %v3820_v16  ;;  %v3804_v39 = vld [vmem:[#allocation8 + $0x620] sm:$0xff] }
 0x468   :  { %v6120_v47 = vpop.f32.mrf.mxu1  ;;  %8281 = vmatpush2.bf16.msra.mxu0 %v10783_v29  ;;  %8239 = vmatprep.subr.bf16.mxu1 %v10648_v12  ;;  %v10608_v29 = vcombine.high %v3680_v23, %v3684_v24  ;;  %v10736_v12 = vcombine.high %v3808_v25, %v3812_v26  ;;  %v10727_v43 = vcombine.low %v3800_v36, %v3804_v39  ;;  %v3888_v26 = vld [vmem:[#allocation8 + $0x8c0] sm:$0xff] }
 0x469   :  { %v13645_v14 = vadd.f32 %v6161_v45, %v6119_v44  ;;  %v13647_v18 = vadd.f32 %v6120_v47, %v6077_v13  ;;  %v13649_v60 = vpop.f32.mrf.mxu0  ;;  %8282 = vmatprep.subr.bf16.mxu0 %v10776_v35  ;;  %v10624_v13 = vcombine.high %v3696_v63, %v3700_v1  ;;  %v3672_v35 = vld [vmem:[#allocation8 + $0x200] sm:$0xff]  ;;  %v10728_v45 = vcombine.high %v3800_v36, %v3804_v39 }
 0x46a   :  { %v6122_v8 = vpop.f32.mrf.mxu1  ;;  %v10600_v44 = vcombine.high %v3672_v35, %v3676_v40  ;;  %v3924_v47 = vld [vmem:[#allocation8 + $0x9e0] sm:$0xff]  ;;  %v10840_v63 = vcombine.high %v3912_v3, %v3916_v51 }
 0x46b   :  { %v6123_v49 = vadd.f32 %v6122_v8, %v6079_v37  ;;  %v6165_v50 = vpop.f32.mrf.mxu0  ;;  %8240 = vmatpush2.bf16.msra.mxu1 %v10647_v46  ;;  %v10744_v37 = vcombine.high %v3816_v31, %v3820_v16  ;;  %v3920_v46 = vld [vmem:[#allocation8 + $0x9c0] sm:$0xff] }
 0x46c   :  { %8283 = vmatpush2.bf16.msra.mxu0 %v10775_v48  ;;  %8241 = vmatprep.subr.bf16.mxu1 %v10640_v21  ;;  %v3665_v48 = vld [vmem:[#allocation8 + $0x1c8] sm:$0xff]  ;;  %v10848_v7 = vcombine.high %v3920_v46, %v3924_v47  ;;  %v3904_v1 = vld [vmem:[#allocation8 + $0x940] sm:$0xff] }
 0x46d   :  { %v13651_v55 = vadd.f32 %v6165_v50, %v6123_v49  ;;  %8284 = vmatprep.subr.bf16.mxu0 %v10768_v4  ;;  %v3669_v21 = vld [vmem:[#allocation8 + $0x1e8] sm:$0xff]  ;;  %v10599_v4 = vcombine.low %v3672_v35, %v3676_v40  ;;  %v10847_v49 = vcombine.low %v3920_v46, %v3924_v47  ;;  %v10832_v15 = vcombine.high %v3904_v1, %v3908_v2  ;;  %v3896_v16 = vld [vmem:[#allocation8 + $0x900] sm:$0xff] }
 0x46e   :  { %v10594_v8 = vcombine.high %v3665_v48, %v3669_v21  ;;  %v3657_v50 = vld [vmem:[#allocation8 + $0x188] sm:$0xff]  ;;  %v3880_v36 = vld [vmem:[#allocation8 + $0x880] sm:$0xff] }
 0x46f   :  { %8242 = vmatpush2.bf16.msra.mxu1 %v10639_v32  ;;  %v3661_v32 = vld [vmem:[#allocation8 + $0x1a8] sm:$0xff]  ;;  %v3884_v39 = vld [vmem:[#allocation8 + $0x8a0] sm:$0xff] }
 0x470   :  { %8285 = vmatpush2.bf16.msra.mxu0 %v10767_v38  ;;  %8243 = vmatprep.subr.bf16.mxu1 %v10632_v54  ;;  %v13653_v38 = vld [vmem:[#allocation2] ss:$24 sps:$4 sm:$0xff]   ;;  %v10593_v54 = vcombine.low %v3665_v48, %v3669_v21  ;;  %v10585_v62 = vcombine.low %v3657_v50, %v3661_v32  ;;  %v10808_v46 = vcombine.high %v3880_v36, %v3884_v39 }
 0x471   :  { %8286 = vmatprep.subr.bf16.mxu0 %v10760_v61  ;;  %v13655_v61 = vld [vmem:[#allocation2 + $0x8] ss:$24 sps:$4 sm:$0xff]  }
 0x472   :  { %v3872_v48 = vld [vmem:[#allocation8 + $0x840] sm:$0xff] }
 0x473   :  { %8244 = vmatpush2.bf16.msra.mxu1 %v10631_v6  ;;  %v10586_v6 = vcombine.high %v3657_v50, %v3661_v32  ;;  %v3876_v21 = vld [vmem:[#allocation8 + $0x860] sm:$0xff]  ;;  %v3609_v32 = vld [vmem:[#allocation8 + $0x8] sm:$0xff] }
 0x474   :  { %8287 = vmatpush2.bf16.msra.mxu0 %v10759_v10  ;;  %8245 = vmatprep.subr.bf16.mxu1 %v10624_v13  ;;  %v3649_v10 = vld [vmem:[#allocation8 + $0x148] sm:$0xff]  ;;  %v3868_v50 = vld [vmem:[#allocation8 + $0x820] sm:$0xff] }
 0x475   :  { %8288 = vmatprep.subr.bf16.mxu0 %v10752_v58  ;;  %v3653_v13 = vld [vmem:[#allocation8 + $0x168] sm:$0xff]  ;;  %v10839_v58 = vcombine.low %v3912_v3, %v3916_v51  ;;  %v10800_v3 = vcombine.high %v3872_v48, %v3876_v21 }
 0x476   :  { %v10578_v31 = vcombine.high %v3649_v10, %v3653_v13  ;;  %v10577_v23 = vcombine.low %v3649_v10, %v3653_v13  ;;  %v3952_v10 = vld [vmem:[#allocation8 + $0xac0] sm:$0xff] }
 0x477   :  { %8246 = vmatpush2.bf16.msra.mxu1 %v10623_v17  ;;  %v3900_v17 = vld [vmem:[#allocation8 + $0x920] sm:$0xff] }
 0x478   :  { %8289 = vmatpush2.bf16.msra.mxu0 %v10751_v34  ;;  %8247 = vmatprep.subr.bf16.mxu1 %v10616_v53  ;;  %v3641_v34 = vld [vmem:[#allocation8 + $0x108] sm:$0xff]  ;;  %v10824_v24 = vcombine.high %v3896_v16, %v3900_v17  ;;  %v3956_v13 = vld [vmem:[#allocation8 + $0xae0] sm:$0xff] }
 0x479   :  { %8290 = vmatprep.subr.bf16.mxu0 %v10744_v37  ;;  %v3645_v53 = vld [vmem:[#allocation8 + $0x128] sm:$0xff]  ;;  %v10831_v37 = vcombine.low %v3904_v1, %v3908_v2 }
 0x47a   :  { %v10570_v25 = vcombine.high %v3641_v34, %v3645_v53 }
 0x47b   :  { %8248 = vmatpush2.bf16.msra.mxu1 %v10615_v27  ;;  %v3892_v27 = vld [vmem:[#allocation8 + $0x8e0] sm:$0xff] }
 0x47c   :  { %8291 = vmatpush2.bf16.msra.mxu0 %v10743_v0  ;;  %8249 = vmatprep.subr.bf16.mxu1 %v10608_v29  ;;  %v3633_v0 = vld [vmem:[#allocation8 + $0xc8] sm:$0xff]  ;;  %v10816_v35 = vcombine.high %v3888_v26, %v3892_v27 }
 0x47d   :  { %8292 = vmatprep.subr.bf16.mxu0 %v10736_v12  ;;  %v3637_v29 = vld [vmem:[#allocation8 + $0xe8] sm:$0xff]  ;;  %v10569_v12 = vcombine.low %v3641_v34, %v3645_v53  ;;  %v3944_v34 = vld [vmem:[#allocation8 + $0xa80] sm:$0xff] }
 0x47e   :  { %v10562_v40 = vcombine.high %v3633_v0, %v3637_v29  ;;  %v3948_v53 = vld [vmem:[#allocation8 + $0xaa0] sm:$0xff] }
 0x47f   :  { %8250 = vmatpush2.bf16.msra.mxu1 %v10607_v42  ;;  %v3625_v42 = vld [vmem:[#allocation8 + $0x88] sm:$0xff] }
 0x480   :  { %8293 = vmatpush2.bf16.msra.mxu0 %v10735_v41  ;;  %8251 = vmatprep.subr.bf16.mxu1 %v10600_v44  ;;  %v3629_v41 = vld [vmem:[#allocation8 + $0xa8] sm:$0xff]  ;;  %v10815_v44 = vcombine.low %v3888_v26, %v3892_v27  ;;  %v10872_v27 = vcombine.high %v3944_v34, %v3948_v53 }
 0x481   :  { %8294 = vmatprep.subr.bf16.mxu0 %v10728_v45  ;;  %v10561_v45 = vcombine.low %v3633_v0, %v3637_v29  ;;  %v10554_v47 = vcombine.high %v3625_v42, %v3629_v41  ;;  %v13666_v0 = vpop.f32.mrf.mxu0 }
 0x483   :  { %8252 = vmatpush2.bf16.msra.mxu1 %v10599_v4  ;;  %v3617_v4 = vld [vmem:[#allocation8 + $0x48] sm:$0xff] }
 0x484   :  { %8295 = vmatpush2.bf16.msra.mxu0 %v10727_v43  ;;  %8307 = vmatprep.subr.bf16.mxu1 %v10848_v7  ;;  %v3621_v43 = vld [vmem:[#allocation8 + $0x68] sm:$0xff]  ;;  %v10807_v7 = vcombine.low %v3880_v36, %v3884_v39 }
 0x485   :  { %8350 = vmatprep.subr.bf16.mxu0 %v10594_v8  ;;  %v10553_v8 = vcombine.low %v3625_v42, %v3629_v41  ;;  %v10546_v51 = vcombine.high %v3617_v4, %v3621_v43  ;;  %v10545_v1 = vcombine.low %v3617_v4, %v3621_v43  ;;  %v3717_v36 = vld [vmem:[#allocation8 + $0x368] sm:$0xff]  ;;  %v10871_v42 = vcombine.low %v3944_v34, %v3948_v53  ;;  %v3932_v4 = vld [vmem:[#allocation8 + $0xa20] sm:$0xff] }
 0x486   :  { %8254 = vmatmul.mubr.bf16.vlgmr.msra.gmra.mxu1 %v13653_v38  ;;  %v3785_v34 = vld [vmem:[#allocation8 + $0x588] sm:$0xff] }
 0x487   :  { %8297 = vmatmul.mubr.bf16.vlgmr.msra.gmra.mxu0 %v13655_v61  ;;  %8308 = vmatpush1.bf16.msra.mxu1 %v10847_v49  ;;  %v3864_v49 = vld [vmem:[#allocation8 + $0x800] sm:$0xff]  ;;  %v3789_v53 = vld [vmem:[#allocation8 + $0x5a8] sm:$0xff] }
 0x488   :  { %10887 = vmatprep.mubr.msk.bf16.mxu1 %vm8217_vm8, %v13658_v5  ;;  %8351 = vmatpush1.bf16.msra.mxu0 %v10593_v54  ;;  %v3613_v54 = vld [vmem:[#allocation8 + $0x28] sm:$0xff]  ;;  %v10792_v2 = vcombine.high %v3864_v49, %v3868_v50 }
 0x489   :  { %8382 = vmatprep.mubr.bf16.mxu0 %v13632_v19  ;;  %8309 = vmatprep.subr.bf16.mxu1 %v10840_v63  ;;  %v10823_v19 = vcombine.low %v3896_v16, %v3900_v17  ;;  %v10799_v63 = vcombine.low %v3872_v48, %v3876_v21  ;;  %v10880_v16 = vcombine.high %v3952_v10, %v3956_v13  ;;  %v3928_v21 = vld [vmem:[#allocation8 + $0xa00] sm:$0xff] }
 0x48a   :  { %8352 = vmatprep.subr.bf16.mxu0 %v10586_v6  ;;  %v10538_v6 = vcombine.high %v3609_v32, %v3613_v54 }
 0x48b   :  { %8310 = vmatpush1.bf16.msra.mxu1 %v10839_v58  ;;  %v3729_v58 = vld [vmem:[#allocation8 + $0x3c8] sm:$0xff] }
 0x48c   :  { %8353 = vmatpush1.bf16.msra.mxu0 %v10585_v62  ;;  %8311 = vmatprep.subr.bf16.mxu1 %v10832_v15  ;;  %v3733_v62 = vld [vmem:[#allocation8 + $0x3e8] sm:$0xff]  ;;  %v10791_v15 = vcombine.low %v3864_v49, %v3868_v50 }
 0x48d   :  { %8354 = vmatprep.subr.bf16.mxu0 %v10578_v31  ;;  %v10537_v31 = vcombine.low %v3609_v32, %v3613_v54  ;;  %v10658_v17 = vcombine.high %v3729_v58, %v3733_v62  ;;  %v10657_v26 = vcombine.low %v3729_v58, %v3733_v62  ;;  %v3697_v58 = vld [vmem:[#allocation8 + $0x2c8] sm:$0xff] }
 0x48e   :  { %v3701_v62 = vld [vmem:[#allocation8 + $0x2e8] sm:$0xff] }
 0x48f   :  { %8312 = vmatpush1.bf16.msra.mxu1 %v10831_v37  ;;  %v3721_v37 = vld [vmem:[#allocation8 + $0x388] sm:$0xff] }
 0x490   :  { %8355 = vmatpush1.bf16.msra.mxu0 %v10577_v23  ;;  %8313 = vmatprep.subr.bf16.mxu1 %v10824_v24  ;;  %v3725_v23 = vld [vmem:[#allocation8 + $0x3a8] sm:$0xff]  ;;  %v10879_v24 = vcombine.low %v3952_v10, %v3956_v13 }
 0x491   :  { %8356 = vmatprep.subr.bf16.mxu0 %v10570_v25  ;;  %v13664_v25 = vpop.f32.mrf.mxu1  ;;  %v10650_v29 = vcombine.high %v3721_v37, %v3725_v23  ;;  %v3797_v10 = vld [vmem:[#allocation8 + $0x5e8] sm:$0xff] }
 0x493   :  { %8314 = vmatpush1.bf16.msra.mxu1 %v10823_v19  ;;  %v3936_v19 = vld [vmem:[#allocation8 + $0xa40] sm:$0xff] }
 0x494   :  { %8357 = vmatpush1.bf16.msra.mxu0 %v10569_v12  ;;  %8315 = vmatprep.subr.bf16.mxu1 %v10816_v35  ;;  %v3940_v12 = vld [vmem:[#allocation8 + $0xa60] sm:$0xff] }
 0x495   :  { %8358 = vmatprep.subr.bf16.mxu0 %v10562_v40  ;;  %v3713_v40 = vld [vmem:[#allocation8 + $0x348] sm:$0xff]  ;;  %v10863_v49 = vcombine.low %v3936_v19, %v3940_v12 }
 0x496   :  { %v10642_v48 = vcombine.high %v3713_v40, %v3717_v36  ;;  %v10641_v54 = vcombine.low %v3713_v40, %v3717_v36  ;;  %v3681_v40 = vld [vmem:[#allocation8 + $0x248] sm:$0xff] }
 0x497   :  { %8316 = vmatpush1.bf16.msra.mxu1 %v10815_v44  ;;  %v3685_v36 = vld [vmem:[#allocation8 + $0x268] sm:$0xff] }
 0x498   :  { %8359 = vmatpush1.bf16.msra.mxu0 %v10561_v45  ;;  %8317 = vmatprep.subr.bf16.mxu1 %v10808_v46  ;;  %v10649_v45 = vcombine.low %v3721_v37, %v3725_v23  ;;  %v10864_v46 = vcombine.high %v3936_v19, %v3940_v12  ;;  %v3689_v37 = vld [vmem:[#allocation8 + $0x288] sm:$0xff] }
 0x499   :  { %8360 = vmatprep.subr.bf16.mxu0 %v10554_v47  ;;  %v3693_v23 = vld [vmem:[#allocation8 + $0x2a8] sm:$0xff] }
 0x49a   :  { %v10618_v19 = vcombine.high %v3689_v37, %v3693_v23  ;;  %v3777_v12 = vld [vmem:[#allocation8 + $0x548] sm:$0xff] }
 0x49b   :  { %8318 = vmatpush1.bf16.msra.mxu1 %v10807_v7 }
 0x49c   :  { %8361 = vmatpush1.bf16.msra.mxu0 %v10553_v8  ;;  %8319 = vmatprep.subr.bf16.mxu1 %v10800_v3  ;;  %v3705_v8 = vld [vmem:[#allocation8 + $0x308] sm:$0xff] }
 0x49d   :  { %8362 = vmatprep.subr.bf16.mxu0 %v10546_v51  ;;  %v3709_v3 = vld [vmem:[#allocation8 + $0x328] sm:$0xff] }
 0x49f   :  { %8320 = vmatpush1.bf16.msra.mxu1 %v10799_v63  ;;  %v10856_v63 = vcombine.high %v3928_v21, %v3932_v4 }
 0x4a0   :  { %8363 = vmatpush1.bf16.msra.mxu0 %v10545_v1  ;;  %8321 = vmatprep.subr.bf16.mxu1 %v10792_v2  ;;  %v10634_v2 = vcombine.high %v3705_v8, %v3709_v3 }
 0x4a1   :  { %8364 = vmatprep.subr.bf16.mxu0 %v10538_v6  ;;  %v3793_v6 = vld [vmem:[#allocation8 + $0x5c8] sm:$0xff] }
 0x4a3   :  { %8322 = vmatpush1.bf16.msra.mxu1 %v10791_v15  ;;  %v10855_v15 = vcombine.low %v3928_v21, %v3932_v4  ;;  %v3677_v21 = vld [vmem:[#allocation8 + $0x228] sm:$0xff] }
 0x4a4   :  { %8365 = vmatpush1.bf16.msra.mxu0 %v10537_v31  ;;  %8331 = vmatprep.subr.bf16.mxu1 %v10880_v16  ;;  %v10633_v31 = vcombine.low %v3705_v8, %v3709_v3  ;;  %v10722_v16 = vcombine.high %v3793_v6, %v3797_v10 }
 0x4a5   :  { %8366 = vmatprep.subr.bf16.mxu0 %v10658_v17  ;;  %v10626_v17 = vcombine.high %v3697_v58, %v3701_v62 }
 0x4a6   :  { %v6204_v35 = vpop.f32.mrf.mxu1 }
 0x4a7   :  { %v6247_v39 = vpop.f32.mrf.mxu0  ;;  %8332 = vmatpush2.bf16.msra.mxu1 %v10879_v24  ;;  %v10721_v24 = vcombine.low %v3793_v6, %v3797_v10  ;;  %v3753_v6 = vld [vmem:[#allocation8 + $0x488] sm:$0xff] }
 0x4a8   :  { %v13668_v41 = vadd.f32 %v6247_v39, %v6204_v35  ;;  %v6206_v44 = vpop.f32.mrf.mxu1  ;;  %8367 = vmatpush2.bf16.msra.mxu0 %v10657_v26  ;;  %8333 = vmatprep.subr.bf16.mxu1 %v10872_v27  ;;  %v13676_v26 = vld [vmem:[#allocation2 + $0x10] ss:$24 sps:$4 sm:$0xff]   ;;  %v10625_v27 = vcombine.low %v3697_v58, %v3701_v62  ;;  %v10713_v39 = vcombine.low %v3785_v34, %v3789_v53 }
 0x4a9   :  { %v6249_v47 = vpop.f32.mrf.mxu0  ;;  %8368 = vmatprep.subr.bf16.mxu0 %v10650_v29  ;;  %v10714_v29 = vcombine.high %v3785_v34, %v3789_v53  ;;  %v3781_v35 = vld [vmem:[#allocation8 + $0x568] sm:$0xff] }
 0x4aa   :  { %v13670_v43 = vadd.f32 %v6249_v47, %v6206_v44  ;;  %v6208_v7 = vpop.f32.mrf.mxu1  ;;  %v10706_v44 = vcombine.high %v3777_v12, %v3781_v35  ;;  %v3773_v47 = vld [vmem:[#allocation8 + $0x528] sm:$0xff]  ;;  %v10705_v4 = vcombine.low %v3777_v12, %v3781_v35 }
 0x4ab   :  { %v6251_v51 = vpop.f32.mrf.mxu0  ;;  %8334 = vmatpush2.bf16.msra.mxu1 %v10871_v42  ;;  %v10617_v42 = vcombine.low %v3689_v37, %v3693_v23  ;;  %v3757_v10 = vld [vmem:[#allocation8 + $0x4a8] sm:$0xff] }
 0x4ac   :  { %v13672_v50 = vadd.f32 %v6251_v51, %v6208_v7  ;;  %v6210_v32 = vpop.f32.mrf.mxu1  ;;  %8369 = vmatpush2.bf16.msra.mxu0 %v10649_v45  ;;  %8335 = vmatprep.subr.bf16.mxu1 %v10864_v46  ;;  %v10610_v45 = vcombine.high %v3681_v40, %v3685_v36  ;;  %v3769_v46 = vld [vmem:[#allocation8 + $0x508] sm:$0xff]  ;;  %v10609_v7 = vcombine.low %v3681_v40, %v3685_v36 }
 0x4ad   :  { %v6253_v1 = vpop.f32.mrf.mxu0  ;;  %8370 = vmatprep.subr.bf16.mxu0 %v10642_v48  ;;  %v3673_v48 = vld [vmem:[#allocation8 + $0x208] sm:$0xff]  ;;  %v10698_v8 = vcombine.high %v3769_v46, %v3773_v47 }
 0x4ae   :  { %v13674_v13 = vadd.f32 %v6253_v1, %v6210_v32  ;;  %v10602_v3 = vcombine.high %v3673_v48, %v3677_v21  ;;  %v3765_v51 = vld [vmem:[#allocation8 + $0x4e8] sm:$0xff] }
 0x4af   :  { %8336 = vmatpush2.bf16.msra.mxu1 %v10863_v49  ;;  %v3921_v49 = vld [vmem:[#allocation8 + $0x9c8] sm:$0xff] }
 0x4b0   :  { %8371 = vmatpush2.bf16.msra.mxu0 %v10641_v54  ;;  %8337 = vmatprep.subr.bf16.mxu1 %v10856_v63  ;;  %v3925_v32 = vld [vmem:[#allocation8 + $0x9e8] sm:$0xff]  ;;  %v10697_v54 = vcombine.low %v3769_v46, %v3773_v47  ;;  %v10601_v63 = vcombine.low %v3673_v48, %v3677_v21 }
 0x4b1   :  { %8372 = vmatprep.subr.bf16.mxu0 %v10634_v2  ;;  %v10850_v2 = vcombine.high %v3921_v49, %v3925_v32  ;;  %v3913_v58 = vld [vmem:[#allocation8 + $0x988] sm:$0xff] }
 0x4b2   :  { %v3917_v62 = vld [vmem:[#allocation8 + $0x9a8] sm:$0xff] }
 0x4b3   :  { %8338 = vmatpush2.bf16.msra.mxu1 %v10855_v15  ;;  %v3745_v34 = vld [vmem:[#allocation8 + $0x448] sm:$0xff]  ;;  %v10841_v12 = vcombine.low %v3913_v58, %v3917_v62 }
 0x4b4   :  { %8373 = vmatpush2.bf16.msra.mxu0 %v10633_v31  ;;  %8393 = vmatprep.subr.bf16.mxu1 %v10722_v16  ;;  %v10849_v31 = vcombine.low %v3921_v49, %v3925_v32  ;;  %v10682_v16 = vcombine.high %v3753_v6, %v3757_v10  ;;  %v3749_v53 = vld [vmem:[#allocation8 + $0x468] sm:$0xff] }
 0x4b5   :  { %8374 = vmatprep.subr.bf16.mxu0 %v10626_v17  ;;  %v10842_v17 = vcombine.high %v3913_v58, %v3917_v62  ;;  %v3905_v23 = vld [vmem:[#allocation8 + $0x948] sm:$0xff]  ;;  %v10674_v35 = vcombine.high %v3745_v34, %v3749_v53  ;;  %v10673_v46 = vcombine.low %v3745_v34, %v3749_v53 }
 0x4b6   :  { %8340 = vmatmul.mubr.bf16.vlgmr.msra.gmra.mxu1 %v13676_v26  ;;  %v3849_v32 = vld [vmem:[#allocation8 + $0x788] sm:$0xff] }
 0x4b7   :  { %8394 = vmatpush1.bf16.msra.mxu1 %v10721_v24  ;;  %8425 = vmatprep.mubr.bf16.mxu1 %v13635_v22  ;;  %v3761_v22 = vld [vmem:[#allocation8 + $0x4c8] sm:$0xff] }
 0x4b8   :  { %8375 = vmatpush2.bf16.msra.mxu0 %v10625_v27  ;;  %8395 = vmatprep.subr.bf16.mxu1 %v10714_v29  ;;  %v10690_v1 = vcombine.high %v3761_v22, %v3765_v51  ;;  %v10689_v15 = vcombine.low %v3761_v22, %v3765_v51  ;;  %v3909_v24 = vld [vmem:[#allocation8 + $0x968] sm:$0xff]  ;;  %v10681_v29 = vcombine.low %v3753_v6, %v3757_v10 }
 0x4b9   :  { %8376 = vmatprep.subr.bf16.mxu0 %v10618_v19  ;;  %v10834_v36 = vcombine.high %v3905_v23, %v3909_v24  ;;  %v3841_v58 = vld [vmem:[#allocation8 + $0x748] sm:$0xff] }
 0x4ba   :  { %v3845_v62 = vld [vmem:[#allocation8 + $0x768] sm:$0xff] }
 0x4bb   :  { %8396 = vmatpush1.bf16.msra.mxu1 %v10713_v39  ;;  %v3737_v39 = vld [vmem:[#allocation8 + $0x408] sm:$0xff]  ;;  %v10770_v34 = vcombine.high %v3841_v58, %v3845_v62 }
 0x4bc   :  { %8377 = vmatpush2.bf16.msra.mxu0 %v10617_v42  ;;  %8397 = vmatprep.subr.bf16.mxu1 %v10706_v44  ;;  %v3897_v44 = vld [vmem:[#allocation8 + $0x908] sm:$0xff] }
 0x4bd   :  { %8378 = vmatprep.subr.bf16.mxu0 %v10610_v45 }
 0x4bf   :  { %8398 = vmatpush1.bf16.msra.mxu1 %v10705_v4  ;;  %v3857_v4 = vld [vmem:[#allocation8 + $0x7c8] sm:$0xff] }
 0x4c0   :  { %8379 = vmatpush2.bf16.msra.mxu0 %v10609_v7  ;;  %8399 = vmatprep.subr.bf16.mxu1 %v10698_v8  ;;  %v3861_v7 = vld [vmem:[#allocation8 + $0x7e8] sm:$0xff] }
 0x4c1   :  { %8380 = vmatprep.subr.bf16.mxu0 %v10602_v3  ;;  %v3889_v8 = vld [vmem:[#allocation8 + $0x8c8] sm:$0xff]  ;;  %v10786_v51 = vcombine.high %v3857_v4, %v3861_v7 }
 0x4c2   :  { %v3893_v3 = vld [vmem:[#allocation8 + $0x8e8] sm:$0xff] }
 0x4c3   :  { %8400 = vmatpush1.bf16.msra.mxu1 %v10697_v54  ;;  %v10818_v49 = vcombine.high %v3889_v8, %v3893_v3  ;;  %v3853_v54 = vld [vmem:[#allocation8 + $0x7a8] sm:$0xff] }
 0x4c4   :  { %8381 = vmatpush2.bf16.msra.mxu0 %v10601_v63  ;;  %8401 = vmatprep.subr.bf16.mxu1 %v10690_v1  ;;  %v3881_v63 = vld [vmem:[#allocation8 + $0x888] sm:$0xff]  ;;  %v10778_v6 = vcombine.high %v3849_v32, %v3853_v54 }
 0x4c5   :  { %8436 = vmatprep.subr.bf16.mxu0 %v10850_v2  ;;  %v3885_v1 = vld [vmem:[#allocation8 + $0x8a8] sm:$0xff]  ;;  %v10817_v2 = vcombine.low %v3889_v8, %v3893_v3 }
 0x4c6   :  { %v6290_v37 = vpop.f32.mrf.mxu1  ;;  %v10810_v10 = vcombine.high %v3881_v63, %v3885_v1 }
 0x4c7   :  { %v13681_v27 = vadd.f32 %v6290_v37, %v13668_v41  ;;  %8383 = vmatmul.mubr.bf16.vlgmr.msra.gmra.mxu0 %v13653_v38  ;;  %8402 = vmatpush1.bf16.msra.mxu1 %v10689_v15  ;;  %v3741_v41 = vld [vmem:[#allocation8 + $0x428] sm:$0xff] }
 0x4c8   :  { %v6292_v19 = vpop.f32.mrf.mxu1  ;;  %8437 = vmatpush1.bf16.msra.mxu0 %v10849_v31  ;;  %10888 = vmatprep.mubr.msk.bf16.mxu0 %vm8217_vm8, %v13658_v5  ;;  %v3901_v38 = vld [vmem:[#allocation8 + $0x928] sm:$0xff]  ;;  %v10833_v5 = vcombine.low %v3905_v23, %v3909_v24  ;;  %v10666_v48 = vcombine.high %v3737_v39, %v3741_v41  ;;  %v10665_v22 = vcombine.low %v3737_v39, %v3741_v41 }
 0x4c9   :  { %v13687_v40 = vadd.f32 %v6292_v19, %v13670_v43  ;;  %8403 = vmatprep.subr.bf16.mxu1 %v10682_v16  ;;  %8438 = vmatprep.subr.bf16.mxu0 %v10842_v17  ;;  %v10826_v21 = vcombine.high %v3897_v44, %v3901_v38  ;;  %v3873_v15 = vld [vmem:[#allocation8 + $0x848] sm:$0xff]  ;;  %v10777_v16 = vcombine.low %v3849_v32, %v3853_v54 }
 0x4ca   :  { %v6294_v42 = vpop.f32.mrf.mxu1  ;;  %v3877_v31 = vld [vmem:[#allocation8 + $0x868] sm:$0xff]  ;;  %v10809_v17 = vcombine.low %v3881_v63, %v3885_v1  ;;  %v10769_v19 = vcombine.low %v3841_v58, %v3845_v62 }
 0x4cb   :  { %v13690_v45 = vadd.f32 %v6294_v42, %v13672_v50  ;;  %8404 = vmatpush1.bf16.msra.mxu1 %v10681_v29  ;;  %v10825_v50 = vcombine.low %v3897_v44, %v3901_v38  ;;  %v10802_v53 = vcombine.high %v3873_v15, %v3877_v31  ;;  %v3833_v37 = vld [vmem:[#allocation8 + $0x708] sm:$0xff] }
 0x4cc   :  { %v6296_v47 = vpop.f32.mrf.mxu1  ;;  %8439 = vmatpush1.bf16.msra.mxu0 %v10841_v12  ;;  %8405 = vmatprep.subr.bf16.mxu1 %v10674_v35  ;;  %v3837_v23 = vld [vmem:[#allocation8 + $0x728] sm:$0xff]  ;;  %v10801_v12 = vcombine.low %v3873_v15, %v3877_v31 }
 0x4cd   :  { %v13693_v43 = vadd.f32 %v6296_v47, %v13674_v13  ;;  %8440 = vmatprep.subr.bf16.mxu0 %v10834_v36  ;;  %v10785_v13 = vcombine.low %v3857_v4, %v3861_v7  ;;  %v3865_v24 = vld [vmem:[#allocation8 + $0x808] sm:$0xff]  ;;  %v10762_v35 = vcombine.high %v3833_v37, %v3837_v23  ;;  %v10761_v38 = vcombine.low %v3833_v37, %v3837_v23  ;;  %v3794_v37 = vld [vmem:[#allocation8 + $0x5d0] sm:$0xff] }
 0x4ce   :  { %v3869_v29 = vld [vmem:[#allocation8 + $0x828] sm:$0xff]  ;;  %v3798_v23 = vld [vmem:[#allocation8 + $0x5f0] sm:$0xff] }
 0x4cf   :  { %8406 = vmatpush1.bf16.msra.mxu1 %v10673_v46  ;;  %v10794_v36 = vcombine.high %v3865_v24, %v3869_v29  ;;  %v3825_v39 = vld [vmem:[#allocation8 + $0x6c8] sm:$0xff]  ;;  %v10793_v46 = vcombine.low %v3865_v24, %v3869_v29 }
 0x4d0   :  { %8441 = vmatpush1.bf16.msra.mxu0 %v10833_v5  ;;  %8407 = vmatprep.subr.bf16.mxu1 %v10666_v48  ;;  %v3829_v41 = vld [vmem:[#allocation8 + $0x6e8] sm:$0xff] }
 0x4d1   :  { %8442 = vmatprep.subr.bf16.mxu0 %v10826_v21  ;;  %v3953_v42 = vld [vmem:[#allocation8 + $0xac8] sm:$0xff]  ;;  %v10754_v47 = vcombine.high %v3825_v39, %v3829_v41  ;;  %v10753_v8 = vcombine.low %v3825_v39, %v3829_v41  ;;  %v3786_v41 = vld [vmem:[#allocation8 + $0x590] sm:$0xff] }
 0x4d2   :  { %v3957_v44 = vld [vmem:[#allocation8 + $0xae8] sm:$0xff] }
 0x4d3   :  { %8408 = vmatpush1.bf16.msra.mxu1 %v10665_v22  ;;  %v10882_v5 = vcombine.high %v3953_v42, %v3957_v44  ;;  %v3817_v48 = vld [vmem:[#allocation8 + $0x688] sm:$0xff]  ;;  %v10881_v3 = vcombine.low %v3953_v42, %v3957_v44  ;;  %v3790_v42 = vld [vmem:[#allocation8 + $0x5b0] sm:$0xff]  ;;  %v10723_v44 = vcombine.low %v3794_v37, %v3798_v23 }
 0x4d4   :  { %8443 = vmatpush1.bf16.msra.mxu0 %v10825_v50  ;;  %8409 = vmatprep.subr.bf16.mxu1 %v10786_v51  ;;  %v3821_v21 = vld [vmem:[#allocation8 + $0x6a8] sm:$0xff] }
 0x4d5   :  { %8444 = vmatprep.subr.bf16.mxu0 %v10818_v49  ;;  %v3945_v4 = vld [vmem:[#allocation8 + $0xa88] sm:$0xff]  ;;  %v10746_v22 = vcombine.high %v3817_v48, %v3821_v21  ;;  %v10745_v63 = vcombine.low %v3817_v48, %v3821_v21  ;;  %v3778_v48 = vld [vmem:[#allocation8 + $0x550] sm:$0xff] }
 0x4d6   :  { %v3949_v7 = vld [vmem:[#allocation8 + $0xaa8] sm:$0xff]  ;;  %v3782_v21 = vld [vmem:[#allocation8 + $0x570] sm:$0xff] }
 0x4d7   :  { %8410 = vmatpush2.bf16.msra.mxu1 %v10785_v13  ;;  %v10874_v50 = vcombine.high %v3945_v4, %v3949_v7  ;;  %v3809_v51 = vld [vmem:[#allocation8 + $0x648] sm:$0xff]  ;;  %v10873_v1 = vcombine.low %v3945_v4, %v3949_v7 }
 0x4d8   :  { %8445 = vmatpush1.bf16.msra.mxu0 %v10817_v2  ;;  %8411 = vmatprep.subr.bf16.mxu1 %v10778_v6  ;;  %v3813_v49 = vld [vmem:[#allocation8 + $0x668] sm:$0xff] }
 0x4d9   :  { %8446 = vmatprep.subr.bf16.mxu0 %v10810_v10  ;;  %v3937_v32 = vld [vmem:[#allocation8 + $0xa48] sm:$0xff]  ;;  %v10738_v13 = vcombine.high %v3809_v51, %v3813_v49  ;;  %v10737_v15 = vcombine.low %v3809_v51, %v3813_v49  ;;  %v3642_v51 = vld [vmem:[#allocation8 + $0x110] sm:$0xff] }
 0x4da   :  { %v3941_v54 = vld [vmem:[#allocation8 + $0xa68] sm:$0xff]  ;;  %v3646_v49 = vld [vmem:[#allocation8 + $0x130] sm:$0xff] }
 0x4db   :  { %8412 = vmatpush2.bf16.msra.mxu1 %v10777_v16  ;;  %v10866_v2 = vcombine.high %v3937_v32, %v3941_v54  ;;  %v3801_v6 = vld [vmem:[#allocation8 + $0x608] sm:$0xff]  ;;  %v10865_v31 = vcombine.low %v3937_v32, %v3941_v54  ;;  %v3774_v32 = vld [vmem:[#allocation8 + $0x530] sm:$0xff] }
 0x4dc   :  { %8447 = vmatpush1.bf16.msra.mxu0 %v10809_v17  ;;  %8413 = vmatprep.subr.bf16.mxu1 %v10770_v34  ;;  %v3805_v10 = vld [vmem:[#allocation8 + $0x628] sm:$0xff]  ;;  %v3666_v34 = vld [vmem:[#allocation8 + $0x1d0] sm:$0xff] }
 0x4dd   :  { %8448 = vmatprep.subr.bf16.mxu0 %v10802_v53  ;;  %v3929_v58 = vld [vmem:[#allocation8 + $0xa08] sm:$0xff]  ;;  %v10730_v16 = vcombine.high %v3801_v6, %v3805_v10  ;;  %v3670_v53 = vld [vmem:[#allocation8 + $0x1f0] sm:$0xff]  ;;  %v10729_v24 = vcombine.low %v3801_v6, %v3805_v10 }
 0x4de   :  { %v3933_v62 = vld [vmem:[#allocation8 + $0xa28] sm:$0xff]  ;;  %v10595_v39 = vcombine.low %v3666_v34, %v3670_v53  ;;  %v3634_v6 = vld [vmem:[#allocation8 + $0xd0] sm:$0xff] }
 0x4df   :  { %8414 = vmatpush2.bf16.msra.mxu1 %v10769_v19  ;;  %v10858_v17 = vcombine.high %v3929_v58, %v3933_v62  ;;  %v10857_v29 = vcombine.low %v3929_v58, %v3933_v62  ;;  %v10596_v19 = vcombine.high %v3666_v34, %v3670_v53  ;;  %v13697_v7 = vld [vmem:[#allocation2 + $0x4] ss:$24 sps:$4 sm:$0xff]   ;;  %v3638_v10 = vld [vmem:[#allocation8 + $0xf0] sm:$0xff] }
 0x4e0   :  { %8449 = vmatpush1.bf16.msra.mxu0 %v10801_v12  ;;  %8415 = vmatprep.subr.bf16.mxu1 %v10762_v35  ;;  %v10724_v12 = vcombine.high %v3794_v37, %v3798_v23  ;;  %v3658_v35 = vld [vmem:[#allocation8 + $0x190] sm:$0xff] }
 0x4e1   :  { %8450 = vmatprep.subr.bf16.mxu0 %v10794_v36  ;;  %v3662_v36 = vld [vmem:[#allocation8 + $0x1b0] sm:$0xff] }
 0x4e2   :  { %v10587_v4 = vcombine.low %v3658_v35, %v3662_v36  ;;  %v3762_v58 = vld [vmem:[#allocation8 + $0x4d0] sm:$0xff] }
 0x4e3   :  { %8416 = vmatpush2.bf16.msra.mxu1 %v10761_v38  ;;  %v10588_v38 = vcombine.high %v3658_v35, %v3662_v36  ;;  %v3766_v62 = vld [vmem:[#allocation8 + $0x4f0] sm:$0xff] }
 0x4e4   :  { %8451 = vmatpush1.bf16.msra.mxu0 %v10793_v46  ;;  %8417 = vmatprep.subr.bf16.mxu1 %v10754_v47  ;;  %v3650_v46 = vld [vmem:[#allocation8 + $0x150] sm:$0xff]  ;;  %v10692_v34 = vcombine.high %v3762_v58, %v3766_v62 }
 0x4e5   :  { %8460 = vmatprep.subr.bf16.mxu0 %v10882_v5  ;;  %v3654_v47 = vld [vmem:[#allocation8 + $0x170] sm:$0xff]  ;;  %v10716_v5 = vcombine.high %v3786_v41, %v3790_v42 }
 0x4e6   :  { %v10579_v54 = vcombine.low %v3650_v46, %v3654_v47  ;;  %v3626_v53 = vld [vmem:[#allocation8 + $0x90] sm:$0xff] }
 0x4e7   :  { %8418 = vmatpush2.bf16.msra.mxu1 %v10753_v8  ;;  %v10715_v8 = vcombine.low %v3786_v41, %v3790_v42  ;;  %v3630_v37 = vld [vmem:[#allocation8 + $0xb0] sm:$0xff] }
 0x4e8   :  { %8461 = vmatpush2.bf16.msra.mxu0 %v10881_v3  ;;  %8419 = vmatprep.subr.bf16.mxu1 %v10746_v22  ;;  %v10580_v3 = vcombine.high %v3650_v46, %v3654_v47  ;;  %v6333_v22 = vpop.f32.mrf.mxu0  ;;  %v3754_v23 = vld [vmem:[#allocation8 + $0x490] sm:$0xff] }
 0x4e9   :  { %8462 = vmatprep.subr.bf16.mxu0 %v10874_v50  ;;  %v13700_v50 = vld [vmem:[#allocation2 + $0xc] ss:$24 sps:$4 sm:$0xff]  }
 0x4ea   :  { %v3622_v41 = vld [vmem:[#allocation8 + $0x70] sm:$0xff] }
 0x4eb   :  { %8420 = vmatpush2.bf16.msra.mxu1 %v10745_v63  ;;  %v10707_v63 = vcombine.low %v3778_v48, %v3782_v21 }
 0x4ec   :  { %8463 = vmatpush2.bf16.msra.mxu0 %v10873_v1  ;;  %8421 = vmatprep.subr.bf16.mxu1 %v10738_v13  ;;  %v10572_v1 = vcombine.high %v3642_v51, %v3646_v49  ;;  %v6335_v13 = vpop.f32.mrf.mxu0 }
 0x4ed   :  { %8464 = vmatprep.subr.bf16.mxu0 %v10866_v2 }
 0x4ef   :  { %8422 = vmatpush2.bf16.msra.mxu1 %v10737_v15  ;;  %v10571_v15 = vcombine.low %v3642_v51, %v3646_v49  ;;  %v3610_v49 = vld [vmem:[#allocation8 + $0x10] sm:$0xff] }
 0x4f0   :  { %8465 = vmatpush2.bf16.msra.mxu0 %v10865_v31  ;;  %8423 = vmatprep.subr.bf16.mxu1 %v10730_v16  ;;  %v10564_v16 = vcombine.high %v3634_v6, %v3638_v10 }
 0x4f1   :  { %8466 = vmatprep.subr.bf16.mxu0 %v10858_v17  ;;  %v6337_v17 = vpop.f32.mrf.mxu0 }
 0x4f3   :  { %8424 = vmatpush2.bf16.msra.mxu1 %v10729_v24  ;;  %v3758_v24 = vld [vmem:[#allocation8 + $0x4b0] sm:$0xff]  ;;  %v6339_v35 = vpop.f32.mrf.mxu0 }
 0x4f4   :  { %8467 = vmatpush2.bf16.msra.mxu0 %v10857_v29  ;;  %8479 = vmatprep.subr.bf16.mxu1 %v10596_v19  ;;  %v10563_v29 = vcombine.low %v3634_v6, %v3638_v10  ;;  %v10691_v19 = vcombine.low %v3762_v58, %v3766_v62  ;;  %v10684_v36 = vcombine.high %v3754_v23, %v3758_v24 }
 0x4f5   :  { %8522 = vmatprep.subr.bf16.mxu0 %v10724_v12  ;;  %v10556_v12 = vcombine.high %v3626_v53, %v3630_v37 }
 0x4f6   :  { %8426 = vmatmul.mubr.bf16.vlgmr.msra.gmra.mxu1 %v13655_v61  ;;  %v10708_v61 = vcombine.high %v3778_v48, %v3782_v21  ;;  %v10683_v21 = vcombine.low %v3754_v23, %v3758_v24  ;;  %v3862_v23 = vld [vmem:[#allocation8 + $0x7f0] sm:$0xff] }
 0x4f7   :  { %8469 = vmatmul.mubr.bf16.vlgmr.msra.gmra.mxu0 %v13676_v26  ;;  %8480 = vmatpush1.bf16.msra.mxu1 %v10595_v39  ;;  %v3770_v26 = vld [vmem:[#allocation8 + $0x510] sm:$0xff] }
 0x4f8   :  { %8511 = vmatprep.mubr.bf16.mxu1 %v13697_v7  ;;  %8523 = vmatpush1.bf16.msra.mxu0 %v10723_v44  ;;  %v10700_v2 = vcombine.high %v3770_v26, %v3774_v32  ;;  %v10699_v31 = vcombine.low %v3770_v26, %v3774_v32  ;;  %v3618_v39 = vld [vmem:[#allocation8 + $0x50] sm:$0xff] }
 0x4f9   :  { %8554 = vmatprep.mubr.bf16.mxu0 %v13700_v50  ;;  %8481 = vmatprep.subr.bf16.mxu1 %v10588_v38  ;;  %v3746_v44 = vld [vmem:[#allocation8 + $0x450] sm:$0xff]  ;;  %v10547_v6 = vcombine.low %v3618_v39, %v3622_v41 }
 0x4fa   :  { %8524 = vmatprep.subr.bf16.mxu0 %v10716_v5  ;;  %v3750_v38 = vld [vmem:[#allocation8 + $0x470] sm:$0xff]  ;;  %v10555_v5 = vcombine.low %v3626_v53, %v3630_v37 }
 0x4fb   :  { %8482 = vmatpush1.bf16.msra.mxu1 %v10587_v4  ;;  %v10548_v4 = vcombine.high %v3618_v39, %v3622_v41  ;;  %v10676_v51 = vcombine.high %v3746_v44, %v3750_v38  ;;  %v3614_v26 = vld [vmem:[#allocation8 + $0x30] sm:$0xff]  ;;  %v10675_v58 = vcombine.low %v3746_v44, %v3750_v38 }
 0x4fc   :  { %8525 = vmatpush1.bf16.msra.mxu0 %v10715_v8  ;;  %8483 = vmatprep.subr.bf16.mxu1 %v10580_v3  ;;  %v10540_v62 = vcombine.high %v3610_v49, %v3614_v26  ;;  %v3734_v53 = vld [vmem:[#allocation8 + $0x3f0] sm:$0xff] }
 0x4fd   :  { %8526 = vmatprep.subr.bf16.mxu0 %v10708_v61  ;;  %v3858_v37 = vld [vmem:[#allocation8 + $0x7d0] sm:$0xff] }
 0x4fe   :  { %v3726_v39 = vld [vmem:[#allocation8 + $0x3b0] sm:$0xff]  ;;  %v10787_v44 = vcombine.low %v3858_v37, %v3862_v23 }
 0x4ff   :  { %8484 = vmatpush1.bf16.msra.mxu1 %v10579_v54  ;;  %v3738_v54 = vld [vmem:[#allocation8 + $0x410] sm:$0xff] }
 0x500   :  { %8527 = vmatpush1.bf16.msra.mxu0 %v10707_v63  ;;  %8485 = vmatprep.subr.bf16.mxu1 %v10572_v1  ;;  %v3742_v63 = vld [vmem:[#allocation8 + $0x430] sm:$0xff] }
 0x501   :  { %8528 = vmatprep.subr.bf16.mxu0 %v10700_v2  ;;  %v3854_v41 = vld [vmem:[#allocation8 + $0x7b0] sm:$0xff] }
 0x503   :  { %8486 = vmatpush1.bf16.msra.mxu1 %v10571_v15 }
 0x504   :  { %8529 = vmatpush1.bf16.msra.mxu0 %v10699_v31  ;;  %8487 = vmatprep.subr.bf16.mxu1 %v10564_v16  ;;  %v10668_v16 = vcombine.high %v3738_v54, %v3742_v63 }
 0x505   :  { %8530 = vmatprep.subr.bf16.mxu0 %v10692_v34  ;;  %v3730_v34 = vld [vmem:[#allocation8 + $0x3d0] sm:$0xff] }
 0x506   :  { %v6376_v42 = vpop.f32.mrf.mxu1 }
 0x507   :  { %v6377_v46 = vadd.f32 %v6376_v42, %v6333_v22  ;;  %v6419_v47 = vpop.f32.mrf.mxu0  ;;  %8488 = vmatpush1.bf16.msra.mxu1 %v10563_v29  ;;  %v10667_v29 = vcombine.low %v3738_v54, %v3742_v63  ;;  %v10659_v42 = vcombine.low %v3730_v34, %v3734_v53  ;;  %v3838_v54 = vld [vmem:[#allocation8 + $0x730] sm:$0xff] }
 0x508   :  { %v6378_v48 = vpop.f32.mrf.mxu1  ;;  %8531 = vmatpush1.bf16.msra.mxu0 %v10691_v19  ;;  %8489 = vmatprep.subr.bf16.mxu1 %v10556_v12  ;;  %v10660_v19 = vcombine.high %v3730_v34, %v3734_v53  ;;  %v10788_v12 = vcombine.high %v3858_v37, %v3862_v23  ;;  %v3690_v37 = vld [vmem:[#allocation8 + $0x290] sm:$0xff] }
 0x509   :  { %v13703_v8 = vadd.f32 %v6419_v47, %v6377_v46  ;;  %v6379_v3 = vadd.f32 %v6378_v48, %v6335_v13  ;;  %v6421_v61 = vpop.f32.mrf.mxu0  ;;  %8532 = vmatprep.subr.bf16.mxu0 %v10684_v36  ;;  %v3722_v36 = vld [vmem:[#allocation8 + $0x390] sm:$0xff] }
 0x50a   :  { %v6380_v32 = vpop.f32.mrf.mxu1  ;;  %v10652_v38 = vcombine.high %v3722_v36, %v3726_v39  ;;  %v3714_v47 = vld [vmem:[#allocation8 + $0x350] sm:$0xff] }
 0x50b   :  { %v13705_v22 = vadd.f32 %v6421_v61, %v6379_v3  ;;  %v6381_v1 = vadd.f32 %v6380_v32, %v6337_v17  ;;  %v6423_v2 = vpop.f32.mrf.mxu0  ;;  %8490 = vmatpush1.bf16.msra.mxu1 %v10555_v5  ;;  %v10539_v17 = vcombine.low %v3610_v49, %v3614_v26  ;;  %v3718_v5 = vld [vmem:[#allocation8 + $0x370] sm:$0xff] }
 0x50c   :  { %v6382_v10 = vpop.f32.mrf.mxu1  ;;  %8533 = vmatpush1.bf16.msra.mxu0 %v10683_v21  ;;  %8491 = vmatprep.subr.bf16.mxu1 %v10548_v4  ;;  %v3842_v48 = vld [vmem:[#allocation8 + $0x750] sm:$0xff]  ;;  %v10651_v4 = vcombine.low %v3722_v36, %v3726_v39  ;;  %v10644_v61 = vcombine.high %v3714_v47, %v3718_v5  ;;  %v10643_v63 = vcombine.low %v3714_v47, %v3718_v5 }
 0x50d   :  { %v13707_v13 = vadd.f32 %v6423_v2, %v6381_v1  ;;  %v6383_v15 = vadd.f32 %v6382_v10, %v6339_v35  ;;  %v6425_v31 = vpop.f32.mrf.mxu0  ;;  %8534 = vmatprep.subr.bf16.mxu0 %v10676_v51  ;;  %v3850_v35 = vld [vmem:[#allocation8 + $0x790] sm:$0xff] }
 0x50e   :  { %v10780_v46 = vcombine.high %v3850_v35, %v3854_v41  ;;  %v3846_v21 = vld [vmem:[#allocation8 + $0x770] sm:$0xff]  ;;  %v10779_v3 = vcombine.low %v3850_v35, %v3854_v41 }
 0x50f   :  { %v13709_v24 = vadd.f32 %v6425_v31, %v6383_v15  ;;  %8492 = vmatpush1.bf16.msra.mxu1 %v10547_v6  ;;  %v10772_v51 = vcombine.high %v3842_v48, %v3846_v21  ;;  %v3706_v49 = vld [vmem:[#allocation8 + $0x310] sm:$0xff]  ;;  %v10771_v1 = vcombine.low %v3842_v48, %v3846_v21 }
 0x510   :  { %8535 = vmatpush1.bf16.msra.mxu0 %v10675_v58  ;;  %8493 = vmatprep.subr.bf16.mxu1 %v10540_v62  ;;  %v3710_v26 = vld [vmem:[#allocation8 + $0x330] sm:$0xff] }
 0x511   :  { %8536 = vmatprep.subr.bf16.mxu0 %v10668_v16  ;;  %v3834_v32 = vld [vmem:[#allocation8 + $0x710] sm:$0xff]  ;;  %v10636_v2 = vcombine.high %v3706_v49, %v3710_v26  ;;  %v10635_v31 = vcombine.low %v3706_v49, %v3710_v26 }
 0x512   :  { %v10764_v6 = vcombine.high %v3834_v32, %v3838_v54  ;;  %v3698_v10 = vld [vmem:[#allocation8 + $0x2d0] sm:$0xff]  ;;  %v10763_v16 = vcombine.low %v3834_v32, %v3838_v54 }
 0x513   :  { %8494 = vmatpush1.bf16.msra.mxu1 %v10539_v17  ;;  %v3702_v58 = vld [vmem:[#allocation8 + $0x2f0] sm:$0xff] }
 0x514   :  { %8537 = vmatpush1.bf16.msra.mxu0 %v10667_v29  ;;  %8495 = vmatprep.subr.bf16.mxu1 %v10660_v19  ;;  %v3826_v62 = vld [vmem:[#allocation8 + $0x6d0] sm:$0xff]  ;;  %v10628_v34 = vcombine.high %v3698_v10, %v3702_v58  ;;  %v10627_v19 = vcombine.low %v3698_v10, %v3702_v58 }
 0x515   :  { %8538 = vmatprep.subr.bf16.mxu0 %v10788_v12  ;;  %v3830_v15 = vld [vmem:[#allocation8 + $0x6f0] sm:$0xff] }
 0x516   :  { %v10756_v53 = vcombine.high %v3826_v62, %v3830_v15  ;;  %v3694_v23 = vld [vmem:[#allocation8 + $0x2b0] sm:$0xff]  ;;  %v10755_v12 = vcombine.low %v3826_v62, %v3830_v15 }
 0x517   :  { %8496 = vmatpush2.bf16.msra.mxu1 %v10659_v42  ;;  %v3818_v17 = vld [vmem:[#allocation8 + $0x690] sm:$0xff]  ;;  %v10620_v36 = vcombine.high %v3690_v37, %v3694_v23 }
 0x518   :  { %8539 = vmatpush2.bf16.msra.mxu0 %v10787_v44  ;;  %8497 = vmatprep.subr.bf16.mxu1 %v10652_v38  ;;  %v3822_v29 = vld [vmem:[#allocation8 + $0x6b0] sm:$0xff]  ;;  %v10619_v38 = vcombine.low %v3690_v37, %v3694_v23 }
 0x519   :  { %8540 = vmatprep.subr.bf16.mxu0 %v10780_v46  ;;  %v10748_v39 = vcombine.high %v3818_v17, %v3822_v29  ;;  %v3682_v35 = vld [vmem:[#allocation8 + $0x250] sm:$0xff]  ;;  %v10747_v46 = vcombine.low %v3818_v17, %v3822_v29  ;;  %v13711_v29 = vld [vmem:[#allocation2] ss:$24 sps:$4 sm:$0xff]  }
 0x51a   :  { %v3686_v41 = vld [vmem:[#allocation8 + $0x270] sm:$0xff] }
 0x51b   :  { %8498 = vmatpush2.bf16.msra.mxu1 %v10651_v4  ;;  %v3810_v42 = vld [vmem:[#allocation8 + $0x650] sm:$0xff]  ;;  %v10612_v47 = vcombine.high %v3682_v35, %v3686_v41 }
 0x51c   :  { %8541 = vmatpush2.bf16.msra.mxu0 %v10779_v3  ;;  %8499 = vmatprep.subr.bf16.mxu1 %v10644_v61  ;;  %v3814_v44 = vld [vmem:[#allocation8 + $0x670] sm:$0xff]  ;;  %v10611_v61 = vcombine.low %v3682_v35, %v3686_v41 }
 0x51d   :  { %8542 = vmatprep.subr.bf16.mxu0 %v10772_v51  ;;  %v10740_v5 = vcombine.high %v3810_v42, %v3814_v44  ;;  %v3674_v48 = vld [vmem:[#allocation8 + $0x210] sm:$0xff]  ;;  %v10739_v51 = vcombine.low %v3810_v42, %v3814_v44 }
 0x51e   :  { %v3678_v21 = vld [vmem:[#allocation8 + $0x230] sm:$0xff] }
 0x51f   :  { %8500 = vmatpush2.bf16.msra.mxu1 %v10643_v63  ;;  %v3802_v4 = vld [vmem:[#allocation8 + $0x610] sm:$0xff]  ;;  %v10604_v49 = vcombine.high %v3674_v48, %v3678_v21  ;;  %v3667_v63 = vld [vmem:[#allocation8 + $0x1d8] sm:$0xff] }
 0x520   :  { %8543 = vmatpush2.bf16.msra.mxu0 %v10771_v1  ;;  %8501 = vmatprep.subr.bf16.mxu1 %v10636_v2  ;;  %v3806_v3 = vld [vmem:[#allocation8 + $0x630] sm:$0xff]  ;;  %v3671_v1 = vld [vmem:[#allocation8 + $0x1f8] sm:$0xff]  ;;  %v10603_v2 = vcombine.low %v3674_v48, %v3678_v21 }
 0x521   :  { %8544 = vmatprep.subr.bf16.mxu0 %v10764_v6  ;;  %v10732_v26 = vcombine.high %v3802_v4, %v3806_v3  ;;  %v3922_v32 = vld [vmem:[#allocation8 + $0x9d0] sm:$0xff]  ;;  %v10731_v6 = vcombine.low %v3802_v4, %v3806_v3  ;;  %v10598_v58 = vcombine.high %v3667_v63, %v3671_v1  ;;  %v3647_v48 = vld [vmem:[#allocation8 + $0x138] sm:$0xff] }
 0x522   :  { %v3926_v54 = vld [vmem:[#allocation8 + $0x9f0] sm:$0xff] }
 0x523   :  { %8502 = vmatpush2.bf16.msra.mxu1 %v10635_v31  ;;  %v10852_v10 = vcombine.high %v3922_v32, %v3926_v54  ;;  %v3914_v62 = vld [vmem:[#allocation8 + $0x990] sm:$0xff]  ;;  %v10851_v31 = vcombine.low %v3922_v32, %v3926_v54  ;;  %v3639_v32 = vld [vmem:[#allocation8 + $0xf8] sm:$0xff] }
 0x524   :  { %8545 = vmatpush2.bf16.msra.mxu0 %v10763_v16  ;;  %8503 = vmatprep.subr.bf16.mxu1 %v10628_v34  ;;  %v3918_v15 = vld [vmem:[#allocation8 + $0x9b0] sm:$0xff]  ;;  %v3659_v16 = vld [vmem:[#allocation8 + $0x198] sm:$0xff] }
 0x525   :  { %8546 = vmatprep.subr.bf16.mxu0 %v10756_v53  ;;  %v3663_v34 = vld [vmem:[#allocation8 + $0x1b8] sm:$0xff]  ;;  %v10597_v53 = vcombine.low %v3667_v63, %v3671_v1  ;;  %v10844_v37 = vcombine.high %v3914_v62, %v3918_v15  ;;  %v3906_v23 = vld [vmem:[#allocation8 + $0x950] sm:$0xff]  ;;  %v10843_v35 = vcombine.low %v3914_v62, %v3918_v15 }
 0x526   :  { %v3910_v17 = vld [vmem:[#allocation8 + $0x970] sm:$0xff]  ;;  %v10589_v42 = vcombine.low %v3659_v16, %v3663_v34 }
 0x527   :  { %8504 = vmatpush2.bf16.msra.mxu1 %v10627_v19  ;;  %v10590_v19 = vcombine.high %v3659_v16, %v3663_v34  ;;  %v13717_v41 = vld [vmem:[#allocation2 + $0x14] ss:$24 sps:$4 sm:$0xff]   ;;  %v10836_v44 = vcombine.high %v3906_v23, %v3910_v17  ;;  %v10835_v21 = vcombine.low %v3906_v23, %v3910_v17 }
 0x528   :  { %8547 = vmatpush2.bf16.msra.mxu0 %v10755_v12  ;;  %8505 = vmatprep.subr.bf16.mxu1 %v10620_v36  ;;  %v3651_v12 = vld [vmem:[#allocation8 + $0x158] sm:$0xff]  ;;  %v3874_v34 = vld [vmem:[#allocation8 + $0x850] sm:$0xff] }
 0x529   :  { %8548 = vmatprep.subr.bf16.mxu0 %v10748_v39  ;;  %v3655_v36 = vld [vmem:[#allocation8 + $0x178] sm:$0xff]  ;;  %v13714_v39 = vld [vmem:[#allocation2 + $0x8] ss:$24 sps:$4 sm:$0xff]  }
 0x52a   :  { %v10581_v4 = vcombine.low %v3651_v12, %v3655_v36  ;;  %v3619_v23 = vld [vmem:[#allocation8 + $0x58] sm:$0xff] }
 0x52b   :  { %8506 = vmatpush2.bf16.msra.mxu1 %v10619_v38  ;;  %v10582_v38 = vcombine.high %v3651_v12, %v3655_v36  ;;  %v3623_v17 = vld [vmem:[#allocation8 + $0x78] sm:$0xff] }
 0x52c   :  { %8549 = vmatpush2.bf16.msra.mxu0 %v10747_v46  ;;  %8507 = vmatprep.subr.bf16.mxu1 %v10612_v47  ;;  %v3898_v46 = vld [vmem:[#allocation8 + $0x910] sm:$0xff] }
 0x52d   :  { %8550 = vmatprep.subr.bf16.mxu0 %v10740_v5  ;;  %v3902_v47 = vld [vmem:[#allocation8 + $0x930] sm:$0xff]  ;;  %v3643_v5 = vld [vmem:[#allocation8 + $0x118] sm:$0xff] }
 0x52e   :  { %v10828_v3 = vcombine.high %v3898_v46, %v3902_v47  ;;  %v10573_v54 = vcombine.low %v3643_v5, %v3647_v48 }
 0x52f   :  { %8508 = vmatpush2.bf16.msra.mxu1 %v10611_v61  ;;  %v10574_v61 = vcombine.high %v3643_v5, %v3647_v48  ;;  %v3866_v5 = vld [vmem:[#allocation8 + $0x810] sm:$0xff] }
 0x530   :  { %8551 = vmatpush2.bf16.msra.mxu0 %v10739_v51  ;;  %8509 = vmatprep.subr.bf16.mxu1 %v10604_v49  ;;  %v3890_v51 = vld [vmem:[#allocation8 + $0x8d0] sm:$0xff] }
 0x531   :  { %8552 = vmatprep.subr.bf16.mxu0 %v10732_v26  ;;  %v3894_v49 = vld [vmem:[#allocation8 + $0x8f0] sm:$0xff]  ;;  %v3635_v26 = vld [vmem:[#allocation8 + $0xd8] sm:$0xff] }
 0x532   :  { %v10820_v63 = vcombine.high %v3890_v51, %v3894_v49  ;;  %v10566_v1 = vcombine.high %v3635_v26, %v3639_v32  ;;  %v10819_v62 = vcombine.low %v3890_v51, %v3894_v49  ;;  %v10565_v15 = vcombine.low %v3635_v26, %v3639_v32  ;;  %v3870_v48 = vld [vmem:[#allocation8 + $0x830] sm:$0xff] }
 0x533   :  { %8510 = vmatpush2.bf16.msra.mxu1 %v10603_v2  ;;  %v3882_v2 = vld [vmem:[#allocation8 + $0x890] sm:$0xff]  ;;  %v10549_v49 = vcombine.low %v3619_v23, %v3623_v17  ;;  %v10796_v26 = vcombine.high %v3866_v5, %v3870_v48 }
 0x534   :  { %8553 = vmatpush2.bf16.msra.mxu0 %v10731_v6  ;;  %8565 = vmatprep.subr.bf16.mxu1 %v10852_v10  ;;  %v3886_v6 = vld [vmem:[#allocation8 + $0x8b0] sm:$0xff]  ;;  %v3627_v10 = vld [vmem:[#allocation8 + $0x98] sm:$0xff] }
 0x535   :  { %8608 = vmatprep.subr.bf16.mxu0 %v10598_v58  ;;  %v3631_v58 = vld [vmem:[#allocation8 + $0xb8] sm:$0xff]  ;;  %v10811_v36 = vcombine.low %v3882_v2, %v3886_v6 }
 0x536   :  { %8512 = vmatmul.mubr.bf16.vlgmr.msra.gmra.mxu1 %v13711_v29  ;;  %v10558_v16 = vcombine.high %v3627_v10, %v3631_v58 }
 0x537   :  { %8555 = vmatmul.mubr.bf16.vlgmr.msra.gmra.mxu0 %v13714_v39  ;;  %8566 = vmatpush1.bf16.msra.mxu1 %v10851_v31  ;;  %v10812_v31 = vcombine.high %v3882_v2, %v3886_v6  ;;  %v3735_v2 = vld [vmem:[#allocation8 + $0x3f8] sm:$0xff]  ;;  %v10795_v6 = vcombine.low %v3866_v5, %v3870_v48  ;;  %v3930_v48 = vld [vmem:[#allocation8 + $0xa10] sm:$0xff] }
 0x538   :  { %10889 = vmatprep.mubr.msk.bf16.mxu1 %vm8217_vm8, %v13717_v41  ;;  %8609 = vmatpush1.bf16.msra.mxu0 %v10597_v53  ;;  %v3878_v53 = vld [vmem:[#allocation8 + $0x870] sm:$0xff] }
 0x539   :  { %8640 = vmatprep.mubr.bf16.mxu0 %v13697_v7  ;;  %8567 = vmatprep.subr.bf16.mxu1 %v10844_v37  ;;  %v10827_v7 = vcombine.low %v3898_v46, %v3902_v47  ;;  %v10550_v47 = vcombine.high %v3619_v23, %v3623_v17  ;;  %v10803_v51 = vcombine.low %v3874_v34, %v3878_v53  ;;  %v3938_v17 = vld [vmem:[#allocation8 + $0xa50] sm:$0xff] }
 0x53a   :  { %8610 = vmatprep.subr.bf16.mxu0 %v10590_v19 }
 0x53b   :  { %8568 = vmatpush1.bf16.msra.mxu1 %v10843_v35 }
 0x53c   :  { %8611 = vmatpush1.bf16.msra.mxu0 %v10589_v42  ;;  %8569 = vmatprep.subr.bf16.mxu1 %v10836_v44  ;;  %v10557_v42 = vcombine.low %v3627_v10, %v3631_v58  ;;  %v10804_v44 = vcombine.high %v3874_v34, %v3878_v53 }
 0x53d   :  { %8612 = vmatprep.subr.bf16.mxu0 %v10582_v38 }
 0x53f   :  { %8570 = vmatpush1.bf16.msra.mxu1 %v10835_v21 }
 0x540   :  { %8613 = vmatpush1.bf16.msra.mxu0 %v10581_v4  ;;  %8571 = vmatprep.subr.bf16.mxu1 %v10828_v3  ;;  %v3611_v4 = vld [vmem:[#allocation8 + $0x18] sm:$0xff] }
 0x541   :  { %8614 = vmatprep.subr.bf16.mxu0 %v10574_v61 }
 0x543   :  { %8572 = vmatpush1.bf16.msra.mxu1 %v10827_v7 }
 0x544   :  { %8615 = vmatpush1.bf16.msra.mxu0 %v10573_v54  ;;  %8573 = vmatprep.subr.bf16.mxu1 %v10820_v63  ;;  %v3954_v54 = vld [vmem:[#allocation8 + $0xad0] sm:$0xff] }
 0x545   :  { %8616 = vmatprep.subr.bf16.mxu0 %v10566_v1  ;;  %v3958_v63 = vld [vmem:[#allocation8 + $0xaf0] sm:$0xff]  ;;  %v3731_v1 = vld [vmem:[#allocation8 + $0x3d8] sm:$0xff] }
 0x546   :  { %v8255_v37 = vpop.f32.mrf.mxu1  ;;  %v10884_v10 = vcombine.high %v3954_v54, %v3958_v63  ;;  %v10662_v58 = vcombine.high %v3731_v1, %v3735_v2  ;;  %v10883_v34 = vcombine.low %v3954_v54, %v3958_v63  ;;  %v10661_v53 = vcombine.low %v3731_v1, %v3735_v2  ;;  %v3699_v54 = vld [vmem:[#allocation8 + $0x2d8] sm:$0xff] }
 0x547   :  { %v8256_v19 = vadd.f32 %v8255_v37, %v13623_v11  ;;  %v8298_v12 = vpop.f32.mrf.mxu0  ;;  %8574 = vmatpush1.bf16.msra.mxu1 %v10819_v62  ;;  %v3615_v11 = vld [vmem:[#allocation8 + $0x38] sm:$0xff]  ;;  %v3946_v62 = vld [vmem:[#allocation8 + $0xa90] sm:$0xff] }
 0x548   :  { %v13723_v35 = vpop.f32.mrf.mxu1  ;;  %8617 = vmatpush1.bf16.msra.mxu0 %v10565_v15  ;;  %8575 = vmatprep.subr.bf16.mxu1 %v10812_v31  ;;  %v10542_v7 = vcombine.high %v3611_v4, %v3615_v11  ;;  %v3950_v15 = vld [vmem:[#allocation8 + $0xab0] sm:$0xff]  ;;  %v3723_v31 = vld [vmem:[#allocation8 + $0x398] sm:$0xff] }
 0x549   :  { %v13725_v38 = vadd.f32 %v8298_v12, %v8256_v19  ;;  %v13727_v46 = vpop.f32.mrf.mxu0  ;;  %8618 = vmatprep.subr.bf16.mxu0 %v10558_v16  ;;  %v3727_v16 = vld [vmem:[#allocation8 + $0x3b8] sm:$0xff]  ;;  %v10876_v37 = vcombine.high %v3946_v62, %v3950_v15  ;;  %v3942_v19 = vld [vmem:[#allocation8 + $0xa70] sm:$0xff] }
 0x54a   :  { %v8259_v21 = vpop.f32.mrf.mxu1  ;;  %v10654_v23 = vcombine.high %v3723_v31, %v3727_v16  ;;  %v3715_v12 = vld [vmem:[#allocation8 + $0x358] sm:$0xff] }
 0x54b   :  { %v8260_v3 = vadd.f32 %v8259_v21, %v13630_v20  ;;  %v8302_v61 = vpop.f32.mrf.mxu0  ;;  %8576 = vmatpush1.bf16.msra.mxu1 %v10811_v36  ;;  %v10541_v20 = vcombine.low %v3611_v4, %v3615_v11  ;;  %v3719_v36 = vld [vmem:[#allocation8 + $0x378] sm:$0xff]  ;;  %v3934_v21 = vld [vmem:[#allocation8 + $0xa30] sm:$0xff] }
 0x54c   :  { %8619 = vmatpush1.bf16.msra.mxu0 %v10557_v42  ;;  %8577 = vmatprep.subr.bf16.mxu1 %v10804_v44  ;;  %v10875_v42 = vcombine.low %v3946_v62, %v3950_v15  ;;  %v10653_v44 = vcombine.low %v3723_v31, %v3727_v16  ;;  %v10646_v5 = vcombine.high %v3715_v12, %v3719_v36  ;;  %v3707_v4 = vld [vmem:[#allocation8 + $0x318] sm:$0xff] }
 0x54d   :  { %v13730_v32 = vadd.f32 %v8302_v61, %v8260_v3  ;;  %8620 = vmatprep.subr.bf16.mxu0 %v10550_v47  ;;  %v10868_v47 = vcombine.high %v3938_v17, %v3942_v19  ;;  %v3711_v11 = vld [vmem:[#allocation8 + $0x338] sm:$0xff]  ;;  %v10867_v3 = vcombine.low %v3938_v17, %v3942_v19  ;;  %v10645_v61 = vcombine.low %v3715_v12, %v3719_v36 }
 0x54e   :  { %v3703_v63 = vld [vmem:[#allocation8 + $0x2f8] sm:$0xff]  ;;  %v10859_v1 = vcombine.low %v3930_v48, %v3934_v21  ;;  %v10637_v2 = vcombine.low %v3707_v4, %v3711_v11 }
 0x54f   :  { %8578 = vmatpush1.bf16.msra.mxu1 %v10803_v51  ;;  %v10860_v51 = vcombine.high %v3930_v48, %v3934_v21  ;;  %v3691_v62 = vld [vmem:[#allocation8 + $0x298] sm:$0xff]  ;;  %v10629_v16 = vcombine.low %v3699_v54, %v3703_v63 }
 0x550   :  { %8621 = vmatpush1.bf16.msra.mxu0 %v10549_v49  ;;  %8579 = vmatprep.subr.bf16.mxu1 %v10796_v26  ;;  %v10638_v49 = vcombine.high %v3707_v4, %v3711_v11  ;;  %v3795_v26 = vld [vmem:[#allocation8 + $0x5d8] sm:$0xff] }
 0x551   :  { %8622 = vmatprep.subr.bf16.mxu0 %v10542_v7  ;;  %v3799_v7 = vld [vmem:[#allocation8 + $0x5f8] sm:$0xff] }
 0x552   :  { %v3695_v15 = vld [vmem:[#allocation8 + $0x2b8] sm:$0xff]  ;;  %v10725_v31 = vcombine.low %v3795_v26, %v3799_v7 }
 0x553   :  { %8580 = vmatpush1.bf16.msra.mxu1 %v10795_v6  ;;  %v10726_v6 = vcombine.high %v3795_v26, %v3799_v7  ;;  %v13732_v17 = vld [vmem:[#allocation2 + $0x10] ss:$24 sps:$4 sm:$0xff]  }
 0x554   :  { %8623 = vmatpush1.bf16.msra.mxu0 %v10541_v20  ;;  %8589 = vmatprep.subr.bf16.mxu1 %v10884_v10  ;;  %v10630_v20 = vcombine.high %v3699_v54, %v3703_v63  ;;  %v3787_v10 = vld [vmem:[#allocation8 + $0x598] sm:$0xff]  ;;  %v13737_v63 = vshrl.u32 %v148_v30, 7  ;;  %v13744_v30 = vld [vmem:[#allocation11] sm:$0xff] }
 0x555   :  { %8624 = vmatprep.subr.bf16.mxu0 %v10662_v58  ;;  %v3791_v58 = vld [vmem:[#allocation8 + $0x5b8] sm:$0xff] }
 0x556   :  { %v3683_v19 = vld [vmem:[#allocation8 + $0x258] sm:$0xff]  ;;  %v10717_v36 = vcombine.low %v3787_v10, %v3791_v58 }
 0x557   :  { %8590 = vmatpush2.bf16.msra.mxu1 %v10883_v34  ;;  %v10718_v34 = vcombine.high %v3787_v10, %v3791_v58  ;;  %v3687_v12 = vld [vmem:[#allocation8 + $0x278] sm:$0xff] }
 0x558   :  { %8625 = vmatpush2.bf16.msra.mxu0 %v10661_v53  ;;  %8591 = vmatprep.subr.bf16.mxu1 %v10876_v37  ;;  %v10622_v53 = vcombine.high %v3691_v62, %v3695_v15  ;;  %v3779_v37 = vld [vmem:[#allocation8 + $0x558] sm:$0xff] }
 0x559   :  { %8626 = vmatprep.subr.bf16.mxu0 %v10654_v23  ;;  %v3783_v23 = vld [vmem:[#allocation8 + $0x578] sm:$0xff] }
 0x55a   :  { %v3775_v48 = vld [vmem:[#allocation8 + $0x538] sm:$0xff]  ;;  %v10709_v11 = vcombine.low %v3779_v37, %v3783_v23 }
 0x55b   :  { %8592 = vmatpush2.bf16.msra.mxu1 %v10875_v42  ;;  %v10621_v42 = vcombine.low %v3691_v62, %v3695_v15  ;;  %v3675_v21 = vld [vmem:[#allocation8 + $0x218] sm:$0xff]  ;;  %v13740_v15 = vsub.s32 0, %v13737_v63 }
 0x55c   :  { %8627 = vmatpush2.bf16.msra.mxu0 %v10653_v44  ;;  %8593 = vmatprep.subr.bf16.mxu1 %v10868_v47  ;;  %v10710_v44 = vcombine.high %v3779_v37, %v3783_v23  ;;  %v10614_v47 = vcombine.high %v3683_v19, %v3687_v12  ;;  %v3679_v4 = vld [vmem:[#allocation8 + $0x238] sm:$0xff] }
 0x55d   :  { %8628 = vmatprep.subr.bf16.mxu0 %v10646_v5  ;;  %v3771_v5 = vld [vmem:[#allocation8 + $0x518] sm:$0xff] }
 0x55e   :  { %v3923_v26 = vld [vmem:[#allocation8 + $0x9d8] sm:$0xff]  ;;  %v10701_v54 = vcombine.low %v3771_v5, %v3775_v48 }
 0x55f   :  { %8594 = vmatpush2.bf16.msra.mxu1 %v10867_v3  ;;  %v10613_v3 = vcombine.low %v3683_v19, %v3687_v12  ;;  %v3927_v7 = vld [vmem:[#allocation8 + $0x9f8] sm:$0xff] }
 0x560   :  { %8629 = vmatpush2.bf16.msra.mxu0 %v10645_v61  ;;  %8595 = vmatprep.subr.bf16.mxu1 %v10860_v51  ;;  %v10702_v61 = vcombine.high %v3771_v5, %v3775_v48  ;;  %v10606_v51 = vcombine.high %v3675_v21, %v3679_v4  ;;  %v3759_v10 = vld [vmem:[#allocation8 + $0x4b8] sm:$0xff] }
 0x561   :  { %8630 = vmatprep.subr.bf16.mxu0 %v10638_v49  ;;  %v3767_v49 = vld [vmem:[#allocation8 + $0x4f8] sm:$0xff] }
 0x562   :  { %v3915_v58 = vld [vmem:[#allocation8 + $0x998] sm:$0xff] }
 0x563   :  { %8596 = vmatpush2.bf16.msra.mxu1 %v10859_v1  ;;  %v10605_v1 = vcombine.low %v3675_v21, %v3679_v4  ;;  %v3919_v62 = vld [vmem:[#allocation8 + $0x9b8] sm:$0xff] }
 0x564   :  { %8631 = vmatpush2.bf16.msra.mxu0 %v10637_v2  ;;  %8651 = vmatprep.subr.bf16.mxu1 %v10726_v6  ;;  %v10854_v6 = vcombine.high %v3923_v26, %v3927_v7  ;;  %v10846_v37 = vcombine.high %v3915_v58, %v3919_v62  ;;  %v3747_v23 = vld [vmem:[#allocation8 + $0x458] sm:$0xff]  ;;  %v10845_v21 = vcombine.low %v3915_v58, %v3919_v62 }
 0x565   :  { %8632 = vmatprep.subr.bf16.mxu0 %v10630_v20  ;;  %v3755_v20 = vld [vmem:[#allocation8 + $0x498] sm:$0xff] }
 0x566   :  { %8598 = vmatmul.mubr.bf16.vlgmr.msra.gmra.mxu1 %v13732_v17  ;;  %v3751_v19 = vld [vmem:[#allocation8 + $0x478] sm:$0xff]  ;;  %v10685_v5 = vcombine.low %v3755_v20, %v3759_v10 }
 0x567   :  { %8652 = vmatpush1.bf16.msra.mxu1 %v10725_v31  ;;  %8683 = vmatprep.mubr.bf16.mxu1 %v13700_v50  ;;  %v3763_v50 = vld [vmem:[#allocation8 + $0x4d8] sm:$0xff]  ;;  %v10678_v4 = vcombine.high %v3747_v23, %v3751_v19 }
 0x568   :  { %8633 = vmatpush2.bf16.msra.mxu0 %v10629_v16  ;;  %8653 = vmatprep.subr.bf16.mxu1 %v10718_v34  ;;  %v10694_v2 = vcombine.high %v3763_v50, %v3767_v49  ;;  %v10693_v31 = vcombine.low %v3763_v50, %v3767_v49  ;;  %v13742_v16 = vpop.f32.mrf.mxu1  ;;  %v10853_v34 = vcombine.low %v3923_v26, %v3927_v7  ;;  %v3903_v50 = vld [vmem:[#allocation8 + $0x938] sm:$0xff] }
 0x569   :  { %8634 = vmatprep.subr.bf16.mxu0 %v10622_v53  ;;  %v10686_v53 = vcombine.high %v3755_v20, %v3759_v10  ;;  %v10677_v26 = vcombine.low %v3747_v23, %v3751_v19  ;;  %v3891_v20 = vld [vmem:[#allocation8 + $0x8d8] sm:$0xff] }
 0x56a   :  { %v3895_v10 = vld [vmem:[#allocation8 + $0x8f8] sm:$0xff] }
 0x56b   :  { %8654 = vmatpush1.bf16.msra.mxu1 %v10717_v36  ;;  %v3907_v36 = vld [vmem:[#allocation8 + $0x958] sm:$0xff] }
 0x56c   :  { %8635 = vmatpush2.bf16.msra.mxu0 %v10621_v42  ;;  %8655 = vmatprep.subr.bf16.mxu1 %v10710_v44  ;;  %v3911_v42 = vld [vmem:[#allocation8 + $0x978] sm:$0xff] }
 0x56d   :  { %8636 = vmatprep.subr.bf16.mxu0 %v10614_v47  ;;  %v8742_v47 = vrot.slane %v13744_v30, %v13740_v15  ;;  %v10837_v7 = vcombine.low %v3907_v36, %v3911_v42  ;;  %v3851_v23 = vld [vmem:[#allocation8 + $0x798] sm:$0xff] }
 0x56e   :  { %v3855_v19 = vld [vmem:[#allocation8 + $0x7b8] sm:$0xff] }
 0x56f   :  { %8656 = vmatpush1.bf16.msra.mxu1 %v10709_v11  ;;  %v10838_v11 = vcombine.high %v3907_v36, %v3911_v42  ;;  %v3887_v36 = vld [vmem:[#allocation8 + $0x8b8] sm:$0xff] }
 0x570   :  { %8637 = vmatpush2.bf16.msra.mxu0 %v10613_v3  ;;  %8657 = vmatprep.subr.bf16.mxu1 %v10702_v61  ;;  %v3739_v3 = vld [vmem:[#allocation8 + $0x418] sm:$0xff] }
 0x571   :  { %8638 = vmatprep.subr.bf16.mxu0 %v10606_v51  ;;  %v3899_v51 = vld [vmem:[#allocation8 + $0x918] sm:$0xff] }
 0x573   :  { %8658 = vmatpush1.bf16.msra.mxu1 %v10701_v54 }
 0x574   :  { %8639 = vmatpush2.bf16.msra.mxu0 %v10605_v1  ;;  %8659 = vmatprep.subr.bf16.mxu1 %v10694_v2  ;;  %v10830_v1 = vcombine.high %v3899_v51, %v3903_v50  ;;  %v3859_v2 = vld [vmem:[#allocation8 + $0x7d8] sm:$0xff] }
 0x575   :  { %8694 = vmatprep.subr.bf16.mxu0 %v10854_v6  ;;  %v3863_v6 = vld [vmem:[#allocation8 + $0x7f8] sm:$0xff] }
 0x576   :  { %v8341_v12 = vpop.f32.mrf.mxu1  ;;  %v10789_v42 = vcombine.low %v3859_v2, %v3863_v6 }
 0x577   :  { %v8342_v44 = vadd.f32 %v8341_v12, %v13725_v38  ;;  %8641 = vmatmul.mubr.bf16.vlgmr.msra.gmra.mxu0 %v13711_v29  ;;  %8660 = vmatpush1.bf16.msra.mxu1 %v10693_v31  ;;  %v3743_v38 = vld [vmem:[#allocation8 + $0x438] sm:$0xff] }
 0x578   :  { %v13750_v48 = vpop.f32.mrf.mxu1  ;;  %8695 = vmatpush1.bf16.msra.mxu0 %v10853_v34  ;;  %10890 = vmatprep.mubr.msk.bf16.mxu0 %vm8217_vm8, %v13717_v41  ;;  %v10670_v54 = vcombine.high %v3739_v3, %v3743_v38  ;;  %v10669_v31 = vcombine.low %v3739_v3, %v3743_v38  ;;  %v10790_v34 = vcombine.high %v3859_v2, %v3863_v6  ;;  %v3883_v12 = vld [vmem:[#allocation8 + $0x898] sm:$0xff] }
 0x579   :  { %8661 = vmatprep.subr.bf16.mxu1 %v10686_v53  ;;  %8696 = vmatprep.subr.bf16.mxu0 %v10846_v37  ;;  %v8779_v49 = vadd.f32 %v8742_v47, %v8342_v44  ;;  %v10822_v37 = vcombine.high %v3891_v20, %v3895_v10  ;;  %v10821_v44 = vcombine.low %v3891_v20, %v3895_v10  ;;  %v3879_v3 = vld [vmem:[#allocation8 + $0x878] sm:$0xff] }
 0x57a   :  { %v8345_v61 = vpop.f32.mrf.mxu1  ;;  %v10781_v38 = vcombine.low %v3851_v23, %v3855_v19  ;;  %v3827_v6 = vld [vmem:[#allocation8 + $0x6d8] sm:$0xff] }
 0x57b   :  { %v8346_v29 = vadd.f32 %v8345_v61, %v13730_v32  ;;  %8662 = vmatpush1.bf16.msra.mxu1 %v10685_v5  ;;  %v8795_v58 = vmax.f32 %v8779_v49, 0.0  ;;  %v10829_v32 = vcombine.low %v3899_v51, %v3903_v50  ;;  %v10814_v5 = vcombine.high %v3883_v12, %v3887_v36  ;;  %v3835_v49 = vld [vmem:[#allocation8 + $0x718] sm:$0xff] }
 0x57c   :  { %8697 = vmatpush1.bf16.msra.mxu0 %v10845_v21  ;;  %8663 = vmatprep.subr.bf16.mxu1 %v10678_v4  ;;  %v3843_v21 = vld [vmem:[#allocation8 + $0x758] sm:$0xff]  ;;  %v10813_v61 = vcombine.low %v3883_v12, %v3887_v36 }
 0x57d   :  { %v8787_v41 = vadd.f32 %v8742_v47, %v8346_v29  ;;  %8698 = vmatprep.subr.bf16.mxu0 %v10838_v11  ;;  %v10782_v47 = vcombine.high %v3851_v23, %v3855_v19  ;;  %v3847_v4 = vld [vmem:[#allocation8 + $0x778] sm:$0xff] }
 0x57e   :  { %v3875_v11 = vld [vmem:[#allocation8 + $0x858] sm:$0xff]  ;;  %v10774_v51 = vcombine.high %v3843_v21, %v3847_v4 }
 0x57f   :  { %v8803_v62 = vmax.f32 %v8787_v41, 0.0  ;;  %8664 = vmatpush1.bf16.msra.mxu1 %v10677_v26  ;;  %v10806_v50 = vcombine.high %v3875_v11, %v3879_v3  ;;  %v3839_v29 = vld [vmem:[#allocation8 + $0x738] sm:$0xff]  ;;  %v10805_v41 = vcombine.low %v3875_v11, %v3879_v3 }
 0x580   :  { %8699 = vmatpush1.bf16.msra.mxu0 %v10837_v7  ;;  %8665 = vmatprep.subr.bf16.mxu1 %v10670_v54  ;;  %v3867_v26 = vld [vmem:[#allocation8 + $0x818] sm:$0xff]  ;;  %v10773_v54 = vcombine.low %v3843_v21, %v3847_v4  ;;  %v8304_v4 = vpop.f32.mrf.mxu0 }
 0x581   :  { %v13755_v53 = vpack.c.bf16 %v8803_v62, %v8795_v58  ;;  %8700 = vmatprep.subr.bf16.mxu0 %v10830_v1  ;;  %v3871_v7 = vld [vmem:[#allocation8 + $0x838] sm:$0xff]  ;;  %v10766_v1 = vcombine.high %v3835_v49, %v3839_v29  ;;  %v10765_v62 = vcombine.low %v3835_v49, %v3839_v29 }
 0x582   :  { %v10798_v2 = vcombine.high %v3867_v26, %v3871_v7  ;;  %v3831_v20 = vld [vmem:[#allocation8 + $0x6f8] sm:$0xff] }
 0x583   :  { %8666 = vmatpush1.bf16.msra.mxu1 %v10669_v31  ;;  %v3955_v10 = vld [vmem:[#allocation8 + $0xad8] sm:$0xff]  ;;  %v5996_v31 = vadd.f32 %v13639_v33, %v13620_v59 }
 0x584   :  { %8701 = vmatpush1.bf16.msra.mxu0 %v10829_v32  ;;  %8667 = vmatprep.subr.bf16.mxu1 %v10790_v34  ;;  %v3959_v58 = vld [vmem:[#allocation8 + $0xaf8] sm:$0xff]  ;;  %v10797_v32 = vcombine.low %v3867_v26, %v3871_v7  ;;  %v10758_v34 = vcombine.high %v3827_v6, %v3831_v20 }
 0x585   :  { %8702 = vmatprep.subr.bf16.mxu0 %v10822_v37  ;;  %v5992_v37 = vadd.f32 %v13616_v57, %v13612_v52  ;;  %v10886_v23 = vcombine.high %v3955_v10, %v3959_v58  ;;  %v3819_v19 = vld [vmem:[#allocation8 + $0x698] sm:$0xff]  ;;  %v6039_v36 = vadd.f32 %v13641_v28, %v5996_v31  ;;  %v10885_v33 = vcombine.low %v3955_v10, %v3959_v58 }
 0x586   :  { %v3823_v12 = vld [vmem:[#allocation8 + $0x6b8] sm:$0xff] }
 0x587   :  { %8668 = vmatpush2.bf16.msra.mxu1 %v10789_v42  ;;  %v3947_v42 = vld [vmem:[#allocation8 + $0xa98] sm:$0xff]  ;;  %v8262_v59 = vadd.f32 %v13742_v16, %v6039_v36  ;;  %v10750_v21 = vcombine.high %v3819_v19, %v3823_v12 }
 0x588   :  { %8703 = vmatpush1.bf16.msra.mxu0 %v10821_v44  ;;  %8669 = vmatprep.subr.bf16.mxu1 %v10782_v47  ;;  %v3951_v44 = vld [vmem:[#allocation8 + $0xab8] sm:$0xff]  ;;  %v6035_v47 = vadd.f32 %v13626_v56, %v5992_v37  ;;  %v8347_v56 = vpop.f32.mrf.mxu1 }
 0x589   :  { %8704 = vmatprep.subr.bf16.mxu0 %v10814_v5  ;;  %v10757_v5 = vcombine.low %v3827_v6, %v3831_v20  ;;  %v10878_v52 = vcombine.high %v3947_v42, %v3951_v44  ;;  %v3811_v57 = vld [vmem:[#allocation8 + $0x658] sm:$0xff]  ;;  %v8305_v16 = vadd.f32 %v8304_v4, %v8262_v59  ;;  %v11948_v59 = vld [vmem:[#allocation13 + $0x160] ss:$8 sps:$4 sm:$0xff]  }
 0x58a   :  { %v3815_v11 = vld [vmem:[#allocation8 + $0x678] sm:$0xff]  ;;  %v8258_v3 = vadd.f32 %v13723_v35, %v6035_v47 }
 0x58b   :  { %8670 = vmatpush2.bf16.msra.mxu1 %v10781_v38  ;;  %v3939_v28 = vld [vmem:[#allocation8 + $0xa58] sm:$0xff]  ;;  %v10742_v49 = vcombine.high %v3811_v57, %v3815_v11  ;;  %v8348_v35 = vadd.f32 %v8347_v56, %v8305_v16  ;;  %v10741_v6 = vcombine.low %v3811_v57, %v3815_v11  ;;  %v11959_v11 = vld [vmem:[#allocation13 + $0x44] ss:$8 sps:$4 sm:$0xff]  }
 0x58c   :  { %8705 = vmatpush1.bf16.msra.mxu0 %v10813_v61  ;;  %8671 = vmatprep.subr.bf16.mxu1 %v10774_v51  ;;  %v3943_v38 = vld [vmem:[#allocation8 + $0xa78] sm:$0xff]  ;;  %v13766_v61 = vsub.s32 1, %v13737_v63  ;;  %v10749_v51 = vcombine.low %v3819_v19, %v3823_v12 }
 0x58d   :  { %8706 = vmatprep.subr.bf16.mxu0 %v10806_v50  ;;  %v10877_v50 = vcombine.low %v3947_v42, %v3951_v44  ;;  %v10870_v29 = vcombine.high %v3939_v28, %v3943_v38  ;;  %v3803_v26 = vld [vmem:[#allocation8 + $0x618] sm:$0xff]  ;;  %v10869_v10 = vcombine.low %v3939_v28, %v3943_v38  ;;  %v11947_v42 = vld [vmem:[#allocation13 + $0x64] ss:$8 sps:$4 sm:$0xff]   ;;  %v11960_v28 = vld [vmem:[#allocation13 + $0x140] ss:$8 sps:$4 sm:$0xff]  }
 0x58e   :  { %v3807_v7 = vld [vmem:[#allocation8 + $0x638] sm:$0xff]  ;;  %v11950_v44 = vld [vmem:[#allocation13 + $0x164] ss:$8 sps:$4 sm:$0xff]  }
 0x58f   :  { %8672 = vmatpush2.bf16.msra.mxu1 %v10773_v54  ;;  %v8301_v54 = vadd.f32 %v13727_v46, %v8258_v3  ;;  %v10734_v58 = vcombine.high %v3803_v26, %v3807_v7  ;;  %v11941_v37 = vld [vmem:[#allocation13 + $0x74] ss:$8 sps:$4 sm:$0xff]   ;;  %v11939_v12 = vld [vmem:[#allocation13 + $0x70] ss:$8 sps:$4 sm:$0xff]   ;;  %v11962_v3 = vld [vmem:[#allocation13 + $0x144] ss:$8 sps:$4 sm:$0xff]  }
 0x590   :  { %8707 = vmatpush1.bf16.msra.mxu0 %v10805_v41  ;;  %8673 = vmatprep.subr.bf16.mxu1 %v10766_v1  ;;  %v3931_v41 = vld [vmem:[#allocation8 + $0xa18] sm:$0xff] }
 0x591   :  { %8708 = vmatprep.subr.bf16.mxu0 %v10798_v2  ;;  %v3935_v1 = vld [vmem:[#allocation8 + $0xa38] sm:$0xff]  ;;  %v8746_v2 = vrot.slane %v13744_v30, %v13766_v61  ;;  %v8344_v20 = vadd.f32 %v13750_v48, %v8301_v54 }
 0x592   :  { %v11942_v36 = vld [vmem:[#allocation13 + $0x170] ss:$8 sps:$4 sm:$0xff]   ;;  %v11956_v4 = vld [vmem:[#allocation13 + $0x154] ss:$8 sps:$4 sm:$0xff]  }
 0x593   :  { %8674 = vmatpush2.bf16.msra.mxu1 %v10765_v62  ;;  %v10862_v62 = vcombine.high %v3931_v41, %v3935_v1  ;;  %v8788_v31 = vadd.f32 %v8746_v2, %v8348_v35  ;;  %v8780_v46 = vadd.f32 %v8746_v2, %v8344_v20  ;;  %v11954_v57 = vld [vmem:[#allocation13 + $0x150] ss:$8 sps:$4 sm:$0xff]   ;;  %v11965_v38 = vld [vmem:[#allocation13 + $0x34] ss:$8 sps:$4 sm:$0xff]   ;;  %v8749_v35 = vsub.s32 2, %v13737_v63 }
 0x594   :  { %8709 = vmatpush1.bf16.msra.mxu0 %v10797_v32  ;;  %8675 = vmatprep.subr.bf16.mxu1 %v10758_v34  ;;  %v10733_v32 = vcombine.low %v3803_v26, %v3807_v7  ;;  %v10861_v34 = vcombine.low %v3931_v41, %v3935_v1  ;;  %v11963_v16 = vld [vmem:[#allocation13 + $0x30] ss:$8 sps:$4 sm:$0xff]   ;;  %v6164_v26 = vadd.f32 %v13649_v60, %v13647_v18  ;;  %v11974_v41 = vld [vmem:[#allocation13 + $0x124] ss:$8 sps:$4 sm:$0xff]   ;;  %v11972_v18 = vld [vmem:[#allocation13 + $0x120] ss:$8 sps:$4 sm:$0xff]  }
 0x595   :  { %8718 = vmatprep.subr.bf16.mxu0 %v10886_v23  ;;  %v11944_v23 = vld [vmem:[#allocation13 + $0x174] ss:$8 sps:$4 sm:$0xff]   ;;  %v8804_v19 = vmax.f32 %v8788_v31, 0.0  ;;  %v8796_v48 = vmax.f32 %v8780_v46, 0.0  ;;  %v8750_v31 = vrot.slane %v13744_v30, %v8749_v35  ;;  %v11993_v35 = vld [vmem:[#allocation13 + $0xe0] ss:$8 sps:$4 sm:$0xff]  }
 0x597   :  { %8676 = vmatpush2.bf16.msra.mxu1 %v10757_v5  ;;  %v8816_v47 = vpack.c.bf16 %v8804_v19, %v8796_v48  ;;  %v11945_v5 = vld [vmem:[#allocation13 + $0x60] ss:$8 sps:$4 sm:$0xff]  }
 0x598   :  { %8719 = vmatpush2.bf16.msra.mxu0 %v10885_v33  ;;  %8677 = vmatprep.subr.bf16.mxu1 %v10750_v21  ;;  %v11953_v33 = vld [vmem:[#allocation13 + $0x54] ss:$8 sps:$4 sm:$0xff]   ;;  %v8384_v21 = vpop.f32.mrf.mxu0 }
 0x599   :  { %8720 = vmatprep.subr.bf16.mxu0 %v10878_v52  ;;  %v11951_v52 = vld [vmem:[#allocation13 + $0x50] ss:$8 sps:$4 sm:$0xff]   ;;  %v8385_v7 = vadd.f32 %v8384_v21, %v13645_v14  ;;  %v11977_v14 = vld [vmem:[#allocation13 + $0x14] ss:$8 sps:$4 sm:$0xff]   ;;  %v11986_v21 = vld [vmem:[#allocation13 + $0x104] ss:$8 sps:$4 sm:$0xff]  }
 0x59b   :  { %8678 = vmatpush2.bf16.msra.mxu1 %v10749_v51  ;;  %v11968_v51 = vld [vmem:[#allocation13 + $0x134] ss:$8 sps:$4 sm:$0xff]  }
 0x59c   :  { %8721 = vmatpush2.bf16.msra.mxu0 %v10877_v50  ;;  %8679 = vmatprep.subr.bf16.mxu1 %v10742_v49  ;;  %v6125_v50 = vadd.f32 %v13664_v25, %v13643_v9  ;;  %v11966_v49 = vld [vmem:[#allocation13 + $0x130] ss:$8 sps:$4 sm:$0xff]   ;;  %v8753_v9 = vsub.s32 3, %v13737_v63  ;;  %v11969_v25 = vld [vmem:[#allocation13 + $0x20] ss:$8 sps:$4 sm:$0xff]  }
 0x59d   :  { %8722 = vmatprep.subr.bf16.mxu0 %v10870_v29  ;;  %v11971_v29 = vld [vmem:[#allocation13 + $0x24] ss:$8 sps:$4 sm:$0xff]  }
 0x59f   :  { %8680 = vmatpush2.bf16.msra.mxu1 %v10741_v6 }
 0x5a0   :  { %8723 = vmatpush2.bf16.msra.mxu0 %v10869_v10  ;;  %8681 = vmatprep.subr.bf16.mxu1 %v10734_v58  ;;  %v6168_v10 = vadd.f32 %v13666_v0, %v6125_v50 }
 0x5a1   :  { %8724 = vmatprep.subr.bf16.mxu0 %v10862_v62 }
 0x5a3   :  { %8682 = vmatpush2.bf16.msra.mxu1 %v10733_v32 }
 0x5a4   :  { %8725 = vmatpush2.bf16.msra.mxu0 %v10861_v34  ;;  %9591 = vmatprep.subr.bf16.mxu1 %v11941_v37  ;;  %v11980_v34 = vld [vmem:[#allocation13 + $0x114] ss:$8 sps:$4 sm:$0xff]  }
 0x5a5   :  { %9634 = vmatprep.subr.bf16.mxu0 %v11944_v23 }
 0x5a6   :  { %8684 = vmatmul.mubr.bf16.vlgmr.msra.gmra.mxu1 %v13714_v39  ;;  %v8386_v39 = vpop.f32.mrf.mxu0 }
 0x5a7   :  { %8727 = vmatmul.mubr.bf16.vlgmr.msra.gmra.mxu0 %v13732_v17  ;;  %9592 = vmatpush1.bf16.msra.mxu1 %v11939_v12  ;;  %v11957_v17 = vld [vmem:[#allocation13 + $0x40] ss:$8 sps:$4 sm:$0xff]   ;;  %v8387_v2 = vadd.f32 %v8386_v39, %v6164_v26  ;;  %v8754_v12 = vrot.slane %v13744_v30, %v8753_v9  ;;  %v11995_v26 = vld [vmem:[#allocation13 + $0xe4] ss:$8 sps:$4 sm:$0xff]  }
 0x5a8   :  { %9623 = vmatprep.mubr.bf16.mxu1 %v8816_v47  ;;  %9635 = vmatpush1.bf16.msra.mxu0 %v11942_v36  ;;  %v8388_v56 = vpop.f32.mrf.mxu0  ;;  %v11975_v36 = vld [vmem:[#allocation13 + $0x10] ss:$8 sps:$4 sm:$0xff]   ;;  %v11984_v39 = vld [vmem:[#allocation13 + $0x100] ss:$8 sps:$4 sm:$0xff]   ;;  %v12007_v9 = vld [vmem:[#allocation13 + $0xc4] ss:$8 sps:$4 sm:$0xff]  }
 0x5a9   :  { %9593 = vmatprep.subr.bf16.mxu1 %v11947_v42  ;;  %9636 = vmatprep.subr.bf16.mxu0 %v11950_v44  ;;  %v8389_v60 = vadd.f32 %v8388_v56, %v13651_v55  ;;  %v11978_v55 = vld [vmem:[#allocation13 + $0x110] ss:$8 sps:$4 sm:$0xff]   ;;  %v11983_v44 = vld [vmem:[#allocation13 + $0x4] ss:$8 sps:$4 sm:$0xff]   ;;  %v11992_v56 = vld [vmem:[#allocation13 + $0x1f4] ss:$8 sps:$4 sm:$0xff]  }
 0x5aa   :  { %v8390_v54 = vpop.f32.mrf.mxu0 }
 0x5ab   :  { %9594 = vmatpush1.bf16.msra.mxu1 %v11945_v5  ;;  %v8391_v23 = vadd.f32 %v8390_v54, %v6168_v10  ;;  %v11998_v54 = vld [vmem:[#allocation13 + $0x1e4] ss:$8 sps:$4 sm:$0xff]   ;;  %v12005_v10 = vld [vmem:[#allocation13 + $0xc0] ss:$8 sps:$4 sm:$0xff]  }
 0x5ac   :  { %9637 = vmatpush1.bf16.msra.mxu0 %v11948_v59  ;;  %9595 = vmatprep.subr.bf16.mxu1 %v11953_v33 }
 0x5ad   :  { %9638 = vmatprep.subr.bf16.mxu0 %v11956_v4 }
 0x5af   :  { %9596 = vmatpush1.bf16.msra.mxu1 %v11951_v52 }
 0x5b0   :  { %9639 = vmatpush1.bf16.msra.mxu0 %v11954_v57  ;;  %9597 = vmatprep.subr.bf16.mxu1 %v11959_v11  ;;  %v11981_v11 = vld [vmem:[#allocation13] ss:$8 sps:$4 sm:$0xff]  }
 0x5b1   :  { %9640 = vmatprep.subr.bf16.mxu0 %v11962_v3  ;;  %v11989_v3 = vld [vmem:[#allocation13 + $0xf4] ss:$8 sps:$4 sm:$0xff]  }
 0x5b3   :  { %9598 = vmatpush1.bf16.msra.mxu1 %v11957_v17 }
 0x5b4   :  { %9641 = vmatpush1.bf16.msra.mxu0 %v11960_v28  ;;  %9599 = vmatprep.subr.bf16.mxu1 %v11965_v38 }
 0x5b5   :  { %9642 = vmatprep.subr.bf16.mxu0 %v11968_v51 }
 0x5b6   :  { %v8427_v1 = vpop.f32.mrf.mxu1 }
 0x5b7   :  { %v8428_v6 = vadd.f32 %v8427_v1, %v8385_v7  ;;  %v8470_v20 = vpop.f32.mrf.mxu0  ;;  %9600 = vmatpush1.bf16.msra.mxu1 %v11963_v16  ;;  %v12001_v1 = vld [vmem:[#allocation13 + $0xd4] ss:$8 sps:$4 sm:$0xff]  }
 0x5b8   :  { %v8429_v58 = vpop.f32.mrf.mxu1  ;;  %9643 = vmatpush1.bf16.msra.mxu0 %v11966_v49  ;;  %9601 = vmatprep.subr.bf16.mxu1 %v11971_v29  ;;  %v11987_v49 = vld [vmem:[#allocation13 + $0xf0] ss:$8 sps:$4 sm:$0xff]  }
 0x5b9   :  { %v8471_v62 = vadd.f32 %v8470_v20, %v8428_v6  ;;  %v8430_v32 = vadd.f32 %v8429_v58, %v8387_v2  ;;  %v8472_v46 = vpop.f32.mrf.mxu0  ;;  %9644 = vmatprep.subr.bf16.mxu0 %v11974_v41  ;;  %v11990_v29 = vld [vmem:[#allocation13 + $0x1f0] ss:$8 sps:$4 sm:$0xff]   ;;  %v11996_v41 = vld [vmem:[#allocation13 + $0x1e0] ss:$8 sps:$4 sm:$0xff]   ;;  %v12004_v2 = vld [vmem:[#allocation13 + $0x1d4] ss:$8 sps:$4 sm:$0xff]  }
 0x5ba   :  { %v8431_v37 = vpop.f32.mrf.mxu1  ;;  %v11999_v6 = vld [vmem:[#allocation13 + $0xd0] ss:$8 sps:$4 sm:$0xff]   ;;  %v12008_v58 = vld [vmem:[#allocation13 + $0x1c0] ss:$8 sps:$4 sm:$0xff]  }
 0x5bb   :  { %v8473_v19 = vadd.f32 %v8472_v46, %v8430_v32  ;;  %v8432_v0 = vadd.f32 %v8431_v37, %v8389_v60  ;;  %v8474_v48 = vpop.f32.mrf.mxu0  ;;  %9602 = vmatpush1.bf16.msra.mxu1 %v11969_v25  ;;  %v8781_v47 = vadd.f32 %v8750_v31, %v8471_v62  ;;  %v12002_v20 = vld [vmem:[#allocation13 + $0x1d0] ss:$8 sps:$4 sm:$0xff]   ;;  %v12010_v25 = vld [vmem:[#allocation13 + $0x1c4] ss:$8 sps:$4 sm:$0xff]   ;;  %v12017_v46 = vld [vmem:[#allocation13 + $0xa0] ss:$8 sps:$4 sm:$0xff]  }
 0x5bc   :  { %v8433_v42 = vpop.f32.mrf.mxu1  ;;  %9645 = vmatpush1.bf16.msra.mxu0 %v11972_v18  ;;  %9603 = vmatprep.subr.bf16.mxu1 %v11977_v14  ;;  %v12013_v18 = vld [vmem:[#allocation13 + $0xb4] ss:$8 sps:$4 sm:$0xff]   ;;  %v12011_v60 = vld [vmem:[#allocation13 + $0xb0] ss:$8 sps:$4 sm:$0xff]   ;;  %v12022_v32 = vld [vmem:[#allocation13 + $0x1a4] ss:$8 sps:$4 sm:$0xff]  }
 0x5bd   :  { %v8475_v5 = vadd.f32 %v8474_v48, %v8432_v0  ;;  %v8434_v59 = vadd.f32 %v8433_v42, %v8391_v23  ;;  %v8476_v33 = vpop.f32.mrf.mxu0  ;;  %9646 = vmatprep.subr.bf16.mxu0 %v11980_v34  ;;  %v8782_v4 = vadd.f32 %v8754_v12, %v8473_v19  ;;  %v8797_v17 = vmax.f32 %v8781_v47, 0.0  ;;  %v12016_v14 = vld [vmem:[#allocation13 + $0x1b4] ss:$8 sps:$4 sm:$0xff]   ;;  %v12014_v62 = vld [vmem:[#allocation13 + $0x1b0] ss:$8 sps:$4 sm:$0xff]  }
 0x5be   :  { %v12020_v34 = vld [vmem:[#allocation13 + $0x1a0] ss:$8 sps:$4 sm:$0xff]   ;;  %v12025_v37 = vld [vmem:[#allocation13 + $0x94] ss:$8 sps:$4 sm:$0xff]   ;;  %v12023_v19 = vld [vmem:[#allocation13 + $0x90] ss:$8 sps:$4 sm:$0xff]  }
 0x5bf   :  { %v8789_v52 = vadd.f32 %v8750_v31, %v8475_v5  ;;  %v8477_v57 = vadd.f32 %v8476_v33, %v8434_v59  ;;  %9604 = vmatpush1.bf16.msra.mxu1 %v11975_v36  ;;  %v8798_v51 = vmax.f32 %v8782_v4, 0.0  ;;  %v12019_v31 = vld [vmem:[#allocation13 + $0xa4] ss:$8 sps:$4 sm:$0xff]   ;;  %v12028_v23 = vld [vmem:[#allocation13 + $0x194] ss:$8 sps:$4 sm:$0xff]  }
 0x5c0   :  { %9647 = vmatpush1.bf16.msra.mxu0 %v11978_v55  ;;  %9605 = vmatprep.subr.bf16.mxu1 %v11983_v44  ;;  %v12031_v0 = vld [vmem:[#allocation13 + $0x84] ss:$8 sps:$4 sm:$0xff]   ;;  %v12029_v36 = vld [vmem:[#allocation13 + $0x80] ss:$8 sps:$4 sm:$0xff]   ;;  %v12037_v55 = vld [vmem:[#allocation13 + $0x274] ss:$8 sps:$4 sm:$0xff]  }
 0x5c1   :  { %v8805_v28 = vmax.f32 %v8789_v52, 0.0  ;;  %v8790_v38 = vadd.f32 %v8754_v12, %v8477_v57  ;;  %9648 = vmatprep.subr.bf16.mxu0 %v11986_v21  ;;  %v12026_v12 = vld [vmem:[#allocation13 + $0x190] ss:$8 sps:$4 sm:$0xff]   ;;  %v12034_v48 = vld [vmem:[#allocation13 + $0x184] ss:$8 sps:$4 sm:$0xff]  }
 0x5c2   :  { %v12032_v42 = vld [vmem:[#allocation13 + $0x180] ss:$8 sps:$4 sm:$0xff]   ;;  %v12085_v44 = vld [vmem:[#allocation13 + $0x374] ss:$8 sps:$4 sm:$0xff]   ;;  %v12035_v47 = vld [vmem:[#allocation13 + $0x270] ss:$8 sps:$4 sm:$0xff]  }
 0x5c3   :  { %v13785_v16 = vpack.c.bf16 %v8805_v28, %v8797_v17  ;;  %v8806_v50 = vmax.f32 %v8790_v38, 0.0  ;;  %9606 = vmatpush1.bf16.msra.mxu1 %v11981_v11  ;;  %v12040_v5 = vld [vmem:[#allocation13 + $0x264] ss:$8 sps:$4 sm:$0xff]   ;;  %v12083_v59 = vld [vmem:[#allocation13 + $0x370] ss:$8 sps:$4 sm:$0xff]  }
 0x5c4   :  { %9649 = vmatpush1.bf16.msra.mxu0 %v11984_v39  ;;  %9607 = vmatprep.subr.bf16.mxu1 %v11989_v3  ;;  %v12088_v33 = vld [vmem:[#allocation13 + $0x364] ss:$8 sps:$4 sm:$0xff]   ;;  %v12038_v21 = vld [vmem:[#allocation13 + $0x260] ss:$8 sps:$4 sm:$0xff]   ;;  %v12043_v4 = vld [vmem:[#allocation13 + $0x254] ss:$8 sps:$4 sm:$0xff]  }
 0x5c5   :  { %9650 = vmatprep.subr.bf16.mxu0 %v11992_v56  ;;  %v8818_v7 = vpack.c.bf16 %v8806_v50, %v8798_v51  ;;  %v12086_v52 = vld [vmem:[#allocation13 + $0x360] ss:$8 sps:$4 sm:$0xff]   ;;  %v12091_v57 = vld [vmem:[#allocation13 + $0x354] ss:$8 sps:$4 sm:$0xff]   ;;  %v12041_v11 = vld [vmem:[#allocation13 + $0x250] ss:$8 sps:$4 sm:$0xff]  }
 0x5c6   :  { %v12046_v39 = vld [vmem:[#allocation13 + $0x244] ss:$8 sps:$4 sm:$0xff]   ;;  %v12089_v3 = vld [vmem:[#allocation13 + $0x350] ss:$8 sps:$4 sm:$0xff]   ;;  %v12049_v28 = vld [vmem:[#allocation13 + $0x234] ss:$8 sps:$4 sm:$0xff]  }
 0x5c7   :  { %9608 = vmatpush2.bf16.msra.mxu1 %v11987_v49  ;;  %9666 = vmatprep.mubr.bf16.mxu0 %v8818_v7  ;;  %v12094_v17 = vld [vmem:[#allocation13 + $0x344] ss:$8 sps:$4 sm:$0xff]   ;;  %v12092_v38 = vld [vmem:[#allocation13 + $0x340] ss:$8 sps:$4 sm:$0xff]   ;;  %v12097_v56 = vld [vmem:[#allocation13 + $0x334] ss:$8 sps:$4 sm:$0xff]  }
 0x5c8   :  { %9651 = vmatpush2.bf16.msra.mxu0 %v11990_v29  ;;  %9609 = vmatprep.subr.bf16.mxu1 %v11995_v26  ;;  %v12047_v51 = vld [vmem:[#allocation13 + $0x230] ss:$8 sps:$4 sm:$0xff]   ;;  %v12100_v49 = vld [vmem:[#allocation13 + $0x324] ss:$8 sps:$4 sm:$0xff]   ;;  %v12050_v29 = vld [vmem:[#allocation13 + $0x220] ss:$8 sps:$4 sm:$0xff]  }
 0x5c9   :  { %9652 = vmatprep.subr.bf16.mxu0 %v11998_v54  ;;  %v12095_v50 = vld [vmem:[#allocation13 + $0x330] ss:$8 sps:$4 sm:$0xff]   ;;  %v12055_v26 = vld [vmem:[#allocation13 + $0x214] ss:$8 sps:$4 sm:$0xff]   ;;  %v12098_v7 = vld [vmem:[#allocation13 + $0x320] ss:$8 sps:$4 sm:$0xff]  }
 0x5ca   :  { %v12103_v54 = vld [vmem:[#allocation13 + $0x314] ss:$8 sps:$4 sm:$0xff]  }
 0x5cb   :  { %9610 = vmatpush2.bf16.msra.mxu1 %v11993_v35  ;;  %v12053_v35 = vld [vmem:[#allocation13 + $0x210] ss:$8 sps:$4 sm:$0xff]  }
 0x5cc   :  { %9653 = vmatpush2.bf16.msra.mxu0 %v11996_v41  ;;  %9611 = vmatprep.subr.bf16.mxu1 %v12001_v1  ;;  %v12058_v41 = vld [vmem:[#allocation13 + $0x204] ss:$8 sps:$4 sm:$0xff]   ;;  %v12101_v1 = vld [vmem:[#allocation13 + $0x310] ss:$8 sps:$4 sm:$0xff]  }
 0x5cd   :  { %9654 = vmatprep.subr.bf16.mxu0 %v12004_v2  ;;  %v12106_v2 = vld [vmem:[#allocation13 + $0x304] ss:$8 sps:$4 sm:$0xff]  }
 0x5cf   :  { %9612 = vmatpush2.bf16.msra.mxu1 %v11999_v6  ;;  %v12056_v6 = vld [vmem:[#allocation13 + $0x200] ss:$8 sps:$4 sm:$0xff]  }
 0x5d0   :  { %9655 = vmatpush2.bf16.msra.mxu0 %v12002_v20  ;;  %9613 = vmatprep.subr.bf16.mxu1 %v12007_v9  ;;  %v12061_v20 = vld [vmem:[#allocation13 + $0x2f4] ss:$8 sps:$4 sm:$0xff]   ;;  %v12104_v9 = vld [vmem:[#allocation13 + $0x300] ss:$8 sps:$4 sm:$0xff]  }
 0x5d1   :  { %9656 = vmatprep.subr.bf16.mxu0 %v12010_v25  ;;  %v12109_v25 = vld [vmem:[#allocation13 + $0x3f4] ss:$8 sps:$4 sm:$0xff]  }
 0x5d3   :  { %9614 = vmatpush2.bf16.msra.mxu1 %v12005_v10  ;;  %v12059_v10 = vld [vmem:[#allocation13 + $0x2f0] ss:$8 sps:$4 sm:$0xff]  }
 0x5d4   :  { %9657 = vmatpush2.bf16.msra.mxu0 %v12008_v58  ;;  %9615 = vmatprep.subr.bf16.mxu1 %v12013_v18  ;;  %v12064_v58 = vld [vmem:[#allocation13 + $0x2e4] ss:$8 sps:$4 sm:$0xff]   ;;  %v12107_v18 = vld [vmem:[#allocation13 + $0x3f0] ss:$8 sps:$4 sm:$0xff]  }
 0x5d5   :  { %9658 = vmatprep.subr.bf16.mxu0 %v12016_v14  ;;  %v12112_v14 = vld [vmem:[#allocation13 + $0x3e4] ss:$8 sps:$4 sm:$0xff]  }
 0x5d7   :  { %9616 = vmatpush2.bf16.msra.mxu1 %v12011_v60  ;;  %v12062_v60 = vld [vmem:[#allocation13 + $0x2e0] ss:$8 sps:$4 sm:$0xff]  }
 0x5d8   :  { %9659 = vmatpush2.bf16.msra.mxu0 %v12014_v62  ;;  %9617 = vmatprep.subr.bf16.mxu1 %v12019_v31  ;;  %v12067_v62 = vld [vmem:[#allocation13 + $0x2d4] ss:$8 sps:$4 sm:$0xff]   ;;  %v12110_v31 = vld [vmem:[#allocation13 + $0x3e0] ss:$8 sps:$4 sm:$0xff]  }
 0x5d9   :  { %9660 = vmatprep.subr.bf16.mxu0 %v12022_v32  ;;  %v12115_v32 = vld [vmem:[#allocation13 + $0x3d4] ss:$8 sps:$4 sm:$0xff]  }
 0x5db   :  { %9618 = vmatpush2.bf16.msra.mxu1 %v12017_v46  ;;  %v12065_v46 = vld [vmem:[#allocation13 + $0x2d0] ss:$8 sps:$4 sm:$0xff]  }
 0x5dc   :  { %9661 = vmatpush2.bf16.msra.mxu0 %v12020_v34  ;;  %9619 = vmatprep.subr.bf16.mxu1 %v12025_v37  ;;  %v12070_v34 = vld [vmem:[#allocation13 + $0x2c4] ss:$8 sps:$4 sm:$0xff]   ;;  %v12113_v37 = vld [vmem:[#allocation13 + $0x3d0] ss:$8 sps:$4 sm:$0xff]  }
 0x5dd   :  { %9662 = vmatprep.subr.bf16.mxu0 %v12028_v23  ;;  %v12118_v23 = vld [vmem:[#allocation13 + $0x3c4] ss:$8 sps:$4 sm:$0xff]  }
 0x5df   :  { %9620 = vmatpush2.bf16.msra.mxu1 %v12023_v19  ;;  %v12068_v19 = vld [vmem:[#allocation13 + $0x2c0] ss:$8 sps:$4 sm:$0xff]  }
 0x5e0   :  { %9663 = vmatpush2.bf16.msra.mxu0 %v12026_v12  ;;  %9621 = vmatprep.subr.bf16.mxu1 %v12031_v0  ;;  %v12073_v12 = vld [vmem:[#allocation13 + $0x2b4] ss:$8 sps:$4 sm:$0xff]   ;;  %v12116_v0 = vld [vmem:[#allocation13 + $0x3c0] ss:$8 sps:$4 sm:$0xff]  }
 0x5e1   :  { %9664 = vmatprep.subr.bf16.mxu0 %v12034_v48  ;;  %v12121_v48 = vld [vmem:[#allocation13 + $0x3b4] ss:$8 sps:$4 sm:$0xff]  }
 0x5e3   :  { %9622 = vmatpush2.bf16.msra.mxu1 %v12029_v36  ;;  %v12071_v36 = vld [vmem:[#allocation13 + $0x2b0] ss:$8 sps:$4 sm:$0xff]  }
 0x5e4   :  { %9665 = vmatpush2.bf16.msra.mxu0 %v12032_v42  ;;  %9677 = vmatprep.subr.bf16.mxu1 %v12037_v55  ;;  %v12076_v42 = vld [vmem:[#allocation13 + $0x2a4] ss:$8 sps:$4 sm:$0xff]   ;;  %v12119_v55 = vld [vmem:[#allocation13 + $0x3b0] ss:$8 sps:$4 sm:$0xff]  }
 0x5e5   :  { %9720 = vmatprep.subr.bf16.mxu0 %v12085_v44  ;;  %v12124_v44 = vld [vmem:[#allocation13 + $0x3a4] ss:$8 sps:$4 sm:$0xff]  }
 0x5e6   :  { %9624 = vmatmul.mubr.bf16.vlgmr.msra.gmra.mxu1 %v13755_v53  ;;  %v12044_v53 = vld [vmem:[#allocation13 + $0x240] ss:$8 sps:$4 sm:$0xff]  }
 0x5e7   :  { %9667 = vmatmul.mubr.bf16.vlgmr.msra.gmra.mxu0 %v13785_v16  ;;  %9678 = vmatpush1.bf16.msra.mxu1 %v12035_v47  ;;  %v12052_v16 = vld [vmem:[#allocation13 + $0x224] ss:$8 sps:$4 sm:$0xff]   ;;  %v12074_v47 = vld [vmem:[#allocation13 + $0x2a0] ss:$8 sps:$4 sm:$0xff]  }
 0x5e8   :  { %9679 = vmatprep.subr.bf16.mxu1 %v12040_v5  ;;  %9721 = vmatpush1.bf16.msra.mxu0 %v12083_v59  ;;  %v12079_v59 = vld [vmem:[#allocation13 + $0x294] ss:$8 sps:$4 sm:$0xff]  }
 0x5e9   :  { %9722 = vmatprep.subr.bf16.mxu0 %v12088_v33  ;;  %v12122_v33 = vld [vmem:[#allocation13 + $0x3a0] ss:$8 sps:$4 sm:$0xff]  }
 0x5eb   :  { %9680 = vmatpush1.bf16.msra.mxu1 %v12038_v21  ;;  %v12127_v21 = vld [vmem:[#allocation13 + $0x394] ss:$8 sps:$4 sm:$0xff]  }
 0x5ec   :  { %9681 = vmatprep.subr.bf16.mxu1 %v12043_v4  ;;  %9723 = vmatpush1.bf16.msra.mxu0 %v12086_v52  ;;  %v12077_v4 = vld [vmem:[#allocation13 + $0x290] ss:$8 sps:$4 sm:$0xff]  }
 0x5ed   :  { %9724 = vmatprep.subr.bf16.mxu0 %v12091_v57 }
 0x5ef   :  { %9682 = vmatpush1.bf16.msra.mxu1 %v12041_v11  ;;  %v12082_v11 = vld [vmem:[#allocation13 + $0x284] ss:$8 sps:$4 sm:$0xff]  }
 0x5f0   :  { %9683 = vmatprep.subr.bf16.mxu1 %v12046_v39  ;;  %9725 = vmatpush1.bf16.msra.mxu0 %v12089_v3  ;;  %v12125_v39 = vld [vmem:[#allocation13 + $0x390] ss:$8 sps:$4 sm:$0xff]   ;;  %v12130_v3 = vld [vmem:[#allocation13 + $0x384] ss:$8 sps:$4 sm:$0xff]  }
 0x5f1   :  { %9726 = vmatprep.subr.bf16.mxu0 %v12094_v17  ;;  %v12080_v17 = vld [vmem:[#allocation13 + $0x280] ss:$8 sps:$4 sm:$0xff]  }
 0x5f3   :  { %9684 = vmatpush1.bf16.msra.mxu1 %v12044_v53 }
 0x5f4   :  { %9685 = vmatprep.subr.bf16.mxu1 %v12049_v28  ;;  %9727 = vmatpush1.bf16.msra.mxu0 %v12092_v38  ;;  %v12128_v38 = vld [vmem:[#allocation13 + $0x380] ss:$8 sps:$4 sm:$0xff]  }
 0x5f5   :  { %9728 = vmatprep.subr.bf16.mxu0 %v12097_v56 }
 0x5f6   :  { %v8513_v5 = vpop.f32.mrf.mxu1 }
 0x5f7   :  { %9686 = vmatpush1.bf16.msra.mxu1 %v12047_v51  ;;  %v8556_v52 = vpop.f32.mrf.mxu0  ;;  %v8514_v56 = vadd.f32 %v8513_v5, %v13681_v27  ;;  %v8769_v5 = vsub.s32 7, %v13737_v63 }
 0x5f8   :  { %9687 = vmatprep.subr.bf16.mxu1 %v12052_v16  ;;  %9729 = vmatpush1.bf16.msra.mxu0 %v12095_v50  ;;  %v8515_v57 = vpop.f32.mrf.mxu1  ;;  %v8757_v16 = vsub.s32 4, %v13737_v63 }
 0x5f9   :  { %9730 = vmatprep.subr.bf16.mxu0 %v12100_v49  ;;  %v8558_v53 = vpop.f32.mrf.mxu0  ;;  %v8516_v51 = vadd.f32 %v8515_v57, %v13687_v40 }
 0x5fa   :  { %v8517_v28 = vpop.f32.mrf.mxu1  ;;  %v8758_v27 = vrot.slane %v13744_v30, %v8757_v16 }
 0x5fb   :  { %9688 = vmatpush1.bf16.msra.mxu1 %v12050_v29  ;;  %v8560_v50 = vpop.f32.mrf.mxu0  ;;  %v8557_v29 = vadd.f32 %v8556_v52, %v8514_v56 }
 0x5fc   :  { %9689 = vmatprep.subr.bf16.mxu1 %v12055_v26  ;;  %9731 = vmatpush1.bf16.msra.mxu0 %v12098_v7  ;;  %v8519_v49 = vpop.f32.mrf.mxu1  ;;  %v8518_v26 = vadd.f32 %v8517_v28, %v13690_v45  ;;  %v8761_v7 = vsub.s32 5, %v13737_v63 }
 0x5fd   :  { %9732 = vmatprep.subr.bf16.mxu0 %v12103_v54 }
 0x5ff   :  { %9690 = vmatpush1.bf16.msra.mxu1 %v12053_v35  ;;  %v8559_v35 = vadd.f32 %v8558_v53, %v8516_v51 }
 0x600   :  { %9691 = vmatprep.subr.bf16.mxu1 %v12058_v41  ;;  %9733 = vmatpush1.bf16.msra.mxu0 %v12101_v1  ;;  %v8520_v41 = vadd.f32 %v8519_v49, %v13693_v43 }
 0x601   :  { %9734 = vmatprep.subr.bf16.mxu0 %v12106_v2  ;;  %v8562_v2 = vpop.f32.mrf.mxu0 }
 0x603   :  { %9692 = vmatpush1.bf16.msra.mxu1 %v12056_v6  ;;  %v8561_v6 = vadd.f32 %v8560_v50, %v8518_v26 }
 0x604   :  { %9693 = vmatprep.subr.bf16.mxu1 %v12061_v20  ;;  %9735 = vmatpush1.bf16.msra.mxu0 %v12104_v9  ;;  %v8762_v9 = vrot.slane %v13744_v30, %v8761_v7 }
 0x605   :  { %9736 = vmatprep.subr.bf16.mxu0 %v12109_v25 }
 0x607   :  { %9694 = vmatpush2.bf16.msra.mxu1 %v12059_v10  ;;  %v8563_v10 = vadd.f32 %v8562_v2, %v8520_v41 }
 0x608   :  { %9695 = vmatprep.subr.bf16.mxu1 %v12064_v58  ;;  %9737 = vmatpush2.bf16.msra.mxu0 %v12107_v18 }
 0x609   :  { %9738 = vmatprep.subr.bf16.mxu0 %v12112_v14 }
 0x60b   :  { %9696 = vmatpush2.bf16.msra.mxu1 %v12062_v60 }
 0x60c   :  { %9697 = vmatprep.subr.bf16.mxu1 %v12067_v62  ;;  %9739 = vmatpush2.bf16.msra.mxu0 %v12110_v31 }
 0x60d   :  { %9740 = vmatprep.subr.bf16.mxu0 %v12115_v32 }
 0x60f   :  { %9698 = vmatpush2.bf16.msra.mxu1 %v12065_v46 }
 0x610   :  { %9699 = vmatprep.subr.bf16.mxu1 %v12070_v34  ;;  %9741 = vmatpush2.bf16.msra.mxu0 %v12113_v37 }
 0x611   :  { %9742 = vmatprep.subr.bf16.mxu0 %v12118_v23 }
 0x613   :  { %9700 = vmatpush2.bf16.msra.mxu1 %v12068_v19 }
 0x614   :  { %9701 = vmatprep.subr.bf16.mxu1 %v12073_v12  ;;  %9743 = vmatpush2.bf16.msra.mxu0 %v12116_v0 }
 0x615   :  { %9744 = vmatprep.subr.bf16.mxu0 %v12121_v48 }
 0x617   :  { %9702 = vmatpush2.bf16.msra.mxu1 %v12071_v36  ;;  %v8765_v36 = vsub.s32 6, %v13737_v63 }
 0x618   :  { %9703 = vmatprep.subr.bf16.mxu1 %v12076_v42  ;;  %9745 = vmatpush2.bf16.msra.mxu0 %v12119_v55 }
 0x619   :  { %9746 = vmatprep.subr.bf16.mxu0 %v12124_v44 }
 0x61b   :  { %9704 = vmatpush2.bf16.msra.mxu1 %v12074_v47 }
 0x61c   :  { %9705 = vmatprep.subr.bf16.mxu1 %v12079_v59  ;;  %9747 = vmatpush2.bf16.msra.mxu0 %v12122_v33 }
 0x61d   :  { %9748 = vmatprep.subr.bf16.mxu0 %v12127_v21 }
 0x61f   :  { %9706 = vmatpush2.bf16.msra.mxu1 %v12077_v4  ;;  %v12143_v4 = vld [vmem:[#allocation11] sm:$0xff] }
 0x620   :  { %9707 = vmatprep.subr.bf16.mxu1 %v12082_v11  ;;  %9749 = vmatpush2.bf16.msra.mxu0 %v12125_v39  ;;  %v8766_v52 = vrot.slane %v12143_v4, %v8765_v36 }
 0x621   :  { %9750 = vmatprep.subr.bf16.mxu0 %v12130_v3 }
 0x623   :  { %9708 = vmatpush2.bf16.msra.mxu1 %v12080_v17  ;;  %v8770_v17 = vrot.slane %v12143_v4, %v8769_v5 }
 0x624   :  { %9751 = vmatpush2.bf16.msra.mxu0 %v12128_v38 }
 0x626   :  { %v8599_v54 = vpop.f32.mrf.mxu1 }
 0x627   :  { %v8600_v1 = vadd.f32 %v8599_v54, %v8557_v29 }
 0x628   :  { %v8601_v40 = vpop.f32.mrf.mxu1 }
 0x629   :  { %v8602_v20 = vadd.f32 %v8601_v40, %v8559_v35  ;;  %v8783_v58 = vadd.f32 %v8758_v27, %v8600_v1 }
 0x62a   :  { %v8603_v25 = vpop.f32.mrf.mxu1 }
 0x62b   :  { %v8604_v18 = vadd.f32 %v8603_v25, %v8561_v6  ;;  %v8784_v14 = vadd.f32 %v8762_v9, %v8602_v20  ;;  %v8799_v31 = vmax.f32 %v8783_v58, 0.0 }
 0x62c   :  { %v8605_v45 = vpop.f32.mrf.mxu1 }
 0x62d   :  { %v8791_v60 = vadd.f32 %v8758_v27, %v8604_v18  ;;  %v8606_v62 = vadd.f32 %v8605_v45, %v8563_v10  ;;  %v8800_v46 = vmax.f32 %v8784_v14, 0.0  ;;  %v9778_v10 = vld [vmem:[#allocation14] sm:$0x3] }
 0x62f   :  { %v8807_v32 = vmax.f32 %v8791_v60, 0.0  ;;  %v8792_v43 = vadd.f32 %v8762_v9, %v8606_v62  ;;  %v9783_v62 = vrot.slane %v9778_v10, %v13740_v15 }
 0x631   :  { %v8819_v34 = vpack.c.bf16 %v8807_v32, %v8799_v31  ;;  %v8808_v37 = vmax.f32 %v8792_v43, 0.0 }
 0x633   :  { %v8820_v23 = vpack.c.bf16 %v8808_v37, %v8800_v46  ;;  %v9798_v37 = vld [vmem:[#allocation16] sm:$0x3] }
 0x635   :  { %9709 = vmatprep.mubr.bf16.mxu1 %v8820_v23 }
 0x636   :  { %9710 = vmatmul.mubr.bf16.vlgmr.msra.gmra.mxu1 %v8819_v34  ;;  %v9787_v34 = vrot.slane %v9778_v10, %v13766_v61 }
 0x637   :  { %v8642_v19 = vpop.f32.mrf.mxu0 }
 0x638   :  { %v8643_v0 = vadd.f32 %v8642_v19, %v13703_v8 }
 0x639   :  { %v8644_v12 = vpop.f32.mrf.mxu0 }
 0x63a   :  { %v8645_v55 = vadd.f32 %v8644_v12, %v13705_v22 }
 0x63b   :  { %v8646_v30 = vpop.f32.mrf.mxu0 }
 0x63c   :  { %v8647_v33 = vadd.f32 %v8646_v30, %v13707_v13 }
 0x63d   :  { %v8648_v48 = vpop.f32.mrf.mxu0 }
 0x63e   :  { %v8649_v8 = vadd.f32 %v8648_v48, %v13709_v24 }
 0x666   :  { %v8685_v42 = vpop.f32.mrf.mxu1 }
 0x667   :  { %v8686_v44 = vadd.f32 %v8685_v42, %v8643_v0  ;;  %v8728_v47 = vpop.f32.mrf.mxu0  ;;  %v9803_v42 = vrot.slane %v9798_v37, %v13740_v15 }
 0x668   :  { %v8687_v59 = vpop.f32.mrf.mxu1 }
 0x669   :  { %v8729_v21 = vadd.f32 %v8728_v47, %v8686_v44  ;;  %v8688_v57 = vadd.f32 %v8687_v59, %v8645_v55  ;;  %v8730_v11 = vpop.f32.mrf.mxu0  ;;  %v9807_v55 = vrot.slane %v9798_v37, %v13766_v61  ;;  %v11019_v61 = vld [vmem:[#allocation5] ss:$0 sm:$0xff] }
 0x66a   :  { %v8689_v39 = vpop.f32.mrf.mxu1 }
 0x66b   :  { %v8731_v3 = vadd.f32 %v8730_v11, %v8688_v57  ;;  %v8690_v53 = vadd.f32 %v8689_v39, %v8647_v33  ;;  %v8732_v28 = vpop.f32.mrf.mxu0  ;;  %v8785_v38 = vadd.f32 %v8766_v52, %v8729_v21 }
 0x66c   :  { %v8691_v22 = vpop.f32.mrf.mxu1 }
 0x66d   :  { %v8733_v56 = vadd.f32 %v8732_v28, %v8690_v53  ;;  %v8692_v51 = vadd.f32 %v8691_v22, %v8649_v8  ;;  %v8734_v63 = vpop.f32.mrf.mxu0  ;;  %v8786_v16 = vadd.f32 %v8770_v17, %v8731_v3  ;;  %v8801_v49 = vmax.f32 %v8785_v38, 0.0 }
 0x66f   :  { %v8793_v50 = vadd.f32 %v8766_v52, %v8733_v56  ;;  %v8735_v13 = vadd.f32 %v8734_v63, %v8692_v51  ;;  %v8802_v7 = vmax.f32 %v8786_v16, 0.0 }
 0x671   :  { %v8809_v29 = vmax.f32 %v8793_v50, 0.0  ;;  %v8794_v26 = vadd.f32 %v8770_v17, %v8735_v13 }
 0x673   :  { %v8821_v54 = vpack.c.bf16 %v8809_v29, %v8801_v49  ;;  %v8810_v35 = vmax.f32 %v8794_v26, 0.0 }
 0x675   :  { %v8822_v41 = vpack.c.bf16 %v8810_v35, %v8802_v7 }
 0x677   :  { %9752 = vmatprep.mubr.bf16.mxu0 %v8822_v41 }
 0x678   :  { %9753 = vmatmul.mubr.bf16.vlgmr.msra.gmra.mxu0 %v8821_v54 }
 0x6a6   :  { %v9625_v24 = vpop.f32.mrf.mxu1 }
 0x6a7   :  { %v9668_v2 = vpop.f32.mrf.mxu0 }
 0x6a8   :  { %v9627_v1 = vpop.f32.mrf.mxu1  ;;  %v9669_v58 = vadd.f32 %v9668_v2, %v9625_v24 }
 0x6a9   :  { %v9670_v6 = vpop.f32.mrf.mxu0 }
 0x6aa   :  { %v9629_v27 = vpop.f32.mrf.mxu1  ;;  %v9671_v14 = vadd.f32 %v9670_v6, %v9627_v1 }
 0x6ab   :  { %v9672_v9 = vpop.f32.mrf.mxu0 }
 0x6ac   :  { %v9631_v40 = vpop.f32.mrf.mxu1  ;;  %v9673_v32 = vadd.f32 %v9672_v9, %v9629_v27 }
 0x6ad   :  { %v9674_v18 = vpop.f32.mrf.mxu0 }
 0x6ae   :  { %v9675_v12 = vadd.f32 %v9674_v18, %v9631_v40 }
 0x6f6   :  { %v9711_v20 = vpop.f32.mrf.mxu1 }
 0x6f7   :  { %v9712_v60 = vadd.f32 %v9711_v20, %v9669_v58 }
 0x6f8   :  { %v9713_v25 = vpop.f32.mrf.mxu1 }
 0x6f9   :  { %v9714_v43 = vadd.f32 %v9713_v25, %v9671_v14 }
 0x6fa   :  { %v9715_v45 = vpop.f32.mrf.mxu1 }
 0x6fb   :  { %v9716_v30 = vadd.f32 %v9715_v45, %v9673_v32 }
 0x6fc   :  { %v9717_v23 = vpop.f32.mrf.mxu1 }
 0x6fd   :  { %v9718_v44 = vadd.f32 %v9717_v23, %v9675_v12 }
 0x738   :  { %v9754_v31 = vpop.f32.mrf.mxu0 }
 0x739   :  { %v9755_v46 = vadd.f32 %v9754_v31, %v9712_v60 }
 0x73a   :  { %v9756_v19 = vpop.f32.mrf.mxu0 }
 0x73b   :  { %v9790_v0 = vadd.f32 %v9783_v62, %v9755_v46  ;;  %v9757_v48 = vadd.f32 %v9756_v19, %v9714_v43 }
 0x73c   :  { %v9758_v36 = vpop.f32.mrf.mxu0 }
 0x73d   :  { %v9794_v47 = vmax.f32 %v9790_v0, 0.0  ;;  %v9791_v5 = vadd.f32 %v9787_v34, %v9757_v48  ;;  %v9759_v59 = vadd.f32 %v9758_v36, %v9716_v30 }
 0x73e   :  { %v9760_v33 = vpop.f32.mrf.mxu0 }
 0x73f   :  { %v9795_v21 = vmax.f32 %v9791_v5, 0.0  ;;  %v9792_v4 = vadd.f32 %v9783_v62, %v9759_v59  ;;  %v9761_v52 = vadd.f32 %v9760_v33, %v9718_v44  ;;  %v9810_v39 = vmul.f32 %v9803_v42, %v9794_v47 }
 0x741   :  { %v9796_v57 = vmax.f32 %v9792_v4, 0.0  ;;  %v9793_v11 = vadd.f32 %v9787_v34, %v9761_v52  ;;  %v9811_v8 = vmul.f32 %v9807_v55, %v9795_v21 }
 0x743   :  { %v9797_v3 = vmax.f32 %v9793_v11, 0.0  ;;  %v9814_v17 = vadd.f32 %v9811_v8, %v9810_v39  ;;  %v9812_v53 = vmul.f32 %v9803_v42, %v9796_v57 }
 0x745   :  { %9815 = vadd.xlane.f32.xlu0 %v9814_v17  ;;  %v9813_v28 = vmul.f32 %v9807_v55, %v9797_v3 }
 0x747   :  { %v9817_v15 = vadd.f32 %v9813_v28, %v9812_v53 }
 0x749   :  { %9818 = vadd.xlane.f32.xlu1 %v9817_v15 }
 0x7ce   :  { %v9816_v22 = vpop.xlane.xlu0 %9815 }
 0x7cf   :  { %v9827_v38 = vadd.f32 %v11019_v61, %v9816_v22 }
 0x7d1   :  { %9830 = vst.msk [vmem:[%s13825_s12] sm:$0xff] %vm9829_vm9, %v9827_v38 }
 0x7d2   :  { %v9819_v56 = vpop.xlane.xlu1 %9818 }
 0x7d3   :  { %v9828_v51 = vadd.f32 %v11019_v61, %v9819_v56 }
 0x7d5   :  { %9831 = vst.msk [vmem:[%s13825_s12 + $0x8] sm:$0xff] %vm9829_vm9, %v9828_v51 }
 0x7d6   :  { %9836 = vsyncpa [#allocation7], 1 }
 0x7d7   :  { %9837 = vsyncpa [#allocation9], 1 }
 0x7d8   :  { %9838 = vsyncpa [#allocation12], 1 }
 0x7d9   :  { %9839 = vsyncpa [#allocation15], 1 }

</bundles_post_ra>
